<compile_context>
chip_gen: v7x
topology: tpu7x:2x2x1
jax: 0.10.0
libtpu: 0.0.40
codegen_flags: <defaults>
</compile_context>

<pallas_src>
import functools

import jax
import jax.numpy as jnp
from jax.experimental import pallas as pl
from jax.experimental.pallas import tpu as pltpu

LANE = 128


def _pad_up(d, m=LANE):
    return ((d + m - 1) // m) * m


def _vmem_limit_bytes():
    # Per-generation scoped-VMEM budget: ~75% of physical per-core VMEM
    # (96 MiB on v5e/v6e, 48 MiB on v7x).  Conservative fallback = v7x figure.
    cap = 64 * 1024 * 1024
    try:
        info_cap = int(pltpu.get_tpu_info().vmem_capacity_bytes)
        if 16 * 1024 * 1024 <= info_cap <= 256 * 1024 * 1024:
            cap = info_cap
    except Exception:
        pass
    return min((cap * 3) // 4, 100 * 1024 * 1024)


VMEM_LIMIT = _vmem_limit_bytes()


def _largest_divisor(n, cands):
    for c in cands:
        if n % c == 0:
            return c
    return n


def _pick_tiles(n, f_in_max, out_lanes_max):
    """(tm, tk): node-row output tile and contraction (source-node) tile."""
    tm = _largest_divisor(n, (512, 256, 128, 64, 32, 16, 8))
    budget = int(VMEM_LIMIT * 0.8)
    tk = None
    for cand in (2048, 1024, 512, 256, 128, 64, 32, 16, 8):
        if n % cand:
            continue
        need = (tm * cand * 2 * 2                    # A bf16, double-buffered
                + cand * f_in_max * 2 * 2            # X bf16, double-buffered
                + f_in_max * out_lanes_max * 2 * 2   # resident W (x2 safety)
                + tm * out_lanes_max * 4             # f32 accumulator scratch
                + tm * out_lanes_max * 2 * 2)        # out tile, double-buffered
        if need <= budget:
            tk = cand
            break
    if tk is None:
        tk = _largest_divisor(n, (256, 128, 64, 32, 16, 8))
    return tm, tk


# ----------------------------------------------------------------------------
# Pallas kernels
# ----------------------------------------------------------------------------
def _gcn_layer_kernel(a_ref, x_ref, w_ref, b_ref, o_ref, acc_ref, *,
                      apply_act, prelu_alpha):
    """One contraction step of out = act(A @ (X @ W) + b) for one row-tile."""
    k = pl.program_id(1)

    @pl.when(k == 0)
    def _():
        acc_ref[...] = jnp.zeros_like(acc_ref)

    # X@W folded into the k-loop: recomputed once per row-tile but rides on
    # MXU slack — the pass is HBM-bound on the streamed A tiles.
    xw = jnp.dot(x_ref[...], w_ref[...],
                 preferred_element_type=jnp.float32).astype(jnp.bfloat16)
    acc_ref[...] += jnp.dot(a_ref[...], xw, preferred_element_type=jnp.float32)

    @pl.when(k == pl.num_programs(1) - 1)
    def _():
        h = acc_ref[...] + b_ref[...]
        if apply_act:  # PReLU (PyTorch init slope 0.25; learnable in torch)
            h = jnp.where(h >= 0.0, h, prelu_alpha * h)
        o_ref[...] = h.astype(o_ref.dtype)


def gcn_layer(a_bf, x_bf, w_bf, b_f32, *, apply_act, prelu_alpha, out_dtype,
              tm, tk):
    """act(A_norm @ (X @ W) + b); A and X streamed, W/b resident, f32 acc."""
    n = a_bf.shape[0]
    f_in = x_bf.shape[1]
    f_out = w_bf.shape[1]
    assert a_bf.shape == (n, n) and n % tm == 0 and n % tk == 0
    steps_i = n // tm
    kern = functools.partial(_gcn_layer_kernel, apply_act=apply_act,
                             prelu_alpha=prelu_alpha)
    cost = pl.CostEstimate(
        flops=2 * n * n * f_out + 2 * steps_i * n * f_in * f_out,
        transcendentals=0,
        bytes_accessed=n * n * 2 + steps_i * n * f_in * 2 + n * f_out * 2)
    return pl.pallas_call(
        kern,
        out_shape=jax.ShapeDtypeStruct((n, f_out), out_dtype),
        grid_spec=pltpu.PrefetchScalarGridSpec(
            num_scalar_prefetch=0,
            grid=(n // tm, n // tk),
            in_specs=[pl.BlockSpec((tm, tk), lambda i, k: (i, k)),       # A stream
                      pl.BlockSpec((tk, f_in), lambda i, k: (k, 0)),     # X stream
                      pl.BlockSpec((f_in, f_out), lambda i, k: (0, 0)),  # W resident
                      pl.BlockSpec((1, f_out), lambda i, k: (0, 0))],    # bias
            out_specs=pl.BlockSpec((tm, f_out), lambda i, k: (i, 0)),
            scratch_shapes=[pltpu.VMEM((tm, f_out), jnp.float32)]),
        compiler_params=pltpu.CompilerParams(
            dimension_semantics=("parallel", "arbitrary"),
            vmem_limit_bytes=VMEM_LIMIT),
        cost_estimate=cost,
    )(a_bf, x_bf, w_bf, b_f32)


def _decoder_fused_kernel(a_ref, x_ref, w_ref, b_ref, clean_ref, o_ref,
                          acc_ref, *, f_out):
    """Shared-A pass for decoder and decoder_ema:
         recon       = A @ (rep @ W) + b
         recon_clean = A @ ((rep * (1-mask)) @ W) + b
       decoder_ema == decoder at this forward (load_state_dict at init;
       ema_update runs only after the loss), and row-zeroing of rep commutes
       with the right-matmul, so the clean branch reuses XW with a row mask."""
    k = pl.program_id(1)

    @pl.when(k == 0)
    def _():
        acc_ref[...] = jnp.zeros_like(acc_ref)

    xw = jnp.dot(x_ref[...], w_ref[...], preferred_element_type=jnp.float32)
    a = a_ref[...]
    acc_ref[:, :f_out] += jnp.dot(a, xw.astype(jnp.bfloat16),
                                  preferred_element_type=jnp.float32)
    acc_ref[:, f_out:] += jnp.dot(a, (xw * clean_ref[...]).astype(jnp.bfloat16),
                                  preferred_element_type=jnp.float32)

    @pl.when(k == pl.num_programs(1) - 1)
    def _():
        o_ref[...] = (acc_ref[...] + b_ref[...]).astype(o_ref.dtype)


def decoder_fused(a_bf, rep_bf, w_bf, b_cat, clean_col, *, tm, tk):
    n = a_bf.shape[0]
    f_in = rep_bf.shape[1]
    f_out = w_bf.shape[1]
    assert a_bf.shape == (n, n) and n % tm == 0 and n % tk == 0
    steps_i = n // tm
    kern = functools.partial(_decoder_fused_kernel, f_out=f_out)
    cost = pl.CostEstimate(
        flops=4 * n * n * f_out + 2 * steps_i * n * f_in * f_out,
        transcendentals=0,
        bytes_accessed=n * n * 2 + steps_i * n * f_in * 2 + n * 2 * f_out * 2)
    return pl.pallas_call(
        kern,
        out_shape=jax.ShapeDtypeStruct((n, 2 * f_out), jnp.bfloat16),
        grid_spec=pltpu.PrefetchScalarGridSpec(
            num_scalar_prefetch=0,
            grid=(n // tm, n // tk),
            in_specs=[pl.BlockSpec((tm, tk), lambda i, k: (i, k)),        # A stream
                      pl.BlockSpec((tk, f_in), lambda i, k: (k, 0)),      # rep stream
                      pl.BlockSpec((f_in, f_out), lambda i, k: (0, 0)),   # W resident
                      pl.BlockSpec((1, 2 * f_out), lambda i, k: (0, 0)),  # bias (dup)
                      pl.BlockSpec((tk, 1), lambda i, k: (k, 0))],        # keep mask
            out_specs=pl.BlockSpec((tm, 2 * f_out), lambda i, k: (i, 0)),
            scratch_shapes=[pltpu.VMEM((tm, 2 * f_out), jnp.float32)]),
        compiler_params=pltpu.CompilerParams(
            dimension_semantics=("parallel", "arbitrary"),
            vmem_limit_bytes=VMEM_LIMIT),
        cost_estimate=cost,
    )(a_bf, rep_bf, w_bf, b_cat, clean_col)


def _linear_kernel(x_ref, w_ref, o_ref):
    o_ref[...] = jnp.dot(x_ref[...], w_ref[...],
                         preferred_element_type=jnp.float32).astype(o_ref.dtype)


def linear_tiled(x, w, *, out_dtype, tm):
    """out = x @ w (bias-free), tiled over node rows; W resident in VMEM."""
    n, f_in = x.shape
    f_out = w.shape[1]
    assert n % tm == 0
    return pl.pallas_call(
        _linear_kernel,
        out_shape=jax.ShapeDtypeStruct((n, f_out), out_dtype),
        grid_spec=pltpu.PrefetchScalarGridSpec(
            num_scalar_prefetch=0,
            grid=(n // tm,),
            in_specs=[pl.BlockSpec((tm, f_in), lambda i: (i, 0)),
                      pl.BlockSpec((f_in, f_out), lambda i: (0, 0))],
            out_specs=pl.BlockSpec((tm, f_out), lambda i: (i, 0))),
        compiler_params=pltpu.CompilerParams(
            dimension_semantics=("parallel",),
            vmem_limit_bytes=VMEM_LIMIT),
    )(x, w)


def _loss_kernel(rc_ref, x_ref, m_ref, o_ref, sce_acc, mse_acc, *,
                 f_pad, f_true, alpha, lamda, n_mask, n_keep):
    i = pl.program_id(0)

    @pl.when(i == 0)
    def _():
        sce_acc[...] = jnp.zeros_like(sce_acc)
        mse_acc[...] = jnp.zeros_like(mse_acc)

    recon = rc_ref[:, :f_pad].astype(jnp.float32)        # bf16 -> f32 in VMEM
    recon_clean = rc_ref[:, f_pad:].astype(jnp.float32)
    xt = x_ref[...]
    m = m_ref[...]                                        # (tm,1): 1.0 = masked
    keep = 1.0 - m
    # sce_loss: row-wise L2 normalize, (1 - cos)^alpha, mean over masked rows.
    rn = recon * jax.lax.rsqrt(jnp.sum(recon * recon, axis=-1, keepdims=True) + 1e-12)
    xn = xt * jax.lax.rsqrt(jnp.sum(xt * xt, axis=-1, keepdims=True) + 1e-12)
    cos = jnp.sum(rn * xn, axis=-1, keepdims=True)
    base = jnp.maximum(1.0 - cos, 0.0)   # clamp: fp noise can push cos above 1
    sce_t = base * base if float(alpha) == 2.0 else jnp.power(base, alpha)
    sce_acc[...] += jnp.sum(sce_t * m).reshape(1, 1)
    # MSE(recon_clean[keep], recon[keep]) over the true feature dim.
    diff = (recon_clean - recon) * keep
    mse_acc[...] += jnp.sum(diff * diff).reshape(1, 1)

    @pl.when(i == pl.num_programs(0) - 1)
    def _():
        o_ref[...] = sce_acc[...] / n_mask + lamda * (mse_acc[...] / (n_keep * f_true))


def fused_loss_tiled(recon_cat, x_pad, mask_col, *, f_pad, f_true, alpha,
                     lamda, n_mask, n_keep, tm):
    n = x_pad.shape[0]
    assert n % tm == 0
    kern = functools.partial(_loss_kernel, f_pad=f_pad, f_true=float(f_true),
                             alpha=float(alpha), lamda=float(lamda),
                             n_mask=float(n_mask), n_keep=float(n_keep))
    return pl.pallas_call(
        kern,
        out_shape=jax.ShapeDtypeStruct((1, 1), jnp.float32),
        grid_spec=pltpu.PrefetchScalarGridSpec(
            num_scalar_prefetch=0,
            grid=(n // tm,),
            in_specs=[pl.BlockSpec((tm, 2 * f_pad), lambda i: (i, 0)),
                      pl.BlockSpec((tm, f_pad), lambda i: (i, 0)),
                      pl.BlockSpec((tm, 1), lambda i: (i, 0))],
            out_specs=pl.BlockSpec((1, 1), lambda i: (0, 0)),
            scratch_shapes=[pltpu.VMEM((1, 1), jnp.float32),
                            pltpu.VMEM((1, 1), jnp.float32)]),
        compiler_params=pltpu.CompilerParams(
            dimension_semantics=("arbitrary",),
            vmem_limit_bytes=VMEM_LIMIT),
    )(recon_cat, x_pad, mask_col)


# ----------------------------------------------------------------------------
# Parameter / constant setup (deterministic, in-script)
# ----------------------------------------------------------------------------
def init_params(key, in_dim, num_hidden, num_layers, timestep):
    keys = jax.random.split(key, num_layers + 2)
    enc_layers = []
    d_in = in_dim
    for l in range(num_layers):
        w = (jax.random.normal(keys[l], (d_in, num_hidden), jnp.float32)
             / jnp.sqrt(jnp.float32(d_in)))
        b = jnp.zeros((num_hidden,), jnp.float32)
        enc_layers.append((w, b))
        d_in = num_hidden
    e2d_w = (jax.random.normal(keys[num_layers], (num_hidden, num_hidden), jnp.float32)
             / jnp.sqrt(jnp.float32(num_hidden)))
    dec_w = (jax.random.normal(keys[num_layers + 1], (num_hidden, in_dim), jnp.float32)
             / jnp.sqrt(jnp.float32(num_hidden)))
    dec_b = jnp.zeros((in_dim,), jnp.float32)

    # GaussianDiffusion tables (linear beta schedule).
    scale = 1000.0 / timestep
    betas = jnp.linspace(scale * 1e-4, scale * 0.02, timestep, dtype=jnp.float32)
    alphas_cumprod = jnp.cumprod(1.0 - betas)
    return {
        "enc_layers": enc_layers,
        "e2d_w": e2d_w,
        "dec_layer": (dec_w, dec_b),
        # nn.Parameter(torch.zeros(...)) in the reference:
        "enc_mask_token": jnp.zeros((1, in_dim), jnp.float32),
        "re_enc_mask_token": jnp.zeros((1, num_hidden), jnp.float32),
        "sqrt_acp": jnp.sqrt(alphas_cumprod),
        "sqrt_omacp": jnp.sqrt(1.0 - alphas_cumprod),
    }


def positional_encoding(t, d_model):
    pos = t.astype(jnp.float32)[:, None]
    i = jnp.arange(0, d_model, 2, dtype=jnp.float32)
    div = jnp.exp(-jnp.log(10000.0) * i / d_model)
    ang = pos * div[None, :]
    pe = jnp.zeros((t.shape[0], d_model), jnp.float32)
    pe = pe.at[:, 0::2].set(jnp.sin(ang))
    pe = pe.at[:, 1::2].set(jnp.cos(ang))
    return pe


def _rows_to_col(idx, n):
    return jnp.zeros((n, 1), jnp.float32).at[idx].set(1.0)


def _pad2(a, rows, cols):
    return jnp.pad(a, ((0, rows - a.shape[0]), (0, cols - a.shape[1])))


# ----------------------------------------------------------------------------
# PreModel.forward  (== mask_attr_prediction; returns the scalar loss)
# ----------------------------------------------------------------------------
def pre_model_forward(params, a_norm_bf16, x, key, *, num_hidden, mask_rate=0.3,
                      remask_rate=0.6, replace_rate=0.1, start_t=9000,
                      timestep=10000, alpha_l=2, lamda_loss=0.1, prelu_alpha=0.25):
    N, in_dim = x.shape
    f_in_pad = _pad_up(in_dim)
    h_pad = _pad_up(num_hidden)
    # A_norm is persisted/passed in bf16 (hoisted cast); no per-forward cast.
    a_bf = a_norm_bf16 if a_norm_bf16.dtype == jnp.bfloat16 else a_norm_bf16.astype(jnp.bfloat16)
    tm, tk = _pick_tiles(N, max(f_in_pad, h_pad), max(h_pad, 2 * f_in_pad))
    tm_lin = _largest_divisor(N, (2048, 1024, 512, 256, 128, 64, 32, 16, 8))
    k1, k2, k3, k4, k5, k6 = jax.random.split(key, 6)

    # ---- encoding_mask_noise (index bookkeeping; Python-static counts) ------
    perm = jax.random.permutation(k1, N)
    num_mask = int(mask_rate * N)
    mask_nodes = perm[:num_mask]
    num_remask = int(remask_rate * num_mask)
    perm_index = jax.random.permutation(k2, num_mask)
    remask_nodes = mask_nodes[perm_index[:num_remask]]
    num_noise = int(replace_rate * num_mask)
    num_token = int((1.0 - replace_rate) * num_mask)
    perm_mask = jax.random.permutation(k3, num_mask)
    token_nodes = mask_nodes[perm_mask[:num_token]]
    noise_nodes = mask_nodes[perm_mask[num_mask - num_noise:]]
    noise_src = jax.random.permutation(k4, N)[:num_noise]

    mask_col = _rows_to_col(mask_nodes, N)       # 1.0 for masked rows
    remask_col = _rows_to_col(remask_nodes, N)
    token_col = _rows_to_col(token_nodes, N)

    # ---- lane-dense padded tensors (feature dims -> multiples of 128) -------
    x_pad = jnp.pad(x, ((0, 0), (0, f_in_pad - in_dim)))                 # f32
    enc_tok_pad = _pad2(params["enc_mask_token"], 1, f_in_pad)
    out_x = jnp.where(token_col > 0, enc_tok_pad, x_pad)                 # token rows -> mask token
    out_x = out_x.at[noise_nodes].set(x_pad[noise_src])                  # small row scatter (glue)

    # ---- encoder (fused GCN, Pallas hot path): h = PReLU(A @ (h W) + b) -----
    h = out_x.astype(jnp.bfloat16)
    d_prev_pad = f_in_pad
    for (w, b) in params["enc_layers"]:
        w_pad = _pad2(w, d_prev_pad, h_pad).astype(jnp.bfloat16)
        b_pad = jnp.pad(b, (0, h_pad - b.shape[0])).reshape(1, h_pad).astype(jnp.float32)
        h = gcn_layer(a_bf, h, w_pad, b_pad, apply_act=True,
                      prelu_alpha=prelu_alpha, out_dtype=jnp.bfloat16,
                      tm=tm, tk=tk)
        d_prev_pad = h_pad
    enc_rep = h  # concat_hidden=False

    # ---- encoder_to_decoder (bias-free linear, Pallas; bf16 end-to-end) -----
    e2d_w_pad = _pad2(params["e2d_w"], h_pad, h_pad).astype(jnp.bfloat16)
    rep = linear_tiled(enc_rep, e2d_w_pad, out_dtype=jnp.bfloat16, tm=tm_lin)
    # rep[keep_nodes] = F.dropout(rep[keep_nodes], p=0.0) -> identity

    # ---- diffusion noising of masked rows (dense, mask-selected, fused XLA) --
    t_all = jax.random.randint(k5, (N,), start_t, timestep)
    t_f = t_all.astype(jnp.float32)
    sqrt_acp_t = params["sqrt_acp"][t_all][:, None]
    sqrt_om_t = params["sqrt_omacp"][t_all][:, None]
    noise = jax.random.normal(k6, (N, num_hidden), jnp.float32)
    noise_pad = jnp.pad(noise, ((0, 0), (0, h_pad - num_hidden)))
    pe_pad = jnp.pad(positional_encoding(t_all, num_hidden),
                     ((0, 0), (0, h_pad - num_hidden)))
    re_tok_pad = _pad2(params["re_enc_mask_token"], 1, h_pad)
    rep_f32 = rep.astype(jnp.float32)
    # q_sample(rep, t) * (1/t): division by raw t is taken verbatim from the
    # PyTorch reference (non-standard DDPM, but that is what the module does).
    noised = (sqrt_acp_t * rep_f32 + sqrt_om_t * noise_pad) / t_f[:, None]
    rep_dec = jnp.where(mask_col > 0, noised + pe_pad + re_tok_pad, rep_f32)
    rep_dec = jnp.where(remask_col > 0, 0.0, rep_dec).astype(jnp.bfloat16)

    # ---- decoder + decoder_ema fused: one A_norm pass, 256-lane bf16 output --
    dec_w, dec_b = params["dec_layer"]
    dec_w_pad = _pad2(dec_w, h_pad, f_in_pad).astype(jnp.bfloat16)
    dec_b_pad = jnp.pad(dec_b, (0, f_in_pad - in_dim)).astype(jnp.float32)
    dec_b_cat = jnp.concatenate([dec_b_pad, dec_b_pad]).reshape(1, 2 * f_in_pad)
    clean_col = 1.0 - mask_col                   # recon_clean zeroes masked rows of rep
    recon_cat = decoder_fused(a_bf, rep_dec, dec_w_pad, dec_b_cat, clean_col,
                              tm=tm, tk=tk)      # [:, :128]=recon, [:, 128:]=recon_clean

    # ---- loss: sce(recon[mask], x[mask]) + lamda * mse(clean[keep], recon[keep])
    loss = fused_loss_tiled(recon_cat, x_pad, mask_col, f_pad=f_in_pad,
                            f_true=in_dim, alpha=alpha_l, lamda=lamda_loss,
                            n_mask=num_mask, n_keep=N - num_mask, tm=tm_lin)
    # TODO(synk): ema_update() mutates decoder_ema params (training-time state);
    # at init decoder_ema == decoder so it does not affect this forward's loss.
    return loss[0, 0]


# ----------------------------------------------------------------------------
if __name__ == "__main__":
    # Shapes chosen so the tiled grids exercise both the row axis and a
    # multi-step contraction (tm=512, tk=2048 -> spmm grid (8, 2)).
    N = 4096         # graph nodes
    IN_DIM = 16      # node feature dim
    NUM_HIDDEN = 32
    NUM_LAYERS = 2
    TIMESTEP = 10000
    START_T = 9000

    root = jax.random.PRNGKey(0)
    k_param, k_graph, k_feat, k_fwd = jax.random.split(root, 4)

    params = init_params(k_param, IN_DIM, NUM_HIDDEN, NUM_LAYERS, TIMESTEP)

    # Deterministic random undirected graph -> symmetric normalized adjacency.
    adj = (jax.random.uniform(k_graph, (N, N)) < 0.01).astype(jnp.float32)
    adj = jnp.maximum(adj, adj.T)
    adj = adj.at[jnp.arange(N), jnp.arange(N)].set(0.0)
    a_hat = adj + jnp.eye(N, dtype=jnp.float32)
    d_inv_sqrt = 1.0 / jnp.sqrt(a_hat.sum(-1))
    a_norm = a_hat * d_inv_sqrt[:, None] * d_inv_sqrt[None, :]
    # Persist A_norm in bf16 once, outside the forward (hoisted cast).
    a_norm_bf16 = a_norm.astype(jnp.bfloat16)
    a_norm_bf16 = jax.block_until_ready(a_norm_bf16)

    x = jax.random.normal(k_feat, (N, IN_DIM), jnp.float32)

    loss = pre_model_forward(
        params, a_norm_bf16, x, k_fwd,
        num_hidden=NUM_HIDDEN, mask_rate=0.3, remask_rate=0.6, replace_rate=0.1,
        start_t=START_T, timestep=TIMESTEP, alpha_l=2, lamda_loss=0.1,
    )
    loss = jax.block_until_ready(loss)
    assert jnp.isfinite(loss)
    print("KERNEL_OK")
</pallas_src>

<mosaic_0001>
module attributes {stable_mosaic.version = 11 : i64} {
  func.func @_gcn_layer_kernel(%arg0: i32, %arg1: i32, %arg2: memref<512x2048xbf16, #tpu.memory_space<vmem>>, %arg3: memref<2048x128xbf16, #tpu.memory_space<vmem>>, %arg4: memref<128x128xbf16, #tpu.memory_space<vmem>>, %arg5: memref<1x128xf32, #tpu.memory_space<vmem>>, %arg6: memref<512x128xbf16, #tpu.memory_space<vmem>>, %arg7: memref<512x128xf32, #tpu.memory_space<vmem>>) attributes {dimension_semantics = [#tpu.dimension_semantics<parallel>, #tpu.dimension_semantics<arbitrary>], iteration_bounds = array<i64: 8, 2>, scalar_prefetch = 0 : i64, scratch_operands = 1 : i64, tpu.core_type = #tpu.core_type<tc>, window_params = [{transform_indices = @transform_0, window_bounds = array<i64: 512, 2048>}, {transform_indices = @transform_1, window_bounds = array<i64: 2048, 128>}, {pipeline_mode = #tpu.pipeline_mode<synchronous>, transform_indices = @transform_2, window_bounds = array<i64: 128, 128>}, {pipeline_mode = #tpu.pipeline_mode<synchronous>, transform_indices = @transform_3, window_bounds = array<i64: 1, 128>}, {transform_indices = @transform_4, window_bounds = array<i64: 512, 128>}]} {
    %c0_i32 = arith.constant 0 : i32
    %0 = arith.cmpi eq, %arg1, %c0_i32 : i32
    %1 = arith.extui %0 : i1 to i32
    %c0_i32_0 = arith.constant 0 : i32
    %2 = arith.cmpi ne, %1, %c0_i32_0 : i32
    scf.if %2 {
      %cst_12 = arith.constant 0.000000e+00 : f32
      %15 = vector.broadcast %cst_12 : f32 to vector<512x128xf32>
      %c0_13 = arith.constant 0 : index
      %c0_14 = arith.constant 0 : index
      %16 = vector.load %arg7[%c0_13, %c0_14] : memref<512x128xf32, #tpu.memory_space<vmem>>, vector<512x128xf32>
      tpu.vector_store %arg7[%c0_13, %c0_14], %15 {strides = array<i32>} : memref<512x128xf32, #tpu.memory_space<vmem>>, vector<512x128xf32>,
    } else {
    }
    %c0 = arith.constant 0 : index
    %c0_1 = arith.constant 0 : index
    %3 = vector.load %arg3[%c0, %c0_1] : memref<2048x128xbf16, #tpu.memory_space<vmem>>, vector<2048x128xbf16>
    %c0_2 = arith.constant 0 : index
    %c0_3 = arith.constant 0 : index
    %4 = vector.load %arg4[%c0_2, %c0_3] : memref<128x128xbf16, #tpu.memory_space<vmem>>, vector<128x128xbf16>
    %cst = arith.constant dense<0.000000e+00> : vector<2048x128xf32>
    %5 = tpu.matmul %3, %4, %cst {dimension_numbers = #tpu.dot_dimension_numbers<[1], [0], [0], [1], [0, 0, 1, 1], [], []>} : vector<2048x128xbf16>, vector<128x128xbf16>, vector<2048x128xf32> -> vector<2048x128xf32>
    %6 = arith.truncf %5 : vector<2048x128xf32> to vector<2048x128xbf16>
    %c0_4 = arith.constant 0 : index
    %c0_5 = arith.constant 0 : index
    %7 = vector.load %arg7[%c0_4, %c0_5] : memref<512x128xf32, #tpu.memory_space<vmem>>, vector<512x128xf32>
    %c0_6 = arith.constant 0 : index
    %c0_7 = arith.constant 0 : index
    %8 = vector.load %arg2[%c0_6, %c0_7] : memref<512x2048xbf16, #tpu.memory_space<vmem>>, vector<512x2048xbf16>
    %cst_8 = arith.constant dense<0.000000e+00> : vector<512x128xf32>
    %9 = tpu.matmul %8, %6, %cst_8 {dimension_numbers = #tpu.dot_dimension_numbers<[1], [0], [0], [1], [0, 0, 1, 1], [], []>} : vector<512x2048xbf16>, vector<2048x128xbf16>, vector<512x128xf32> -> vector<512x128xf32>
    %10 = arith.addf %7, %9 : vector<512x128xf32>
    %c0_9 = arith.constant 0 : index
    %c0_10 = arith.constant 0 : index
    %11 = vector.load %arg7[%c0_9, %c0_10] : memref<512x128xf32, #tpu.memory_space<vmem>>, vector<512x128xf32>
    tpu.vector_store %arg7[%c0_9, %c0_10], %10 {strides = array<i32>} : memref<512x128xf32, #tpu.memory_space<vmem>>, vector<512x128xf32>,
    %c1_i32 = arith.constant 1 : i32
    %12 = arith.cmpi eq, %arg1, %c1_i32 : i32
    %13 = arith.extui %12 : i1 to i32
    %c0_i32_11 = arith.constant 0 : i32
    %14 = arith.cmpi ne, %13, %c0_i32_11 : i32
    scf.if %14 {
      %c0_12 = arith.constant 0 : index
      %c0_13 = arith.constant 0 : index
      %15 = vector.load %arg7[%c0_12, %c0_13] : memref<512x128xf32, #tpu.memory_space<vmem>>, vector<512x128xf32>
      %c0_14 = arith.constant 0 : index
      %c0_15 = arith.constant 0 : index
      %16 = vector.load %arg5[%c0_14, %c0_15] : memref<1x128xf32, #tpu.memory_space<vmem>>, vector<1x128xf32>
      %17 = vector.broadcast %16 : vector<1x128xf32> to vector<512x128xf32>
      %18 = arith.addf %15, %17 : vector<512x128xf32>
      %cst_16 = arith.constant 0.000000e+00 : f32
      %19 = vector.broadcast %cst_16 : f32 to vector<512x128xf32>
      %20 = arith.cmpf oge, %18, %19 : vector<512x128xf32>
      %cst_17 = arith.constant 2.500000e-01 : f32
      %21 = vector.broadcast %cst_17 : f32 to vector<512x128xf32>
      %22 = arith.mulf %21, %18 : vector<512x128xf32>
      %23 = arith.select %20, %18, %22 : vector<512x128xi1>, vector<512x128xf32>
      %24 = arith.truncf %23 : vector<512x128xf32> to vector<512x128xbf16>
      %c0_18 = arith.constant 0 : index
      %c0_19 = arith.constant 0 : index
      %25 = vector.load %arg6[%c0_18, %c0_19] : memref<512x128xbf16, #tpu.memory_space<vmem>>, vector<512x128xbf16>
      tpu.vector_store %arg6[%c0_18, %c0_19], %24 {strides = array<i32>} : memref<512x128xbf16, #tpu.memory_space<vmem>>, vector<512x128xbf16>,
    } else {
    }
    return
  }
  func.func @transform_0(%arg0: i32, %arg1: i32) -> (i32, i32) {
    %c0_i32 = arith.constant 0 : i32
    return %arg0, %arg1 : i32, i32
  }
  func.func @transform_1(%arg0: i32, %arg1: i32) -> (i32, i32) {
    %c0_i32 = arith.constant 0 : i32
    %c0_i32_0 = arith.constant 0 : i32
    return %arg1, %c0_i32 : i32, i32
  }
  func.func @transform_2(%arg0: i32, %arg1: i32) -> (i32, i32) {
    %c0_i32 = arith.constant 0 : i32
    %c0_i32_0 = arith.constant 0 : i32
    %c0_i32_1 = arith.constant 0 : i32
    return %c0_i32, %c0_i32_0 : i32, i32
  }
  func.func @transform_3(%arg0: i32, %arg1: i32) -> (i32, i32) {
    %c0_i32 = arith.constant 0 : i32
    %c0_i32_0 = arith.constant 0 : i32
    %c0_i32_1 = arith.constant 0 : i32
    return %c0_i32, %c0_i32_0 : i32, i32
  }
  func.func @transform_4(%arg0: i32, %arg1: i32) -> (i32, i32) {
    %c0_i32 = arith.constant 0 : i32
    %c0_i32_0 = arith.constant 0 : i32
    return %arg0, %c0_i32 : i32, i32
  }
}

</mosaic_0001>

<bundles_post_ra>
// kernel: tpu_custom_call.1
= control target key start
LH: loop header
LB: loop body
LE: loop exit
PB: predicated region body
PF: predicated region fallthrough
CT: control target
= control target key end

     0   :  { %s14356_s0 = inlined_call_operand.hbm [shape: bf16[4096,4096], index: 0, kind: input, shape index: {}]   ;;  %s14357_s1 = inlined_call_operand.hbm [shape: bf16[4096,128], index: 1, kind: input, shape index: {}]   ;;  %s14358_s2 = inlined_call_operand.hbm [shape: bf16[128,128], index: 2, kind: input, shape index: {}]   ;;  %s14359_s3 = inlined_call_operand.hbm [shape: f32[1,128], index: 3, kind: input, shape index: {}]   ;;  %s14360_s4 = inlined_call_operand.hbm [shape: bf16[4096,128], index: 4, kind: output, shape index: {}]  }
   0x1   :  { %14446 = sst [smem:[#allocation137_spill]] %s14356_s0 }
   0x2   :  { %14447 = sst [smem:[#allocation138_spill]] %s14358_s2 }
   0x3   :  { %14448 = sst [smem:[#allocation139_spill]] %s14359_s3 }
   0x4   :  { %14449 = sst [smem:[#allocation140_spill]] %s14360_s4 }
   0x5   :  { %9 = vsyncpa [#allocation4], 0 }
   0x6   :  { %11 = vsyncpa [#allocation4 + $0x1], 0 }
   0x7   :  { %12 = vsyncpa [#allocation7], 0 }
   0x8   :  { %14 = vsyncpa [#allocation7 + $0x1], 0 }
   0x9   :  { %15 = vsyncpa [#allocation10], 0 }
   0xa   :  { %16 = vsyncpa [#allocation5], 0 }
   0xb   :  { %18 = vsyncpa [#allocation5 + $0x1], 0  ;;  %s11064_s15 = smov 0   ;;  %s11066_s16 = smov 0  }
   0xc   :  { %s11068_s17 = smov 0   ;;  %s11070_s18 = smov 0  }
   0xd   :  { %s11072_s19 = smov 0   ;;  %s11074_s20 = smov 0  }
   0xe   :  { %s11076_s21 = smov 0   ;;  %s11078_s22 = smov 0  }
   0xf   :  { %s11080_s23 = smov 0   ;;  %s11082_s24 = smov 0  }
  0x10   :  { %s11084_s25 = smov 0   ;;  %s11086_s26 = smov 0  }
  0x11   :  { %s11088_s27 = smov 0   ;;  %s11090_s28 = smov 0  }
  0x12 LB: > { %14450 = sst [smem:[#allocation17_spill]] %s10972_s15  ;;  %s11131_s29 = sadd.s32 4294967295, %s11024_s28   ;;  %s11024_s28 = sphi %s11090_s28, %s24_s28   ;;  %s11020_s27 = sphi %s11088_s27, %s14978_s27   ;;  %s11016_s26 = sphi %s11086_s26, %s14990_s26   ;;  %s11012_s25 = sphi %s11084_s25, %s14989_s25   ;;  %s11008_s24 = sphi %s11082_s24, %s14988_s24   ;;  %s11004_s23 = sphi %s11080_s23, %s14987_s23   ;;  %s11000_s22 = sphi %s11078_s22, %s14986_s22   ;;  %s10996_s21 = sphi %s11076_s21, %s14985_s21   ;;  %s10992_s20 = sphi %s11074_s20, %s14984_s20   ;;  %s10988_s19 = sphi %s11072_s19, %s14983_s19   ;;  %s10984_s18 = sphi %s11070_s18, %s14982_s18   ;;  %s10980_s17 = sphi %s11068_s17, %s14981_s17   ;;  %s10976_s16 = sphi %s11066_s16, %s14980_s16   ;;  %s10972_s15 = sphi %s11064_s15, %s14974_s15  }
  0x13   : > { %14451 = sst [smem:[#allocation18_spill]] %s10976_s16  ;;  %s9017_s30 = sadd.s32 4294967294, %s11024_s28  }
  0x14   : > { %14452 = sst [smem:[#allocation19_spill]] %s11008_s24  ;;  %p58_p0 = scmp.ne.s32.totalorder %s11000_s22, %s10996_s21 }
  0x15   : > { %14453 = sst [smem:[#allocation20_spill]] %s11012_s25  ;;  %p14364_p1 = scmp.eq.s32.totalorder %s11131_s29, 0 }
  0x16   : > { %14454 = sst [smem:[#allocation21_spill]] %s11020_s27  ;;  %p84_p2 = scmp.ne.s32.totalorder %s10988_s19, %s10984_s18 }
  0x17   : > { %p11140_p3 = por %p14364_p1, %p58_p0  ;;  %p149_p4 = scmp.ne.s32.totalorder %s10980_s17, %s10976_s16 }
  0x18   : > { %p11148_p5 = por %p84_p2, %p14364_p1  ;;  %p150_p6 = scmp.eq.s32.totalorder %s11131_s29, 15 }
  0x19   : > { %s14455_s6 = scalar_select %p11140_p3, 1, 0 }
  0x1a   : > { %s14456_s7 = scalar_select %p11148_p5, 1, 0 }
  0x1b   : > { %p155_p7 = scmp.ne.s32.totalorder %s10976_s16, %s10972_s15  ;;  %p156_p8 = scmp.eq.s32.totalorder %s9017_s30, 15 }
  0x1c   : > { %p11155_p9 = por %p150_p6, %p149_p4  ;;  %p9018_p10 = scmp.ge.s32.totalorder %s11024_s28, 1 }
  0x1d   : > { %p11160_p11 = por %p156_p8, %p155_p7  ;;  %p163_p12 = scmp.lt.s32.totalorder %s11024_s28, 17 }
  0x1e   : > { %s14457_s8 = scalar_select %p11155_p9, 1, 0 }
  0x1f   : > { %s14459_s9 = scalar_select %p11160_p11, 1, 0 }
  0x20   : > { %14458 = sst [smem:[#allocation22_spill]] %s14457_s8  ;;  %p11165_p13 = pnand %p9018_p10, %p163_p12 }
  0x21   : > { %14460 = sst [smem:[#allocation23_spill]] %s14459_s9  ;;  %s11026_s11 = smov [#allocation8]  }
  0x22   : > { %s14461_s10 = scalar_select %p11165_p13, 1, 0 }
  0x23   : > { %s175_s12 = sshll.u32 %s11026_s11, 4  ;;  %p10468_p0 = pneg %p11165_p13  ;;  %s176_s12 = int_to_ptr.vmem [resolvable:$true] %s175_s12 }
  0x24   : > { %s11027_s14 = smov [#allocation9]   ;;  %s14463_s2 = sld [smem:[#allocation138_spill]] }
  0x25   : > { %p11173_p2 = pnand %p10468_p0, %p14364_p1  ;;  %s189_s18 = sshll.u32 %s11027_s14, 4  ;;  %s11177_s18 = int_to_ptr.vmem [resolvable:$true] %s189_s18 }
  0x27   : > { %p10752_p6 = pneg %p11173_p2 }
  0x2a   : > { %s10750_s5 = scalar_lea.hbm %s14463_s2, 1024 }
  0x2b   : > { %p10751_p4 = scmp.ne.s32.totalorder %s14463_s2, %s10750_s5  ;;  %p10757_p10 = scmp.lt.u32.totalorder %s10750_s5, %s14463_s2 }
  0x2d   : > { %p10753_p7 = pnand %p10752_p6, %p10751_p4 }
  0x2f   : > { %p10754_p8 = pneg %p10753_p7 }
  0x31   : > { %p10759_p12 = pnand %p10757_p10, %p10754_p8 }
  0x33   : > { %10762 = shalt.err (!%p10759_p12)
}
  0x34   : > { %s10763_s14 = scalar_lea.vmem %s176_s12, 1024  ;;  %p10771_p9 = scmp.lt.s32.totalorder %s176_s12, %s176_s12 }
  0x35   : > { %p10764_p0 = scmp.ne.s32.totalorder %s176_s12, %s10763_s14  ;;  %p10772_p5 = scmp.lt.s32.totalorder %s10763_s14, %s10763_s14 }
  0x37   : > { %p10766_p1 = pnand %p10764_p0, %p10752_p6  ;;  %p10773_p3 = por %p10772_p5, %p10771_p9 }
  0x39   : > { %p10767_p11 = pneg %p10766_p1 }
  0x3b   : > { %p10774_p13 = pnand %p10773_p3, %p10767_p11 }
  0x3d   : > { %10777 = shalt.err (!%p10774_p13)
}
  0x3e   : > { %s14372_s9 = smov 64   ;;  %s14371_s21 = smov 4  }
  0x3f   : > { %10471 = dma.hbm_to_vmem [thread:$0]  (!%p11173_p2), %s14463_s2, 1024, %s176_s12, [#allocation7], %s14372_s9, %s14372_s9, %s14371_s21  }
  0x40   : > { %s14464_s3 = sld [smem:[#allocation139_spill]] }
  0x46   : > { %s10778_s11 = scalar_lea.hbm %s14464_s3, 16 }
  0x47   : > { %p10779_p1 = scmp.ne.s32.totalorder %s14464_s3, %s10778_s11  ;;  %p10785_p9 = scmp.lt.u32.totalorder %s10778_s11, %s14464_s3 }
  0x49   : > { %p10781_p3 = pnand %p10779_p1, %p10752_p6 }
  0x4b   : > { %p10782_p5 = pneg %p10781_p3 }
  0x4d   : > { %p10787_p11 = pnand %p10785_p9, %p10782_p5 }
  0x4f   : > { %10790 = shalt.err (!%p10787_p11)
}
  0x50   : > { %s10791_s12 = scalar_lea.vmem %s11177_s18, 16  ;;  %s10798_s8 = scalar_lea.vmem %s11177_s18, 32 }
  0x51   : > { %p10792_p13 = scmp.ne.s32.totalorder %s11177_s18, %s10791_s12  ;;  %p10799_p8 = scmp.lt.s32.totalorder %s11177_s18, %s11177_s18 }
  0x52   : > { %p10800_p10 = scmp.lt.s32.totalorder %s10798_s8, %s10791_s12 }
  0x53   : > { %p10794_p4 = pnand %p10792_p13, %p10752_p6 }
  0x54   : > { %p10801_p12 = por %p10800_p10, %p10799_p8 }
  0x55   : > { %p10795_p7 = pneg %p10794_p4 }
  0x57   : > { %p10802_p0 = pnand %p10801_p12, %p10795_p7 }
  0x59   : > { %10805 = shalt.err (!%p10802_p0)
}
  0x5a   : > { %10474 = dma.hbm_to_vmem [thread:$0]  (!%p11173_p2), %s14464_s3, 16, %s11177_s18, [#allocation10]  }
  0x5b   : > { %s33_s4 = sadd.s32 1, %s11016_s26  ;;  %s36_s15 = sadd.s32 1, %s11020_s27 }
  0x5c   : > { %p34_p6 = scmp.ge.s32.totalorder %s33_s4, 2  ;;  %s45_s13 = sadd.s32 1, %s11004_s23 }
  0x5d   : > { %p52_p1 = scmp.ne.s32.totalorder %s11004_s23, %s11000_s22  ;;  %p14379_p3 = scmp.eq.s32.totalorder %s11024_s28, 0 }
  0x5e   : > { %s14992_s4 = smov (%p34_p6, %s33_s4), 0  ;;  %s14994_s15 = smov (!%p34_p6, %s36_s15), %s11020_s27 }
  0x5f   : > { %14465 = sst [smem:[#allocation24_spill]] %s14992_s4  ;;  %s11241_s5 = ssub.s32 %s11016_s26, %s14992_s4 }
  0x60   : > { %p11245_p2 = por %p14379_p3, %p52_p1  ;;  %p38_p5 = scmp.ge.s32.totalorder %s14994_s15, 8 }
  0x61   : > { %p69_p9 = scmp.eq.s32.totalorder %s11241_s5, 0  ;;  %p14378_p11 = scmp.lt.s32.totalorder %s11024_s28, 16 }
  0x62   : > { %s200_s30 = sand.u32 1, %s11004_s23   ;;  %s14996_s15 = smov (%p38_p5, %s14994_s15), 0 }
  0x63   : > { %14467 = sst [smem:[#allocation25_spill]] %s14996_s15  ;;  %s9022_s11 = sshll.u32 %s200_s30, 12 }
  0x64   : > { %s40_s14 = ssub.s32 %s11020_s27, %s14996_s15  ;;  %s9024_s8 = sshll.u32 %s11016_s26, 4 }
  0x65   : > { %s42_s12 = sor.u32 %s11241_s5, %s40_s14  ;;  %p137_p13 = scmp.eq.s32.totalorder %s40_s14, 0 }
  0x66   : > { %p43_p4 = scmp.eq.s32.totalorder %s42_s12, 0  ;;  %s14468_s24 = sadd.s32 1, %s10980_s17 }
  0x67   : > { %s11261_s25 = scalar_select %p137_p13, %s10980_s17, %s14468_s24  }
  0x68   : > { %s11264_s21 = scalar_select %p43_p4, %s11004_s23, %s45_s13  }
  0x69   : > { %s9756_s9 = sshll.u32 %s11020_s27, 11  ;;  %s204_s2 = scalar_lea.vmem [#allocation3], %s9022_s11 }
  0x6a   : > { %s214_s3 = sshll.u32 %s204_s2, 4  ;;  %s211_s4 = sadd.s32 %s9756_s9, %s9024_s8  ;;  %s11267_s3 = int_to_ptr.vmem [resolvable:$true] %s214_s3 }
  0x6b   : > { %s9026_s16 = sshll.u32 %s211_s4, 6  ;;  %p11273_p7 = pnand %p14378_p11, %p11245_p2 }
  0x6c   : > { %s14470_s0 = sld [smem:[#allocation137_spill]]  ;;  %s11282_s2 = scalar_lea.sflag [#allocation4], %s200_s30 }
  0x6d   : > { %p10808_p10 = pneg %p11273_p7 }
  0x72   : > { %s11280_s13 = scalar_lea.hbm %s14470_s0, %s9026_s16  ;;  %s10811_s11 = scalar_lea.hbm %s14470_s0, 1048576 }
  0x73   : > { %s10806_s9 = scalar_lea.hbm %s11280_s13, 65536  ;;  %p10812_p6 = scmp.lt.u32.totalorder %s11280_s13, %s14470_s0 }
  0x74   : > { %p10807_p8 = scmp.ne.s32.totalorder %s11280_s13, %s10806_s9  ;;  %p10813_p1 = scmp.lt.u32.totalorder %s10811_s11, %s10806_s9 }
  0x75   : > { %p10815_p5 = scmp.lt.u32.totalorder %s10806_s9, %s11280_s13 }
  0x76   : > { %p10809_p12 = pnand %p10808_p10, %p10807_p8  ;;  %p10814_p2 = por %p10813_p1, %p10812_p6 }
  0x78   : > { %p10810_p0 = pneg %p10809_p12  ;;  %p10816_p13 = por %p10815_p5, %p10814_p2 }
  0x7a   : > { %p10817_p4 = pnand %p10816_p13, %p10810_p0 }
  0x7c   : > { %10820 = shalt.err (!%p10817_p4)
}
  0x7d   : > { %s10821_s30 = scalar_lea.vmem %s11267_s3, 65536  ;;  %s11030_s24 = smov [#allocation3]  }
  0x7e   : > { %p10822_p8 = scmp.ne.s32.totalorder %s11267_s3, %s10821_s30  ;;  %s10826_s14 = sshll.u32 %s11030_s24, 4  ;;  %s10827_s14 = int_to_ptr.vmem [resolvable:$false] %s10826_s14 }
  0x7f   : > { %s10828_s12 = scalar_lea.vmem %s10827_s14, 131072  ;;  %p10829_p3 = scmp.lt.s32.totalorder %s11267_s3, %s10827_s14 }
  0x80   : > { %p10824_p12 = pnand %p10822_p8, %p10808_p10  ;;  %p10830_p6 = scmp.lt.s32.totalorder %s10828_s12, %s10821_s30 }
  0x82   : > { %p10825_p11 = pneg %p10824_p12  ;;  %p10831_p1 = por %p10830_p6, %p10829_p3 }
  0x84   : > { %p10832_p2 = pnand %p10831_p1, %p10825_p11 }
  0x86   : > { %10835 = shalt.err (!%p10832_p2)
}
  0x87   : > { %s11031_s9 = smov 2048   ;;  %s11032_s4 = smov 1024  }
  0x88   : > { %s14471_s18 = smov 64   ;;  %s224_s11 = sand.u32 1, %s11024_s28  }
  0x89   : > { %10478 = dma.hbm_to_vmem [thread:$0]  (!%p11273_p7), %s11280_s13, 65536, %s11267_s3, %s11282_s2, %s11031_s9, %s11032_s4, %s14471_s18  }
  0x8a   : > { %s71_s16 = sadd.s32 1, %s10992_s20  ;;  %p78_p3 = scmp.ne.s32.totalorder %s10992_s20, %s10988_s19 }
  0x8b   : > { %s11318_s8 = scalar_select %p69_p9, %s10992_s20, %s71_s16  }
  0x8c   : > { %p14472_p11 = scmp.eq.s32.totalorder %s11024_s28, 0  ;;  %s226_s30 = sand.u32 1, %s10992_s20  }
  0x8d   : > { %s9027_s24 = sshll.u32 %s226_s30, 10  ;;  %s9757_s14 = sshll.u32 %s11016_s26, 14 }
  0x8e   : > { %p80_p10 = por %p78_p3, %p14472_p11  ;;  %s11327_s27 = scalar_lea.hbm %s14357_s1, %s9757_s14 }
  0x8f   : > { %s228_s3 = scalar_lea.vmem [#allocation6], %s9027_s24  ;;  %p14473_p7 = scmp.lt.s32.totalorder %s11024_s28, 16 }
  0x90   : > { %s235_s15 = sshll.u32 %s228_s3, 4  ;;  %s11337_s13 = scalar_lea.sflag [#allocation7], %s224_s11  ;;  %s11335_s15 = int_to_ptr.vmem [resolvable:$true] %s235_s15 }
  0x91   : > { %p11331_p0 = pnand %p14473_p7, %p80_p10  ;;  %s10836_s0 = scalar_lea.hbm %s11327_s27, 16384 }
  0x92   : > { %p10837_p9 = scmp.ne.s32.totalorder %s11327_s27, %s10836_s0  ;;  %s10841_s4 = scalar_lea.hbm %s14357_s1, 32768 }
  0x93   : > { %p10838_p5 = pneg %p11331_p0  ;;  %p10842_p8 = scmp.lt.u32.totalorder %s11327_s27, %s14357_s1 }
  0x94   : > { %p10843_p12 = scmp.lt.u32.totalorder %s10841_s4, %s10836_s0  ;;  %p10845_p1 = scmp.lt.u32.totalorder %s10836_s0, %s11327_s27 }
  0x95   : > { %p10839_p13 = pnand %p10838_p5, %p10837_p9 }
  0x96   : > { %p10844_p6 = por %p10843_p12, %p10842_p8 }
  0x97   : > { %p10840_p4 = pneg %p10839_p13 }
  0x98   : > { %p10846_p2 = por %p10845_p1, %p10844_p6 }
  0x9a   : > { %p10847_p3 = pnand %p10846_p2, %p10840_p4 }
  0x9c   : > { %10850 = shalt.err (!%p10847_p3)
}
  0x9d   : > { %s10851_s11 = scalar_lea.vmem %s11335_s15, 16384  ;;  %s11033_s24 = smov [#allocation6]  }
  0x9e   : > { %p10852_p11 = scmp.ne.s32.totalorder %s11335_s15, %s10851_s11  ;;  %s10856_s14 = sshll.u32 %s11033_s24, 4  ;;  %s10857_s14 = int_to_ptr.vmem [resolvable:$false] %s10856_s14 }
  0x9f   : > { %s10858_s12 = scalar_lea.vmem %s10857_s14, 32768  ;;  %p10859_p9 = scmp.lt.s32.totalorder %s11335_s15, %s10857_s14 }
  0xa0   : > { %p10854_p10 = pnand %p10852_p11, %p10838_p5  ;;  %p10860_p13 = scmp.lt.s32.totalorder %s10858_s12, %s10851_s11 }
  0xa2   : > { %p10855_p7 = pneg %p10854_p10  ;;  %p10861_p8 = por %p10860_p13, %p10859_p9 }
  0xa4   : > { %p10862_p12 = pnand %p10861_p8, %p10855_p7 }
  0xa6   : > { %10865 = shalt.err (!%p10862_p12)
}
  0xa7   : > { %s14475_s3 = smov 4   ;;  %p14476_p5 = scmp.ne.s32.totalorder %s14461_s10, 0 }
  0xa8   : > { %10481 = dma.hbm_to_vmem [thread:$0]  (!%p11331_p0), %s11327_s27, 16384, %s11335_s15, %s11337_s13, %s14471_s18, %s14471_s18, %s14475_s3  }
  0xa9   : > { %247 = sbr.rel (%p14476_p5) target bundleno = 2107 (0x83b), region = 36 }
  0xb0   : > { %s249_s0 = sand.u32 1, %s11000_s22   ;;  %p14477_p4 = scmp.ne.s32.totalorder %s14455_s6, 0 }
  0xb1   : > { %s9031_s2 = sshll.u32 %s249_s0, 12  ;;  %s250_s9 = scalar_lea.sflag [#allocation4], %s249_s0 }
  0xb2   : > { %s11371_s4 = scalar_lea.vmem [#allocation3], %s9031_s2 }
  0xb3   : > { %10951 = dma.done.wait (%p14477_p4), %s250_s9, 65536  }
  0xb4   : > { %10953 = vsyncadd (%p14477_p4), %s250_s9, 4294901760  ;;  %s258_s5 = sand.u32 1, %s11131_s29   ;;  %s260_s27 = sand.u32 1, %s10988_s19  }
  0xb5   : > { %s9032_s18 = sshll.u32 %s260_s27, 10  ;;  %s259_s10 = scalar_lea.sflag [#allocation7], %s258_s5 }
  0xb6   : > { %s11379_s15 = scalar_lea.vmem [#allocation6], %s9032_s18  ;;  %p14478_p0 = scmp.ne.s32.totalorder %s14456_s7, 0 }
  0xb8   : > { %10955 = dma.done.wait (%p14478_p0), %s259_s10, 16384  }
  0xb9   : > { %10957 = vsyncadd (%p14478_p0), %s259_s10, 4294950912  ;;  %p14479_p6 = scmp.eq.s32.totalorder %s11131_s29, 0 }
  0xbb   : > { %10959 = dma.done.wait (%p14479_p6), [#allocation7], 1024   ;;  %p14480_p1 = pmov %p14479_p6 }
  0xbd   : > { %10961 = vsyncadd (%p14480_p1), [#allocation7], 4294966272  ;;  %p14481_p2 = pmov %p14480_p1 }
  0xbe   : > { %p14482_p3 = pmov %p14480_p1 }
  0xbf   : > { %10963 = dma.done.wait (%p14481_p2), [#allocation10], 16  }
  0xc0   : > { %10965 = vsyncadd (%p14482_p3), [#allocation10], 4294967280  ;;  %s14483_s6 = sld [smem:[#allocation18_spill]]  ;;  %s14484_s7 = sld [smem:[#allocation19_spill]] }
  0xc6   : > { %s297_s13 = sand.u32 1, %s14483_s6   ;;  %p9036_p11 = scmp.ne.s32.totalorder %s14484_s7, 0 }
  0xc7   : > { %s9035_s16 = sshll.u32 %s297_s13, 8  ;;  %v11034_v0 = vmov (!%p9036_p11), 0.0  }
  0xc8   : > { %s11396_s30 = scalar_lea.vmem [#allocation11], %s9035_s16  ;;  %308 = sbr.rel (%p9036_p11) target bundleno = 232 (0xe8), region = 56  ;;  %309 = vst [vmem:[#allocation2] sm:$0xff] (!%p9036_p11), %v11034_v0  ;;  %310 = vst [vmem:[#allocation2 + $0x8] sm:$0xff] (!%p9036_p11), %v11034_v0 }
  0xc9   : > { %311 = vst [vmem:[#allocation2 + $0x10] sm:$0xff] (!%p9036_p11), %v11034_v0  ;;  %312 = vst [vmem:[#allocation2 + $0x18] sm:$0xff] (!%p9036_p11), %v11034_v0 }
  0xca   : > { %313 = vst [vmem:[#allocation2 + $0x20] sm:$0xff] (!%p9036_p11), %v11034_v0  ;;  %314 = vst [vmem:[#allocation2 + $0x28] sm:$0xff] (!%p9036_p11), %v11034_v0 }
  0xcb   : > { %315 = vst [vmem:[#allocation2 + $0x30] sm:$0xff] (!%p9036_p11), %v11034_v0  ;;  %316 = vst [vmem:[#allocation2 + $0x38] sm:$0xff] (!%p9036_p11), %v11034_v0 }
  0xcc   : > { %317 = vst [vmem:[#allocation2 + $0x40] sm:$0xff] (!%p9036_p11), %v11034_v0  ;;  %318 = vst [vmem:[#allocation2 + $0x48] sm:$0xff] (!%p9036_p11), %v11034_v0 }
  0xcd   : > { %319 = vst [vmem:[#allocation2 + $0x50] sm:$0xff] (!%p9036_p11), %v11034_v0  ;;  %320 = vst [vmem:[#allocation2 + $0x58] sm:$0xff] (!%p9036_p11), %v11034_v0 }
  0xce   : > { %321 = vst [vmem:[#allocation2 + $0x60] sm:$0xff] (!%p9036_p11), %v11034_v0  ;;  %322 = vst [vmem:[#allocation2 + $0x68] sm:$0xff] (!%p9036_p11), %v11034_v0 }
  0xcf   : > { %323 = vst [vmem:[#allocation2 + $0x70] sm:$0xff] %v11034_v0  ;;  %324 = vst [vmem:[#allocation2 + $0x78] sm:$0xff] %v11034_v0 }
  0xd0   : > { %325 = vst [vmem:[#allocation2 + $0x80] sm:$0xff] %v11034_v0  ;;  %326 = vst [vmem:[#allocation2 + $0x88] sm:$0xff] %v11034_v0 }
  0xd1   : > { %327 = vst [vmem:[#allocation2 + $0x90] sm:$0xff] %v11034_v0  ;;  %328 = vst [vmem:[#allocation2 + $0x98] sm:$0xff] %v11034_v0 }
  0xd2   : > { %329 = vst [vmem:[#allocation2 + $0xa0] sm:$0xff] %v11034_v0  ;;  %330 = vst [vmem:[#allocation2 + $0xa8] sm:$0xff] %v11034_v0 }
  0xd3   : > { %331 = vst [vmem:[#allocation2 + $0xb0] sm:$0xff] %v11034_v0  ;;  %332 = vst [vmem:[#allocation2 + $0xb8] sm:$0xff] %v11034_v0 }
  0xd4   : > { %333 = vst [vmem:[#allocation2 + $0xc0] sm:$0xff] %v11034_v0  ;;  %334 = vst [vmem:[#allocation2 + $0xc8] sm:$0xff] %v11034_v0 }
  0xd5   : > { %335 = vst [vmem:[#allocation2 + $0xd0] sm:$0xff] %v11034_v0  ;;  %336 = vst [vmem:[#allocation2 + $0xd8] sm:$0xff] %v11034_v0 }
  0xd6   : > { %337 = vst [vmem:[#allocation2 + $0xe0] sm:$0xff] %v11034_v0  ;;  %338 = vst [vmem:[#allocation2 + $0xe8] sm:$0xff] %v11034_v0 }
  0xd7   : > { %339 = vst [vmem:[#allocation2 + $0xf0] sm:$0xff] %v11034_v0  ;;  %340 = vst [vmem:[#allocation2 + $0xf8] sm:$0xff] %v11034_v0 }
  0xd8   : > { %341 = vst [vmem:[#allocation2 + $0x100] sm:$0xff] %v11034_v0  ;;  %342 = vst [vmem:[#allocation2 + $0x108] sm:$0xff] %v11034_v0 }
  0xd9   : > { %343 = vst [vmem:[#allocation2 + $0x110] sm:$0xff] %v11034_v0  ;;  %344 = vst [vmem:[#allocation2 + $0x118] sm:$0xff] %v11034_v0 }
  0xda   : > { %345 = vst [vmem:[#allocation2 + $0x120] sm:$0xff] %v11034_v0  ;;  %346 = vst [vmem:[#allocation2 + $0x128] sm:$0xff] %v11034_v0 }
  0xdb   : > { %347 = vst [vmem:[#allocation2 + $0x130] sm:$0xff] %v11034_v0  ;;  %348 = vst [vmem:[#allocation2 + $0x138] sm:$0xff] %v11034_v0 }
  0xdc   : > { %349 = vst [vmem:[#allocation2 + $0x140] sm:$0xff] %v11034_v0  ;;  %350 = vst [vmem:[#allocation2 + $0x148] sm:$0xff] %v11034_v0 }
  0xdd   : > { %351 = vst [vmem:[#allocation2 + $0x150] sm:$0xff] %v11034_v0  ;;  %352 = vst [vmem:[#allocation2 + $0x158] sm:$0xff] %v11034_v0 }
  0xde   : > { %353 = vst [vmem:[#allocation2 + $0x160] sm:$0xff] %v11034_v0  ;;  %354 = vst [vmem:[#allocation2 + $0x168] sm:$0xff] %v11034_v0 }
  0xdf   : > { %355 = vst [vmem:[#allocation2 + $0x170] sm:$0xff] %v11034_v0  ;;  %356 = vst [vmem:[#allocation2 + $0x178] sm:$0xff] %v11034_v0 }
  0xe0   : > { %357 = vst [vmem:[#allocation2 + $0x180] sm:$0xff] %v11034_v0  ;;  %358 = vst [vmem:[#allocation2 + $0x188] sm:$0xff] %v11034_v0 }
  0xe1   : > { %359 = vst [vmem:[#allocation2 + $0x190] sm:$0xff] %v11034_v0  ;;  %360 = vst [vmem:[#allocation2 + $0x198] sm:$0xff] %v11034_v0 }
  0xe2   : > { %361 = vst [vmem:[#allocation2 + $0x1a0] sm:$0xff] %v11034_v0  ;;  %362 = vst [vmem:[#allocation2 + $0x1a8] sm:$0xff] %v11034_v0 }
  0xe3   : > { %363 = vst [vmem:[#allocation2 + $0x1b0] sm:$0xff] %v11034_v0  ;;  %364 = vst [vmem:[#allocation2 + $0x1b8] sm:$0xff] %v11034_v0 }
  0xe4   : > { %365 = vst [vmem:[#allocation2 + $0x1c0] sm:$0xff] %v11034_v0  ;;  %366 = vst [vmem:[#allocation2 + $0x1c8] sm:$0xff] %v11034_v0 }
  0xe5   : > { %367 = vst [vmem:[#allocation2 + $0x1d0] sm:$0xff] %v11034_v0  ;;  %368 = vst [vmem:[#allocation2 + $0x1d8] sm:$0xff] %v11034_v0 }
  0xe6   : > { %369 = vst [vmem:[#allocation2 + $0x1e0] sm:$0xff] %v11034_v0  ;;  %370 = vst [vmem:[#allocation2 + $0x1e8] sm:$0xff] %v11034_v0 }
  0xe7   : > { %371 = vst [vmem:[#allocation2 + $0x1f0] sm:$0xff] %v11034_v0  ;;  %372 = vst [vmem:[#allocation2 + $0x1f8] sm:$0xff] %v11034_v0 }
  0xe8 PF: > { %v10614_v1 = vld [vmem:[#allocation8] sm:$0xff]   ;;  %v10615_v2 = vld [vmem:[#allocation8 + $0x8] sm:$0xff]   ;;  %v10616_v3 = vld [vmem:[#allocation8 + $0x10] sm:$0xff]   ;;  %v14381_v34 = vmov 0   ;;  %s14964_s29 = sld [smem:[#allocation19_spill]] }
  0xe9   : > { %10150 = vmatprep.subr.bf16.mxu0 %v10614_v1  ;;  %v10617_v4 = vld [vmem:[#allocation8 + $0x18] sm:$0xff]   ;;  %v10622_v5 = vld [vmem:[%s11379_s15] sm:$0xff]   ;;  %v10619_v7 = vld [vmem:[#allocation8 + $0x28] sm:$0xff]   ;;  %5782 = vmatprep.subr.bf16.mxu1 %v14381_v34 }
  0xea   : > { %10151 = vmatpush3.bf16.msra.mxu0 %v10614_v1  ;;  %10166 = vmatprep.mubr.bf16.mxu0 %v10622_v5  ;;  %v10618_v6 = vld [vmem:[#allocation8 + $0x20] sm:$0xff]   ;;  %v10620_v8 = vld [vmem:[#allocation8 + $0x30] sm:$0xff]   ;;  %v10621_v9 = vld [vmem:[#allocation8 + $0x38] sm:$0xff]  }
  0xeb   : > { %10152 = vmatprep.subr.bf16.mxu0 %v10615_v2  ;;  %v10623_v10 = vld [vmem:[%s11379_s15 + $0x8] sm:$0xff]   ;;  %v10624_v11 = vld [vmem:[%s11379_s15 + $0x10] sm:$0xff]   ;;  %v10625_v12 = vld [vmem:[%s11379_s15 + $0x18] sm:$0xff]  }
  0xec   : > { %v10626_v13 = vld [vmem:[%s11379_s15 + $0x20] sm:$0xff]   ;;  %v10627_v14 = vld [vmem:[%s11379_s15 + $0x28] sm:$0xff]   ;;  %v10628_v15 = vld [vmem:[%s11379_s15 + $0x30] sm:$0xff]  }
  0xed   : > { %v10629_v16 = vld [vmem:[%s11379_s15 + $0x38] sm:$0xff]   ;;  %v10630_v17 = vld [vmem:[%s11379_s15 + $0x40] sm:$0xff]   ;;  %v10631_v18 = vld [vmem:[%s11379_s15 + $0x48] sm:$0xff]  }
  0xee   : > { %10153 = vmatpush3.bf16.msra.mxu0 %v10615_v2  ;;  %v10632_v19 = vld [vmem:[%s11379_s15 + $0x50] sm:$0xff]   ;;  %v10633_v20 = vld [vmem:[%s11379_s15 + $0x58] sm:$0xff]   ;;  %v10634_v21 = vld [vmem:[%s11379_s15 + $0x60] sm:$0xff]   ;;  %p9685_p10 = scmp.ne.s32.totalorder %s14964_s29, 1 }
  0xef   : > { %10154 = vmatprep.subr.bf16.mxu0 %v10616_v3  ;;  %v10635_v22 = vld [vmem:[%s11379_s15 + $0x68] sm:$0xff]   ;;  %v10636_v23 = vld [vmem:[%s11379_s15 + $0x70] sm:$0xff]   ;;  %v10637_v24 = vld [vmem:[%s11379_s15 + $0x78] sm:$0xff]  }
  0xf0   : > { %v10638_v25 = vld [vmem:[%s11379_s15 + $0x80] sm:$0xff]   ;;  %v10639_v26 = vld [vmem:[%s11379_s15 + $0x88] sm:$0xff]   ;;  %v10640_v27 = vld [vmem:[%s11379_s15 + $0x90] sm:$0xff]  }
  0xf1   : > { %v10641_v28 = vld [vmem:[%s11379_s15 + $0x98] sm:$0xff]   ;;  %v10642_v29 = vld [vmem:[%s11379_s15 + $0xa0] sm:$0xff]   ;;  %v10643_v30 = vld [vmem:[%s11379_s15 + $0xa8] sm:$0xff]  }
  0xf2   : > { %10155 = vmatpush3.bf16.msra.mxu0 %v10616_v3  ;;  %v10644_v31 = vld [vmem:[%s11379_s15 + $0xb0] sm:$0xff]   ;;  %v10645_v32 = vld [vmem:[%s11379_s15 + $0xb8] sm:$0xff]   ;;  %v10646_v33 = vld [vmem:[%s11379_s15 + $0xc0] sm:$0xff]  }
  0xf3   : > { %10156 = vmatprep.subr.bf16.mxu0 %v10617_v4  ;;  %v10647_v35 = vld [vmem:[%s11379_s15 + $0xc8] sm:$0xff]   ;;  %v10648_v36 = vld [vmem:[%s11379_s15 + $0xd0] sm:$0xff]   ;;  %v10649_v37 = vld [vmem:[%s11379_s15 + $0xd8] sm:$0xff]  }
  0xf4   : > { %v10650_v38 = vld [vmem:[%s11379_s15 + $0xe0] sm:$0xff]   ;;  %v10651_v39 = vld [vmem:[%s11379_s15 + $0xe8] sm:$0xff]   ;;  %v10652_v40 = vld [vmem:[%s11379_s15 + $0xf0] sm:$0xff]  }
  0xf5   : > { %v10653_v41 = vld [vmem:[%s11379_s15 + $0xf8] sm:$0xff]   ;;  %v10654_v42 = vld [vmem:[%s11379_s15 + $0x100] sm:$0xff]   ;;  %v10655_v43 = vld [vmem:[%s11379_s15 + $0x108] sm:$0xff]  }
  0xf6   : > { %10157 = vmatpush3.bf16.msra.mxu0 %v10617_v4  ;;  %v10656_v44 = vld [vmem:[%s11379_s15 + $0x110] sm:$0xff]   ;;  %v10657_v45 = vld [vmem:[%s11379_s15 + $0x118] sm:$0xff]   ;;  %v10658_v46 = vld [vmem:[%s11379_s15 + $0x120] sm:$0xff]  }
  0xf7   : > { %10158 = vmatprep.subr.bf16.mxu0 %v10618_v6  ;;  %v10659_v47 = vld [vmem:[%s11379_s15 + $0x128] sm:$0xff]   ;;  %v10660_v48 = vld [vmem:[%s11379_s15 + $0x130] sm:$0xff]   ;;  %v10661_v49 = vld [vmem:[%s11379_s15 + $0x138] sm:$0xff]  }
  0xf8   : > { %v11506_v50 = vld [vmem:[%s11371_s4] sm:$0xff]  ;;  %v10663_v55 = vld [vmem:[%s11379_s15 + $0x148] sm:$0xff]   ;;  %v10664_v56 = vld [vmem:[%s11379_s15 + $0x150] sm:$0xff]  }
  0xf9   : > { %v11509_v51 = vld [vmem:[%s11371_s4 + $0x40] sm:$0xff]  ;;  %v10665_v57 = vld [vmem:[%s11379_s15 + $0x158] sm:$0xff]   ;;  %v10667_v59 = vld [vmem:[%s11379_s15 + $0x168] sm:$0xff]  }
  0xfa   : > { %10159 = vmatpush3.bf16.msra.mxu0 %v10618_v6  ;;  %v10662_v52 = vld [vmem:[%s11379_s15 + $0x140] sm:$0xff]   ;;  %v9174_v53 = vcombine.high %v11506_v50, %v11509_v51  ;;  %v9173_v54 = vcombine.low %v11506_v50, %v11509_v51  ;;  %v10668_v60 = vld [vmem:[%s11379_s15 + $0x170] sm:$0xff]   ;;  %v10669_v61 = vld [vmem:[%s11379_s15 + $0x178] sm:$0xff]  }
  0xfb   : > { %10160 = vmatprep.subr.bf16.mxu0 %v10619_v7  ;;  %v10666_v58 = vld [vmem:[%s11379_s15 + $0x160] sm:$0xff]   ;;  %v10671_v63 = vld [vmem:[%s11379_s15 + $0x188] sm:$0xff]   ;;  %v10672_v0 = vld [vmem:[%s11379_s15 + $0x190] sm:$0xff]  }
  0xfc   : > { %5814 = vmatprep.mubr.bf16.mxu1 %v9174_v53  ;;  %v10670_v62 = vld [vmem:[%s11379_s15 + $0x180] sm:$0xff]   ;;  %v10673_v1 = vld [vmem:[%s11379_s15 + $0x198] sm:$0xff]   ;;  %v10675_v3 = vld [vmem:[%s11379_s15 + $0x1a8] sm:$0xff]  }
  0xfd   : > { %v10674_v2 = vld [vmem:[%s11379_s15 + $0x1a0] sm:$0xff]   ;;  %v10676_v4 = vld [vmem:[%s11379_s15 + $0x1b0] sm:$0xff]  }
  0xfe   : > { %10161 = vmatpush3.bf16.msra.mxu0 %v10619_v7  ;;  %v10677_v7 = vld [vmem:[%s11379_s15 + $0x1b8] sm:$0xff]  }
  0xff   : > { %10162 = vmatprep.subr.bf16.mxu0 %v10620_v8 }
 0x102   : > { %10163 = vmatpush3.bf16.msra.mxu0 %v10620_v8 }
 0x103   : > { %10164 = vmatprep.subr.bf16.mxu0 %v10621_v9 }
 0x106   : > { %10165 = vmatpush3.bf16.msra.mxu0 %v10621_v9  ;;  %v10678_v9 = vld [vmem:[%s11379_s15 + $0x1c0] sm:$0xff]  }
 0x107   : > { %6360 = vmatprep.subr.bf16.mxu0 %v14381_v34 }
 0x109   : > { %10167 = vmatmul.mubr.bf16.vlgmr.msra.gmra.mrb[0].mxu0 %v10623_v10 }
 0x10a   : > { %10170 = vmatprep.mubr.bf16.mxu0 %v10624_v11 }
 0x111   : > { %10171 = vmatmul.mubr.bf16.gmra.mrb[4].mxu0 %v10625_v12 }
 0x112   : > { %10174 = vmatprep.mubr.bf16.mxu0 %v10626_v13 }
 0x119   : > { %10175 = vmatmul.mubr.bf16.gmra.mrb[8].mxu0 %v10627_v14 }
 0x11a   : > { %10178 = vmatprep.mubr.bf16.mxu0 %v10628_v15  ;;  %v10679_v15 = vld [vmem:[%s11379_s15 + $0x1c8] sm:$0xff]  }
 0x121   : > { %10179 = vmatmul.mubr.bf16.gmra.mrb[12].mxu0 %v10629_v16 }
 0x122   : > { %10182 = vmatprep.mubr.bf16.mxu0 %v10630_v17  ;;  %v10680_v17 = vld [vmem:[%s11379_s15 + $0x1d0] sm:$0xff]  }
 0x129   : > { %10183 = vmatmul.mubr.bf16.gmra.mrb[16].mxu0 %v10631_v18 }
 0x12a   : > { %10186 = vmatprep.mubr.bf16.mxu0 %v10632_v19 }
 0x131   : > { %10187 = vmatmul.mubr.bf16.gmra.mrb[20].mxu0 %v10633_v20 }
 0x132   : > { %10190 = vmatprep.mubr.bf16.mxu0 %v10634_v21 }
 0x139   : > { %10191 = vmatmul.mubr.bf16.gmra.mrb[24].mxu0 %v10635_v22 }
 0x13a   : > { %10194 = vmatprep.mubr.bf16.mxu0 %v10636_v23  ;;  %v10681_v23 = vld [vmem:[%s11379_s15 + $0x1d8] sm:$0xff]  }
 0x141   : > { %10195 = vmatmul.mubr.bf16.gmra.mrb[28].mxu0 %v10637_v24 }
 0x142   : > { %10198 = vmatprep.mubr.bf16.mxu0 %v10638_v25  ;;  %v10682_v25 = vld [vmem:[%s11379_s15 + $0x1e0] sm:$0xff]  }
 0x149   : > { %10199 = vmatmul.mubr.bf16.gmra.mrb[32].mxu0 %v10639_v26 }
 0x14a   : > { %10202 = vmatprep.mubr.bf16.mxu0 %v10640_v27 }
 0x151   : > { %10203 = vmatmul.mubr.bf16.gmra.mrb[36].mxu0 %v10641_v28 }
 0x152   : > { %10206 = vmatprep.mubr.bf16.mxu0 %v10642_v29 }
 0x159   : > { %10207 = vmatmul.mubr.bf16.gmra.mrb[40].mxu0 %v10643_v30 }
 0x15a   : > { %10210 = vmatprep.mubr.bf16.mxu0 %v10644_v31  ;;  %v10683_v31 = vld [vmem:[%s11379_s15 + $0x1e8] sm:$0xff]  }
 0x161   : > { %10211 = vmatmul.mubr.bf16.gmra.mrb[44].mxu0 %v10645_v32 }
 0x162   : > { %10214 = vmatprep.mubr.bf16.mxu0 %v10646_v33  ;;  %v10684_v33 = vld [vmem:[%s11379_s15 + $0x1f0] sm:$0xff]  }
 0x169   : > { %10215 = vmatmul.mubr.bf16.gmra.mrb[48].mxu0 %v10647_v35 }
 0x16a   : > { %10218 = vmatprep.mubr.bf16.mxu0 %v10648_v36 }
 0x171   : > { %10219 = vmatmul.mubr.bf16.gmra.mrb[52].mxu0 %v10649_v37 }
 0x172   : > { %10222 = vmatprep.mubr.bf16.mxu0 %v10650_v38 }
 0x179   : > { %10223 = vmatmul.mubr.bf16.gmra.mrb[56].mxu0 %v10651_v39 }
 0x17a   : > { %10226 = vmatprep.mubr.bf16.mxu0 %v10652_v40  ;;  %v10685_v40 = vld [vmem:[%s11379_s15 + $0x1f8] sm:$0xff]  }
 0x181   : > { %10227 = vmatmul.mubr.bf16.gmra.mrb[60].mxu0 %v10653_v41 }
 0x182   : > { %10230 = vmatprep.mubr.bf16.mxu0 %v10654_v42  ;;  %v10686_v42 = vld [vmem:[%s11379_s15 + $0x200] sm:$0xff]  }
 0x189   : > { %10231 = vmatmul.mubr.bf16.gmra.mrb[64].mxu0 %v10655_v43 }
 0x18a   : > { %10234 = vmatprep.mubr.bf16.mxu0 %v10656_v44 }
 0x191   : > { %10235 = vmatmul.mubr.bf16.gmra.mrb[68].mxu0 %v10657_v45 }
 0x192   : > { %10238 = vmatprep.mubr.bf16.mxu0 %v10658_v46 }
 0x199   : > { %10239 = vmatmul.mubr.bf16.gmra.mrb[72].mxu0 %v10659_v47 }
 0x19a   : > { %10242 = vmatprep.mubr.bf16.mxu0 %v10660_v48  ;;  %v10687_v48 = vld [vmem:[%s11379_s15 + $0x208] sm:$0xff]  }
 0x1a1   : > { %10243 = vmatmul.mubr.bf16.gmra.mrb[76].mxu0 %v10661_v49 }
 0x1a2   : > { %10246 = vmatprep.mubr.bf16.mxu0 %v10662_v52  ;;  %v10688_v52 = vld [vmem:[%s11379_s15 + $0x210] sm:$0xff]  }
 0x1a9   : > { %10247 = vmatmul.mubr.bf16.gmra.mrb[80].mxu0 %v10663_v55 }
 0x1aa   : > { %10250 = vmatprep.mubr.bf16.mxu0 %v10664_v56 }
 0x1b1   : > { %10251 = vmatmul.mubr.bf16.gmra.mrb[84].mxu0 %v10665_v57 }
 0x1b2   : > { %10254 = vmatprep.mubr.bf16.mxu0 %v10666_v58 }
 0x1b9   : > { %10255 = vmatmul.mubr.bf16.gmra.mrb[88].mxu0 %v10667_v59  ;;  %v10689_v59 = vld [vmem:[%s11379_s15 + $0x218] sm:$0xff]  }
 0x1ba   : > { %10258 = vmatprep.mubr.bf16.mxu0 %v10668_v60 }
 0x1c1   : > { %10259 = vmatmul.mubr.bf16.gmra.mrb[92].mxu0 %v10669_v61  ;;  %v10690_v61 = vld [vmem:[%s11379_s15 + $0x220] sm:$0xff]  }
 0x1c2   : > { %10262 = vmatprep.mubr.bf16.mxu0 %v10670_v62 }
 0x1c9   : > { %10263 = vmatmul.mubr.bf16.gmra.mrb[96].mxu0 %v10671_v63 }
 0x1ca   : > { %10266 = vmatprep.mubr.bf16.mxu0 %v10672_v0 }
 0x1d1   : > { %10267 = vmatmul.mubr.bf16.gmra.mrb[100].mxu0 %v10673_v1 }
 0x1d2   : > { %10270 = vmatprep.mubr.bf16.mxu0 %v10674_v2 }
 0x1d9   : > { %10271 = vmatmul.mubr.bf16.gmra.mrb[104].mxu0 %v10675_v3  ;;  %v10691_v3 = vld [vmem:[%s11379_s15 + $0x228] sm:$0xff]  }
 0x1da   : > { %10274 = vmatprep.mubr.bf16.mxu0 %v10676_v4 }
 0x1dc   : > { %v10168_v5 = vpop.f32.mrb[0].mxu0 }
 0x1dd   : > { %v1495_v6 = vpop.f32.mrb[1].mxu0 }
 0x1de   : > { %v10169_v8 = vpop.f32.mrb[2].mxu0 }
 0x1df   : > { %v2519_v10 = vpack.c.bf16 %v10169_v8, %v10168_v5  ;;  %v1498_v11 = vpop.f32.mrb[3].mxu0  ;;  %v10692_v5 = vld [vmem:[%s11379_s15 + $0x230] sm:$0xff]  }
 0x1e0   : > { %v2518_v12 = vpack.c.bf16 %v1498_v11, %v1495_v6  ;;  %v2734_v11 = vld [vmem:[%s11371_s4 + $0xc0] sm:$0xff] }
 0x1e1   : > { %10275 = vmatmul.mubr.bf16.gmra.mrb[108].mxu0 %v10677_v7 }
 0x1e2   : > { %5783 = vmatpush1.bf16.msra.mxu1 %v2518_v12  ;;  %10278 = vmatprep.mubr.bf16.mxu0 %v10678_v9 }
 0x1e3   : > { %5784 = vmatprep.subr.bf16.mxu1 %v14381_v34 }
 0x1e4   : > { %v10172_v13 = vpop.f32.mrb[4].mxu0 }
 0x1e5   : > { %v1511_v14 = vpop.f32.mrb[5].mxu0 }
 0x1e6   : > { %v10173_v16 = vpop.f32.mrb[6].mxu0  ;;  %5785 = vmatpush1.bf16.msra.mxu1 %v2519_v10  ;;  %v2726_v10 = vld [vmem:[%s11371_s4 + $0x80] sm:$0xff] }
 0x1e7   : > { %v2521_v18 = vpack.c.bf16 %v10173_v16, %v10172_v13  ;;  %v1514_v19 = vpop.f32.mrb[7].mxu0  ;;  %5786 = vmatprep.subr.bf16.mxu1 %v14381_v34  ;;  %v10693_v13 = vld [vmem:[%s11379_s15 + $0x238] sm:$0xff]  }
 0x1e8   : > { %v2520_v20 = vpack.c.bf16 %v1514_v19, %v1511_v14 }
 0x1e9   : > { %10279 = vmatmul.mubr.bf16.gmra.mrb[112].mxu0 %v10679_v15  ;;  %v10694_v15 = vld [vmem:[%s11379_s15 + $0x240] sm:$0xff]  }
 0x1ea   : > { %5787 = vmatpush1.bf16.msra.mxu1 %v2520_v20  ;;  %10282 = vmatprep.mubr.bf16.mxu0 %v10680_v17 }
 0x1eb   : > { %5788 = vmatprep.subr.bf16.mxu1 %v14381_v34 }
 0x1ec   : > { %v10176_v21 = vpop.f32.mrb[8].mxu0 }
 0x1ed   : > { %v1527_v22 = vpop.f32.mrb[9].mxu0 }
 0x1ee   : > { %v10177_v24 = vpop.f32.mrb[10].mxu0  ;;  %5789 = vmatpush1.bf16.msra.mxu1 %v2521_v18  ;;  %v9190_v18 = vcombine.high %v2726_v10, %v2734_v11 }
 0x1ef   : > { %v2523_v26 = vpack.c.bf16 %v10177_v24, %v10176_v21  ;;  %v1530_v27 = vpop.f32.mrb[11].mxu0  ;;  %5790 = vmatprep.subr.bf16.mxu1 %v14381_v34  ;;  %v2742_v21 = vld [vmem:[%s11371_s4 + $0x100] sm:$0xff]  ;;  %v10695_v24 = vld [vmem:[%s11379_s15 + $0x248] sm:$0xff]  }
 0x1f0   : > { %v2522_v28 = vpack.c.bf16 %v1530_v27, %v1527_v22  ;;  %v2750_v22 = vld [vmem:[%s11371_s4 + $0x140] sm:$0xff]  ;;  %v10696_v27 = vld [vmem:[%s11379_s15 + $0x250] sm:$0xff]  }
 0x1f1   : > { %10283 = vmatmul.mubr.bf16.gmra.mrb[116].mxu0 %v10681_v23  ;;  %v9206_v51 = vcombine.high %v2742_v21, %v2750_v22 }
 0x1f2   : > { %5791 = vmatpush1.bf16.msra.mxu1 %v2522_v28  ;;  %10286 = vmatprep.mubr.bf16.mxu0 %v10682_v25  ;;  %v9189_v25 = vcombine.low %v2726_v10, %v2734_v11 }
 0x1f3   : > { %5792 = vmatprep.subr.bf16.mxu1 %v14381_v34 }
 0x1f4   : > { %v10180_v29 = vpop.f32.mrb[12].mxu0 }
 0x1f5   : > { %v1543_v30 = vpop.f32.mrb[13].mxu0 }
 0x1f6   : > { %v10181_v32 = vpop.f32.mrb[14].mxu0  ;;  %5793 = vmatpush1.bf16.msra.mxu1 %v2523_v26 }
 0x1f7   : > { %v2525_v35 = vpack.c.bf16 %v10181_v32, %v10180_v29  ;;  %v1546_v36 = vpop.f32.mrb[15].mxu0  ;;  %5794 = vmatprep.subr.bf16.mxu1 %v14381_v34 }
 0x1f8   : > { %v2524_v37 = vpack.c.bf16 %v1546_v36, %v1543_v30  ;;  %v2758_v30 = vld [vmem:[%s11371_s4 + $0x180] sm:$0xff] }
 0x1f9   : > { %10287 = vmatmul.mubr.bf16.gmra.mrb[120].mxu0 %v10683_v31  ;;  %v2766_v31 = vld [vmem:[%s11371_s4 + $0x1c0] sm:$0xff] }
 0x1fa   : > { %5795 = vmatpush1.bf16.msra.mxu1 %v2524_v37  ;;  %10290 = vmatprep.mubr.bf16.mxu0 %v10684_v33  ;;  %v10697_v33 = vld [vmem:[%s11379_s15 + $0x258] sm:$0xff]   ;;  %v10698_v37 = vld [vmem:[%s11379_s15 + $0x260] sm:$0xff]  }
 0x1fb   : > { %5796 = vmatprep.subr.bf16.mxu1 %v14381_v34 }
 0x1fc   : > { %v10184_v38 = vpop.f32.mrb[16].mxu0 }
 0x1fd   : > { %v1559_v39 = vpop.f32.mrb[17].mxu0 }
 0x1fe   : > { %v10185_v41 = vpop.f32.mrb[18].mxu0  ;;  %5797 = vmatpush1.bf16.msra.mxu1 %v2525_v35  ;;  %v9205_v35 = vcombine.low %v2742_v21, %v2750_v22  ;;  %v10705_v21 = vld [vmem:[%s11379_s15 + $0x298] sm:$0xff]  }
 0x1ff   : > { %v2527_v43 = vpack.c.bf16 %v10185_v41, %v10184_v38  ;;  %v1562_v44 = vpop.f32.mrb[19].mxu0  ;;  %5798 = vmatprep.subr.bf16.mxu1 %v14381_v34 }
 0x200   : > { %v2526_v45 = vpack.c.bf16 %v1562_v44, %v1559_v39  ;;  %v2782_v44 = vld [vmem:[%s11371_s4 + $0x240] sm:$0xff] }
 0x201   : > { %10291 = vmatmul.mubr.bf16.gmra.mrb[124].mxu0 %v10685_v40  ;;  %v9222_v40 = vcombine.high %v2758_v30, %v2766_v31 }
 0x202   : > { %5799 = vmatpush1.bf16.msra.mxu1 %v2526_v45  ;;  %10294 = vmatprep.mubr.bf16.mxu0 %v10686_v42 }
 0x203   : > { %5800 = vmatprep.subr.bf16.mxu1 %v14381_v34 }
 0x204   : > { %v10188_v46 = vpop.f32.mrb[20].mxu0 }
 0x205   : > { %v1575_v47 = vpop.f32.mrb[21].mxu0 }
 0x206   : > { %v10189_v49 = vpop.f32.mrb[22].mxu0  ;;  %5801 = vmatpush1.bf16.msra.mxu1 %v2527_v43  ;;  %v2774_v43 = vld [vmem:[%s11371_s4 + $0x200] sm:$0xff] }
 0x207   : > { %v2529_v53 = vpack.c.bf16 %v10189_v49, %v10188_v46  ;;  %v1578_v55 = vpop.f32.mrb[23].mxu0  ;;  %5802 = vmatprep.subr.bf16.mxu1 %v14381_v34  ;;  %v10699_v46 = vld [vmem:[%s11379_s15 + $0x268] sm:$0xff]   ;;  %v10700_v49 = vld [vmem:[%s11379_s15 + $0x270] sm:$0xff]  }
 0x208   : > { %v2528_v56 = vpack.c.bf16 %v1578_v55, %v1575_v47  ;;  %v9221_v47 = vcombine.low %v2758_v30, %v2766_v31  ;;  %v9238_v55 = vcombine.high %v2774_v43, %v2782_v44  ;;  %v10707_v30 = vld [vmem:[%s11379_s15 + $0x2a8] sm:$0xff]  }
 0x209   : > { %10295 = vmatmul.mubr.bf16.gmra.mrb[128].mxu0 %v10687_v48 }
 0x20a   : > { %5803 = vmatpush1.bf16.msra.mxu1 %v2528_v56  ;;  %10298 = vmatprep.mubr.bf16.mxu0 %v10688_v52 }
 0x20b   : > { %5804 = vmatprep.subr.bf16.mxu1 %v14381_v34 }
 0x20c   : > { %v10192_v57 = vpop.f32.mrb[24].mxu0 }
 0x20d   : > { %v1591_v58 = vpop.f32.mrb[25].mxu0 }
 0x20e   : > { %v10193_v60 = vpop.f32.mrb[26].mxu0  ;;  %5805 = vmatpush1.bf16.msra.mxu1 %v2529_v53 }
 0x20f   : > { %v2531_v62 = vpack.c.bf16 %v10193_v60, %v10192_v57  ;;  %v1594_v63 = vpop.f32.mrb[27].mxu0  ;;  %5806 = vmatprep.subr.bf16.mxu1 %v14381_v34 }
 0x210   : > { %v2530_v0 = vpack.c.bf16 %v1594_v63, %v1591_v58  ;;  %v2790_v58 = vld [vmem:[%s11371_s4 + $0x280] sm:$0xff] }
 0x211   : > { %10299 = vmatmul.mubr.bf16.gmra.mrb[132].mxu0 %v10689_v59  ;;  %v2798_v59 = vld [vmem:[%s11371_s4 + $0x2c0] sm:$0xff] }
 0x212   : > { %5807 = vmatpush1.bf16.msra.mxu1 %v2530_v0  ;;  %10302 = vmatprep.mubr.bf16.mxu0 %v10690_v61  ;;  %v10701_v61 = vld [vmem:[%s11379_s15 + $0x278] sm:$0xff]   ;;  %v10702_v0 = vld [vmem:[%s11379_s15 + $0x280] sm:$0xff]   ;;  %v9253_v10 = vcombine.low %v2790_v58, %v2798_v59 }
 0x213   : > { %5808 = vmatprep.subr.bf16.mxu1 %v14381_v34 }
 0x214   : > { %v10196_v1 = vpop.f32.mrb[28].mxu0 }
 0x215   : > { %v1607_v2 = vpop.f32.mrb[29].mxu0 }
 0x216   : > { %v10197_v4 = vpop.f32.mrb[30].mxu0  ;;  %5809 = vmatpush1.bf16.msra.mxu1 %v2531_v62  ;;  %v9237_v62 = vcombine.low %v2774_v43, %v2782_v44  ;;  %v10709_v43 = vld [vmem:[%s11379_s15 + $0x2b8] sm:$0xff]  }
 0x217   : > { %v2533_v6 = vpack.c.bf16 %v10197_v4, %v10196_v1  ;;  %v1610_v7 = vpop.f32.mrb[31].mxu0  ;;  %5810 = vmatprep.subr.bf16.mxu1 %v14381_v34 }
 0x218   : > { %v2532_v8 = vpack.c.bf16 %v1610_v7, %v1607_v2  ;;  %v2814_v7 = vld [vmem:[%s11371_s4 + $0x340] sm:$0xff] }
 0x219   : > { %10303 = vmatmul.mubr.bf16.gmra.mrb[136].mxu0 %v10691_v3  ;;  %v9254_v3 = vcombine.high %v2790_v58, %v2798_v59 }
 0x21a   : > { %5811 = vmatpush1.bf16.msra.mxu1 %v2532_v8  ;;  %10306 = vmatprep.mubr.bf16.mxu0 %v10692_v5 }
 0x21b   : > { %5812 = vmatprep.subr.bf16.mxu1 %v14381_v34 }
 0x21c   : > { %v10200_v9 = vpop.f32.mrb[32].mxu0 }
 0x21d   : > { %v1623_v12 = vpop.f32.mrb[33].mxu0 }
 0x21e   : > { %v10201_v14 = vpop.f32.mrb[34].mxu0  ;;  %5813 = vmatpush1.bf16.msra.mxu1 %v2533_v6  ;;  %v2806_v6 = vld [vmem:[%s11371_s4 + $0x300] sm:$0xff] }
 0x21f   : > { %v2535_v16 = vpack.c.bf16 %v10201_v14, %v10200_v9  ;;  %v1626_v17 = vpop.f32.mrb[35].mxu0  ;;  %6071 = vmatprep.subr.bf16.mxu1 %v14381_v34  ;;  %v10703_v9 = vld [vmem:[%s11379_s15 + $0x288] sm:$0xff]   ;;  %v9269_v22 = vcombine.low %v2806_v6, %v2814_v7 }
 0x220   : > { %v2534_v19 = vpack.c.bf16 %v1626_v17, %v1623_v12  ;;  %v10704_v12 = vld [vmem:[%s11379_s15 + $0x290] sm:$0xff]  }
 0x221   : > { %10307 = vmatmul.mubr.bf16.gmra.mrb[140].mxu0 %v10693_v13  ;;  %5815 = vmatmul.mubr.bf16.vlgmr.msra.gmra.mrb[0].mxu1 %v9173_v54 }
 0x222   : > { %6072 = vmatpush1.bf16.msra.mxu1 %v2534_v19  ;;  %10310 = vmatprep.mubr.bf16.mxu0 %v10694_v15  ;;  %v9270_v15 = vcombine.high %v2806_v6, %v2814_v7  ;;  %v2830_v19 = vld [vmem:[%s11371_s4 + $0x3c0] sm:$0xff] }
 0x223   : > { %6073 = vmatprep.subr.bf16.mxu1 %v14381_v34  ;;  %5822 = vmatprep.mubr.bf16.mxu1 %v9190_v18  ;;  %v2822_v18 = vld [vmem:[%s11371_s4 + $0x380] sm:$0xff] }
 0x224   : > { %v10204_v20 = vpop.f32.mrb[36].mxu0  ;;  %v9285_v31 = vcombine.low %v2822_v18, %v2830_v19 }
 0x225   : > { %v1639_v23 = vpop.f32.mrb[37].mxu0 }
 0x226   : > { %v10205_v26 = vpop.f32.mrb[38].mxu0  ;;  %6074 = vmatpush1.bf16.msra.mxu1 %v2535_v16 }
 0x227   : > { %v2537_v28 = vpack.c.bf16 %v10205_v26, %v10204_v20  ;;  %v1642_v50 = vpop.f32.mrb[39].mxu0  ;;  %6075 = vmatprep.subr.bf16.mxu1 %v14381_v34 }
 0x228   : > { %v2536_v54 = vpack.c.bf16 %v1642_v50, %v1639_v23 }
 0x229   : > { %10311 = vmatmul.mubr.bf16.gmra.mrb[144].mxu0 %v10695_v24  ;;  %5823 = vmatmul.mubr.bf16.gmra.mrb[4].mxu1 %v9189_v25  ;;  %v10706_v24 = vld [vmem:[%s11379_s15 + $0x2a0] sm:$0xff]  }
 0x22a   : > { %6076 = vmatpush1.bf16.msra.mxu1 %v2536_v54  ;;  %10314 = vmatprep.mubr.bf16.mxu0 %v10696_v27  ;;  %v9286_v27 = vcombine.high %v2822_v18, %v2830_v19  ;;  %v2846_v54 = vld [vmem:[%s11371_s4 + $0x440] sm:$0xff] }
 0x22b   : > { %6077 = vmatprep.subr.bf16.mxu1 %v14381_v34  ;;  %5830 = vmatprep.mubr.bf16.mxu1 %v9206_v51  ;;  %v2838_v51 = vld [vmem:[%s11371_s4 + $0x400] sm:$0xff] }
 0x22c   : > { %v10208_v29 = vpop.f32.mrb[40].mxu0  ;;  %v9301_v44 = vcombine.low %v2838_v51, %v2846_v54 }
 0x22d   : > { %v1655_v32 = vpop.f32.mrb[41].mxu0 }
 0x22e   : > { %v10209_v36 = vpop.f32.mrb[42].mxu0  ;;  %6078 = vmatpush1.bf16.msra.mxu1 %v2537_v28 }
 0x22f   : > { %v2539_v38 = vpack.c.bf16 %v10209_v36, %v10208_v29  ;;  %v1658_v39 = vpop.f32.mrb[43].mxu0  ;;  %6079 = vmatprep.subr.bf16.mxu1 %v14381_v34 }
 0x230   : > { %v2538_v41 = vpack.c.bf16 %v1658_v39, %v1655_v32 }
 0x231   : > { %10315 = vmatmul.mubr.bf16.gmra.mrb[148].mxu0 %v10697_v33  ;;  %5831 = vmatmul.mubr.bf16.gmra.mrb[8].mxu1 %v9205_v35  ;;  %v10708_v33 = vld [vmem:[%s11379_s15 + $0x2b0] sm:$0xff]  }
 0x232   : > { %6080 = vmatpush1.bf16.msra.mxu1 %v2538_v41  ;;  %10318 = vmatprep.mubr.bf16.mxu0 %v10698_v37  ;;  %v9302_v37 = vcombine.high %v2838_v51, %v2846_v54  ;;  %v2862_v41 = vld [vmem:[%s11371_s4 + $0x4c0] sm:$0xff] }
 0x233   : > { %6081 = vmatprep.subr.bf16.mxu1 %v14381_v34  ;;  %5838 = vmatprep.mubr.bf16.mxu1 %v9222_v40  ;;  %v2854_v40 = vld [vmem:[%s11371_s4 + $0x480] sm:$0xff] }
 0x234   : > { %v10212_v42 = vpop.f32.mrb[44].mxu0  ;;  %v9317_v58 = vcombine.low %v2854_v40, %v2862_v41 }
 0x235   : > { %v1671_v45 = vpop.f32.mrb[45].mxu0 }
 0x236   : > { %v10213_v48 = vpop.f32.mrb[46].mxu0  ;;  %6082 = vmatpush1.bf16.msra.mxu1 %v2539_v38 }
 0x237   : > { %v2541_v52 = vpack.c.bf16 %v10213_v48, %v10212_v42  ;;  %v1674_v53 = vpop.f32.mrb[47].mxu0  ;;  %6083 = vmatprep.subr.bf16.mxu1 %v14381_v34 }
 0x238   : > { %v2540_v56 = vpack.c.bf16 %v1674_v53, %v1671_v45  ;;  %v2870_v53 = vld [vmem:[%s11371_s4 + $0x500] sm:$0xff] }
 0x239   : > { %10319 = vmatmul.mubr.bf16.gmra.mrb[152].mxu0 %v10699_v46  ;;  %5839 = vmatmul.mubr.bf16.gmra.mrb[12].mxu1 %v9221_v47  ;;  %v10710_v46 = vld [vmem:[%s11379_s15 + $0x2c0] sm:$0xff]  }
 0x23a   : > { %6084 = vmatpush1.bf16.msra.mxu1 %v2540_v56  ;;  %10322 = vmatprep.mubr.bf16.mxu0 %v10700_v49  ;;  %v9318_v49 = vcombine.high %v2854_v40, %v2862_v41 }
 0x23b   : > { %6085 = vmatprep.subr.bf16.mxu1 %v14381_v34  ;;  %5846 = vmatprep.mubr.bf16.mxu1 %v9238_v55  ;;  %v2878_v55 = vld [vmem:[%s11371_s4 + $0x540] sm:$0xff] }
 0x23c   : > { %v10216_v57 = vpop.f32.mrb[48].mxu0  ;;  %v9333_v6 = vcombine.low %v2870_v53, %v2878_v55 }
 0x23d   : > { %v1687_v60 = vpop.f32.mrb[49].mxu0 }
 0x23e   : > { %v10217_v63 = vpop.f32.mrb[50].mxu0  ;;  %6086 = vmatpush1.bf16.msra.mxu1 %v2541_v52 }
 0x23f   : > { %v2543_v1 = vpack.c.bf16 %v10217_v63, %v10216_v57  ;;  %v1690_v2 = vpop.f32.mrb[51].mxu0  ;;  %6087 = vmatprep.subr.bf16.mxu1 %v14381_v34  ;;  %v10711_v57 = vld [vmem:[%s11379_s15 + $0x2c8] sm:$0xff]  }
 0x240   : > { %v2542_v4 = vpack.c.bf16 %v1690_v2, %v1687_v60  ;;  %v10712_v60 = vld [vmem:[%s11379_s15 + $0x2d0] sm:$0xff]   ;;  %v2886_v2 = vld [vmem:[%s11371_s4 + $0x580] sm:$0xff] }
 0x241   : > { %10323 = vmatmul.mubr.bf16.gmra.mrb[156].mxu0 %v10701_v61  ;;  %5847 = vmatmul.mubr.bf16.gmra.mrb[16].mxu1 %v9237_v62  ;;  %v9334_v61 = vcombine.high %v2870_v53, %v2878_v55  ;;  %v10721_v53 = vld [vmem:[%s11379_s15 + $0x318] sm:$0xff]  }
 0x242   : > { %6088 = vmatpush1.bf16.msra.mxu1 %v2542_v4  ;;  %10326 = vmatprep.mubr.bf16.mxu0 %v10702_v0 }
 0x243   : > { %6089 = vmatprep.subr.bf16.mxu1 %v14381_v34  ;;  %5854 = vmatprep.mubr.bf16.mxu1 %v9254_v3  ;;  %v2894_v3 = vld [vmem:[%s11371_s4 + $0x5c0] sm:$0xff] }
 0x244   : > { %v10220_v5 = vpop.f32.mrb[52].mxu0  ;;  %v9349_v18 = vcombine.low %v2886_v2, %v2894_v3 }
 0x245   : > { %v1703_v8 = vpop.f32.mrb[53].mxu0 }
 0x246   : > { %v10221_v11 = vpop.f32.mrb[54].mxu0  ;;  %6090 = vmatpush1.bf16.msra.mxu1 %v2543_v1 }
 0x247   : > { %v2545_v13 = vpack.c.bf16 %v10221_v11, %v10220_v5  ;;  %v1706_v14 = vpop.f32.mrb[55].mxu0  ;;  %6091 = vmatprep.subr.bf16.mxu1 %v14381_v34  ;;  %v10713_v5 = vld [vmem:[%s11379_s15 + $0x2d8] sm:$0xff]  }
 0x248   : > { %v2544_v16 = vpack.c.bf16 %v1706_v14, %v1703_v8  ;;  %v10714_v8 = vld [vmem:[%s11379_s15 + $0x2e0] sm:$0xff]  }
 0x249   : > { %10327 = vmatmul.mubr.bf16.gmra.mrb[160].mxu0 %v10703_v9  ;;  %5855 = vmatmul.mubr.bf16.gmra.mrb[20].mxu1 %v9253_v10  ;;  %v9350_v9 = vcombine.high %v2886_v2, %v2894_v3  ;;  %v2902_v14 = vld [vmem:[%s11371_s4 + $0x600] sm:$0xff]  ;;  %v10723_v2 = vld [vmem:[%s11379_s15 + $0x328] sm:$0xff]  }
 0x24a   : > { %6092 = vmatpush1.bf16.msra.mxu1 %v2544_v16  ;;  %10330 = vmatprep.mubr.bf16.mxu0 %v10704_v12 }
 0x24b   : > { %6093 = vmatprep.subr.bf16.mxu1 %v14381_v34  ;;  %5862 = vmatprep.mubr.bf16.mxu1 %v9270_v15  ;;  %v2910_v15 = vld [vmem:[%s11371_s4 + $0x640] sm:$0xff] }
 0x24c   : > { %v10224_v17 = vpop.f32.mrb[56].mxu0  ;;  %v9365_v51 = vcombine.low %v2902_v14, %v2910_v15 }
 0x24d   : > { %v1719_v20 = vpop.f32.mrb[57].mxu0 }
 0x24e   : > { %v10225_v23 = vpop.f32.mrb[58].mxu0  ;;  %6094 = vmatpush1.bf16.msra.mxu1 %v2545_v13 }
 0x24f   : > { %v2547_v25 = vpack.c.bf16 %v10225_v23, %v10224_v17  ;;  %v1722_v26 = vpop.f32.mrb[59].mxu0  ;;  %6095 = vmatprep.subr.bf16.mxu1 %v14381_v34  ;;  %v10715_v17 = vld [vmem:[%s11379_s15 + $0x2e8] sm:$0xff]  }
 0x250   : > { %v2546_v28 = vpack.c.bf16 %v1722_v26, %v1719_v20  ;;  %v10716_v20 = vld [vmem:[%s11379_s15 + $0x2f0] sm:$0xff]   ;;  %v2918_v26 = vld [vmem:[%s11371_s4 + $0x680] sm:$0xff] }
 0x251   : > { %10331 = vmatmul.mubr.bf16.gmra.mrb[164].mxu0 %v10705_v21  ;;  %5863 = vmatmul.mubr.bf16.gmra.mrb[24].mxu1 %v9269_v22  ;;  %v9366_v21 = vcombine.high %v2902_v14, %v2910_v15  ;;  %v10726_v15 = vld [vmem:[%s11379_s15 + $0x340] sm:$0xff]  }
 0x252   : > { %6096 = vmatpush1.bf16.msra.mxu1 %v2546_v28  ;;  %10334 = vmatprep.mubr.bf16.mxu0 %v10706_v24 }
 0x253   : > { %6097 = vmatprep.subr.bf16.mxu1 %v14381_v34  ;;  %5870 = vmatprep.mubr.bf16.mxu1 %v9286_v27  ;;  %v2926_v27 = vld [vmem:[%s11371_s4 + $0x6c0] sm:$0xff] }
 0x254   : > { %v10228_v50 = vpop.f32.mrb[60].mxu0  ;;  %v9381_v40 = vcombine.low %v2918_v26, %v2926_v27 }
 0x255   : > { %v1735_v29 = vpop.f32.mrb[61].mxu0 }
 0x256   : > { %v10229_v32 = vpop.f32.mrb[62].mxu0  ;;  %6098 = vmatpush1.bf16.msra.mxu1 %v2547_v25 }
 0x257   : > { %v2549_v35 = vpack.c.bf16 %v10229_v32, %v10228_v50  ;;  %v1738_v36 = vpop.f32.mrb[63].mxu0  ;;  %6099 = vmatprep.subr.bf16.mxu1 %v14381_v34  ;;  %v10717_v50 = vld [vmem:[%s11379_s15 + $0x2f8] sm:$0xff]  }
 0x258   : > { %v2548_v38 = vpack.c.bf16 %v1738_v36, %v1735_v29  ;;  %v10718_v29 = vld [vmem:[%s11379_s15 + $0x300] sm:$0xff]  }
 0x259   : > { %10335 = vmatmul.mubr.bf16.gmra.mrb[168].mxu0 %v10707_v30  ;;  %5871 = vmatmul.mubr.bf16.gmra.mrb[28].mxu1 %v9285_v31  ;;  %v9382_v30 = vcombine.high %v2918_v26, %v2926_v27  ;;  %v2934_v36 = vld [vmem:[%s11371_s4 + $0x700] sm:$0xff] }
 0x25a   : > { %6100 = vmatpush1.bf16.msra.mxu1 %v2548_v38  ;;  %10338 = vmatprep.mubr.bf16.mxu0 %v10708_v33  ;;  %v10730_v27 = vld [vmem:[%s11379_s15 + $0x360] sm:$0xff]  }
 0x25b   : > { %6101 = vmatprep.subr.bf16.mxu1 %v14381_v34  ;;  %5878 = vmatprep.mubr.bf16.mxu1 %v9302_v37  ;;  %v2942_v37 = vld [vmem:[%s11371_s4 + $0x740] sm:$0xff] }
 0x25c   : > { %v10232_v39 = vpop.f32.mrb[64].mxu0  ;;  %v9397_v55 = vcombine.low %v2934_v36, %v2942_v37 }
 0x25d   : > { %v1751_v42 = vpop.f32.mrb[65].mxu0 }
 0x25e   : > { %v10233_v45 = vpop.f32.mrb[66].mxu0  ;;  %6102 = vmatpush1.bf16.msra.mxu1 %v2549_v35 }
 0x25f   : > { %v2551_v47 = vpack.c.bf16 %v10233_v45, %v10232_v39  ;;  %v1754_v48 = vpop.f32.mrb[67].mxu0  ;;  %6649 = vmatprep.subr.bf16.mxu1 %v14381_v34  ;;  %v10719_v39 = vld [vmem:[%s11379_s15 + $0x308] sm:$0xff]  }
 0x260   : > { %v2550_v52 = vpack.c.bf16 %v1754_v48, %v1751_v42  ;;  %v10720_v42 = vld [vmem:[%s11379_s15 + $0x310] sm:$0xff]   ;;  %v2950_v48 = vld [vmem:[%s11371_s4 + $0x780] sm:$0xff] }
 0x261   : > { %10339 = vmatmul.mubr.bf16.gmra.mrb[172].mxu0 %v10709_v43  ;;  %5879 = vmatmul.mubr.bf16.gmra.mrb[32].mxu1 %v9301_v44  ;;  %v9398_v43 = vcombine.high %v2934_v36, %v2942_v37  ;;  %v10734_v37 = vld [vmem:[%s11379_s15 + $0x380] sm:$0xff]  }
 0x262   : > { %6361 = vmatpush1.bf16.msra.mxu0 %v2550_v52  ;;  %10342 = vmatprep.mubr.bf16.mxu0 %v10710_v46 }
 0x263   : > { %6362 = vmatprep.subr.bf16.mxu0 %v14381_v34  ;;  %5886 = vmatprep.mubr.bf16.mxu1 %v9318_v49  ;;  %v2958_v49 = vld [vmem:[%s11371_s4 + $0x7c0] sm:$0xff] }
 0x264   : > { %v10236_v56 = vpop.f32.mrb[68].mxu0  ;;  %v9413_v3 = vcombine.low %v2950_v48, %v2958_v49 }
 0x265   : > { %v1767_v59 = vpop.f32.mrb[69].mxu0 }
 0x266   : > { %6363 = vmatpush1.bf16.msra.mxu0 %v2551_v47  ;;  %v10237_v62 = vpop.f32.mrb[70].mxu0 }
 0x267   : > { %v2553_v63 = vpack.c.bf16 %v10237_v62, %v10236_v56  ;;  %v1770_v0 = vpop.f32.mrb[71].mxu0  ;;  %6364 = vmatprep.subr.bf16.mxu0 %v14381_v34 }
 0x268   : > { %v2552_v1 = vpack.c.bf16 %v1770_v0, %v1767_v59  ;;  %v2974_v0 = vld [vmem:[%s11371_s4 + $0x840] sm:$0xff] }
 0x269   : > { %10343 = vmatmul.mubr.bf16.gmra.mrb[176].mxu0 %v10711_v57  ;;  %5887 = vmatmul.mubr.bf16.gmra.mrb[36].mxu1 %v9317_v58  ;;  %v10722_v57 = vld [vmem:[%s11379_s15 + $0x320] sm:$0xff]   ;;  %v9414_v58 = vcombine.high %v2950_v48, %v2958_v49 }
 0x26a   : > { %10346 = vmatprep.mubr.bf16.mxu0 %v10712_v60  ;;  %5894 = vmatprep.mubr.bf16.mxu1 %v9334_v61  ;;  %v10738_v49 = vld [vmem:[%s11379_s15 + $0x3a0] sm:$0xff]  }
 0x26b   : > { %6365 = vmatpush1.bf16.msra.mxu0 %v2552_v1 }
 0x26c   : > { %6366 = vmatprep.subr.bf16.mxu0 %v14381_v34  ;;  %v10240_v4 = vpop.f32.mrb[72].mxu0 }
 0x26d   : > { %v1783_v7 = vpop.f32.mrb[73].mxu0 }
 0x26e   : > { %v10241_v10 = vpop.f32.mrb[74].mxu0 }
 0x26f   : > { %6367 = vmatpush1.bf16.msra.mxu0 %v2553_v63  ;;  %v2555_v11 = vpack.c.bf16 %v10241_v10, %v10240_v4  ;;  %v1786_v12 = vpop.f32.mrb[75].mxu0  ;;  %v2966_v63 = vld [vmem:[%s11371_s4 + $0x800] sm:$0xff] }
 0x270   : > { %v2554_v13 = vpack.c.bf16 %v1786_v12, %v1783_v7  ;;  %6368 = vmatprep.subr.bf16.mxu0 %v14381_v34  ;;  %v2990_v12 = vld [vmem:[%s11371_s4 + $0x8c0] sm:$0xff]  ;;  %v9429_v14 = vcombine.low %v2966_v63, %v2974_v0 }
 0x271   : > { %10347 = vmatmul.mubr.bf16.gmra.mrb[180].mxu0 %v10713_v5  ;;  %5895 = vmatmul.mubr.bf16.gmra.mrb[40].mxu1 %v9333_v6  ;;  %v10724_v5 = vld [vmem:[%s11379_s15 + $0x330] sm:$0xff]   ;;  %v9430_v6 = vcombine.high %v2966_v63, %v2974_v0 }
 0x272   : > { %10350 = vmatprep.mubr.bf16.mxu0 %v10714_v8  ;;  %5902 = vmatprep.mubr.bf16.mxu1 %v9350_v9  ;;  %v10740_v0 = vld [vmem:[%s11379_s15 + $0x3b0] sm:$0xff]  }
 0x273   : > { %6369 = vmatpush1.bf16.msra.mxu0 %v2554_v13  ;;  %v10725_v13 = vld [vmem:[%s11379_s15 + $0x338] sm:$0xff]  }
 0x274   : > { %v10244_v16 = vpop.f32.mrb[76].mxu0  ;;  %6370 = vmatprep.subr.bf16.mxu0 %v14381_v34 }
 0x275   : > { %v1799_v19 = vpop.f32.mrb[77].mxu0 }
 0x276   : > { %v10245_v22 = vpop.f32.mrb[78].mxu0 }
 0x277   : > { %v2557_v23 = vpack.c.bf16 %v10245_v22, %v10244_v16  ;;  %6371 = vmatpush1.bf16.msra.mxu0 %v2555_v11  ;;  %v1802_v24 = vpop.f32.mrb[79].mxu0  ;;  %v2982_v11 = vld [vmem:[%s11371_s4 + $0x880] sm:$0xff] }
 0x278   : > { %v2556_v25 = vpack.c.bf16 %v1802_v24, %v1799_v19  ;;  %6372 = vmatprep.subr.bf16.mxu0 %v14381_v34  ;;  %v9446_v16 = vcombine.high %v2982_v11, %v2990_v12  ;;  %v10727_v19 = vld [vmem:[%s11379_s15 + $0x348] sm:$0xff]   ;;  %v3022_v24 = vld [vmem:[%s11371_s4 + $0x9c0] sm:$0xff] }
 0x279   : > { %10351 = vmatmul.mubr.bf16.gmra.mrb[184].mxu0 %v10715_v17  ;;  %5903 = vmatmul.mubr.bf16.gmra.mrb[44].mxu1 %v9349_v18  ;;  %v2998_v17 = vld [vmem:[%s11371_s4 + $0x900] sm:$0xff] }
 0x27a   : > { %10354 = vmatprep.mubr.bf16.mxu0 %v10716_v20  ;;  %5910 = vmatprep.mubr.bf16.mxu1 %v9366_v21  ;;  %v3006_v18 = vld [vmem:[%s11371_s4 + $0x940] sm:$0xff]  ;;  %v9445_v20 = vcombine.low %v2982_v11, %v2990_v12  ;;  %v10728_v21 = vld [vmem:[%s11379_s15 + $0x350] sm:$0xff]  }
 0x27b   : > { %6373 = vmatpush1.bf16.msra.mxu0 %v2556_v25  ;;  %v9462_v22 = vcombine.high %v2998_v17, %v3006_v18  ;;  %v10729_v25 = vld [vmem:[%s11379_s15 + $0x358] sm:$0xff]   ;;  %v9461_v26 = vcombine.low %v2998_v17, %v3006_v18 }
 0x27c   : > { %v10248_v28 = vpop.f32.mrb[80].mxu0  ;;  %6374 = vmatprep.subr.bf16.mxu0 %v14381_v34 }
 0x27d   : > { %v1815_v54 = vpop.f32.mrb[81].mxu0 }
 0x27e   : > { %v10249_v31 = vpop.f32.mrb[82].mxu0 }
 0x27f   : > { %v2559_v32 = vpack.c.bf16 %v10249_v31, %v10248_v28  ;;  %6375 = vmatpush1.bf16.msra.mxu0 %v2557_v23  ;;  %v1818_v33 = vpop.f32.mrb[83].mxu0  ;;  %v3014_v23 = vld [vmem:[%s11371_s4 + $0x980] sm:$0xff] }
 0x280   : > { %v2558_v35 = vpack.c.bf16 %v1818_v33, %v1815_v54  ;;  %6376 = vmatprep.subr.bf16.mxu0 %v14381_v34  ;;  %v9478_v28 = vcombine.high %v3014_v23, %v3022_v24  ;;  %v10731_v54 = vld [vmem:[%s11379_s15 + $0x368] sm:$0xff]   ;;  %v3054_v33 = vld [vmem:[%s11371_s4 + $0xac0] sm:$0xff] }
 0x281   : > { %10355 = vmatmul.mubr.bf16.gmra.mrb[188].mxu0 %v10717_v50  ;;  %5911 = vmatmul.mubr.bf16.gmra.mrb[48].mxu1 %v9365_v51  ;;  %v3030_v50 = vld [vmem:[%s11371_s4 + $0xa00] sm:$0xff] }
 0x282   : > { %10358 = vmatprep.mubr.bf16.mxu0 %v10718_v29  ;;  %5918 = vmatprep.mubr.bf16.mxu1 %v9382_v30  ;;  %v3038_v51 = vld [vmem:[%s11371_s4 + $0xa40] sm:$0xff]  ;;  %v9477_v29 = vcombine.low %v3014_v23, %v3022_v24  ;;  %v10732_v30 = vld [vmem:[%s11379_s15 + $0x370] sm:$0xff]  }
 0x283   : > { %6377 = vmatpush1.bf16.msra.mxu0 %v2558_v35  ;;  %v9494_v31 = vcombine.high %v3030_v50, %v3038_v51  ;;  %v10733_v35 = vld [vmem:[%s11379_s15 + $0x378] sm:$0xff]   ;;  %v9493_v36 = vcombine.low %v3030_v50, %v3038_v51  ;;  %v3134_v23 = vld [vmem:[%s11371_s4 + $0xd40] sm:$0xff] }
 0x284   : > { %v10252_v38 = vpop.f32.mrb[84].mxu0  ;;  %6378 = vmatprep.subr.bf16.mxu0 %v14381_v34 }
 0x285   : > { %v1831_v41 = vpop.f32.mrb[85].mxu0 }
 0x286   : > { %v10253_v44 = vpop.f32.mrb[86].mxu0 }
 0x287   : > { %v2561_v45 = vpack.c.bf16 %v10253_v44, %v10252_v38  ;;  %6379 = vmatpush1.bf16.msra.mxu0 %v2559_v32  ;;  %v1834_v46 = vpop.f32.mrb[87].mxu0  ;;  %v3046_v32 = vld [vmem:[%s11371_s4 + $0xa80] sm:$0xff] }
 0x288   : > { %v2560_v47 = vpack.c.bf16 %v1834_v46, %v1831_v41  ;;  %6380 = vmatprep.subr.bf16.mxu0 %v14381_v34  ;;  %v9510_v38 = vcombine.high %v3046_v32, %v3054_v33  ;;  %v10735_v41 = vld [vmem:[%s11379_s15 + $0x388] sm:$0xff]   ;;  %v3086_v46 = vld [vmem:[%s11371_s4 + $0xbc0] sm:$0xff] }
 0x289   : > { %10359 = vmatmul.mubr.bf16.gmra.mrb[192].mxu0 %v10719_v39  ;;  %5919 = vmatmul.mubr.bf16.gmra.mrb[52].mxu1 %v9381_v40  ;;  %v3062_v39 = vld [vmem:[%s11371_s4 + $0xb00] sm:$0xff] }
 0x28a   : > { %10362 = vmatprep.mubr.bf16.mxu0 %v10720_v42  ;;  %5926 = vmatprep.mubr.bf16.mxu1 %v9398_v43  ;;  %v3070_v40 = vld [vmem:[%s11371_s4 + $0xb40] sm:$0xff]  ;;  %v9509_v42 = vcombine.low %v3046_v32, %v3054_v33  ;;  %v10736_v43 = vld [vmem:[%s11379_s15 + $0x390] sm:$0xff]  }
 0x28b   : > { %6381 = vmatpush1.bf16.msra.mxu0 %v2560_v47  ;;  %v9526_v44 = vcombine.high %v3062_v39, %v3070_v40  ;;  %v10737_v47 = vld [vmem:[%s11379_s15 + $0x398] sm:$0xff]   ;;  %v9525_v48 = vcombine.low %v3062_v39, %v3070_v40  ;;  %v3150_v39 = vld [vmem:[%s11371_s4 + $0xdc0] sm:$0xff] }
 0x28c   : > { %v10256_v52 = vpop.f32.mrb[88].mxu0  ;;  %6382 = vmatprep.subr.bf16.mxu0 %v14381_v34 }
 0x28d   : > { %v1847_v56 = vpop.f32.mrb[89].mxu0 }
 0x28e   : > { %v10257_v59 = vpop.f32.mrb[90].mxu0 }
 0x28f   : > { %v2563_v60 = vpack.c.bf16 %v10257_v59, %v10256_v52  ;;  %6383 = vmatpush1.bf16.msra.mxu0 %v2561_v45  ;;  %v1850_v61 = vpop.f32.mrb[91].mxu0  ;;  %v3078_v45 = vld [vmem:[%s11371_s4 + $0xb80] sm:$0xff] }
 0x290   : > { %v2562_v62 = vpack.c.bf16 %v1850_v61, %v1847_v56  ;;  %6384 = vmatprep.subr.bf16.mxu0 %v14381_v34  ;;  %v9542_v52 = vcombine.high %v3078_v45, %v3086_v46  ;;  %v3094_v56 = vld [vmem:[%s11371_s4 + $0xc00] sm:$0xff]  ;;  %v10739_v61 = vld [vmem:[%s11379_s15 + $0x3a8] sm:$0xff]  }
 0x291   : > { %10363 = vmatmul.mubr.bf16.gmra.mrb[196].mxu0 %v10721_v53  ;;  %5927 = vmatmul.mubr.bf16.gmra.mrb[56].mxu1 %v9397_v55 }
 0x292   : > { %10366 = vmatprep.mubr.bf16.mxu0 %v10722_v57  ;;  %5934 = vmatprep.mubr.bf16.mxu1 %v9414_v58  ;;  %v3102_v57 = vld [vmem:[%s11371_s4 + $0xc40] sm:$0xff] }
 0x293   : > { %6385 = vmatpush1.bf16.msra.mxu0 %v2562_v62  ;;  %v9541_v62 = vcombine.low %v3078_v45, %v3086_v46 }
 0x294   : > { %v10260_v1 = vpop.f32.mrb[92].mxu0  ;;  %6386 = vmatprep.subr.bf16.mxu0 %v14381_v34 }
 0x295   : > { %v1863_v4 = vpop.f32.mrb[93].mxu0 }
 0x296   : > { %v10261_v7 = vpop.f32.mrb[94].mxu0 }
 0x297   : > { %v2565_v8 = vpack.c.bf16 %v10261_v7, %v10260_v1  ;;  %6387 = vmatpush1.bf16.msra.mxu0 %v2563_v60  ;;  %v1866_v9 = vpop.f32.mrb[95].mxu0  ;;  %v9558_v1 = vcombine.high %v3094_v56, %v3102_v57 }
 0x298   : > { %v2564_v10 = vpack.c.bf16 %v1866_v9, %v1863_v4  ;;  %6388 = vmatprep.subr.bf16.mxu0 %v14381_v34  ;;  %v3110_v4 = vld [vmem:[%s11371_s4 + $0xc80] sm:$0xff]  ;;  %v10741_v9 = vld [vmem:[%s11379_s15 + $0x3b8] sm:$0xff]  }
 0x299   : > { %10367 = vmatmul.mubr.bf16.gmra.mrb[200].mxu0 %v10723_v2  ;;  %5935 = vmatmul.mubr.bf16.gmra.mrb[60].mxu1 %v9413_v3 }
 0x29a   : > { %10370 = vmatprep.mubr.bf16.mxu0 %v10724_v5  ;;  %5942 = vmatprep.mubr.bf16.mxu1 %v9430_v6  ;;  %v3118_v5 = vld [vmem:[%s11371_s4 + $0xcc0] sm:$0xff] }
 0x29b   : > { %6389 = vmatpush1.bf16.msra.mxu0 %v2564_v10  ;;  %v9557_v10 = vcombine.low %v3094_v56, %v3102_v57 }
 0x29c   : > { %6390 = vmatprep.subr.bf16.mxu0 %v14381_v34  ;;  %v11689_v53 = vpop.f32.mrb[96].mxu0 }
 0x29d   : > { %v11691_v55 = vpop.f32.mrb[97].mxu0 }
 0x29e   : > { %v11695_v58 = vpop.f32.mrb[98].mxu0 }
 0x29f   : > { %6391 = vmatpush1.bf16.msra.mxu0 %v2565_v8  ;;  %v11699_v60 = vpop.f32.mrb[99].mxu0 }
 0x2a0   : > { %6938 = vmatprep.subr.bf16.mxu0 %v14381_v34  ;;  %v2728_v34 = vld [vmem:[%s11371_s4 + $0x90] sm:$0xff] }
 0x2a1   : > { %10371 = vmatmul.mubr.bf16.gmra.mrb[204].mxu0 %v10725_v13  ;;  %5943 = vmatmul.mubr.bf16.gmra.mrb[64].mxu1 %v9429_v14  ;;  %v10742_v13 = vld [vmem:[%s11379_s15 + $0x3c0] sm:$0xff]   ;;  %v9574_v14 = vcombine.high %v3110_v4, %v3118_v5 }
 0x2a2   : > { %10374 = vmatprep.mubr.bf16.mxu0 %v10726_v15  ;;  %5950 = vmatprep.mubr.bf16.mxu1 %v9446_v16 }
 0x2a4   : > { %v11705_v2 = vpop.f32.mrb[100].mxu0 }
 0x2a5   : > { %v11707_v3 = vpop.f32.mrb[101].mxu0 }
 0x2a6   : > { %v11711_v6 = vpop.f32.mrb[102].mxu0 }
 0x2a7   : > { %v11715_v8 = vpop.f32.mrb[103].mxu0 }
 0x2a9   : > { %10375 = vmatmul.mubr.bf16.gmra.mrb[208].mxu0 %v10727_v19  ;;  %5951 = vmatmul.mubr.bf16.gmra.mrb[68].mxu1 %v9445_v20 }
 0x2aa   : > { %10378 = vmatprep.mubr.bf16.mxu0 %v10728_v21  ;;  %5958 = vmatprep.mubr.bf16.mxu1 %v9462_v22  ;;  %v3126_v22 = vld [vmem:[%s11371_s4 + $0xd00] sm:$0xff] }
 0x2ac   : > { %v11720_v12 = vpop.f32.mrb[104].mxu0 }
 0x2ad   : > { %v11723_v15 = vpop.f32.mrb[105].mxu0 }
 0x2ae   : > { %v11725_v16 = vpop.f32.mrb[106].mxu0 }
 0x2af   : > { %v11729_v18 = vpop.f32.mrb[107].mxu0 }
 0x2b1   : > { %10379 = vmatmul.mubr.bf16.gmra.mrb[212].mxu0 %v10729_v25  ;;  %5959 = vmatmul.mubr.bf16.gmra.mrb[72].mxu1 %v9461_v26 }
 0x2b2   : > { %10382 = vmatprep.mubr.bf16.mxu0 %v10730_v27  ;;  %5966 = vmatprep.mubr.bf16.mxu1 %v9478_v28  ;;  %v10743_v27 = vld [vmem:[%s11379_s15 + $0x3c8] sm:$0xff]   ;;  %v9573_v28 = vcombine.low %v3110_v4, %v3118_v5  ;;  %v3166_v4 = vld [vmem:[%s11371_s4 + $0xe40] sm:$0xff] }
 0x2b4   : > { %v11733_v20 = vpop.f32.mrb[108].mxu0 }
 0x2b5   : > { %v11735_v21 = vpop.f32.mrb[109].mxu0 }
 0x2b6   : > { %v11739_v24 = vpop.f32.mrb[110].mxu0 }
 0x2b7   : > { %v11743_v26 = vpop.f32.mrb[111].mxu0 }
 0x2b9   : > { %10383 = vmatmul.mubr.bf16.gmra.mrb[216].mxu0 %v10731_v54  ;;  %5967 = vmatmul.mubr.bf16.gmra.mrb[76].mxu1 %v9477_v29  ;;  %v10744_v54 = vld [vmem:[%s11379_s15 + $0x3d0] sm:$0xff]   ;;  %v9590_v29 = vcombine.high %v3126_v22, %v3134_v23 }
 0x2ba   : > { %10386 = vmatprep.mubr.bf16.mxu0 %v10732_v30  ;;  %5974 = vmatprep.mubr.bf16.mxu1 %v9494_v31 }
 0x2bc   : > { %v11748_v51 = vpop.f32.mrb[112].mxu0 }
 0x2bd   : > { %v11751_v30 = vpop.f32.mrb[113].mxu0 }
 0x2be   : > { %v11753_v31 = vpop.f32.mrb[114].mxu0 }
 0x2bf   : > { %v11757_v33 = vpop.f32.mrb[115].mxu0 }
 0x2c1   : > { %10387 = vmatmul.mubr.bf16.gmra.mrb[220].mxu0 %v10733_v35  ;;  %5975 = vmatmul.mubr.bf16.gmra.mrb[80].mxu1 %v9493_v36  ;;  %v10749_v35 = vld [vmem:[%s11379_s15 + $0x3f8] sm:$0xff]  }
 0x2c2   : > { %10390 = vmatprep.mubr.bf16.mxu0 %v10734_v37  ;;  %5982 = vmatprep.mubr.bf16.mxu1 %v9510_v38  ;;  %v3142_v38 = vld [vmem:[%s11371_s4 + $0xd80] sm:$0xff] }
 0x2c4   : > { %v11761_v36 = vpop.f32.mrb[116].mxu0 }
 0x2c5   : > { %14485 = vst [vmem:[#allocation26_spill] sm:$0xff] %v11761_v36  ;;  %v11763_v37 = vpop.f32.mrb[117].mxu0 }
 0x2c6   : > { %14486 = vst [vmem:[#allocation27_spill] sm:$0xff] %v11763_v37  ;;  %v11767_v40 = vpop.f32.mrb[118].mxu0 }
 0x2c7   : > { %14487 = vst [vmem:[#allocation28_spill] sm:$0xff] %v11767_v40 }
 0x2c9   : > { %10391 = vmatmul.mubr.bf16.gmra.mrb[224].mxu0 %v10735_v41  ;;  %5983 = vmatmul.mubr.bf16.gmra.mrb[84].mxu1 %v9509_v42  ;;  %v11771_v42 = vpop.f32.mrb[119].mxu0  ;;  %v2720_v41 = vld [vmem:[%s11371_s4 + $0x50] sm:$0xff] }
 0x2ca   : > { %10394 = vmatprep.mubr.bf16.mxu0 %v10736_v43  ;;  %5990 = vmatprep.mubr.bf16.mxu1 %v9526_v44  ;;  %v10745_v43 = vld [vmem:[%s11379_s15 + $0x3d8] sm:$0xff]   ;;  %v9589_v44 = vcombine.low %v3126_v22, %v3134_v23  ;;  %v9605_v22 = vcombine.low %v3142_v38, %v3150_v39 }
 0x2cc   : > { %v11776_v46 = vpop.f32.mrb[120].mxu0 }
 0x2cd   : > { %14488 = vst [vmem:[#allocation29_spill] sm:$0xff] %v11776_v46 }
 0x2d1   : > { %10395 = vmatmul.mubr.bf16.gmra.mrb[228].mxu0 %v10737_v47  ;;  %5991 = vmatmul.mubr.bf16.gmra.mrb[88].mxu1 %v9525_v48  ;;  %v10746_v47 = vld [vmem:[%s11379_s15 + $0x3e0] sm:$0xff]   ;;  %v9606_v48 = vcombine.high %v3142_v38, %v3150_v39 }
 0x2d2   : > { %10398 = vmatprep.mubr.bf16.mxu0 %v10738_v49  ;;  %5998 = vmatprep.mubr.bf16.mxu1 %v9542_v52  ;;  %v11779_v49 = vpop.f32.mrb[121].mxu0 }
 0x2d3   : > { %14489 = vst [vmem:[#allocation30_spill] sm:$0xff] %v11779_v49  ;;  %v11781_v52 = vpop.f32.mrb[122].mxu0 }
 0x2d4   : > { %14490 = vst [vmem:[#allocation31_spill] sm:$0xff] %v11781_v52  ;;  %v11785_v57 = vpop.f32.mrb[123].mxu0 }
 0x2d5   : > { %14491 = vst [vmem:[#allocation32_spill] sm:$0xff] %v11785_v57  ;;  %v2760_v57 = vld [vmem:[%s11371_s4 + $0x190] sm:$0xff] }
 0x2d9   : > { %10399 = vmatmul.mubr.bf16.gmra.mrb[232].mxu0 %v10739_v61  ;;  %5999 = vmatmul.mubr.bf16.gmra.mrb[92].mxu1 %v9541_v62  ;;  %v11789_v62 = vpop.f32.mrb[124].mxu0  ;;  %v2712_v61 = vld [vmem:[%s11371_s4 + $0x10] sm:$0xff] }
 0x2da   : > { %10402 = vmatprep.mubr.bf16.mxu0 %v10740_v0  ;;  %6006 = vmatprep.mubr.bf16.mxu1 %v9558_v1  ;;  %14492 = vst [vmem:[#allocation33_spill] sm:$0xff] %v11789_v62  ;;  %v11791_v0 = vpop.f32.mrb[125].mxu0  ;;  %v3158_v1 = vld [vmem:[%s11371_s4 + $0xe00] sm:$0xff]  ;;  %v9178_v19 = vcombine.high %v2712_v61, %v2720_v41 }
 0x2db   : > { %14493 = vst [vmem:[#allocation34_spill] sm:$0xff] %v11791_v0  ;;  %v11795_v5 = vpop.f32.mrb[126].mxu0  ;;  %v9621_v25 = vcombine.low %v3158_v1, %v3166_v4 }
 0x2dc   : > { %14494 = vst [vmem:[#allocation35_spill] sm:$0xff] %v11795_v5 }
 0x2e1   : > { %10403 = vmatmul.mubr.bf16.gmra.mrb[236].mxu0 %v10741_v9  ;;  %6007 = vmatmul.mubr.bf16.gmra.mrb[96].mxu1 %v9557_v10 }
 0x2e2   : > { %10406 = vmatprep.mubr.bf16.mxu0 %v10742_v13  ;;  %6014 = vmatprep.mubr.bf16.mxu1 %v9574_v14  ;;  %v11801_v13 = vpop.f32.mrb[127].mxu0  ;;  %v10747_v14 = vld [vmem:[%s11379_s15 + $0x3e8] sm:$0xff]  }
 0x2e3   : > { %14496 = vst [vmem:[#allocation37_spill] sm:$0xff] %v11801_v13  ;;  %v2752_v13 = vld [vmem:[%s11371_s4 + $0x150] sm:$0xff] }
 0x2e9   : > { %10407 = vmatmul.mubr.bf16.gmra.mrb[240].mxu0 %v10743_v27  ;;  %6015 = vmatmul.mubr.bf16.gmra.mrb[100].mxu1 %v9573_v28  ;;  %v11806_v28 = vpop.f32.mrb[128].mxu0  ;;  %v3174_v27 = vld [vmem:[%s11371_s4 + $0xe80] sm:$0xff] }
 0x2ea   : > { %10410 = vmatprep.mubr.bf16.mxu0 %v10744_v54  ;;  %6022 = vmatprep.mubr.bf16.mxu1 %v9590_v29  ;;  %v10748_v54 = vld [vmem:[%s11379_s15 + $0x3f0] sm:$0xff]   ;;  %v9622_v29 = vcombine.high %v3158_v1, %v3166_v4  ;;  %v9177_v4 = vcombine.low %v2712_v61, %v2720_v41 }
 0x2f1   : > { %10411 = vmatmul.mubr.bf16.gmra.mrb[244].mxu0 %v10745_v43  ;;  %6023 = vmatmul.mubr.bf16.gmra.mrb[104].mxu1 %v9589_v44  ;;  %v11811_v44 = vpop.f32.mrb[129].mxu0 }
 0x2f2   : > { %10414 = vmatprep.mubr.bf16.mxu0 %v10746_v47  ;;  %6030 = vmatprep.mubr.bf16.mxu1 %v9606_v48  ;;  %v11813_v48 = vpop.f32.mrb[130].mxu0 }
 0x2f3   : > { %v11817_v39 = vpop.f32.mrb[131].mxu0 }
 0x2f4   : > { %v11797_v9 = vpop.f32.mrb[0].mxu1  ;;  %v11821_v10 = vpop.f32.mrb[132].mxu0  ;;  %v14502_v41 = vpack.c.bf16 %v11817_v39, %v11811_v44 }
 0x2f5   : > { %14495 = vst [vmem:[#allocation36_spill] sm:$0xff] %v11797_v9  ;;  %v5818_v23 = vpop.f32.mrb[1].mxu1  ;;  %v11824_v56 = vpop.f32.mrb[133].mxu0 }
 0x2f6   : > { %v11809_v43 = vpop.f32.mrb[2].mxu1  ;;  %v11829_v45 = vpop.f32.mrb[134].mxu0  ;;  %v2736_v23 = vld [vmem:[%s11371_s4 + $0xd0] sm:$0xff] }
 0x2f7   : > { %14497 = vst [vmem:[#allocation38_spill] sm:$0xff] %v11809_v43  ;;  %v5821_v47 = vpop.f32.mrb[3].mxu1  ;;  %v9194_v62 = vcombine.high %v2728_v34, %v2736_v23 }
 0x2f8   : > { %v3182_v47 = vld [vmem:[%s11371_s4 + $0xec0] sm:$0xff] }
 0x2f9   : > { %10415 = vmatmul.mubr.bf16.gmra.mrb[248].mxu0 %v10747_v14  ;;  %6031 = vmatmul.mubr.bf16.gmra.mrb[108].mxu1 %v9605_v22  ;;  %v11835_v22 = vpop.f32.mrb[135].mxu0  ;;  %v9638_v17 = vcombine.high %v3174_v27, %v3182_v47 }
 0x2fa   : > { %10418 = vmatprep.mubr.bf16.mxu0 %v10748_v54  ;;  %6038 = vmatprep.mubr.bf16.mxu1 %v9622_v29  ;;  %v11840_v29 = vpop.f32.mrb[136].mxu0  ;;  %v3190_v54 = vld [vmem:[%s11371_s4 + $0xf00] sm:$0xff] }
 0x2fb   : > { %v11844_v11 = vpop.f32.mrb[137].mxu0 }
 0x2fc   : > { %v11831_v32 = vpop.f32.mrb[4].mxu1  ;;  %v11846_v63 = vpop.f32.mrb[138].mxu0 }
 0x2fd   : > { %14498 = vst [vmem:[#allocation39_spill] sm:$0xff] %v11831_v32  ;;  %v5826_v50 = vpop.f32.mrb[5].mxu1  ;;  %v11850_v1 = vpop.f32.mrb[139].mxu0  ;;  %v9637_v32 = vcombine.low %v3174_v27, %v3182_v47  ;;  %v3206_v47 = vld [vmem:[%s11371_s4 + $0xf80] sm:$0xff] }
 0x2fe   : > { %v11842_v7 = vpop.f32.mrb[6].mxu1  ;;  %v11854_v14 = vpop.f32.mrb[140].mxu0 }
 0x2ff   : > { %14499 = vst [vmem:[#allocation40_spill] sm:$0xff] %v11842_v7  ;;  %v5829_v59 = vpop.f32.mrb[7].mxu1  ;;  %v11857_v38 = vpop.f32.mrb[141].mxu0 }
 0x300   : > { %v3198_v59 = vld [vmem:[%s11371_s4 + $0xf40] sm:$0xff]  ;;  %v11862_v7 = vpop.f32.mrb[142].mxu0 }
 0x301   : > { %10419 = vmatmul.mubr.bf16.gmra.mrb[252].mxu0 %v10749_v35  ;;  %6039 = vmatmul.mubr.bf16.gmra.mrb[112].mxu1 %v9621_v25  ;;  %v11868_v35 = vpop.f32.mrb[143].mxu0  ;;  %v9654_v9 = vcombine.high %v3190_v54, %v3198_v59  ;;  %v9653_v52 = vcombine.low %v3190_v54, %v3198_v59  ;;  %v2711_v59 = vld [vmem:[%s11371_s4 + $0x8] sm:$0xff] }
 0x302   : > { %6046 = vmatprep.mubr.bf16.mxu1 %v9638_v17  ;;  %6392 = vmatprep.mubr.bf16.mxu0 %v9178_v19  ;;  %v11872_v19 = vpop.f32.mrb[144].mxu0 }
 0x304   : > { %v11864_v50 = vpop.f32.mrb[8].mxu1 }
 0x305   : > { %14500 = vst [vmem:[#allocation41_spill] sm:$0xff] %v11864_v50  ;;  %v5834_v43 = vpop.f32.mrb[9].mxu1  ;;  %v11876_v50 = vpop.f32.mrb[145].mxu0 }
 0x306   : > { %v11874_v5 = vpop.f32.mrb[10].mxu1  ;;  %v11878_v0 = vpop.f32.mrb[146].mxu0 }
 0x307   : > { %14501 = vst [vmem:[#allocation42_spill] sm:$0xff] %v11874_v5  ;;  %v5837_v25 = vpop.f32.mrb[11].mxu1  ;;  %v11882_v61 = vpop.f32.mrb[147].mxu0  ;;  %v2744_v5 = vld [vmem:[%s11371_s4 + $0x110] sm:$0xff] }
 0x308   : > { %v11886_v43 = vpop.f32.mrb[148].mxu0  ;;  %v3214_v25 = vld [vmem:[%s11371_s4 + $0xfc0] sm:$0xff]  ;;  %v9210_v39 = vcombine.high %v2744_v5, %v2752_v13 }
 0x309   : > { %6047 = vmatmul.mubr.bf16.gmra.mrb[116].mxu1 %v9637_v32  ;;  %6393 = vmatmul.mubr.bf16.vlgmr.msra.gmra.mrb[0].mxu0 %v9177_v4  ;;  %v11889_v17 = vpop.f32.mrb[149].mxu0  ;;  %v9670_v44 = vcombine.high %v3206_v47, %v3214_v25 }
 0x30a   : > { %6054 = vmatprep.mubr.bf16.mxu1 %v9654_v9  ;;  %6400 = vmatprep.mubr.bf16.mxu0 %v9194_v62  ;;  %v11894_v46 = vpop.f32.mrb[150].mxu0  ;;  %v14504_v62 = vmov 0   ;;  %v9193_v9 = vcombine.low %v2728_v34, %v2736_v23  ;;  %v14506_v34 = vpack.c.bf16 %v11813_v48, %v11806_v28  ;;  %v14507_v28 = vpack.c.bf16 %v11835_v22, %v11824_v56 }
 0x30b   : > { %6939 = vmatpush1.bf16.msra.mxu0 %v14502_v41  ;;  %v11903_v27 = vpop.f32.mrb[151].mxu0 }
 0x30c   : > { %v11899_v32 = vpop.f32.mrb[12].mxu1  ;;  %6940 = vmatprep.subr.bf16.mxu0 %v14504_v62  ;;  %v11908_v36 = vpop.f32.mrb[152].mxu0 }
 0x30d   : > { %14503 = vst [vmem:[#allocation43_spill] sm:$0xff] %v11899_v32  ;;  %v5842_v49 = vpop.f32.mrb[13].mxu1  ;;  %v11912_v4 = vpop.f32.mrb[153].mxu0 }
 0x30e   : > { %v11910_v41 = vpop.f32.mrb[14].mxu1  ;;  %v11914_v40 = vpop.f32.mrb[154].mxu0 }
 0x30f   : > { %14505 = vst [vmem:[#allocation44_spill] sm:$0xff] %v11910_v41  ;;  %v5845_v32 = vpop.f32.mrb[15].mxu1  ;;  %6941 = vmatpush1.bf16.msra.mxu0 %v14506_v34  ;;  %v11921_v23 = vpop.f32.mrb[155].mxu0  ;;  %v2768_v41 = vld [vmem:[%s11371_s4 + $0x1d0] sm:$0xff] }
 0x310   : > { %6942 = vmatprep.subr.bf16.mxu0 %v14504_v62  ;;  %v2719_v32 = vld [vmem:[%s11371_s4 + $0x48] sm:$0xff]  ;;  %v9226_v54 = vcombine.high %v2760_v57, %v2768_v41 }
 0x311   : > { %6055 = vmatmul.mubr.bf16.gmra.mrb[120].mxu1 %v9653_v52  ;;  %6401 = vmatmul.mubr.bf16.gmra.mrb[4].mxu0 %v9193_v9  ;;  %v9209_v52 = vcombine.low %v2744_v5, %v2752_v13  ;;  %v9669_v9 = vcombine.low %v3206_v47, %v3214_v25  ;;  %v14510_v5 = vpack.c.bf16 %v11829_v45, %v11821_v10  ;;  %v2727_v47 = vld [vmem:[%s11371_s4 + $0x88] sm:$0xff] }
 0x312   : > { %6062 = vmatprep.mubr.bf16.mxu1 %v9670_v44  ;;  %6408 = vmatprep.mubr.bf16.mxu0 %v9210_v39  ;;  %v9176_v39 = vcombine.high %v2711_v59, %v2719_v32  ;;  %v2735_v25 = vld [vmem:[%s11371_s4 + $0xc8] sm:$0xff]  ;;  %v9175_v10 = vcombine.low %v2711_v59, %v2719_v32 }
 0x313   : > { %6943 = vmatpush1.bf16.msra.mxu0 %v14507_v28  ;;  %v14511_v28 = vpack.c.bf16 %v11850_v1, %v11844_v11  ;;  %v2743_v59 = vld [vmem:[%s11371_s4 + $0x108] sm:$0xff] }
 0x314   : > { %v11933_v48 = vpop.f32.mrb[16].mxu1  ;;  %v11935_v34 = vpop.f32.mrb[156].mxu0  ;;  %6944 = vmatprep.subr.bf16.mxu0 %v14504_v62  ;;  %v2751_v32 = vld [vmem:[%s11371_s4 + $0x148] sm:$0xff] }
 0x315   : > { %14508 = vst [vmem:[#allocation45_spill] sm:$0xff] %v11933_v48  ;;  %v5850_v49 = vpop.f32.mrb[17].mxu1  ;;  %v11938_v44 = vpop.f32.mrb[157].mxu0 }
 0x316   : > { %v11940_v37 = vpop.f32.mrb[18].mxu1  ;;  %v11942_v56 = vpop.f32.mrb[158].mxu0  ;;  %v2776_v49 = vld [vmem:[%s11371_s4 + $0x210] sm:$0xff] }
 0x317   : > { %14509 = vst [vmem:[#allocation46_spill] sm:$0xff] %v11940_v37  ;;  %v5853_v22 = vpop.f32.mrb[19].mxu1  ;;  %v11946_v48 = vpop.f32.mrb[159].mxu0  ;;  %6945 = vmatpush1.bf16.msra.mxu0 %v14510_v5  ;;  %v9225_v5 = vcombine.low %v2760_v57, %v2768_v41  ;;  %v14513_v57 = vpack.c.bf16 %v11846_v63, %v11840_v29  ;;  %v14515_v63 = vpack.c.bf16 %v11868_v35, %v11857_v38 }
 0x318   : > { %6946 = vmatprep.subr.bf16.mxu0 %v14504_v62  ;;  %v2784_v22 = vld [vmem:[%s11371_s4 + $0x250] sm:$0xff]  ;;  %v9208_v41 = vcombine.high %v2743_v59, %v2751_v32  ;;  %v14516_v35 = vpack.c.bf16 %v11695_v58, %v11689_v53  ;;  %v2759_v53 = vld [vmem:[%s11371_s4 + $0x188] sm:$0xff] }
 0x319   : > { %6063 = vmatmul.mubr.bf16.gmra.mrb[124].mxu1 %v9669_v9  ;;  %6409 = vmatmul.mubr.bf16.gmra.mrb[8].mxu0 %v9209_v52  ;;  %v2767_v58 = vld [vmem:[%s11371_s4 + $0x1c8] sm:$0xff] }
 0x31a   : > { %6103 = vmatprep.mubr.bf16.mxu1 %v9176_v39  ;;  %6416 = vmatprep.mubr.bf16.mxu0 %v9226_v54  ;;  %v9192_v54 = vcombine.high %v2727_v47, %v2735_v25  ;;  %v9242_v39 = vcombine.high %v2776_v49, %v2784_v22 }
 0x31b   : > { %6947 = vmatpush1.bf16.msra.mxu0 %v14511_v28  ;;  %v14514_v28 = vpack.c.bf16 %v11699_v60, %v11691_v55 }
 0x31c   : > { %v11961_v37 = vpop.f32.mrb[20].mxu1  ;;  %v11963_v45 = vpop.f32.mrb[160].mxu0  ;;  %6948 = vmatprep.subr.bf16.mxu0 %v14504_v62 }
 0x31d   : > { %14512 = vst [vmem:[#allocation47_spill] sm:$0xff] %v11961_v37  ;;  %v5858_v9 = vpop.f32.mrb[21].mxu1  ;;  %v11966_v52 = vpop.f32.mrb[161].mxu0 }
 0x31e   : > { %v11968_v13 = vpop.f32.mrb[22].mxu1  ;;  %v11970_v11 = vpop.f32.mrb[162].mxu0  ;;  %v2792_v9 = vld [vmem:[%s11371_s4 + $0x290] sm:$0xff] }
 0x31f   : > { %v5861_v1 = vpop.f32.mrb[23].mxu1  ;;  %v11974_v37 = vpop.f32.mrb[163].mxu0  ;;  %6949 = vmatpush1.bf16.msra.mxu0 %v14513_v57 }
 0x320   : > { %6950 = vmatprep.subr.bf16.mxu0 %v14504_v62  ;;  %v2800_v1 = vld [vmem:[%s11371_s4 + $0x2d0] sm:$0xff] }
 0x321   : > { %6104 = vmatmul.mubr.bf16.vlgmr.msra.gmra.mrb[128].mxu1 %v9175_v10  ;;  %6417 = vmatmul.mubr.bf16.gmra.mrb[12].mxu0 %v9225_v5  ;;  %v9241_v5 = vcombine.low %v2776_v49, %v2784_v22  ;;  %v9258_v55 = vcombine.high %v2792_v9, %v2800_v1  ;;  %v14517_v49 = vpack.c.bf16 %v11862_v7, %v11854_v14  ;;  %v2904_v22 = vld [vmem:[%s11371_s4 + $0x610] sm:$0xff] }
 0x322   : > { %6111 = vmatprep.mubr.bf16.mxu1 %v9192_v54  ;;  %6424 = vmatprep.mubr.bf16.mxu0 %v9242_v39  ;;  %v9191_v54 = vcombine.low %v2727_v47, %v2735_v25  ;;  %v14519_v7 = vpack.c.bf16 %v11882_v61, %v11876_v50 }
 0x323   : > { %6650 = vmatpush1.bf16.msra.mxu1 %v14514_v28  ;;  %6951 = vmatpush1.bf16.msra.mxu0 %v14515_v63  ;;  %v2808_v63 = vld [vmem:[%s11371_s4 + $0x310] sm:$0xff] }
 0x324   : > { %6651 = vmatprep.subr.bf16.mxu1 %v14504_v62  ;;  %v11993_v29 = vpop.f32.mrb[24].mxu1  ;;  %v11995_v10 = vpop.f32.mrb[164].mxu0  ;;  %6952 = vmatprep.subr.bf16.mxu0 %v14504_v62 }
 0x325   : > { %v5866_v39 = vpop.f32.mrb[25].mxu1  ;;  %v11998_v57 = vpop.f32.mrb[165].mxu0 }
 0x326   : > { %v12000_v60 = vpop.f32.mrb[26].mxu1  ;;  %v12002_v38 = vpop.f32.mrb[166].mxu0  ;;  %v2816_v39 = vld [vmem:[%s11371_s4 + $0x350] sm:$0xff] }
 0x327   : > { %6652 = vmatpush1.bf16.msra.mxu1 %v14516_v35  ;;  %v5869_v28 = vpop.f32.mrb[27].mxu1  ;;  %v12009_v25 = vpop.f32.mrb[167].mxu0  ;;  %6953 = vmatpush1.bf16.msra.mxu0 %v14517_v49  ;;  %v14518_v35 = vpack.c.bf16 %v11715_v8, %v11707_v3  ;;  %v9224_v49 = vcombine.high %v2759_v53, %v2767_v58  ;;  %v9274_v3 = vcombine.high %v2808_v63, %v2816_v39 }
 0x328   : > { %6653 = vmatprep.subr.bf16.mxu1 %v14504_v62  ;;  %6954 = vmatprep.subr.bf16.mxu0 %v14504_v62 }
 0x329   : > { %6112 = vmatmul.mubr.bf16.gmra.mrb[132].mxu1 %v9191_v54  ;;  %6425 = vmatmul.mubr.bf16.gmra.mrb[16].mxu0 %v9241_v5  ;;  %v9207_v5 = vcombine.low %v2743_v59, %v2751_v32 }
 0x32a   : > { %6119 = vmatprep.mubr.bf16.mxu1 %v9208_v41  ;;  %6432 = vmatprep.mubr.bf16.mxu0 %v9258_v55  ;;  %v9257_v41 = vcombine.low %v2792_v9, %v2800_v1  ;;  %v14525_v9 = vpack.c.bf16 %v11878_v0, %v11872_v19  ;;  %v14527_v0 = vpack.c.bf16 %v11903_v27, %v11889_v17 }
 0x32b   : > { %6654 = vmatpush1.bf16.msra.mxu1 %v14518_v35  ;;  %6955 = vmatpush1.bf16.msra.mxu0 %v14519_v7  ;;  %v14523_v35 = vpack.c.bf16 %v11711_v6, %v11705_v2  ;;  %v2775_v2 = vld [vmem:[%s11371_s4 + $0x208] sm:$0xff]  ;;  %v2824_v7 = vld [vmem:[%s11371_s4 + $0x390] sm:$0xff] }
 0x32c   : > { %v12028_v14 = vpop.f32.mrb[28].mxu1  ;;  %v12030_v28 = vpop.f32.mrb[168].mxu0  ;;  %6655 = vmatprep.subr.bf16.mxu1 %v14504_v62  ;;  %6956 = vmatprep.subr.bf16.mxu0 %v14504_v62  ;;  %v2783_v6 = vld [vmem:[%s11371_s4 + $0x248] sm:$0xff] }
 0x32d   : > { %14520 = vst [vmem:[#allocation48_spill] sm:$0xff] %v12030_v28  ;;  %v5874_v54 = vpop.f32.mrb[29].mxu1  ;;  %v12034_v55 = vpop.f32.mrb[169].mxu0 }
 0x32e   : > { %14521 = vst [vmem:[#allocation49_spill] sm:$0xff] %v12034_v55  ;;  %v12036_v8 = vpop.f32.mrb[30].mxu1  ;;  %v12038_v50 = vpop.f32.mrb[170].mxu0  ;;  %v2832_v54 = vld [vmem:[%s11371_s4 + $0x3d0] sm:$0xff] }
 0x32f   : > { %14522 = vst [vmem:[#allocation50_spill] sm:$0xff] %v12038_v50  ;;  %v5877_v61 = vpop.f32.mrb[31].mxu1  ;;  %6656 = vmatpush1.bf16.msra.mxu1 %v14523_v35  ;;  %v12045_v32 = vpop.f32.mrb[171].mxu0  ;;  %6957 = vmatpush1.bf16.msra.mxu0 %v14525_v9  ;;  %v9240_v9 = vcombine.high %v2775_v2, %v2783_v6 }
 0x330   : > { %14524 = vst [vmem:[#allocation51_spill] sm:$0xff] %v12045_v32  ;;  %6657 = vmatprep.subr.bf16.mxu1 %v14504_v62  ;;  %6958 = vmatprep.subr.bf16.mxu0 %v14504_v62  ;;  %v14526_v61 = vpack.c.bf16 %v11729_v18, %v11723_v15  ;;  %v9290_v15 = vcombine.high %v2824_v7, %v2832_v54 }
 0x331   : > { %6120 = vmatmul.mubr.bf16.gmra.mrb[136].mxu1 %v9207_v5  ;;  %6433 = vmatmul.mubr.bf16.gmra.mrb[20].mxu0 %v9257_v41  ;;  %v9273_v41 = vcombine.low %v2808_v63, %v2816_v39  ;;  %v9223_v5 = vcombine.low %v2759_v53, %v2767_v58  ;;  %v14534_v53 = vpack.c.bf16 %v11725_v16, %v11720_v12  ;;  %v2791_v39 = vld [vmem:[%s11371_s4 + $0x288] sm:$0xff]  ;;  %v2848_v12 = vld [vmem:[%s11371_s4 + $0x450] sm:$0xff] }
 0x332   : > { %6127 = vmatprep.mubr.bf16.mxu1 %v9224_v49  ;;  %6440 = vmatprep.mubr.bf16.mxu0 %v9274_v3  ;;  %v14535_v58 = vpack.c.bf16 %v11894_v46, %v11886_v43  ;;  %v14536_v16 = vpack.c.bf16 %v11743_v26, %v11735_v21  ;;  %v14537_v46 = vpack.c.bf16 %v11921_v23, %v11912_v4  ;;  %v14568_v63 = vld [vmem:[#allocation30_spill] sm:$0xff] }
 0x333   : > { %6658 = vmatpush1.bf16.msra.mxu1 %v14526_v61  ;;  %6959 = vmatpush1.bf16.msra.mxu0 %v14527_v0  ;;  %v2896_v61 = vld [vmem:[%s11371_s4 + $0x5d0] sm:$0xff] }
 0x334   : > { %v12064_v19 = vpop.f32.mrb[32].mxu1  ;;  %v12066_v35 = vpop.f32.mrb[172].mxu0  ;;  %6659 = vmatprep.subr.bf16.mxu1 %v14504_v62  ;;  %6960 = vmatprep.subr.bf16.mxu0 %v14504_v62 }
 0x335   : > { %14528 = vst [vmem:[#allocation52_spill] sm:$0xff] %v12064_v19  ;;  %14529 = vst [vmem:[#allocation53_spill] sm:$0xff] %v12066_v35  ;;  %v5882_v49 = vpop.f32.mrb[33].mxu1  ;;  %v12070_v3 = vpop.f32.mrb[173].mxu0 }
 0x336   : > { %14530 = vst [vmem:[#allocation54_spill] sm:$0xff] %v12070_v3  ;;  %v12072_v18 = vpop.f32.mrb[34].mxu1  ;;  %v12074_v17 = vpop.f32.mrb[174].mxu0  ;;  %v2799_v49 = vld [vmem:[%s11371_s4 + $0x2c8] sm:$0xff] }
 0x337   : > { %14531 = vst [vmem:[#allocation55_spill] sm:$0xff] %v12072_v18  ;;  %14532 = vst [vmem:[#allocation56_spill] sm:$0xff] %v12074_v17  ;;  %v5885_v27 = vpop.f32.mrb[35].mxu1  ;;  %v12078_v0 = vpop.f32.mrb[175].mxu0  ;;  %6660 = vmatpush1.bf16.msra.mxu1 %v14534_v53  ;;  %6961 = vmatpush1.bf16.msra.mxu0 %v14535_v58  ;;  %v9256_v58 = vcombine.high %v2791_v39, %v2799_v49  ;;  %v3167_v18 = vld [vmem:[%s11371_s4 + $0xe48] sm:$0xff] }
 0x338   : > { %14533 = vst [vmem:[#allocation57_spill] sm:$0xff] %v12078_v0  ;;  %6661 = vmatprep.subr.bf16.mxu1 %v14504_v62  ;;  %6962 = vmatprep.subr.bf16.mxu0 %v14504_v62  ;;  %v2840_v27 = vld [vmem:[%s11371_s4 + $0x410] sm:$0xff] }
 0x339   : > { %6128 = vmatmul.mubr.bf16.gmra.mrb[140].mxu1 %v9223_v5  ;;  %6441 = vmatmul.mubr.bf16.gmra.mrb[24].mxu0 %v9273_v41  ;;  %v9289_v41 = vcombine.low %v2824_v7, %v2832_v54  ;;  %v9239_v5 = vcombine.low %v2775_v2, %v2783_v6  ;;  %v9306_v21 = vcombine.high %v2840_v27, %v2848_v12  ;;  %v2807_v54 = vld [vmem:[%s11371_s4 + $0x308] sm:$0xff]  ;;  %v2888_v7 = vld [vmem:[%s11371_s4 + $0x590] sm:$0xff] }
 0x33a   : > { %6135 = vmatprep.mubr.bf16.mxu1 %v9240_v9  ;;  %6448 = vmatprep.mubr.bf16.mxu0 %v9290_v15  ;;  %v14544_v2 = vpack.c.bf16 %v11739_v24, %v11733_v20  ;;  %v14545_v6 = vpack.c.bf16 %v11914_v40, %v11908_v36  ;;  %v2864_v20 = vld [vmem:[%s11371_s4 + $0x4d0] sm:$0xff]  ;;  %v14546_v24 = vpack.c.bf16 %v11757_v33, %v11751_v30 }
 0x33b   : > { %6662 = vmatpush1.bf16.msra.mxu1 %v14536_v16  ;;  %6963 = vmatpush1.bf16.msra.mxu0 %v14537_v46  ;;  %v14547_v36 = vpack.c.bf16 %v11946_v48, %v11938_v44 }
 0x33c   : > { %v12100_v43 = vpop.f32.mrb[36].mxu1  ;;  %v12102_v53 = vpop.f32.mrb[176].mxu0  ;;  %6663 = vmatprep.subr.bf16.mxu1 %v14504_v62  ;;  %6964 = vmatprep.subr.bf16.mxu0 %v14504_v62 }
 0x33d   : > { %14538 = vst [vmem:[#allocation58_spill] sm:$0xff] %v12100_v43  ;;  %14539 = vst [vmem:[#allocation59_spill] sm:$0xff] %v12102_v53  ;;  %v5890_v9 = vpop.f32.mrb[37].mxu1  ;;  %v12106_v15 = vpop.f32.mrb[177].mxu0 }
 0x33e   : > { %14540 = vst [vmem:[#allocation60_spill] sm:$0xff] %v12106_v15  ;;  %v12108_v26 = vpop.f32.mrb[38].mxu1  ;;  %v12110_v4 = vpop.f32.mrb[178].mxu0  ;;  %v2815_v9 = vld [vmem:[%s11371_s4 + $0x348] sm:$0xff] }
 0x33f   : > { %14541 = vst [vmem:[#allocation61_spill] sm:$0xff] %v12108_v26  ;;  %14542 = vst [vmem:[#allocation62_spill] sm:$0xff] %v12110_v4  ;;  %v5893_v23 = vpop.f32.mrb[39].mxu1  ;;  %v12114_v46 = vpop.f32.mrb[179].mxu0  ;;  %6664 = vmatpush1.bf16.msra.mxu1 %v14544_v2  ;;  %6965 = vmatpush1.bf16.msra.mxu0 %v14545_v6  ;;  %v9272_v6 = vcombine.high %v2807_v54, %v2815_v9 }
 0x340   : > { %14543 = vst [vmem:[#allocation63_spill] sm:$0xff] %v12114_v46  ;;  %6665 = vmatprep.subr.bf16.mxu1 %v14504_v62  ;;  %6966 = vmatprep.subr.bf16.mxu0 %v14504_v62  ;;  %v2856_v23 = vld [vmem:[%s11371_s4 + $0x490] sm:$0xff] }
 0x341   : > { %6136 = vmatmul.mubr.bf16.gmra.mrb[144].mxu1 %v9239_v5  ;;  %6449 = vmatmul.mubr.bf16.gmra.mrb[28].mxu0 %v9289_v41  ;;  %v9305_v41 = vcombine.low %v2840_v27, %v2848_v12  ;;  %v9255_v5 = vcombine.low %v2791_v39, %v2799_v49  ;;  %v9322_v30 = vcombine.high %v2856_v23, %v2864_v20  ;;  %v2823_v12 = vld [vmem:[%s11371_s4 + $0x388] sm:$0xff] }
 0x342   : > { %6143 = vmatprep.mubr.bf16.mxu1 %v9256_v58  ;;  %6456 = vmatprep.mubr.bf16.mxu0 %v9306_v21  ;;  %v14554_v39 = vpack.c.bf16 %v11753_v31, %v11748_v51  ;;  %v14555_v49 = vpack.c.bf16 %v11942_v56, %v11935_v34  ;;  %v2880_v51 = vld [vmem:[%s11371_s4 + $0x550] sm:$0xff] }
 0x343   : > { %6666 = vmatpush1.bf16.msra.mxu1 %v14546_v24  ;;  %6967 = vmatpush1.bf16.msra.mxu0 %v14547_v36  ;;  %v14556_v31 = vld [vmem:[#allocation27_spill] sm:$0xff]  ;;  %v9271_v24 = vcombine.low %v2807_v54, %v2815_v9  ;;  %v14564_v54 = vld [vmem:[#allocation28_spill] sm:$0xff]  ;;  %v14565_v9 = vld [vmem:[#allocation26_spill] sm:$0xff] }
 0x344   : > { %v12136_v40 = vpop.f32.mrb[40].mxu1  ;;  %v12138_v2 = vpop.f32.mrb[180].mxu0  ;;  %6667 = vmatprep.subr.bf16.mxu1 %v14504_v62  ;;  %6968 = vmatprep.subr.bf16.mxu0 %v14504_v62 }
 0x345   : > { %14548 = vst [vmem:[#allocation64_spill] sm:$0xff] %v12136_v40  ;;  %14549 = vst [vmem:[#allocation65_spill] sm:$0xff] %v12138_v2  ;;  %v5898_v58 = vpop.f32.mrb[41].mxu1  ;;  %v12142_v21 = vpop.f32.mrb[181].mxu0 }
 0x346   : > { %14550 = vst [vmem:[#allocation66_spill] sm:$0xff] %v12142_v21  ;;  %v12144_v33 = vpop.f32.mrb[42].mxu1  ;;  %v12146_v48 = vpop.f32.mrb[182].mxu0  ;;  %v2831_v58 = vld [vmem:[%s11371_s4 + $0x3c8] sm:$0xff] }
 0x347   : > { %14551 = vst [vmem:[#allocation67_spill] sm:$0xff] %v12144_v33  ;;  %14552 = vst [vmem:[#allocation68_spill] sm:$0xff] %v12146_v48  ;;  %v5901_v44 = vpop.f32.mrb[43].mxu1  ;;  %v12150_v36 = vpop.f32.mrb[183].mxu0  ;;  %6668 = vmatpush1.bf16.msra.mxu1 %v14554_v39  ;;  %6969 = vmatpush1.bf16.msra.mxu0 %v14555_v49  ;;  %v14557_v39 = vpack.c.bf16 %v11771_v42, %v14556_v31  ;;  %v9321_v49 = vcombine.low %v2856_v23, %v2864_v20 }
 0x348   : > { %14553 = vst [vmem:[#allocation69_spill] sm:$0xff] %v12150_v36  ;;  %6669 = vmatprep.subr.bf16.mxu1 %v14504_v62  ;;  %7516 = vmatprep.subr.bf16.mxu0 %v14504_v62  ;;  %v2872_v44 = vld [vmem:[%s11371_s4 + $0x510] sm:$0xff]  ;;  %v14566_v23 = vpack.c.bf16 %v14564_v54, %v14565_v9 }
 0x349   : > { %6144 = vmatmul.mubr.bf16.gmra.mrb[148].mxu1 %v9255_v5  ;;  %6457 = vmatmul.mubr.bf16.gmra.mrb[32].mxu0 %v9305_v41  ;;  %v9337_v9 = vcombine.low %v2872_v44, %v2880_v51 }
 0x34a   : > { %6151 = vmatprep.mubr.bf16.mxu1 %v9272_v6  ;;  %6464 = vmatprep.mubr.bf16.mxu0 %v9322_v30  ;;  %v9288_v6 = vcombine.high %v2823_v12, %v2831_v58  ;;  %v9338_v30 = vcombine.high %v2872_v44, %v2880_v51 }
 0x34b   : > { %6670 = vmatpush1.bf16.msra.mxu1 %v14557_v39  ;;  %v14567_v39 = vld [vmem:[#allocation32_spill] sm:$0xff] }
 0x34c   : > { %v12169_v34 = vpop.f32.mrb[44].mxu1  ;;  %v12171_v56 = vpop.f32.mrb[184].mxu0  ;;  %6671 = vmatprep.subr.bf16.mxu1 %v14504_v62  ;;  %v14569_v59 = vpack.c.bf16 %v14567_v39, %v14568_v63  ;;  %v14579_v39 = vld [vmem:[#allocation37_spill] sm:$0xff] }
 0x34d   : > { %14558 = vst [vmem:[#allocation27_spill] sm:$0xff] %v12169_v34  ;;  %14559 = vst [vmem:[#allocation70_spill] sm:$0xff] %v12171_v56  ;;  %v5906_v5 = vpop.f32.mrb[45].mxu1  ;;  %v12174_v41 = vpop.f32.mrb[185].mxu0  ;;  %v2912_v56 = vld [vmem:[%s11371_s4 + $0x650] sm:$0xff] }
 0x34e   : > { %14560 = vst [vmem:[#allocation71_spill] sm:$0xff] %v12174_v41  ;;  %v12176_v27 = vpop.f32.mrb[46].mxu1  ;;  %v12178_v42 = vpop.f32.mrb[186].mxu0  ;;  %v2839_v5 = vld [vmem:[%s11371_s4 + $0x408] sm:$0xff] }
 0x34f   : > { %14561 = vst [vmem:[#allocation72_spill] sm:$0xff] %v12176_v27  ;;  %14562 = vst [vmem:[#allocation73_spill] sm:$0xff] %v12178_v42  ;;  %v5909_v31 = vpop.f32.mrb[47].mxu1  ;;  %v12182_v16 = vpop.f32.mrb[187].mxu0  ;;  %6672 = vmatpush1.bf16.msra.mxu1 %v14566_v23  ;;  %v9287_v23 = vcombine.low %v2823_v12, %v2831_v58  ;;  %v14576_v12 = vld [vmem:[#allocation31_spill] sm:$0xff]  ;;  %v14577_v58 = vld [vmem:[#allocation29_spill] sm:$0xff] }
 0x350   : > { %14563 = vst [vmem:[#allocation74_spill] sm:$0xff] %v12182_v16  ;;  %6673 = vmatprep.subr.bf16.mxu1 %v14504_v62  ;;  %v2847_v31 = vld [vmem:[%s11371_s4 + $0x448] sm:$0xff]  ;;  %v14578_v44 = vpack.c.bf16 %v14576_v12, %v14577_v58  ;;  %v9353_v58 = vcombine.low %v2888_v7, %v2896_v61 }
 0x351   : > { %6152 = vmatmul.mubr.bf16.gmra.mrb[152].mxu1 %v9271_v24  ;;  %6465 = vmatmul.mubr.bf16.gmra.mrb[36].mxu0 %v9321_v49 }
 0x352   : > { %6159 = vmatprep.mubr.bf16.mxu1 %v9288_v6  ;;  %6472 = vmatprep.mubr.bf16.mxu0 %v9338_v30  ;;  %v9304_v6 = vcombine.high %v2839_v5, %v2847_v31  ;;  %v9354_v30 = vcombine.high %v2888_v7, %v2896_v61  ;;  %v14584_v61 = vld [vmem:[#allocation35_spill] sm:$0xff]  ;;  %v14585_v7 = vld [vmem:[#allocation33_spill] sm:$0xff] }
 0x353   : > { %6674 = vmatpush1.bf16.msra.mxu1 %v14569_v59 }
 0x354   : > { %v12197_v1 = vpop.f32.mrb[48].mxu1  ;;  %v12199_v54 = vpop.f32.mrb[188].mxu0  ;;  %6675 = vmatprep.subr.bf16.mxu1 %v14504_v62 }
 0x355   : > { %14570 = vst [vmem:[#allocation28_spill] sm:$0xff] %v12197_v1  ;;  %14571 = vst [vmem:[#allocation26_spill] sm:$0xff] %v12199_v54  ;;  %v5914_v24 = vpop.f32.mrb[49].mxu1  ;;  %v12202_v49 = vpop.f32.mrb[189].mxu0  ;;  %v14580_v54 = vld [vmem:[#allocation34_spill] sm:$0xff] }
 0x356   : > { %14572 = vst [vmem:[#allocation32_spill] sm:$0xff] %v12202_v49  ;;  %v12204_v20 = vpop.f32.mrb[50].mxu1  ;;  %v12206_v59 = vpop.f32.mrb[190].mxu0  ;;  %v2855_v24 = vld [vmem:[%s11371_s4 + $0x488] sm:$0xff]  ;;  %v2928_v49 = vld [vmem:[%s11371_s4 + $0x6d0] sm:$0xff] }
 0x357   : > { %14573 = vst [vmem:[#allocation30_spill] sm:$0xff] %v12204_v20  ;;  %14574 = vst [vmem:[#allocation75_spill] sm:$0xff] %v12206_v59  ;;  %v5917_v63 = vpop.f32.mrb[51].mxu1  ;;  %v12210_v47 = vpop.f32.mrb[191].mxu0  ;;  %6676 = vmatpush1.bf16.msra.mxu1 %v14578_v44  ;;  %v14581_v59 = vpack.c.bf16 %v14579_v39, %v14580_v54  ;;  %v9303_v44 = vcombine.low %v2839_v5, %v2847_v31  ;;  %v14586_v5 = vpack.c.bf16 %v14584_v61, %v14585_v7 }
 0x358   : > { %14575 = vst [vmem:[#allocation76_spill] sm:$0xff] %v12210_v47  ;;  %6677 = vmatprep.subr.bf16.mxu1 %v14504_v62  ;;  %v2863_v63 = vld [vmem:[%s11371_s4 + $0x4c8] sm:$0xff]  ;;  %v9369_v20 = vcombine.low %v2904_v22, %v2912_v56 }
 0x359   : > { %6160 = vmatmul.mubr.bf16.gmra.mrb[156].mxu1 %v9287_v23  ;;  %6473 = vmatmul.mubr.bf16.gmra.mrb[40].mxu0 %v9337_v9  ;;  %v9319_v61 = vcombine.low %v2855_v24, %v2863_v63 }
 0x35a   : > { %6167 = vmatprep.mubr.bf16.mxu1 %v9304_v6  ;;  %6480 = vmatprep.mubr.bf16.mxu0 %v9354_v30  ;;  %v9320_v6 = vcombine.high %v2855_v24, %v2863_v63  ;;  %v9370_v30 = vcombine.high %v2904_v22, %v2912_v56  ;;  %v2887_v56 = vld [vmem:[%s11371_s4 + $0x588] sm:$0xff]  ;;  %v2936_v63 = vld [vmem:[%s11371_s4 + $0x710] sm:$0xff] }
 0x35b   : > { %6678 = vmatpush1.bf16.msra.mxu1 %v14581_v59  ;;  %v2895_v24 = vld [vmem:[%s11371_s4 + $0x5c8] sm:$0xff] }
 0x35c   : > { %v12225_v42 = vpop.f32.mrb[52].mxu1  ;;  %v12227_v12 = vpop.f32.mrb[192].mxu0  ;;  %6679 = vmatprep.subr.bf16.mxu1 %v14504_v62 }
 0x35d   : > { %14582 = vst [vmem:[#allocation31_spill] sm:$0xff] %v12225_v42  ;;  %v5922_v23 = vpop.f32.mrb[53].mxu1  ;;  %v12230_v9 = vpop.f32.mrb[193].mxu0 }
 0x35e   : > { %v12232_v51 = vpop.f32.mrb[54].mxu1  ;;  %v12234_v54 = vpop.f32.mrb[194].mxu0  ;;  %v2871_v23 = vld [vmem:[%s11371_s4 + $0x508] sm:$0xff] }
 0x35f   : > { %14583 = vst [vmem:[#allocation29_spill] sm:$0xff] %v12232_v51  ;;  %v5925_v59 = vpop.f32.mrb[55].mxu1  ;;  %v12238_v42 = vpop.f32.mrb[195].mxu0  ;;  %6680 = vmatpush1.bf16.msra.mxu1 %v14586_v5  ;;  %v2920_v51 = vld [vmem:[%s11371_s4 + $0x690] sm:$0xff] }
 0x360   : > { %7227 = vmatprep.subr.bf16.mxu1 %v14504_v62  ;;  %v2879_v59 = vld [vmem:[%s11371_s4 + $0x548] sm:$0xff] }
 0x361   : > { %6168 = vmatmul.mubr.bf16.gmra.mrb[160].mxu1 %v9303_v44  ;;  %6481 = vmatmul.mubr.bf16.gmra.mrb[44].mxu0 %v9353_v58  ;;  %v9336_v58 = vcombine.high %v2871_v23, %v2879_v59  ;;  %v9386_v44 = vcombine.high %v2920_v51, %v2928_v49 }
 0x362   : > { %6175 = vmatprep.mubr.bf16.mxu1 %v9320_v6  ;;  %6488 = vmatprep.mubr.bf16.mxu0 %v9370_v30 }
 0x364   : > { %v12250_v39 = vpop.f32.mrb[56].mxu1  ;;  %v12252_v47 = vpop.f32.mrb[196].mxu0 }
 0x365   : > { %14587 = vst [vmem:[#allocation37_spill] sm:$0xff] %v12250_v39  ;;  %v5930_v7 = vpop.f32.mrb[57].mxu1  ;;  %v12254_v5 = vpop.f32.mrb[197].mxu0  ;;  %v9335_v39 = vcombine.low %v2871_v23, %v2879_v59  ;;  %v2952_v23 = vld [vmem:[%s11371_s4 + $0x790] sm:$0xff] }
 0x366   : > { %v12256_v6 = vpop.f32.mrb[58].mxu1  ;;  %v12258_v30 = vpop.f32.mrb[198].mxu0  ;;  %v2944_v7 = vld [vmem:[%s11371_s4 + $0x750] sm:$0xff] }
 0x367   : > { %14588 = vst [vmem:[#allocation34_spill] sm:$0xff] %v12256_v6  ;;  %v5933_v31 = vpop.f32.mrb[59].mxu1  ;;  %v12262_v1 = vpop.f32.mrb[199].mxu0  ;;  %v2960_v59 = vld [vmem:[%s11371_s4 + $0x7d0] sm:$0xff] }
 0x368   : > { %v9385_v31 = vcombine.low %v2920_v51, %v2928_v49  ;;  %v2911_v51 = vld [vmem:[%s11371_s4 + $0x648] sm:$0xff] }
 0x369   : > { %6176 = vmatmul.mubr.bf16.gmra.mrb[164].mxu1 %v9319_v61  ;;  %6489 = vmatmul.mubr.bf16.gmra.mrb[48].mxu0 %v9369_v20  ;;  %v9352_v20 = vcombine.high %v2887_v56, %v2895_v24  ;;  %v9402_v61 = vcombine.high %v2936_v63, %v2944_v7 }
 0x36a   : > { %6183 = vmatprep.mubr.bf16.mxu1 %v9336_v58  ;;  %6496 = vmatprep.mubr.bf16.mxu0 %v9386_v44 }
 0x36c   : > { %v12270_v6 = vpop.f32.mrb[60].mxu1  ;;  %v12272_v41 = vpop.f32.mrb[200].mxu0 }
 0x36d   : > { %14589 = vst [vmem:[#allocation35_spill] sm:$0xff] %v12270_v6  ;;  %v5938_v16 = vpop.f32.mrb[61].mxu1  ;;  %v12274_v2 = vpop.f32.mrb[201].mxu0  ;;  %v9351_v6 = vcombine.low %v2887_v56, %v2895_v24  ;;  %v2927_v24 = vld [vmem:[%s11371_s4 + $0x6c8] sm:$0xff] }
 0x36e   : > { %v12276_v58 = vpop.f32.mrb[62].mxu1  ;;  %v12278_v44 = vpop.f32.mrb[202].mxu0  ;;  %v2903_v16 = vld [vmem:[%s11371_s4 + $0x608] sm:$0xff] }
 0x36f   : > { %14590 = vst [vmem:[#allocation33_spill] sm:$0xff] %v12276_v58  ;;  %v5941_v22 = vpop.f32.mrb[63].mxu1  ;;  %v12282_v48 = vpop.f32.mrb[203].mxu0 }
 0x370   : > { %v9401_v22 = vcombine.low %v2936_v63, %v2944_v7  ;;  %v2968_v63 = vld [vmem:[%s11371_s4 + $0x810] sm:$0xff] }
 0x371   : > { %6184 = vmatmul.mubr.bf16.gmra.mrb[168].mxu1 %v9335_v39  ;;  %6497 = vmatmul.mubr.bf16.gmra.mrb[52].mxu0 %v9385_v31  ;;  %v9368_v39 = vcombine.high %v2903_v16, %v2911_v51  ;;  %v9418_v31 = vcombine.high %v2952_v23, %v2960_v59  ;;  %v2976_v7 = vld [vmem:[%s11371_s4 + $0x850] sm:$0xff] }
 0x372   : > { %6191 = vmatprep.mubr.bf16.mxu1 %v9352_v20  ;;  %6504 = vmatprep.mubr.bf16.mxu0 %v9402_v61 }
 0x374   : > { %v12290_v58 = vpop.f32.mrb[64].mxu1  ;;  %v12292_v27 = vpop.f32.mrb[204].mxu0 }
 0x375   : > { %14591 = vst [vmem:[#allocation77_spill] sm:$0xff] %v12290_v58  ;;  %v5946_v34 = vpop.f32.mrb[65].mxu1  ;;  %v12294_v21 = vpop.f32.mrb[205].mxu0  ;;  %v9367_v58 = vcombine.low %v2903_v16, %v2911_v51  ;;  %v2943_v51 = vld [vmem:[%s11371_s4 + $0x748] sm:$0xff] }
 0x376   : > { %v12296_v20 = vpop.f32.mrb[66].mxu1  ;;  %v12298_v61 = vpop.f32.mrb[206].mxu0  ;;  %v2919_v34 = vld [vmem:[%s11371_s4 + $0x688] sm:$0xff] }
 0x377   : > { %14592 = vst [vmem:[#allocation78_spill] sm:$0xff] %v12296_v20  ;;  %v5949_v49 = vpop.f32.mrb[67].mxu1  ;;  %v12302_v36 = vpop.f32.mrb[207].mxu0 }
 0x378   : > { %v9417_v49 = vcombine.low %v2952_v23, %v2960_v59  ;;  %v2984_v23 = vld [vmem:[%s11371_s4 + $0x890] sm:$0xff] }
 0x379   : > { %6192 = vmatmul.mubr.bf16.gmra.mrb[172].mxu1 %v9351_v6  ;;  %6505 = vmatmul.mubr.bf16.gmra.mrb[56].mxu0 %v9401_v22  ;;  %v9384_v6 = vcombine.high %v2919_v34, %v2927_v24  ;;  %v9434_v22 = vcombine.high %v2968_v63, %v2976_v7  ;;  %v2992_v59 = vld [vmem:[%s11371_s4 + $0x8d0] sm:$0xff] }
 0x37a   : > { %6199 = vmatprep.mubr.bf16.mxu1 %v9368_v39  ;;  %6512 = vmatprep.mubr.bf16.mxu0 %v9418_v31 }
 0x37c   : > { %v12310_v20 = vpop.f32.mrb[68].mxu1  ;;  %v12312_v53 = vpop.f32.mrb[208].mxu0 }
 0x37d   : > { %14593 = vst [vmem:[#allocation79_spill] sm:$0xff] %v12310_v20  ;;  %v5954_v4 = vpop.f32.mrb[69].mxu1  ;;  %v12314_v33 = vpop.f32.mrb[209].mxu0  ;;  %v9383_v20 = vcombine.low %v2919_v34, %v2927_v24  ;;  %v2959_v24 = vld [vmem:[%s11371_s4 + $0x7c8] sm:$0xff] }
 0x37e   : > { %v12316_v39 = vpop.f32.mrb[70].mxu1  ;;  %v12318_v31 = vpop.f32.mrb[210].mxu0  ;;  %v2935_v4 = vld [vmem:[%s11371_s4 + $0x708] sm:$0xff] }
 0x37f   : > { %14594 = vst [vmem:[#allocation80_spill] sm:$0xff] %v12316_v39  ;;  %v5957_v56 = vpop.f32.mrb[71].mxu1  ;;  %v12322_v40 = vpop.f32.mrb[211].mxu0 }
 0x380   : > { %v9433_v56 = vcombine.low %v2968_v63, %v2976_v7  ;;  %v3000_v63 = vld [vmem:[%s11371_s4 + $0x910] sm:$0xff] }
 0x381   : > { %6200 = vmatmul.mubr.bf16.gmra.mrb[176].mxu1 %v9367_v58  ;;  %6513 = vmatmul.mubr.bf16.gmra.mrb[60].mxu0 %v9417_v49  ;;  %v9400_v58 = vcombine.high %v2935_v4, %v2943_v51  ;;  %v9450_v49 = vcombine.high %v2984_v23, %v2992_v59  ;;  %v3008_v7 = vld [vmem:[%s11371_s4 + $0x950] sm:$0xff] }
 0x382   : > { %6207 = vmatprep.mubr.bf16.mxu1 %v9384_v6  ;;  %6520 = vmatprep.mubr.bf16.mxu0 %v9434_v22 }
 0x384   : > { %v12330_v39 = vpop.f32.mrb[72].mxu1  ;;  %v12332_v15 = vpop.f32.mrb[212].mxu0 }
 0x385   : > { %14595 = vst [vmem:[#allocation81_spill] sm:$0xff] %v12330_v39  ;;  %14596 = vst [vmem:[#allocation82_spill] sm:$0xff] %v12332_v15  ;;  %v5962_v46 = vpop.f32.mrb[73].mxu1  ;;  %v12334_v35 = vpop.f32.mrb[213].mxu0  ;;  %v9399_v39 = vcombine.low %v2935_v4, %v2943_v51  ;;  %v2975_v51 = vld [vmem:[%s11371_s4 + $0x848] sm:$0xff] }
 0x386   : > { %14597 = vst [vmem:[#allocation83_spill] sm:$0xff] %v12334_v35  ;;  %v12336_v6 = vpop.f32.mrb[74].mxu1  ;;  %v12338_v22 = vpop.f32.mrb[214].mxu0  ;;  %v2951_v46 = vld [vmem:[%s11371_s4 + $0x788] sm:$0xff] }
 0x387   : > { %14598 = vst [vmem:[#allocation84_spill] sm:$0xff] %v12336_v6  ;;  %14599 = vst [vmem:[#allocation85_spill] sm:$0xff] %v12338_v22  ;;  %v5965_v16 = vpop.f32.mrb[75].mxu1  ;;  %v12342_v17 = vpop.f32.mrb[215].mxu0 }
 0x388   : > { %14600 = vst [vmem:[#allocation86_spill] sm:$0xff] %v12342_v17  ;;  %v9449_v16 = vcombine.low %v2984_v23, %v2992_v59  ;;  %v3016_v23 = vld [vmem:[%s11371_s4 + $0x990] sm:$0xff] }
 0x389   : > { %6208 = vmatmul.mubr.bf16.gmra.mrb[180].mxu1 %v9383_v20  ;;  %6521 = vmatmul.mubr.bf16.gmra.mrb[64].mxu0 %v9433_v56  ;;  %v9416_v20 = vcombine.high %v2951_v46, %v2959_v24  ;;  %v9466_v56 = vcombine.high %v3000_v63, %v3008_v7  ;;  %v3024_v59 = vld [vmem:[%s11371_s4 + $0x9d0] sm:$0xff] }
 0x38a   : > { %6215 = vmatprep.mubr.bf16.mxu1 %v9400_v58  ;;  %6528 = vmatprep.mubr.bf16.mxu0 %v9450_v49 }
 0x38c   : > { %v12350_v6 = vpop.f32.mrb[76].mxu1  ;;  %v12352_v26 = vpop.f32.mrb[216].mxu0 }
 0x38d   : > { %14601 = vst [vmem:[#allocation87_spill] sm:$0xff] %v12350_v6  ;;  %14602 = vst [vmem:[#allocation88_spill] sm:$0xff] %v12352_v26  ;;  %v5970_v43 = vpop.f32.mrb[77].mxu1  ;;  %v12354_v3 = vpop.f32.mrb[217].mxu0  ;;  %v9415_v6 = vcombine.low %v2951_v46, %v2959_v24  ;;  %v2991_v24 = vld [vmem:[%s11371_s4 + $0x8c8] sm:$0xff] }
 0x38e   : > { %14603 = vst [vmem:[#allocation89_spill] sm:$0xff] %v12354_v3  ;;  %v12356_v58 = vpop.f32.mrb[78].mxu1  ;;  %v12358_v49 = vpop.f32.mrb[218].mxu0  ;;  %v2967_v43 = vld [vmem:[%s11371_s4 + $0x808] sm:$0xff] }
 0x38f   : > { %14604 = vst [vmem:[#allocation90_spill] sm:$0xff] %v12356_v58  ;;  %14605 = vst [vmem:[#allocation91_spill] sm:$0xff] %v12358_v49  ;;  %v5973_v34 = vpop.f32.mrb[79].mxu1  ;;  %v12362_v0 = vpop.f32.mrb[219].mxu0  ;;  %v9431_v22 = vcombine.low %v2967_v43, %v2975_v51 }
 0x390   : > { %14606 = vst [vmem:[#allocation92_spill] sm:$0xff] %v12362_v0  ;;  %v9465_v34 = vcombine.low %v3000_v63, %v3008_v7  ;;  %v3032_v63 = vld [vmem:[%s11371_s4 + $0xa10] sm:$0xff] }
 0x391   : > { %6216 = vmatmul.mubr.bf16.gmra.mrb[184].mxu1 %v9399_v39  ;;  %6529 = vmatmul.mubr.bf16.gmra.mrb[68].mxu0 %v9449_v16  ;;  %v9432_v39 = vcombine.high %v2967_v43, %v2975_v51  ;;  %v9482_v16 = vcombine.high %v3016_v23, %v3024_v59  ;;  %v3040_v7 = vld [vmem:[%s11371_s4 + $0xa50] sm:$0xff]  ;;  %v2999_v43 = vld [vmem:[%s11371_s4 + $0x908] sm:$0xff] }
 0x392   : > { %6223 = vmatprep.mubr.bf16.mxu1 %v9416_v20  ;;  %6536 = vmatprep.mubr.bf16.mxu0 %v9466_v56  ;;  %v3048_v51 = vld [vmem:[%s11371_s4 + $0xa90] sm:$0xff]  ;;  %v9497_v28 = vcombine.low %v3032_v63, %v3040_v7 }
 0x394   : > { %v12370_v58 = vpop.f32.mrb[80].mxu1  ;;  %v12372_v15 = vpop.f32.mrb[220].mxu0 }
 0x395   : > { %14607 = vst [vmem:[#allocation93_spill] sm:$0xff] %v12370_v58  ;;  %14608 = vst [vmem:[#allocation94_spill] sm:$0xff] %v12372_v15  ;;  %v5978_v26 = vpop.f32.mrb[81].mxu1  ;;  %v12374_v49 = vpop.f32.mrb[221].mxu0 }
 0x396   : > { %14609 = vst [vmem:[#allocation95_spill] sm:$0xff] %v12374_v49  ;;  %v12376_v20 = vpop.f32.mrb[82].mxu1  ;;  %v12378_v56 = vpop.f32.mrb[222].mxu0  ;;  %v2983_v26 = vld [vmem:[%s11371_s4 + $0x888] sm:$0xff] }
 0x397   : > { %14610 = vst [vmem:[#allocation96_spill] sm:$0xff] %v12376_v20  ;;  %14611 = vst [vmem:[#allocation97_spill] sm:$0xff] %v12378_v56  ;;  %v5981_v4 = vpop.f32.mrb[83].mxu1  ;;  %v12382_v3 = vpop.f32.mrb[223].mxu0  ;;  %v9448_v46 = vcombine.high %v2983_v26, %v2991_v24 }
 0x398   : > { %14612 = vst [vmem:[#allocation98_spill] sm:$0xff] %v12382_v3  ;;  %v9481_v4 = vcombine.low %v3016_v23, %v3024_v59  ;;  %v3056_v23 = vld [vmem:[%s11371_s4 + $0xad0] sm:$0xff] }
 0x399   : > { %6224 = vmatmul.mubr.bf16.gmra.mrb[188].mxu1 %v9415_v6  ;;  %6537 = vmatmul.mubr.bf16.gmra.mrb[72].mxu0 %v9465_v34  ;;  %v9498_v6 = vcombine.high %v3032_v63, %v3040_v7  ;;  %v3064_v63 = vld [vmem:[%s11371_s4 + $0xb10] sm:$0xff] }
 0x39a   : > { %6231 = vmatprep.mubr.bf16.mxu1 %v9432_v39  ;;  %6544 = vmatprep.mubr.bf16.mxu0 %v9482_v16  ;;  %v3072_v7 = vld [vmem:[%s11371_s4 + $0xb50] sm:$0xff] }
 0x39c   : > { %v12390_v20 = vpop.f32.mrb[84].mxu1  ;;  %v10392_v0 = vpop.f32.mrb[224].mxu0 }
 0x39d   : > { %14613 = vst [vmem:[#allocation99_spill] sm:$0xff] %v12390_v20  ;;  %v5986_v58 = vpop.f32.mrb[85].mxu1  ;;  %v2391_v15 = vpop.f32.mrb[225].mxu0 }
 0x39e   : > { %v12392_v34 = vpop.f32.mrb[86].mxu1  ;;  %v10393_v39 = vpop.f32.mrb[226].mxu0  ;;  %v3007_v58 = vld [vmem:[%s11371_s4 + $0x948] sm:$0xff] }
 0x39f   : > { %14614 = vst [vmem:[#allocation100_spill] sm:$0xff] %v12392_v34  ;;  %v5989_v16 = vpop.f32.mrb[87].mxu1  ;;  %v12394_v56 = vpack.c.bf16 %v10393_v39, %v10392_v0  ;;  %v2394_v49 = vpop.f32.mrb[227].mxu0  ;;  %v9447_v34 = vcombine.low %v2983_v26, %v2991_v24  ;;  %v3015_v26 = vld [vmem:[%s11371_s4 + $0x988] sm:$0xff] }
 0x3a0   : > { %v12396_v3 = vpack.c.bf16 %v2394_v49, %v2391_v15  ;;  %v9464_v15 = vcombine.high %v2999_v43, %v3007_v58  ;;  %v3023_v24 = vld [vmem:[%s11371_s4 + $0x9c8] sm:$0xff] }
 0x3a1   : > { %14615 = vst [vmem:[#allocation101_spill] sm:$0xff] %v12394_v56  ;;  %6232 = vmatmul.mubr.bf16.gmra.mrb[192].mxu1 %v9431_v22  ;;  %6545 = vmatmul.mubr.bf16.gmra.mrb[76].mxu0 %v9481_v4  ;;  %v9514_v22 = vcombine.high %v3048_v51, %v3056_v23 }
 0x3a2   : > { %14616 = vst [vmem:[#allocation102_spill] sm:$0xff] %v12396_v3  ;;  %6239 = vmatprep.mubr.bf16.mxu1 %v9448_v46  ;;  %6552 = vmatprep.mubr.bf16.mxu0 %v9498_v6 }
 0x3a4   : > { %v12402_v59 = vpop.f32.mrb[88].mxu1  ;;  %v10396_v20 = vpop.f32.mrb[228].mxu0 }
 0x3a5   : > { %14617 = vst [vmem:[#allocation103_spill] sm:$0xff] %v12402_v59  ;;  %v5994_v0 = vpop.f32.mrb[89].mxu1  ;;  %v2407_v39 = vpop.f32.mrb[229].mxu0  ;;  %v9513_v59 = vcombine.low %v3048_v51, %v3056_v23  ;;  %v3080_v51 = vld [vmem:[%s11371_s4 + $0xb90] sm:$0xff] }
 0x3a6   : > { %v12404_v49 = vpop.f32.mrb[90].mxu1  ;;  %v10397_v46 = vpop.f32.mrb[230].mxu0  ;;  %v3088_v23 = vld [vmem:[%s11371_s4 + $0xbd0] sm:$0xff] }
 0x3a7   : > { %14618 = vst [vmem:[#allocation104_spill] sm:$0xff] %v12404_v49  ;;  %v5997_v4 = vpop.f32.mrb[91].mxu1  ;;  %v12406_v6 = vpack.c.bf16 %v10397_v46, %v10396_v20  ;;  %v2410_v16 = vpop.f32.mrb[231].mxu0  ;;  %v9463_v49 = vcombine.low %v2999_v43, %v3007_v58  ;;  %v3031_v43 = vld [vmem:[%s11371_s4 + $0xa08] sm:$0xff] }
 0x3a8   : > { %v12408_v56 = vpack.c.bf16 %v2410_v16, %v2407_v39  ;;  %v9480_v39 = vcombine.high %v3015_v26, %v3023_v24  ;;  %v3039_v58 = vld [vmem:[%s11371_s4 + $0xa48] sm:$0xff] }
 0x3a9   : > { %14619 = vst [vmem:[#allocation105_spill] sm:$0xff] %v12406_v6  ;;  %6240 = vmatmul.mubr.bf16.gmra.mrb[196].mxu1 %v9447_v34  ;;  %6553 = vmatmul.mubr.bf16.gmra.mrb[80].mxu0 %v9497_v28  ;;  %v9530_v34 = vcombine.high %v3064_v63, %v3072_v7 }
 0x3aa   : > { %14620 = vst [vmem:[#allocation106_spill] sm:$0xff] %v12408_v56  ;;  %6247 = vmatprep.mubr.bf16.mxu1 %v9464_v15  ;;  %6560 = vmatprep.mubr.bf16.mxu0 %v9514_v22 }
 0x3ac   : > { %v12414_v0 = vpop.f32.mrb[92].mxu1  ;;  %v10400_v3 = vpop.f32.mrb[232].mxu0 }
 0x3ad   : > { %14621 = vst [vmem:[#allocation107_spill] sm:$0xff] %v12414_v0  ;;  %v6002_v20 = vpop.f32.mrb[93].mxu1  ;;  %v2423_v46 = vpop.f32.mrb[233].mxu0  ;;  %v9529_v0 = vcombine.low %v3064_v63, %v3072_v7  ;;  %v3096_v63 = vld [vmem:[%s11371_s4 + $0xc10] sm:$0xff] }
 0x3ae   : > { %v12416_v28 = vpop.f32.mrb[94].mxu1  ;;  %v10401_v15 = vpop.f32.mrb[234].mxu0  ;;  %v3104_v7 = vld [vmem:[%s11371_s4 + $0xc50] sm:$0xff] }
 0x3af   : > { %14622 = vst [vmem:[#allocation108_spill] sm:$0xff] %v12416_v28  ;;  %v6005_v22 = vpop.f32.mrb[95].mxu1  ;;  %v12418_v4 = vpack.c.bf16 %v10401_v15, %v10400_v3  ;;  %v2426_v16 = vpop.f32.mrb[235].mxu0  ;;  %v9479_v28 = vcombine.low %v3015_v26, %v3023_v24  ;;  %v3047_v26 = vld [vmem:[%s11371_s4 + $0xa88] sm:$0xff] }
 0x3b0   : > { %v12420_v6 = vpack.c.bf16 %v2426_v16, %v2423_v46  ;;  %v9496_v46 = vcombine.high %v3031_v43, %v3039_v58  ;;  %v3055_v24 = vld [vmem:[%s11371_s4 + $0xac8] sm:$0xff] }
 0x3b1   : > { %14623 = vst [vmem:[#allocation109_spill] sm:$0xff] %v12418_v4  ;;  %6248 = vmatmul.mubr.bf16.gmra.mrb[200].mxu1 %v9463_v49  ;;  %6561 = vmatmul.mubr.bf16.gmra.mrb[84].mxu0 %v9513_v59  ;;  %v9546_v49 = vcombine.high %v3080_v51, %v3088_v23 }
 0x3b2   : > { %14624 = vst [vmem:[#allocation110_spill] sm:$0xff] %v12420_v6  ;;  %6255 = vmatprep.mubr.bf16.mxu1 %v9480_v39  ;;  %6568 = vmatprep.mubr.bf16.mxu0 %v9530_v34 }
 0x3b4   : > { %v12426_v20 = vpop.f32.mrb[96].mxu1  ;;  %v10404_v56 = vpop.f32.mrb[236].mxu0 }
 0x3b5   : > { %14625 = vst [vmem:[#allocation111_spill] sm:$0xff] %v12426_v20  ;;  %v6010_v3 = vpop.f32.mrb[97].mxu1  ;;  %v2439_v15 = vpop.f32.mrb[237].mxu0  ;;  %v9545_v20 = vcombine.low %v3080_v51, %v3088_v23  ;;  %v3112_v51 = vld [vmem:[%s11371_s4 + $0xc90] sm:$0xff] }
 0x3b6   : > { %v12428_v59 = vpop.f32.mrb[98].mxu1  ;;  %v10405_v39 = vpop.f32.mrb[238].mxu0  ;;  %v3120_v23 = vld [vmem:[%s11371_s4 + $0xcd0] sm:$0xff] }
 0x3b7   : > { %14626 = vst [vmem:[#allocation112_spill] sm:$0xff] %v12428_v59  ;;  %v6013_v34 = vpop.f32.mrb[99].mxu1  ;;  %v12430_v22 = vpack.c.bf16 %v10405_v39, %v10404_v56  ;;  %v2442_v16 = vpop.f32.mrb[239].mxu0  ;;  %v9495_v59 = vcombine.low %v3031_v43, %v3039_v58  ;;  %v3063_v43 = vld [vmem:[%s11371_s4 + $0xb08] sm:$0xff] }
 0x3b8   : > { %v12432_v4 = vpack.c.bf16 %v2442_v16, %v2439_v15  ;;  %v9512_v15 = vcombine.high %v3047_v26, %v3055_v24  ;;  %v3071_v58 = vld [vmem:[%s11371_s4 + $0xb48] sm:$0xff] }
 0x3b9   : > { %14627 = vst [vmem:[#allocation113_spill] sm:$0xff] %v12430_v22  ;;  %6256 = vmatmul.mubr.bf16.gmra.mrb[204].mxu1 %v9479_v28  ;;  %6569 = vmatmul.mubr.bf16.gmra.mrb[88].mxu0 %v9529_v0  ;;  %v9562_v28 = vcombine.high %v3096_v63, %v3104_v7 }
 0x3ba   : > { %14628 = vst [vmem:[#allocation114_spill] sm:$0xff] %v12432_v4  ;;  %6263 = vmatprep.mubr.bf16.mxu1 %v9496_v46  ;;  %6576 = vmatprep.mubr.bf16.mxu0 %v9546_v49 }
 0x3bc   : > { %v12438_v3 = vpop.f32.mrb[100].mxu1  ;;  %v10408_v6 = vpop.f32.mrb[240].mxu0 }
 0x3bd   : > { %14629 = vst [vmem:[#allocation115_spill] sm:$0xff] %v12438_v3  ;;  %v6018_v56 = vpop.f32.mrb[101].mxu1  ;;  %v2455_v39 = vpop.f32.mrb[241].mxu0  ;;  %v9561_v3 = vcombine.low %v3096_v63, %v3104_v7  ;;  %v3128_v63 = vld [vmem:[%s11371_s4 + $0xd10] sm:$0xff] }
 0x3be   : > { %v12440_v0 = vpop.f32.mrb[102].mxu1  ;;  %v10409_v46 = vpop.f32.mrb[242].mxu0  ;;  %v3136_v7 = vld [vmem:[%s11371_s4 + $0xd50] sm:$0xff] }
 0x3bf   : > { %14630 = vst [vmem:[#allocation116_spill] sm:$0xff] %v12440_v0  ;;  %v6021_v49 = vpop.f32.mrb[103].mxu1  ;;  %v12442_v34 = vpack.c.bf16 %v10409_v46, %v10408_v6  ;;  %v2458_v16 = vpop.f32.mrb[243].mxu0  ;;  %v9511_v0 = vcombine.low %v3047_v26, %v3055_v24  ;;  %v3079_v26 = vld [vmem:[%s11371_s4 + $0xb88] sm:$0xff] }
 0x3c0   : > { %v12444_v22 = vpack.c.bf16 %v2458_v16, %v2455_v39  ;;  %v9528_v39 = vcombine.high %v3063_v43, %v3071_v58  ;;  %v3087_v24 = vld [vmem:[%s11371_s4 + $0xbc8] sm:$0xff] }
 0x3c1   : > { %14631 = vst [vmem:[#allocation117_spill] sm:$0xff] %v12442_v34  ;;  %6264 = vmatmul.mubr.bf16.gmra.mrb[208].mxu1 %v9495_v59  ;;  %6577 = vmatmul.mubr.bf16.gmra.mrb[92].mxu0 %v9545_v20  ;;  %v9578_v59 = vcombine.high %v3112_v51, %v3120_v23 }
 0x3c2   : > { %14632 = vst [vmem:[#allocation118_spill] sm:$0xff] %v12444_v22  ;;  %6271 = vmatprep.mubr.bf16.mxu1 %v9512_v15  ;;  %6584 = vmatprep.mubr.bf16.mxu0 %v9562_v28 }
 0x3c4   : > { %v12450_v56 = vpop.f32.mrb[104].mxu1  ;;  %v10412_v4 = vpop.f32.mrb[244].mxu0 }
 0x3c5   : > { %14633 = vst [vmem:[#allocation119_spill] sm:$0xff] %v12450_v56  ;;  %v6026_v6 = vpop.f32.mrb[105].mxu1  ;;  %v2471_v46 = vpop.f32.mrb[245].mxu0  ;;  %v9577_v56 = vcombine.low %v3112_v51, %v3120_v23  ;;  %v3144_v51 = vld [vmem:[%s11371_s4 + $0xd90] sm:$0xff] }
 0x3c6   : > { %v12452_v20 = vpop.f32.mrb[106].mxu1  ;;  %v10413_v15 = vpop.f32.mrb[246].mxu0  ;;  %v3152_v23 = vld [vmem:[%s11371_s4 + $0xdd0] sm:$0xff] }
 0x3c7   : > { %14634 = vst [vmem:[#allocation120_spill] sm:$0xff] %v12452_v20  ;;  %v6029_v28 = vpop.f32.mrb[107].mxu1  ;;  %v12454_v49 = vpack.c.bf16 %v10413_v15, %v10412_v4  ;;  %v2474_v16 = vpop.f32.mrb[247].mxu0  ;;  %v9527_v20 = vcombine.low %v3063_v43, %v3071_v58  ;;  %v3095_v43 = vld [vmem:[%s11371_s4 + $0xc08] sm:$0xff] }
 0x3c8   : > { %v12456_v34 = vpack.c.bf16 %v2474_v16, %v2471_v46  ;;  %v9544_v46 = vcombine.high %v3079_v26, %v3087_v24  ;;  %v3103_v58 = vld [vmem:[%s11371_s4 + $0xc48] sm:$0xff] }
 0x3c9   : > { %14635 = vst [vmem:[#allocation121_spill] sm:$0xff] %v12454_v49  ;;  %6272 = vmatmul.mubr.bf16.gmra.mrb[212].mxu1 %v9511_v0  ;;  %6585 = vmatmul.mubr.bf16.gmra.mrb[96].mxu0 %v9561_v3  ;;  %v9594_v0 = vcombine.high %v3128_v63, %v3136_v7 }
 0x3ca   : > { %14636 = vst [vmem:[#allocation122_spill] sm:$0xff] %v12456_v34  ;;  %6279 = vmatprep.mubr.bf16.mxu1 %v9528_v39  ;;  %6592 = vmatprep.mubr.bf16.mxu0 %v9578_v59 }
 0x3cc   : > { %v12462_v6 = vpop.f32.mrb[108].mxu1  ;;  %v10416_v22 = vpop.f32.mrb[248].mxu0 }
 0x3cd   : > { %14637 = vst [vmem:[#allocation123_spill] sm:$0xff] %v12462_v6  ;;  %v6034_v4 = vpop.f32.mrb[109].mxu1  ;;  %v2487_v15 = vpop.f32.mrb[249].mxu0  ;;  %v9593_v6 = vcombine.low %v3128_v63, %v3136_v7  ;;  %v3160_v63 = vld [vmem:[%s11371_s4 + $0xe10] sm:$0xff] }
 0x3ce   : > { %v12464_v3 = vpop.f32.mrb[110].mxu1  ;;  %v10417_v39 = vpop.f32.mrb[250].mxu0  ;;  %v3168_v7 = vld [vmem:[%s11371_s4 + $0xe50] sm:$0xff] }
 0x3cf   : > { %14638 = vst [vmem:[#allocation124_spill] sm:$0xff] %v12464_v3  ;;  %v6037_v59 = vpop.f32.mrb[111].mxu1  ;;  %v12466_v28 = vpack.c.bf16 %v10417_v39, %v10416_v22  ;;  %v2490_v16 = vpop.f32.mrb[251].mxu0  ;;  %v9543_v3 = vcombine.low %v3079_v26, %v3087_v24  ;;  %v3111_v26 = vld [vmem:[%s11371_s4 + $0xc88] sm:$0xff] }
 0x3d0   : > { %v12468_v49 = vpack.c.bf16 %v2490_v16, %v2487_v15  ;;  %v9560_v15 = vcombine.high %v3095_v43, %v3103_v58  ;;  %v3119_v24 = vld [vmem:[%s11371_s4 + $0xcc8] sm:$0xff] }
 0x3d1   : > { %14639 = vst [vmem:[#allocation125_spill] sm:$0xff] %v12466_v28  ;;  %6280 = vmatmul.mubr.bf16.gmra.mrb[216].mxu1 %v9527_v20  ;;  %6593 = vmatmul.mubr.bf16.gmra.mrb[100].mxu0 %v9577_v56  ;;  %v9610_v20 = vcombine.high %v3144_v51, %v3152_v23 }
 0x3d2   : > { %14640 = vst [vmem:[#allocation126_spill] sm:$0xff] %v12468_v49  ;;  %6287 = vmatprep.mubr.bf16.mxu1 %v9544_v46  ;;  %6600 = vmatprep.mubr.bf16.mxu0 %v9594_v0 }
 0x3d4   : > { %v12474_v4 = vpop.f32.mrb[112].mxu1  ;;  %v10420_v34 = vpop.f32.mrb[252].mxu0 }
 0x3d5   : > { %14641 = vst [vmem:[#allocation127_spill] sm:$0xff] %v12474_v4  ;;  %v6042_v22 = vpop.f32.mrb[113].mxu1  ;;  %v2503_v39 = vpop.f32.mrb[253].mxu0  ;;  %v3151_v4 = vld [vmem:[%s11371_s4 + $0xdc8] sm:$0xff] }
 0x3d6   : > { %v12476_v56 = vpop.f32.mrb[114].mxu1  ;;  %v10421_v46 = vpop.f32.mrb[254].mxu0 }
 0x3d7   : > { %14642 = vst [vmem:[#allocation128_spill] sm:$0xff] %v12476_v56  ;;  %v6045_v0 = vpop.f32.mrb[115].mxu1  ;;  %v12478_v59 = vpack.c.bf16 %v10421_v46, %v10420_v34  ;;  %v2506_v16 = vpop.f32.mrb[255].mxu0  ;;  %v9559_v34 = vcombine.low %v3095_v43, %v3103_v58 }
 0x3d8   : > { %v12480_v28 = vpack.c.bf16 %v2506_v16, %v2503_v39  ;;  %v9609_v0 = vcombine.low %v3144_v51, %v3152_v23  ;;  %v3176_v51 = vld [vmem:[%s11371_s4 + $0xe90] sm:$0xff] }
 0x3d9   : > { %14643 = vst [vmem:[#allocation129_spill] sm:$0xff] %v12478_v59  ;;  %6288 = vmatmul.mubr.bf16.gmra.mrb[220].mxu1 %v9543_v3  ;;  %6601 = vmatmul.mubr.bf16.gmra.mrb[104].mxu0 %v9593_v6  ;;  %v9576_v3 = vcombine.high %v3111_v26, %v3119_v24  ;;  %v9626_v6 = vcombine.high %v3160_v63, %v3168_v7  ;;  %v3184_v23 = vld [vmem:[%s11371_s4 + $0xed0] sm:$0xff] }
 0x3da   : > { %14644 = vst [vmem:[#allocation130_spill] sm:$0xff] %v12480_v28  ;;  %6295 = vmatprep.mubr.bf16.mxu1 %v9560_v15  ;;  %6608 = vmatprep.mubr.bf16.mxu0 %v9610_v20  ;;  %v3127_v28 = vld [vmem:[%s11371_s4 + $0xd08] sm:$0xff] }
 0x3dc   : > { %v12486_v22 = vpop.f32.mrb[116].mxu1  ;;  %v12488_v49 = vpop.f32.mrb[0].mxu0 }
 0x3dd   : > { %14645 = vst [vmem:[#allocation131_spill] sm:$0xff] %v12486_v22  ;;  %v6050_v39 = vpop.f32.mrb[117].mxu1  ;;  %v6396_v46 = vpop.f32.mrb[1].mxu0  ;;  %v3135_v22 = vld [vmem:[%s11371_s4 + $0xd48] sm:$0xff] }
 0x3de   : > { %v12490_v15 = vpop.f32.mrb[118].mxu1  ;;  %v12492_v20 = vpop.f32.mrb[2].mxu0  ;;  %v9625_v39 = vcombine.low %v3160_v63, %v3168_v7  ;;  %v9575_v46 = vcombine.low %v3111_v26, %v3119_v24  ;;  %v3192_v63 = vld [vmem:[%s11371_s4 + $0xf10] sm:$0xff] }
 0x3df   : > { %14646 = vst [vmem:[#allocation132_spill] sm:$0xff] %v12490_v15  ;;  %v6053_v16 = vpop.f32.mrb[119].mxu1  ;;  %v6399_v59 = vpop.f32.mrb[3].mxu0  ;;  %v3200_v7 = vld [vmem:[%s11371_s4 + $0xf50] sm:$0xff] }
 0x3e1   : > { %6296 = vmatmul.mubr.bf16.gmra.mrb[224].mxu1 %v9559_v34  ;;  %6609 = vmatmul.mubr.bf16.gmra.mrb[108].mxu0 %v9609_v0  ;;  %v9592_v0 = vcombine.high %v3127_v28, %v3135_v22 }
 0x3e2   : > { %6303 = vmatprep.mubr.bf16.mxu1 %v9576_v3  ;;  %6616 = vmatprep.mubr.bf16.mxu0 %v9626_v6  ;;  %v9642_v3 = vcombine.high %v3176_v51, %v3184_v23 }
 0x3e4   : > { %v12498_v43 = vpop.f32.mrb[120].mxu1  ;;  %v12500_v58 = vpop.f32.mrb[4].mxu0 }
 0x3e5   : > { %14647 = vst [vmem:[#allocation133_spill] sm:$0xff] %v12498_v43  ;;  %v6058_v16 = vpop.f32.mrb[121].mxu1  ;;  %v6404_v59 = vpop.f32.mrb[5].mxu0  ;;  %v3143_v43 = vld [vmem:[%s11371_s4 + $0xd88] sm:$0xff] }
 0x3e6   : > { %v12502_v34 = vpop.f32.mrb[122].mxu1  ;;  %v12504_v6 = vpop.f32.mrb[6].mxu0  ;;  %v9641_v16 = vcombine.low %v3176_v51, %v3184_v23  ;;  %v3208_v51 = vld [vmem:[%s11371_s4 + $0xf90] sm:$0xff]  ;;  %v9607_v35 = vcombine.low %v3143_v43, %v3151_v4 }
 0x3e7   : > { %14648 = vst [vmem:[#allocation134_spill] sm:$0xff] %v12502_v34  ;;  %v6061_v15 = vpop.f32.mrb[123].mxu1  ;;  %v6407_v56 = vpop.f32.mrb[7].mxu0  ;;  %v3216_v23 = vld [vmem:[%s11371_s4 + $0xfd0] sm:$0xff] }
 0x3e8   : > { %v9591_v15 = vcombine.low %v3127_v28, %v3135_v22  ;;  %v14651_v28 = vld [vmem:[#allocation36_spill] sm:$0xff] }
 0x3e9   : > { %6304 = vmatmul.mubr.bf16.gmra.mrb[228].mxu1 %v9575_v46  ;;  %6617 = vmatmul.mubr.bf16.gmra.mrb[112].mxu0 %v9625_v39  ;;  %v9608_v39 = vcombine.high %v3143_v43, %v3151_v4  ;;  %v3175_v4 = vld [vmem:[%s11371_s4 + $0xe88] sm:$0xff] }
 0x3ea   : > { %6311 = vmatprep.mubr.bf16.mxu1 %v9592_v0  ;;  %6624 = vmatprep.mubr.bf16.mxu0 %v9642_v3  ;;  %v9658_v0 = vcombine.high %v3192_v63, %v3200_v7  ;;  %v3183_v43 = vld [vmem:[%s11371_s4 + $0xec8] sm:$0xff] }
 0x3ec   : > { %v12510_v26 = vpop.f32.mrb[124].mxu1  ;;  %v12512_v24 = vpop.f32.mrb[8].mxu0 }
 0x3ed   : > { %14649 = vst [vmem:[#allocation135_spill] sm:$0xff] %v12510_v26  ;;  %v6066_v59 = vpop.f32.mrb[125].mxu1  ;;  %v6412_v56 = vpop.f32.mrb[9].mxu0  ;;  %v3159_v26 = vld [vmem:[%s11371_s4 + $0xe08] sm:$0xff] }
 0x3ee   : > { %v12514_v46 = vpop.f32.mrb[126].mxu1  ;;  %v12516_v3 = vpop.f32.mrb[10].mxu0 }
 0x3ef   : > { %14650 = vst [vmem:[#allocation136_spill] sm:$0xff] %v12514_v46  ;;  %v6069_v34 = vpop.f32.mrb[127].mxu1  ;;  %v6415_v50 = vpop.f32.mrb[11].mxu0  ;;  %v9657_v46 = vcombine.low %v3192_v63, %v3200_v7  ;;  %v2714_v7 = vld [vmem:[%s11371_s4 + $0x20] sm:$0xff] }
 0x3f1   : > { %6312 = vmatmul.mubr.bf16.gmra.mrb[232].mxu1 %v9591_v15  ;;  %6625 = vmatmul.mubr.bf16.gmra.mrb[116].mxu0 %v9641_v16  ;;  %v9624_v16 = vcombine.high %v3159_v26, %v3167_v18  ;;  %v9674_v15 = vcombine.high %v3208_v51, %v3216_v23 }
 0x3f2   : > { %6319 = vmatprep.mubr.bf16.mxu1 %v9608_v39  ;;  %6632 = vmatprep.mubr.bf16.mxu0 %v9658_v0  ;;  %v14652_v0 = vld [vmem:[#allocation38_spill] sm:$0xff] }
 0x3f4   : > { %v6105_v59 = vpop.f32.mrb[128].mxu1  ;;  %v12522_v19 = vpop.f32.mrb[12].mxu0 }
 0x3f5   : > { %v6106_v22 = vadd.f32 %v6105_v59, %v14651_v28  ;;  %v6107_v56 = vpop.f32.mrb[129].mxu1  ;;  %v6420_v34 = vpop.f32.mrb[13].mxu0  ;;  %v2722_v28 = vld [vmem:[%s11371_s4 + $0x60] sm:$0xff] }
 0x3f6   : > { %v6108_v50 = vpop.f32.mrb[130].mxu1  ;;  %v12525_v39 = vpop.f32.mrb[14].mxu0 }
 0x3f7   : > { %v6109_v17 = vadd.f32 %v6108_v50, %v14652_v0  ;;  %v12529_v55 = vadd.f32 %v12488_v49, %v6106_v22  ;;  %v6110_v32 = vpop.f32.mrb[131].mxu1  ;;  %v6423_v59 = vpop.f32.mrb[15].mxu0  ;;  %v14655_v50 = vld [vmem:[#allocation39_spill] sm:$0xff]  ;;  %v9673_v22 = vcombine.low %v3208_v51, %v3216_v23  ;;  %v2730_v23 = vld [vmem:[%s11371_s4 + $0xa0] sm:$0xff] }
 0x3f8   : > { %v9623_v32 = vcombine.low %v3159_v26, %v3167_v18  ;;  %v3191_v18 = vld [vmem:[%s11371_s4 + $0xf08] sm:$0xff] }
 0x3f9   : > { %14653 = vst [vmem:[#allocation36_spill] sm:$0xff] %v12529_v55  ;;  %v12532_v63 = vadd.f32 %v12492_v20, %v6109_v17  ;;  %6320 = vmatmul.mubr.bf16.gmra.mrb[236].mxu1 %v9607_v35  ;;  %6633 = vmatmul.mubr.bf16.gmra.mrb[120].mxu0 %v9657_v46  ;;  %v9640_v20 = vcombine.high %v3175_v4, %v3183_v43  ;;  %v3199_v26 = vld [vmem:[%s11371_s4 + $0xf48] sm:$0xff] }
 0x3fa   : > { %6327 = vmatprep.mubr.bf16.mxu1 %v9624_v16  ;;  %6640 = vmatprep.mubr.bf16.mxu0 %v9674_v15  ;;  %v9182_v46 = vcombine.high %v2714_v7, %v2722_v28  ;;  %v14656_v15 = vld [vmem:[#allocation40_spill] sm:$0xff] }
 0x3fb   : > { %14654 = vst [vmem:[#allocation38_spill] sm:$0xff] %v12532_v63 }
 0x3fc   : > { %v6113_v56 = vpop.f32.mrb[132].mxu1  ;;  %v12538_v34 = vpop.f32.mrb[16].mxu0 }
 0x3fd   : > { %v6114_v0 = vadd.f32 %v6113_v56, %v14655_v50  ;;  %v6115_v49 = vpop.f32.mrb[133].mxu1  ;;  %v6428_v17 = vpop.f32.mrb[17].mxu0  ;;  %v2738_v50 = vld [vmem:[%s11371_s4 + $0xe0] sm:$0xff] }
 0x3fe   : > { %v6116_v35 = vpop.f32.mrb[134].mxu1  ;;  %v12541_v16 = vpop.f32.mrb[18].mxu0 }
 0x3ff   : > { %v6117_v59 = vadd.f32 %v6116_v35, %v14656_v15  ;;  %v12545_v63 = vadd.f32 %v12500_v58, %v6114_v0  ;;  %v6118_v55 = vpop.f32.mrb[135].mxu1  ;;  %v6431_v56 = vpop.f32.mrb[19].mxu0  ;;  %v14659_v35 = vld [vmem:[#allocation41_spill] sm:$0xff]  ;;  %v9181_v0 = vcombine.low %v2714_v7, %v2722_v28 }
 0x400   : > { %v9639_v55 = vcombine.low %v3175_v4, %v3183_v43  ;;  %v3207_v4 = vld [vmem:[%s11371_s4 + $0xf88] sm:$0xff]  ;;  %v2746_v28 = vld [vmem:[%s11371_s4 + $0x120] sm:$0xff] }
 0x401   : > { %14657 = vst [vmem:[#allocation39_spill] sm:$0xff] %v12545_v63  ;;  %v12548_v51 = vadd.f32 %v12504_v6, %v6117_v59  ;;  %6328 = vmatmul.mubr.bf16.gmra.mrb[240].mxu1 %v9623_v32  ;;  %6641 = vmatmul.mubr.bf16.gmra.mrb[124].mxu0 %v9673_v22  ;;  %v9656_v22 = vcombine.high %v3191_v18, %v3199_v26  ;;  %v14660_v59 = vld [vmem:[#allocation42_spill] sm:$0xff] }
 0x402   : > { %6335 = vmatprep.mubr.bf16.mxu1 %v9640_v20  ;;  %6970 = vmatprep.mubr.bf16.mxu0 %v9182_v46  ;;  %v9198_v20 = vcombine.high %v2730_v23, %v2738_v50  ;;  %v3215_v43 = vld [vmem:[%s11371_s4 + $0xfc8] sm:$0xff] }
 0x403   : > { %14658 = vst [vmem:[#allocation40_spill] sm:$0xff] %v12548_v51 }
 0x404   : > { %v6121_v49 = vpop.f32.mrb[136].mxu1  ;;  %v12554_v17 = vpop.f32.mrb[20].mxu0 }
 0x405   : > { %v6122_v15 = vadd.f32 %v6121_v49, %v14659_v35  ;;  %v6123_v58 = vpop.f32.mrb[137].mxu1  ;;  %v6436_v6 = vpop.f32.mrb[21].mxu0  ;;  %v2754_v35 = vld [vmem:[%s11371_s4 + $0x160] sm:$0xff] }
 0x406   : > { %v6124_v32 = vpop.f32.mrb[138].mxu1  ;;  %v12557_v46 = vpop.f32.mrb[22].mxu0  ;;  %v14661_v58 = vpack.c.bf16 %v12238_v42, %v12230_v9  ;;  %v14663_v9 = vld [vmem:[#allocation44_spill] sm:$0xff] }
 0x407   : > { %v6125_v56 = vadd.f32 %v6124_v32, %v14660_v59  ;;  %v12561_v51 = vadd.f32 %v12512_v24, %v6122_v15  ;;  %v6126_v63 = vpop.f32.mrb[139].mxu1  ;;  %v6439_v49 = vpop.f32.mrb[23].mxu0  ;;  %v9214_v59 = vcombine.high %v2746_v28, %v2754_v35 }
 0x408   : > { %v14662_v63 = vld [vmem:[#allocation43_spill] sm:$0xff] }
 0x409   : > { %v12564_v7 = vadd.f32 %v12516_v3, %v6125_v56  ;;  %6336 = vmatmul.mubr.bf16.gmra.mrb[244].mxu1 %v9639_v55  ;;  %6971 = vmatmul.mubr.bf16.vlgmr.msra.gmra.mrb[128].mxu0 %v9181_v0  ;;  %v9197_v55 = vcombine.low %v2730_v23, %v2738_v50  ;;  %v9655_v0 = vcombine.low %v3191_v18, %v3199_v26  ;;  %v2713_v23 = vld [vmem:[%s11371_s4 + $0x18] sm:$0xff] }
 0x40a   : > { %6343 = vmatprep.mubr.bf16.mxu1 %v9656_v22  ;;  %6978 = vmatprep.mubr.bf16.mxu0 %v9198_v20  ;;  %v9672_v20 = vcombine.high %v3207_v4, %v3215_v43  ;;  %v14664_v18 = vpack.c.bf16 %v12234_v54, %v12227_v12  ;;  %v2721_v50 = vld [vmem:[%s11371_s4 + $0x58] sm:$0xff] }
 0x40b   : > { %7517 = vmatpush1.bf16.msra.mxu0 %v14661_v58  ;;  %v14666_v54 = vld [vmem:[#allocation45_spill] sm:$0xff] }
 0x40c   : > { %v6129_v6 = vpop.f32.mrb[140].mxu1  ;;  %v12573_v24 = vpop.f32.mrb[24].mxu0  ;;  %7518 = vmatprep.subr.bf16.mxu0 %v14504_v62 }
 0x40d   : > { %v6130_v3 = vadd.f32 %v6129_v6, %v14662_v63  ;;  %v6131_v15 = vpop.f32.mrb[141].mxu1  ;;  %v6444_v32 = vpop.f32.mrb[25].mxu0  ;;  %v2762_v63 = vld [vmem:[%s11371_s4 + $0x1a0] sm:$0xff] }
 0x40e   : > { %v6132_v22 = vpop.f32.mrb[142].mxu1  ;;  %v12577_v42 = vpop.f32.mrb[26].mxu0 }
 0x40f   : > { %v6133_v56 = vadd.f32 %v6132_v22, %v14663_v9  ;;  %v12581_v49 = vadd.f32 %v12522_v19, %v6130_v3  ;;  %v6134_v58 = vpop.f32.mrb[143].mxu1  ;;  %v6447_v6 = vpop.f32.mrb[27].mxu0  ;;  %7519 = vmatpush1.bf16.msra.mxu0 %v14664_v18  ;;  %v2770_v19 = vld [vmem:[%s11371_s4 + $0x1e0] sm:$0xff]  ;;  %v14665_v3 = vpack.c.bf16 %v12262_v1, %v12254_v5 }
 0x410   : > { %7520 = vmatprep.subr.bf16.mxu0 %v14504_v62  ;;  %v9230_v9 = vcombine.high %v2762_v63, %v2770_v19  ;;  %v14667_v5 = vld [vmem:[#allocation46_spill] sm:$0xff] }
 0x411   : > { %v12588_v26 = vadd.f32 %v12525_v39, %v6133_v56  ;;  %6344 = vmatmul.mubr.bf16.gmra.mrb[248].mxu1 %v9655_v0  ;;  %6979 = vmatmul.mubr.bf16.gmra.mrb[132].mxu0 %v9197_v55  ;;  %v9213_v0 = vcombine.low %v2746_v28, %v2754_v35  ;;  %v9671_v55 = vcombine.low %v3207_v4, %v3215_v43  ;;  %v2729_v28 = vld [vmem:[%s11371_s4 + $0x98] sm:$0xff] }
 0x412   : > { %6351 = vmatprep.mubr.bf16.mxu1 %v9672_v20  ;;  %6986 = vmatprep.mubr.bf16.mxu0 %v9214_v59  ;;  %v9180_v59 = vcombine.high %v2713_v23, %v2721_v50  ;;  %v14668_v4 = vpack.c.bf16 %v12258_v30, %v12252_v47  ;;  %v2737_v35 = vld [vmem:[%s11371_s4 + $0xd8] sm:$0xff]  ;;  %v14670_v30 = vld [vmem:[#allocation47_spill] sm:$0xff] }
 0x413   : > { %7521 = vmatpush1.bf16.msra.mxu0 %v14665_v3  ;;  %v2778_v3 = vld [vmem:[%s11371_s4 + $0x220] sm:$0xff] }
 0x414   : > { %v6137_v15 = vpop.f32.mrb[144].mxu1  ;;  %v12597_v12 = vpop.f32.mrb[28].mxu0  ;;  %7522 = vmatprep.subr.bf16.mxu0 %v14504_v62 }
 0x415   : > { %v6138_v39 = vadd.f32 %v6137_v15, %v14666_v54  ;;  %v6139_v32 = vpop.f32.mrb[145].mxu1  ;;  %v6452_v22 = vpop.f32.mrb[29].mxu0  ;;  %v14669_v15 = vpack.c.bf16 %v12282_v48, %v12274_v2 }
 0x416   : > { %v6140_v20 = vpop.f32.mrb[146].mxu1  ;;  %v12601_v1 = vpop.f32.mrb[30].mxu0  ;;  %v9179_v32 = vcombine.low %v2713_v23, %v2721_v50  ;;  %v14671_v23 = vpack.c.bf16 %v12278_v44, %v12272_v41  ;;  %v14673_v41 = vpack.c.bf16 %v12302_v36, %v12294_v21 }
 0x417   : > { %v6141_v56 = vadd.f32 %v6140_v20, %v14667_v5  ;;  %v12605_v58 = vadd.f32 %v12538_v34, %v6138_v39  ;;  %v6142_v6 = vpop.f32.mrb[147].mxu1  ;;  %v6455_v18 = vpop.f32.mrb[31].mxu0  ;;  %7523 = vmatpush1.bf16.msra.mxu0 %v14668_v4  ;;  %v2786_v34 = vld [vmem:[%s11371_s4 + $0x260] sm:$0xff]  ;;  %v9196_v20 = vcombine.high %v2729_v28, %v2737_v35 }
 0x418   : > { %7524 = vmatprep.subr.bf16.mxu0 %v14504_v62  ;;  %v14672_v6 = vpack.c.bf16 %v11974_v37, %v11966_v52 }
 0x419   : > { %v12612_v43 = vadd.f32 %v12541_v16, %v6141_v56  ;;  %6352 = vmatmul.mubr.bf16.gmra.mrb[252].mxu1 %v9671_v55  ;;  %6987 = vmatmul.mubr.bf16.gmra.mrb[136].mxu0 %v9213_v0  ;;  %v9229_v0 = vcombine.low %v2762_v63, %v2770_v19  ;;  %v2745_v63 = vld [vmem:[%s11371_s4 + $0x118] sm:$0xff]  ;;  %v2794_v19 = vld [vmem:[%s11371_s4 + $0x2a0] sm:$0xff] }
 0x41a   : > { %6681 = vmatprep.mubr.bf16.mxu1 %v9180_v59  ;;  %6994 = vmatprep.mubr.bf16.mxu0 %v9230_v9  ;;  %v9246_v59 = vcombine.high %v2778_v3, %v2786_v34 }
 0x41b   : > { %7525 = vmatpush1.bf16.msra.mxu0 %v14669_v15  ;;  %v9195_v15 = vcombine.low %v2729_v28, %v2737_v35  ;;  %v14674_v28 = vpack.c.bf16 %v11970_v11, %v11963_v45  ;;  %v14675_v35 = vpack.c.bf16 %v12298_v61, %v12292_v27  ;;  %v2818_v45 = vld [vmem:[%s11371_s4 + $0x360] sm:$0xff]  ;;  %v14676_v11 = vpack.c.bf16 %v12009_v25, %v11998_v57 }
 0x41c   : > { %v6145_v54 = vpop.f32.mrb[148].mxu1  ;;  %v12621_v47 = vpop.f32.mrb[32].mxu0  ;;  %7526 = vmatprep.subr.bf16.mxu0 %v14504_v62  ;;  %v14677_v27 = vpack.c.bf16 %v12322_v40, %v12314_v33 }
 0x41d   : > { %v6146_v16 = vadd.f32 %v6145_v54, %v14670_v30  ;;  %v6147_v39 = vpop.f32.mrb[149].mxu1  ;;  %v6460_v55 = vpop.f32.mrb[33].mxu0  ;;  %v9245_v54 = vcombine.low %v2778_v3, %v2786_v34  ;;  %v2769_v3 = vld [vmem:[%s11371_s4 + $0x1d8] sm:$0xff]  ;;  %v2810_v34 = vld [vmem:[%s11371_s4 + $0x320] sm:$0xff] }
 0x41e   : > { %v6148_v22 = vpop.f32.mrb[150].mxu1  ;;  %v12625_v2 = vpop.f32.mrb[34].mxu0  ;;  %v9278_v25 = vcombine.high %v2810_v34, %v2818_v45 }
 0x41f   : > { %v6149_v48 = vadd.f32 %v6148_v22, %v11968_v13  ;;  %v12629_v9 = vadd.f32 %v12554_v17, %v6146_v16  ;;  %v6150_v5 = vpop.f32.mrb[151].mxu1  ;;  %v6463_v56 = vpop.f32.mrb[35].mxu0  ;;  %7527 = vmatpush1.bf16.msra.mxu0 %v14671_v23  ;;  %v2753_v13 = vld [vmem:[%s11371_s4 + $0x158] sm:$0xff]  ;;  %v2802_v17 = vld [vmem:[%s11371_s4 + $0x2e0] sm:$0xff]  ;;  %v14678_v23 = vpack.c.bf16 %v12002_v38, %v11995_v10  ;;  %v14680_v38 = vld [vmem:[#allocation51_spill] sm:$0xff] }
 0x420   : > { %7528 = vmatprep.subr.bf16.mxu0 %v14504_v62  ;;  %v9212_v37 = vcombine.high %v2745_v63, %v2753_v13  ;;  %v9262_v52 = vcombine.high %v2794_v19, %v2802_v17  ;;  %v9211_v22 = vcombine.low %v2745_v63, %v2753_v13  ;;  %v14679_v63 = vpack.c.bf16 %v12318_v31, %v12312_v53  ;;  %v2785_v13 = vld [vmem:[%s11371_s4 + $0x258] sm:$0xff]  ;;  %v2834_v10 = vld [vmem:[%s11371_s4 + $0x3e0] sm:$0xff]  ;;  %v14684_v31 = vld [vmem:[#allocation83_spill] sm:$0xff] }
 0x421   : > { %v12636_v50 = vadd.f32 %v12557_v46, %v6149_v48  ;;  %6682 = vmatmul.mubr.bf16.vlgmr.msra.gmra.mrb[0].mxu1 %v9179_v32  ;;  %6995 = vmatmul.mubr.bf16.gmra.mrb[140].mxu0 %v9229_v0  ;;  %v14683_v53 = vld [vmem:[#allocation86_spill] sm:$0xff] }
 0x422   : > { %6689 = vmatprep.mubr.bf16.mxu1 %v9196_v20  ;;  %7002 = vmatprep.mubr.bf16.mxu0 %v9246_v59  ;;  %v9261_v20 = vcombine.low %v2794_v19, %v2802_v17  ;;  %v2826_v19 = vld [vmem:[%s11371_s4 + $0x3a0] sm:$0xff] }
 0x423   : > { %7228 = vmatpush1.bf16.msra.mxu1 %v14672_v6  ;;  %7529 = vmatpush1.bf16.msra.mxu0 %v14673_v41  ;;  %v14681_v17 = vld [vmem:[#allocation49_spill] sm:$0xff]  ;;  %v14685_v41 = vpack.c.bf16 %v14683_v53, %v14684_v31  ;;  %v9293_v53 = vcombine.low %v2826_v19, %v2834_v10 }
 0x424   : > { %v6153_v44 = vpop.f32.mrb[152].mxu1  ;;  %v12648_v18 = vpop.f32.mrb[36].mxu0  ;;  %7229 = vmatprep.subr.bf16.mxu1 %v14504_v62  ;;  %7530 = vmatprep.subr.bf16.mxu0 %v14504_v62  ;;  %v14682_v6 = vpack.c.bf16 %v14680_v38, %v14681_v17 }
 0x425   : > { %v6154_v46 = vadd.f32 %v6153_v44, %v11993_v29  ;;  %v6155_v4 = vpop.f32.mrb[153].mxu1  ;;  %v6468_v30 = vpop.f32.mrb[37].mxu0 }
 0x426   : > { %v6156_v16 = vpop.f32.mrb[154].mxu1  ;;  %v12653_v21 = vpop.f32.mrb[38].mxu0  ;;  %v9277_v30 = vcombine.low %v2810_v34, %v2818_v45  ;;  %v14691_v34 = vld [vmem:[#allocation85_spill] sm:$0xff]  ;;  %v14692_v45 = vld [vmem:[#allocation82_spill] sm:$0xff] }
 0x427   : > { %v6157_v36 = vadd.f32 %v6156_v16, %v12000_v60  ;;  %v12657_v39 = vadd.f32 %v12573_v24, %v6154_v46  ;;  %v6158_v32 = vpop.f32.mrb[155].mxu1  ;;  %v6471_v29 = vpop.f32.mrb[39].mxu0  ;;  %7230 = vmatpush1.bf16.msra.mxu1 %v14674_v28  ;;  %7531 = vmatpush1.bf16.msra.mxu0 %v14675_v35  ;;  %v2761_v24 = vld [vmem:[%s11371_s4 + $0x198] sm:$0xff] }
 0x428   : > { %7231 = vmatprep.subr.bf16.mxu1 %v14504_v62  ;;  %7532 = vmatprep.subr.bf16.mxu0 %v14504_v62  ;;  %v9228_v57 = vcombine.high %v2761_v24, %v2769_v3  ;;  %v14687_v29 = vld [vmem:[#allocation55_spill] sm:$0xff] }
 0x429   : > { %v12668_v60 = vadd.f32 %v12577_v42, %v6157_v36  ;;  %6690 = vmatmul.mubr.bf16.gmra.mrb[4].mxu1 %v9195_v15  ;;  %7003 = vmatmul.mubr.bf16.gmra.mrb[144].mxu0 %v9245_v54  ;;  %v9227_v54 = vcombine.low %v2761_v24, %v2769_v3  ;;  %v9294_v36 = vcombine.high %v2826_v19, %v2834_v10  ;;  %v14689_v24 = vld [vmem:[#allocation48_spill] sm:$0xff]  ;;  %v14705_v19 = vld [vmem:[#allocation91_spill] sm:$0xff] }
 0x42a   : > { %6697 = vmatprep.mubr.bf16.mxu1 %v9212_v37  ;;  %7010 = vmatprep.mubr.bf16.mxu0 %v9262_v52  ;;  %v14706_v10 = vld [vmem:[#allocation88_spill] sm:$0xff] }
 0x42b   : > { %7232 = vmatpush1.bf16.msra.mxu1 %v14676_v11  ;;  %7533 = vmatpush1.bf16.msra.mxu0 %v14677_v27 }
 0x42c   : > { %v6161_v61 = vpop.f32.mrb[156].mxu1  ;;  %v12680_v0 = vpop.f32.mrb[40].mxu0  ;;  %7233 = vmatprep.subr.bf16.mxu1 %v14504_v62  ;;  %7534 = vmatprep.subr.bf16.mxu0 %v14504_v62 }
 0x42d   : > { %v6162_v42 = vadd.f32 %v6161_v61, %v12028_v14  ;;  %v6163_v55 = vpop.f32.mrb[157].mxu1  ;;  %v6476_v59 = vpop.f32.mrb[41].mxu0  ;;  %v14688_v61 = vld [vmem:[#allocation50_spill] sm:$0xff] }
 0x42e   : > { %v6164_v48 = vpop.f32.mrb[158].mxu1  ;;  %v12685_v40 = vpop.f32.mrb[42].mxu0  ;;  %v14690_v3 = vpack.c.bf16 %v14688_v61, %v14689_v24  ;;  %v2850_v59 = vld [vmem:[%s11371_s4 + $0x460] sm:$0xff]  ;;  %v14708_v61 = vld [vmem:[#allocation63_spill] sm:$0xff]  ;;  %v14709_v24 = vld [vmem:[#allocation60_spill] sm:$0xff] }
 0x42f   : > { %v6165_v33 = vadd.f32 %v6164_v48, %v12036_v8  ;;  %v12689_v5 = vadd.f32 %v12597_v12, %v6162_v42  ;;  %v6166_v56 = vpop.f32.mrb[159].mxu1  ;;  %v6479_v14 = vpop.f32.mrb[43].mxu0  ;;  %7234 = vmatpush1.bf16.msra.mxu1 %v14678_v23  ;;  %7535 = vmatpush1.bf16.msra.mxu0 %v14679_v63  ;;  %v2777_v12 = vld [vmem:[%s11371_s4 + $0x218] sm:$0xff]  ;;  %v14693_v42 = vpack.c.bf16 %v14691_v34, %v14692_v45  ;;  %v14711_v34 = vld [vmem:[#allocation98_spill] sm:$0xff]  ;;  %v14712_v45 = vld [vmem:[#allocation95_spill] sm:$0xff] }
 0x430   : > { %7235 = vmatprep.subr.bf16.mxu1 %v14504_v62  ;;  %7536 = vmatprep.subr.bf16.mxu0 %v14504_v62  ;;  %v9244_v52 = vcombine.high %v2777_v12, %v2785_v13  ;;  %v14694_v48 = vld [vmem:[#allocation57_spill] sm:$0xff] }
 0x431   : > { %v12700_v8 = vadd.f32 %v12601_v1, %v6165_v33  ;;  %6698 = vmatmul.mubr.bf16.gmra.mrb[8].mxu1 %v9211_v22  ;;  %7011 = vmatmul.mubr.bf16.gmra.mrb[148].mxu0 %v9261_v20  ;;  %v14686_v1 = vld [vmem:[#allocation52_spill] sm:$0xff]  ;;  %v2842_v20 = vld [vmem:[%s11371_s4 + $0x420] sm:$0xff] }
 0x432   : > { %6705 = vmatprep.mubr.bf16.mxu1 %v9228_v57  ;;  %7018 = vmatprep.mubr.bf16.mxu0 %v9278_v25  ;;  %v2801_v22 = vld [vmem:[%s11371_s4 + $0x2d8] sm:$0xff]  ;;  %v14695_v57 = vld [vmem:[#allocation54_spill] sm:$0xff] }
 0x433   : > { %7236 = vmatpush1.bf16.msra.mxu1 %v14682_v6  ;;  %7537 = vmatpush1.bf16.msra.mxu0 %v14685_v41  ;;  %v14696_v25 = vpack.c.bf16 %v14694_v48, %v14695_v57  ;;  %v14697_v33 = vld [vmem:[#allocation92_spill] sm:$0xff]  ;;  %v14698_v56 = vld [vmem:[#allocation89_spill] sm:$0xff]  ;;  %v9243_v6 = vcombine.low %v2777_v12, %v2785_v13 }
 0x434   : > { %v6169_v44 = vpop.f32.mrb[160].mxu1  ;;  %v12712_v46 = vpop.f32.mrb[44].mxu0  ;;  %7237 = vmatprep.subr.bf16.mxu1 %v14504_v62  ;;  %7538 = vmatprep.subr.bf16.mxu0 %v14504_v62  ;;  %v14699_v14 = vpack.c.bf16 %v14697_v33, %v14698_v56  ;;  %v14703_v12 = vld [vmem:[#allocation53_spill] sm:$0xff] }
 0x435   : > { %v6170_v4 = vadd.f32 %v6169_v44, %v14686_v1  ;;  %v6171_v15 = vpop.f32.mrb[161].mxu1  ;;  %v6484_v16 = vpop.f32.mrb[45].mxu0  ;;  %v9310_v1 = vcombine.high %v2842_v20, %v2850_v59 }
 0x436   : > { %v6172_v37 = vpop.f32.mrb[162].mxu1  ;;  %v12717_v32 = vpop.f32.mrb[46].mxu0  ;;  %v14701_v15 = vld [vmem:[#allocation61_spill] sm:$0xff] }
 0x437   : > { %v6173_v28 = vadd.f32 %v6172_v37, %v14687_v29  ;;  %v12721_v35 = vadd.f32 %v12621_v47, %v6170_v4  ;;  %v6174_v11 = vpop.f32.mrb[163].mxu1  ;;  %v6487_v27 = vpop.f32.mrb[47].mxu0  ;;  %7238 = vmatpush1.bf16.msra.mxu1 %v14690_v3  ;;  %7539 = vmatpush1.bf16.msra.mxu0 %v14693_v42  ;;  %v2793_v47 = vld [vmem:[%s11371_s4 + $0x298] sm:$0xff]  ;;  %v14710_v3 = vpack.c.bf16 %v14708_v61, %v14709_v24  ;;  %v14725_v24 = vld [vmem:[#allocation27_spill] sm:$0xff] }
 0x438   : > { %7239 = vmatprep.subr.bf16.mxu1 %v14504_v62  ;;  %7540 = vmatprep.subr.bf16.mxu0 %v14504_v62  ;;  %v9260_v44 = vcombine.high %v2793_v47, %v2801_v22  ;;  %v2858_v11 = vld [vmem:[%s11371_s4 + $0x4a0] sm:$0xff]  ;;  %v14713_v42 = vpack.c.bf16 %v14711_v34, %v14712_v45  ;;  %v9259_v56 = vcombine.low %v2793_v47, %v2801_v22  ;;  %v14717_v47 = vld [vmem:[#allocation59_spill] sm:$0xff] }
 0x439   : > { %v12732_v55 = vadd.f32 %v12625_v2, %v6173_v28  ;;  %6706 = vmatmul.mubr.bf16.gmra.mrb[12].mxu1 %v9227_v54  ;;  %7019 = vmatmul.mubr.bf16.gmra.mrb[152].mxu0 %v9277_v30  ;;  %v14700_v2 = vld [vmem:[#allocation58_spill] sm:$0xff]  ;;  %v2817_v28 = vld [vmem:[%s11371_s4 + $0x358] sm:$0xff] }
 0x43a   : > { %6713 = vmatprep.mubr.bf16.mxu1 %v9244_v52  ;;  %7026 = vmatprep.mubr.bf16.mxu0 %v9294_v36  ;;  %v14702_v52 = vld [vmem:[#allocation56_spill] sm:$0xff]  ;;  %v14707_v36 = vpack.c.bf16 %v14705_v19, %v14706_v10  ;;  %v2866_v27 = vld [vmem:[%s11371_s4 + $0x4e0] sm:$0xff] }
 0x43b   : > { %7240 = vmatpush1.bf16.msra.mxu1 %v14696_v25  ;;  %7541 = vmatpush1.bf16.msra.mxu0 %v14699_v14  ;;  %v14704_v13 = vpack.c.bf16 %v14702_v52, %v14703_v12  ;;  %v9309_v14 = vcombine.low %v2842_v20, %v2850_v59  ;;  %v14719_v20 = vld [vmem:[#allocation97_spill] sm:$0xff]  ;;  %v14720_v59 = vld [vmem:[#allocation94_spill] sm:$0xff]  ;;  %v9325_v45 = vcombine.low %v2858_v11, %v2866_v27 }
 0x43c   : > { %v6177_v23 = vpop.f32.mrb[164].mxu1  ;;  %v12744_v63 = vpop.f32.mrb[48].mxu0  ;;  %7241 = vmatprep.subr.bf16.mxu1 %v14504_v62  ;;  %7542 = vmatprep.subr.bf16.mxu0 %v14504_v62  ;;  %v2874_v52 = vld [vmem:[%s11371_s4 + $0x520] sm:$0xff] }
 0x43d   : > { %v6178_v38 = vadd.f32 %v6177_v23, %v14700_v2  ;;  %v6179_v17 = vpop.f32.mrb[165].mxu1  ;;  %v6492_v31 = vpop.f32.mrb[49].mxu0  ;;  %v2882_v12 = vld [vmem:[%s11371_s4 + $0x560] sm:$0xff] }
 0x43e   : > { %v6180_v41 = vpop.f32.mrb[166].mxu1  ;;  %v12749_v4 = vpop.f32.mrb[50].mxu0  ;;  %v9326_v17 = vcombine.high %v2858_v11, %v2866_v27  ;;  %v14723_v19 = vld [vmem:[#allocation66_spill] sm:$0xff]  ;;  %v2841_v27 = vld [vmem:[%s11371_s4 + $0x418] sm:$0xff] }
 0x43f   : > { %v6181_v54 = vadd.f32 %v6180_v41, %v14701_v15  ;;  %v12753_v30 = vadd.f32 %v12648_v18, %v6178_v38  ;;  %v6182_v16 = vpop.f32.mrb[167].mxu1  ;;  %v6495_v37 = vpop.f32.mrb[51].mxu0  ;;  %7242 = vmatpush1.bf16.msra.mxu1 %v14704_v13  ;;  %7543 = vmatpush1.bf16.msra.mxu0 %v14707_v36  ;;  %v2809_v18 = vld [vmem:[%s11371_s4 + $0x318] sm:$0xff]  ;;  %v14716_v15 = vld [vmem:[#allocation62_spill] sm:$0xff] }
 0x440   : > { %7243 = vmatprep.subr.bf16.mxu1 %v14504_v62  ;;  %7544 = vmatprep.subr.bf16.mxu0 %v14504_v62  ;;  %v9276_v38 = vcombine.high %v2809_v18, %v2817_v28  ;;  %v14718_v22 = vpack.c.bf16 %v14716_v15, %v14717_v47  ;;  %v2833_v37 = vld [vmem:[%s11371_s4 + $0x3d8] sm:$0xff]  ;;  %v9275_v34 = vcombine.low %v2809_v18, %v2817_v28 }
 0x441   : > { %v12764_v29 = vadd.f32 %v12653_v21, %v6181_v54  ;;  %6714 = vmatmul.mubr.bf16.gmra.mrb[16].mxu1 %v9243_v6  ;;  %7027 = vmatmul.mubr.bf16.gmra.mrb[156].mxu0 %v9293_v53  ;;  %v14714_v21 = vld [vmem:[#allocation64_spill] sm:$0xff]  ;;  %v14715_v53 = vld [vmem:[#allocation67_spill] sm:$0xff]  ;;  %v14721_v54 = vpack.c.bf16 %v14719_v20, %v14720_v59  ;;  %v14722_v13 = vld [vmem:[#allocation69_spill] sm:$0xff] }
 0x442   : > { %6721 = vmatprep.mubr.bf16.mxu1 %v9260_v44  ;;  %7034 = vmatprep.mubr.bf16.mxu0 %v9310_v1  ;;  %v14724_v10 = vpack.c.bf16 %v14722_v13, %v14723_v19  ;;  %v14728_v18 = vld [vmem:[#allocation65_spill] sm:$0xff]  ;;  %v14733_v20 = vld [vmem:[#allocation28_spill] sm:$0xff]  ;;  %v9341_v13 = vcombine.low %v2874_v52, %v2882_v12 }
 0x443   : > { %7244 = vmatpush1.bf16.msra.mxu1 %v14710_v3  ;;  %7545 = vmatpush1.bf16.msra.mxu0 %v14713_v42 }
 0x444   : > { %v6185_v48 = vpop.f32.mrb[168].mxu1  ;;  %v12776_v57 = vpop.f32.mrb[52].mxu0  ;;  %7245 = vmatprep.subr.bf16.mxu1 %v14504_v62  ;;  %7546 = vmatprep.subr.bf16.mxu0 %v14504_v62 }
 0x445   : > { %v6186_v25 = vadd.f32 %v6185_v48, %v14714_v21  ;;  %v6187_v33 = vpop.f32.mrb[169].mxu1  ;;  %v6500_v23 = vpop.f32.mrb[53].mxu0 }
 0x446   : > { %v6188_v2 = vpop.f32.mrb[170].mxu1  ;;  %v12781_v6 = vpop.f32.mrb[54].mxu0 }
 0x447   : > { %v6189_v31 = vadd.f32 %v6188_v2, %v14715_v53  ;;  %v12785_v41 = vadd.f32 %v12680_v0, %v6186_v25  ;;  %v6190_v44 = vpop.f32.mrb[171].mxu1  ;;  %v6503_v1 = vpop.f32.mrb[55].mxu0  ;;  %7246 = vmatpush1.bf16.msra.mxu1 %v14718_v22  ;;  %7547 = vmatpush1.bf16.msra.mxu0 %v14721_v54  ;;  %v2825_v0 = vld [vmem:[%s11371_s4 + $0x398] sm:$0xff]  ;;  %v9342_v25 = vcombine.high %v2874_v52, %v2882_v12 }
 0x448   : > { %7247 = vmatprep.subr.bf16.mxu1 %v14504_v62  ;;  %7805 = vmatprep.subr.bf16.mxu0 %v14504_v62  ;;  %v9292_v21 = vcombine.high %v2825_v0, %v2833_v37  ;;  %v2849_v53 = vld [vmem:[%s11371_s4 + $0x458] sm:$0xff]  ;;  %v14730_v44 = vld [vmem:[#allocation74_spill] sm:$0xff]  ;;  %v14731_v1 = vld [vmem:[#allocation71_spill] sm:$0xff]  ;;  %v9291_v54 = vcombine.low %v2825_v0, %v2833_v37 }
 0x449   : > { %v12796_v16 = vadd.f32 %v12685_v40, %v6189_v31  ;;  %6722 = vmatmul.mubr.bf16.gmra.mrb[20].mxu1 %v9259_v56  ;;  %7035 = vmatmul.mubr.bf16.gmra.mrb[160].mxu0 %v9309_v14  ;;  %v14726_v56 = vld [vmem:[#allocation72_spill] sm:$0xff]  ;;  %v2890_v31 = vld [vmem:[%s11371_s4 + $0x5a0] sm:$0xff]  ;;  %v14732_v15 = vpack.c.bf16 %v14730_v44, %v14731_v1  ;;  %v9307_v1 = vcombine.low %v2841_v27, %v2849_v53 }
 0x44a   : > { %6729 = vmatprep.mubr.bf16.mxu1 %v9276_v38  ;;  %7042 = vmatprep.mubr.bf16.mxu0 %v9326_v17  ;;  %v14727_v17 = vld [vmem:[#allocation68_spill] sm:$0xff]  ;;  %v14736_v0 = vld [vmem:[#allocation70_spill] sm:$0xff] }
 0x44b   : > { %7248 = vmatpush1.bf16.msra.mxu1 %v14724_v10  ;;  %v14729_v28 = vpack.c.bf16 %v14727_v17, %v14728_v18  ;;  %v2857_v12 = vld [vmem:[%s11371_s4 + $0x498] sm:$0xff] }
 0x44c   : > { %v6193_v36 = vpop.f32.mrb[172].mxu1  ;;  %v12805_v61 = vpop.f32.mrb[56].mxu0  ;;  %7249 = vmatprep.subr.bf16.mxu1 %v14504_v62 }
 0x44d   : > { %v6194_v40 = vadd.f32 %v6193_v36, %v14725_v24  ;;  %v6195_v3 = vpop.f32.mrb[173].mxu1  ;;  %v6508_v42 = vpop.f32.mrb[57].mxu0  ;;  %v9308_v36 = vcombine.high %v2841_v27, %v2849_v53  ;;  %v14744_v27 = vld [vmem:[#allocation26_spill] sm:$0xff] }
 0x44e   : > { %v6196_v48 = vpop.f32.mrb[174].mxu1  ;;  %v12809_v33 = vpop.f32.mrb[58].mxu0  ;;  %v14734_v3 = vld [vmem:[#allocation30_spill] sm:$0xff] }
 0x44f   : > { %v6197_v14 = vadd.f32 %v6196_v48, %v14726_v56  ;;  %v12813_v23 = vadd.f32 %v12712_v46, %v6194_v40  ;;  %v6198_v2 = vpop.f32.mrb[175].mxu1  ;;  %v6511_v38 = vpop.f32.mrb[59].mxu0  ;;  %7250 = vmatpush1.bf16.msra.mxu1 %v14729_v28  ;;  %v2898_v46 = vld [vmem:[%s11371_s4 + $0x5e0] sm:$0xff]  ;;  %v14741_v28 = vld [vmem:[#allocation31_spill] sm:$0xff] }
 0x450   : > { %7251 = vmatprep.subr.bf16.mxu1 %v14504_v62  ;;  %v9358_v24 = vcombine.high %v2890_v31, %v2898_v46  ;;  %v2906_v56 = vld [vmem:[%s11371_s4 + $0x620] sm:$0xff]  ;;  %v14739_v2 = vld [vmem:[#allocation32_spill] sm:$0xff] }
 0x451   : > { %v12820_v11 = vadd.f32 %v12717_v32, %v6197_v14  ;;  %6730 = vmatmul.mubr.bf16.gmra.mrb[24].mxu1 %v9275_v34  ;;  %7043 = vmatmul.mubr.bf16.gmra.mrb[164].mxu0 %v9325_v45  ;;  %v14738_v14 = vld [vmem:[#allocation76_spill] sm:$0xff] }
 0x452   : > { %6737 = vmatprep.mubr.bf16.mxu1 %v9292_v21  ;;  %7050 = vmatprep.mubr.bf16.mxu0 %v9342_v25  ;;  %v14735_v21 = vld [vmem:[#allocation73_spill] sm:$0xff]  ;;  %v14740_v38 = vpack.c.bf16 %v14738_v14, %v14739_v2 }
 0x453   : > { %7252 = vmatpush1.bf16.msra.mxu1 %v14732_v15  ;;  %v14737_v37 = vpack.c.bf16 %v14735_v21, %v14736_v0  ;;  %v2865_v25 = vld [vmem:[%s11371_s4 + $0x4d8] sm:$0xff]  ;;  %v9357_v15 = vcombine.low %v2890_v31, %v2898_v46 }
 0x454   : > { %v6201_v47 = vpop.f32.mrb[176].mxu1  ;;  %v12829_v22 = vpop.f32.mrb[60].mxu0  ;;  %7253 = vmatprep.subr.bf16.mxu1 %v14504_v62  ;;  %v2873_v46 = vld [vmem:[%s11371_s4 + $0x518] sm:$0xff]  ;;  %v9323_v2 = vcombine.low %v2857_v12, %v2865_v25 }
 0x455   : > { %v6202_v32 = vadd.f32 %v6201_v47, %v14733_v20  ;;  %v6203_v59 = vpop.f32.mrb[177].mxu1  ;;  %v6516_v19 = vpop.f32.mrb[61].mxu0  ;;  %v14746_v0 = vld [vmem:[#allocation37_spill] sm:$0xff] }
 0x456   : > { %v6204_v10 = vpop.f32.mrb[178].mxu1  ;;  %v12833_v40 = vpop.f32.mrb[62].mxu0 }
 0x457   : > { %v6205_v34 = vadd.f32 %v6204_v10, %v14734_v3  ;;  %v12837_v45 = vadd.f32 %v12744_v63, %v6202_v32  ;;  %v6206_v42 = vpop.f32.mrb[179].mxu1  ;;  %v6519_v48 = vpop.f32.mrb[63].mxu0  ;;  %7254 = vmatpush1.bf16.msra.mxu1 %v14737_v37  ;;  %v2914_v63 = vld [vmem:[%s11371_s4 + $0x660] sm:$0xff]  ;;  %v9324_v32 = vcombine.high %v2857_v12, %v2865_v25  ;;  %v14743_v3 = vld [vmem:[#allocation75_spill] sm:$0xff]  ;;  %v2889_v25 = vld [vmem:[%s11371_s4 + $0x598] sm:$0xff] }
 0x458   : > { %7255 = vmatprep.subr.bf16.mxu1 %v14504_v62  ;;  %v9374_v59 = vcombine.high %v2906_v56, %v2914_v63  ;;  %v14745_v53 = vpack.c.bf16 %v14743_v3, %v14744_v27  ;;  %v2922_v42 = vld [vmem:[%s11371_s4 + $0x6a0] sm:$0xff] }
 0x459   : > { %v12844_v52 = vadd.f32 %v12749_v4, %v6205_v34  ;;  %6738 = vmatmul.mubr.bf16.gmra.mrb[28].mxu1 %v9291_v54  ;;  %7051 = vmatmul.mubr.bf16.gmra.mrb[168].mxu0 %v9341_v13  ;;  %v14742_v13 = vld [vmem:[#allocation29_spill] sm:$0xff] }
 0x45a   : > { %6745 = vmatprep.mubr.bf16.mxu1 %v9308_v36  ;;  %7058 = vmatprep.mubr.bf16.mxu0 %v9358_v24  ;;  %v2881_v34 = vld [vmem:[%s11371_s4 + $0x558] sm:$0xff] }
 0x45b   : > { %7256 = vmatpush1.bf16.msra.mxu1 %v14740_v38  ;;  %v9373_v38 = vcombine.low %v2906_v56, %v2914_v63  ;;  %v2897_v56 = vld [vmem:[%s11371_s4 + $0x5d8] sm:$0xff]  ;;  %v2938_v63 = vld [vmem:[%s11371_s4 + $0x720] sm:$0xff]  ;;  %v9339_v3 = vcombine.low %v2873_v46, %v2881_v34 }
 0x45c   : > { %v6209_v17 = vpop.f32.mrb[180].mxu1  ;;  %v12853_v18 = vpop.f32.mrb[64].mxu0  ;;  %7257 = vmatprep.subr.bf16.mxu1 %v14504_v62 }
 0x45d   : > { %v6210_v4 = vadd.f32 %v6209_v17, %v14741_v28  ;;  %v6211_v44 = vpop.f32.mrb[181].mxu1  ;;  %v6524_v47 = vpop.f32.mrb[65].mxu0  ;;  %v9340_v28 = vcombine.high %v2873_v46, %v2881_v34  ;;  %v2905_v34 = vld [vmem:[%s11371_s4 + $0x618] sm:$0xff] }
 0x45e   : > { %v6212_v20 = vpop.f32.mrb[182].mxu1  ;;  %v12857_v54 = vpop.f32.mrb[66].mxu0 }
 0x45f   : > { %v6213_v19 = vadd.f32 %v6212_v20, %v14742_v13  ;;  %v12861_v10 = vadd.f32 %v12776_v57, %v6210_v4  ;;  %v6214_v36 = vpop.f32.mrb[183].mxu1  ;;  %v6527_v24 = vpop.f32.mrb[67].mxu0  ;;  %7258 = vmatpush1.bf16.msra.mxu1 %v14745_v53  ;;  %v2930_v57 = vld [vmem:[%s11371_s4 + $0x6e0] sm:$0xff] }
 0x460   : > { %10422 = vmatprep.subr.bf16.mxu1 %v14504_v62  ;;  %v9390_v4 = vcombine.high %v2922_v42, %v2930_v57  ;;  %v14748_v36 = vld [vmem:[#allocation35_spill] sm:$0xff]  ;;  %v9389_v27 = vcombine.low %v2922_v42, %v2930_v57  ;;  %v2913_v42 = vld [vmem:[%s11371_s4 + $0x658] sm:$0xff]  ;;  %v2954_v57 = vld [vmem:[%s11371_s4 + $0x7a0] sm:$0xff] }
 0x461   : > { %v12868_v31 = vadd.f32 %v12781_v6, %v6213_v19  ;;  %6746 = vmatmul.mubr.bf16.gmra.mrb[32].mxu1 %v9307_v1  ;;  %7059 = vmatmul.mubr.bf16.gmra.mrb[172].mxu0 %v9357_v15  ;;  %v14747_v1 = vld [vmem:[#allocation34_spill] sm:$0xff] }
 0x462   : > { %6753 = vmatprep.mubr.bf16.mxu1 %v9324_v32  ;;  %7066 = vmatprep.mubr.bf16.mxu0 %v9374_v59  ;;  %v2946_v59 = vld [vmem:[%s11371_s4 + $0x760] sm:$0xff] }
 0x464   : > { %v6217_v48 = vpop.f32.mrb[184].mxu1  ;;  %v12874_v21 = vpop.f32.mrb[68].mxu0 }
 0x465   : > { %v6218_v37 = vadd.f32 %v6217_v48, %v14746_v0  ;;  %v6219_v14 = vpop.f32.mrb[185].mxu1  ;;  %v6532_v6 = vpop.f32.mrb[69].mxu0  ;;  %v9356_v48 = vcombine.high %v2889_v25, %v2897_v56  ;;  %v9406_v0 = vcombine.high %v2938_v63, %v2946_v59 }
 0x466   : > { %v6220_v17 = vpop.f32.mrb[186].mxu1  ;;  %v12877_v44 = vpop.f32.mrb[70].mxu0  ;;  %v14749_v14 = vld [vmem:[#allocation33_spill] sm:$0xff] }
 0x467   : > { %v6221_v15 = vadd.f32 %v6220_v17, %v14747_v1  ;;  %v12881_v47 = vadd.f32 %v12805_v61, %v6218_v37  ;;  %v6222_v20 = vpop.f32.mrb[187].mxu1  ;;  %v6535_v32 = vpop.f32.mrb[71].mxu0 }
 0x468   : > { %v9355_v32 = vcombine.low %v2889_v25, %v2897_v56  ;;  %v2921_v56 = vld [vmem:[%s11371_s4 + $0x698] sm:$0xff] }
 0x469   : > { %v12884_v12 = vadd.f32 %v12809_v33, %v6221_v15  ;;  %6754 = vmatmul.mubr.bf16.gmra.mrb[36].mxu1 %v9323_v2  ;;  %7067 = vmatmul.mubr.bf16.gmra.mrb[176].mxu0 %v9373_v38  ;;  %v14750_v15 = vld [vmem:[#allocation77_spill] sm:$0xff] }
 0x46a   : > { %6761 = vmatprep.mubr.bf16.mxu1 %v9340_v28  ;;  %7074 = vmatprep.mubr.bf16.mxu0 %v9390_v4  ;;  %v2962_v28 = vld [vmem:[%s11371_s4 + $0x7e0] sm:$0xff] }
 0x46c   : > { %v6225_v13 = vpop.f32.mrb[188].mxu1  ;;  %v12890_v19 = vpop.f32.mrb[72].mxu0 }
 0x46d   : > { %v6226_v24 = vadd.f32 %v6225_v13, %v14748_v36  ;;  %v6227_v61 = vpop.f32.mrb[189].mxu1  ;;  %v6540_v33 = vpop.f32.mrb[73].mxu0  ;;  %v9405_v13 = vcombine.low %v2938_v63, %v2946_v59  ;;  %v2929_v63 = vld [vmem:[%s11371_s4 + $0x6d8] sm:$0xff]  ;;  %v2970_v59 = vld [vmem:[%s11371_s4 + $0x820] sm:$0xff] }
 0x46e   : > { %v6228_v53 = vpop.f32.mrb[190].mxu1  ;;  %v12893_v37 = vpop.f32.mrb[74].mxu0  ;;  %v9422_v61 = vcombine.high %v2954_v57, %v2962_v28 }
 0x46f   : > { %v6229_v2 = vadd.f32 %v6228_v53, %v14749_v14  ;;  %v12897_v38 = vadd.f32 %v12829_v22, %v6226_v24  ;;  %v6230_v6 = vpop.f32.mrb[191].mxu1  ;;  %v6543_v17 = vpop.f32.mrb[75].mxu0  ;;  %v9372_v24 = vcombine.high %v2905_v34, %v2913_v42  ;;  %v2978_v14 = vld [vmem:[%s11371_s4 + $0x860] sm:$0xff] }
 0x470   : > { %v14752_v17 = vld [vmem:[#allocation79_spill] sm:$0xff] }
 0x471   : > { %v12900_v46 = vadd.f32 %v12833_v40, %v6229_v2  ;;  %6762 = vmatmul.mubr.bf16.gmra.mrb[40].mxu1 %v9339_v3  ;;  %7075 = vmatmul.mubr.bf16.gmra.mrb[180].mxu0 %v9389_v27  ;;  %v14751_v27 = vld [vmem:[#allocation78_spill] sm:$0xff] }
 0x472   : > { %6769 = vmatprep.mubr.bf16.mxu1 %v9356_v48  ;;  %7082 = vmatprep.mubr.bf16.mxu0 %v9406_v0 }
 0x474   : > { %v6233_v4 = vpop.f32.mrb[192].mxu1  ;;  %v12906_v1 = vpop.f32.mrb[76].mxu0 }
 0x475   : > { %v6234_v20 = vadd.f32 %v6233_v4, %v14750_v15  ;;  %v6235_v22 = vpop.f32.mrb[193].mxu1  ;;  %v6548_v40 = vpop.f32.mrb[77].mxu0  ;;  %v9371_v15 = vcombine.low %v2905_v34, %v2913_v42  ;;  %v2937_v42 = vld [vmem:[%s11371_s4 + $0x718] sm:$0xff] }
 0x476   : > { %v6236_v36 = vpop.f32.mrb[194].mxu1  ;;  %v12909_v3 = vpop.f32.mrb[78].mxu0 }
 0x477   : > { %v6237_v33 = vadd.f32 %v6236_v36, %v14751_v27  ;;  %v12913_v53 = vadd.f32 %v12853_v18, %v6234_v20  ;;  %v6238_v48 = vpop.f32.mrb[195].mxu1  ;;  %v6551_v0 = vpop.f32.mrb[79].mxu0  ;;  %v9421_v20 = vcombine.low %v2954_v57, %v2962_v28  ;;  %v14753_v36 = vld [vmem:[#allocation80_spill] sm:$0xff]  ;;  %v2986_v28 = vld [vmem:[%s11371_s4 + $0x8a0] sm:$0xff] }
 0x478   : > { %v2945_v57 = vld [vmem:[%s11371_s4 + $0x758] sm:$0xff]  ;;  %v2994_v48 = vld [vmem:[%s11371_s4 + $0x8e0] sm:$0xff] }
 0x479   : > { %v12916_v25 = vadd.f32 %v12857_v54, %v6237_v33  ;;  %6770 = vmatmul.mubr.bf16.gmra.mrb[44].mxu1 %v9355_v32  ;;  %7083 = vmatmul.mubr.bf16.gmra.mrb[184].mxu0 %v9405_v13  ;;  %v9388_v32 = vcombine.high %v2921_v56, %v2929_v63  ;;  %v9438_v13 = vcombine.high %v2970_v59, %v2978_v14 }
 0x47a   : > { %6777 = vmatprep.mubr.bf16.mxu1 %v9372_v24  ;;  %7090 = vmatprep.mubr.bf16.mxu0 %v9422_v61 }
 0x47c   : > { %v6241_v2 = vpop.f32.mrb[196].mxu1  ;;  %v12922_v6 = vpop.f32.mrb[80].mxu0 }
 0x47d   : > { %v6242_v4 = vadd.f32 %v6241_v2, %v14752_v17  ;;  %v6243_v18 = vpop.f32.mrb[197].mxu1  ;;  %v6556_v54 = vpop.f32.mrb[81].mxu0  ;;  %v14754_v17 = vld [vmem:[#allocation81_spill] sm:$0xff] }
 0x47e   : > { %v6244_v22 = vpop.f32.mrb[198].mxu1  ;;  %v12925_v40 = vpop.f32.mrb[82].mxu0  ;;  %v9437_v54 = vcombine.low %v2970_v59, %v2978_v14  ;;  %v2961_v59 = vld [vmem:[%s11371_s4 + $0x7d8] sm:$0xff]  ;;  %v3002_v14 = vld [vmem:[%s11371_s4 + $0x920] sm:$0xff] }
 0x47f   : > { %v6245_v24 = vadd.f32 %v6244_v22, %v14753_v36  ;;  %v12929_v61 = vadd.f32 %v12874_v21, %v6242_v4  ;;  %v6246_v27 = vpop.f32.mrb[199].mxu1  ;;  %v6559_v33 = vpop.f32.mrb[83].mxu0  ;;  %v9387_v4 = vcombine.low %v2921_v56, %v2929_v63  ;;  %v9454_v22 = vcombine.high %v2986_v28, %v2994_v48  ;;  %v2953_v63 = vld [vmem:[%s11371_s4 + $0x798] sm:$0xff] }
 0x481   : > { %v12932_v34 = vadd.f32 %v12877_v44, %v6245_v24  ;;  %6778 = vmatmul.mubr.bf16.gmra.mrb[48].mxu1 %v9371_v15  ;;  %7091 = vmatmul.mubr.bf16.gmra.mrb[188].mxu0 %v9421_v20  ;;  %v9404_v20 = vcombine.high %v2937_v42, %v2945_v57 }
 0x482   : > { %6785 = vmatprep.mubr.bf16.mxu1 %v9388_v32  ;;  %7098 = vmatprep.mubr.bf16.mxu0 %v9438_v13  ;;  %v14755_v13 = vld [vmem:[#allocation84_spill] sm:$0xff] }
 0x484   : > { %v6249_v0 = vpop.f32.mrb[200].mxu1  ;;  %v12938_v2 = vpop.f32.mrb[84].mxu0 }
 0x485   : > { %v6250_v18 = vadd.f32 %v6249_v0, %v14754_v17  ;;  %v6251_v21 = vpop.f32.mrb[201].mxu1  ;;  %v6564_v44 = vpop.f32.mrb[85].mxu0  ;;  %v3010_v0 = vld [vmem:[%s11371_s4 + $0x960] sm:$0xff] }
 0x486   : > { %v6252_v15 = vpop.f32.mrb[202].mxu1  ;;  %v12941_v32 = vpop.f32.mrb[86].mxu0  ;;  %v14758_v44 = vld [vmem:[#allocation87_spill] sm:$0xff] }
 0x487   : > { %v6253_v36 = vadd.f32 %v6252_v15, %v14755_v13  ;;  %v12945_v24 = vadd.f32 %v12890_v19, %v6250_v18  ;;  %v6254_v27 = vpop.f32.mrb[203].mxu1  ;;  %v6567_v33 = vpop.f32.mrb[87].mxu0  ;;  %v9403_v18 = vcombine.low %v2937_v42, %v2945_v57  ;;  %v9453_v13 = vcombine.low %v2986_v28, %v2994_v48  ;;  %v2969_v57 = vld [vmem:[%s11371_s4 + $0x818] sm:$0xff]  ;;  %v3018_v48 = vld [vmem:[%s11371_s4 + $0x9a0] sm:$0xff] }
 0x488   : > { %v2977_v28 = vld [vmem:[%s11371_s4 + $0x858] sm:$0xff] }
 0x489   : > { %14756 = vst [vmem:[#allocation41_spill] sm:$0xff] %v12945_v24  ;;  %v12948_v56 = vadd.f32 %v12893_v37, %v6253_v36  ;;  %6786 = vmatmul.mubr.bf16.gmra.mrb[52].mxu1 %v9387_v4  ;;  %7099 = vmatmul.mubr.bf16.gmra.mrb[192].mxu0 %v9437_v54  ;;  %v9420_v54 = vcombine.high %v2953_v63, %v2961_v59  ;;  %v14759_v36 = vld [vmem:[#allocation90_spill] sm:$0xff] }
 0x48a   : > { %6793 = vmatprep.mubr.bf16.mxu1 %v9404_v20  ;;  %7106 = vmatprep.mubr.bf16.mxu0 %v9454_v22  ;;  %v9470_v20 = vcombine.high %v3002_v14, %v3010_v0 }
 0x48b   : > { %14757 = vst [vmem:[#allocation42_spill] sm:$0xff] %v12948_v56 }
 0x48c   : > { %v6257_v17 = vpop.f32.mrb[204].mxu1  ;;  %v12954_v21 = vpop.f32.mrb[88].mxu0 }
 0x48d   : > { %v6258_v15 = vadd.f32 %v6257_v17, %v14758_v44  ;;  %v6259_v19 = vpop.f32.mrb[205].mxu1  ;;  %v6572_v37 = vpop.f32.mrb[89].mxu0  ;;  %v3026_v44 = vld [vmem:[%s11371_s4 + $0x9e0] sm:$0xff] }
 0x48e   : > { %v6260_v4 = vpop.f32.mrb[206].mxu1  ;;  %v12957_v22 = vpop.f32.mrb[90].mxu0 }
 0x48f   : > { %v6261_v27 = vadd.f32 %v6260_v4, %v14759_v36  ;;  %v12961_v33 = vadd.f32 %v12906_v1, %v6258_v15  ;;  %v6262_v56 = vpop.f32.mrb[207].mxu1  ;;  %v6575_v17 = vpop.f32.mrb[91].mxu0  ;;  %v14762_v4 = vld [vmem:[#allocation93_spill] sm:$0xff]  ;;  %v9419_v15 = vcombine.low %v2953_v63, %v2961_v59 }
 0x490   : > { %v9469_v56 = vcombine.low %v3002_v14, %v3010_v0  ;;  %v2985_v59 = vld [vmem:[%s11371_s4 + $0x898] sm:$0xff]  ;;  %v3034_v0 = vld [vmem:[%s11371_s4 + $0xa20] sm:$0xff] }
 0x491   : > { %14760 = vst [vmem:[#allocation43_spill] sm:$0xff] %v12961_v33  ;;  %v12964_v42 = vadd.f32 %v12909_v3, %v6261_v27  ;;  %6794 = vmatmul.mubr.bf16.gmra.mrb[56].mxu1 %v9403_v18  ;;  %7107 = vmatmul.mubr.bf16.gmra.mrb[196].mxu0 %v9453_v13  ;;  %v9436_v13 = vcombine.high %v2969_v57, %v2977_v28  ;;  %v14763_v27 = vld [vmem:[#allocation96_spill] sm:$0xff] }
 0x492   : > { %6801 = vmatprep.mubr.bf16.mxu1 %v9420_v54  ;;  %7114 = vmatprep.mubr.bf16.mxu0 %v9470_v20  ;;  %v9486_v54 = vcombine.high %v3018_v48, %v3026_v44  ;;  %v2993_v14 = vld [vmem:[%s11371_s4 + $0x8d8] sm:$0xff] }
 0x493   : > { %14761 = vst [vmem:[#allocation44_spill] sm:$0xff] %v12964_v42 }
 0x494   : > { %v6265_v19 = vpop.f32.mrb[208].mxu1  ;;  %v12970_v37 = vpop.f32.mrb[92].mxu0 }
 0x495   : > { %v6266_v36 = vadd.f32 %v6265_v19, %v14762_v4  ;;  %v6267_v1 = vpop.f32.mrb[209].mxu1  ;;  %v6580_v3 = vpop.f32.mrb[93].mxu0  ;;  %v3042_v4 = vld [vmem:[%s11371_s4 + $0xa60] sm:$0xff] }
 0x496   : > { %v6268_v18 = vpop.f32.mrb[210].mxu1  ;;  %v12973_v20 = vpop.f32.mrb[94].mxu0 }
 0x497   : > { %v6269_v17 = vadd.f32 %v6268_v18, %v14763_v27  ;;  %v12977_v42 = vadd.f32 %v12922_v6, %v6266_v36  ;;  %v6270_v33 = vpop.f32.mrb[211].mxu1  ;;  %v6583_v19 = vpop.f32.mrb[95].mxu0  ;;  %v14766_v18 = vld [vmem:[#allocation99_spill] sm:$0xff]  ;;  %v9435_v36 = vcombine.low %v2969_v57, %v2977_v28  ;;  %v3001_v28 = vld [vmem:[%s11371_s4 + $0x918] sm:$0xff] }
 0x498   : > { %v9485_v33 = vcombine.low %v3018_v48, %v3026_v44  ;;  %v3009_v48 = vld [vmem:[%s11371_s4 + $0x958] sm:$0xff]  ;;  %v3050_v44 = vld [vmem:[%s11371_s4 + $0xaa0] sm:$0xff] }
 0x499   : > { %14764 = vst [vmem:[#allocation45_spill] sm:$0xff] %v12977_v42  ;;  %v12980_v63 = vadd.f32 %v12925_v40, %v6269_v17  ;;  %6802 = vmatmul.mubr.bf16.gmra.mrb[60].mxu1 %v9419_v15  ;;  %7115 = vmatmul.mubr.bf16.gmra.mrb[200].mxu0 %v9469_v56  ;;  %v9452_v56 = vcombine.high %v2985_v59, %v2993_v14  ;;  %v14767_v17 = vld [vmem:[#allocation100_spill] sm:$0xff] }
 0x49a   : > { %6809 = vmatprep.mubr.bf16.mxu1 %v9436_v13  ;;  %7122 = vmatprep.mubr.bf16.mxu0 %v9486_v54  ;;  %v9502_v13 = vcombine.high %v3034_v0, %v3042_v4 }
 0x49b   : > { %14765 = vst [vmem:[#allocation46_spill] sm:$0xff] %v12980_v63 }
 0x49c   : > { %v6273_v1 = vpop.f32.mrb[212].mxu1  ;;  %v12986_v3 = vpop.f32.mrb[96].mxu0 }
 0x49d   : > { %v6274_v27 = vadd.f32 %v6273_v1, %v14766_v18  ;;  %v6275_v6 = vpop.f32.mrb[213].mxu1  ;;  %v6588_v40 = vpop.f32.mrb[97].mxu0  ;;  %v3058_v18 = vld [vmem:[%s11371_s4 + $0xae0] sm:$0xff] }
 0x49e   : > { %v6276_v15 = vpop.f32.mrb[214].mxu1  ;;  %v12989_v54 = vpop.f32.mrb[98].mxu0 }
 0x49f   : > { %v6277_v19 = vadd.f32 %v6276_v15, %v14767_v17  ;;  %v12993_v63 = vadd.f32 %v12938_v2, %v6274_v27  ;;  %v6278_v42 = vpop.f32.mrb[215].mxu1  ;;  %v6591_v1 = vpop.f32.mrb[99].mxu0  ;;  %v14770_v15 = vld [vmem:[#allocation103_spill] sm:$0xff]  ;;  %v9451_v27 = vcombine.low %v2985_v59, %v2993_v14  ;;  %v3017_v14 = vld [vmem:[%s11371_s4 + $0x998] sm:$0xff] }
 0x4a0   : > { %v9501_v42 = vcombine.low %v3034_v0, %v3042_v4  ;;  %v3025_v0 = vld [vmem:[%s11371_s4 + $0x9d8] sm:$0xff]  ;;  %v3066_v4 = vld [vmem:[%s11371_s4 + $0xb20] sm:$0xff] }
 0x4a1   : > { %14768 = vst [vmem:[#allocation47_spill] sm:$0xff] %v12993_v63  ;;  %v12996_v57 = vadd.f32 %v12941_v32, %v6277_v19  ;;  %6810 = vmatmul.mubr.bf16.gmra.mrb[64].mxu1 %v9435_v36  ;;  %7123 = vmatmul.mubr.bf16.gmra.mrb[204].mxu0 %v9485_v33  ;;  %v9468_v33 = vcombine.high %v3001_v28, %v3009_v48  ;;  %v14771_v19 = vld [vmem:[#allocation104_spill] sm:$0xff] }
 0x4a2   : > { %6817 = vmatprep.mubr.bf16.mxu1 %v9452_v56  ;;  %7130 = vmatprep.mubr.bf16.mxu0 %v9502_v13  ;;  %v9518_v56 = vcombine.high %v3050_v44, %v3058_v18 }
 0x4a3   : > { %14769 = vst [vmem:[#allocation51_spill] sm:$0xff] %v12996_v57 }
 0x4a4   : > { %v6281_v6 = vpop.f32.mrb[216].mxu1  ;;  %v13002_v40 = vpop.f32.mrb[100].mxu0 }
 0x4a5   : > { %v6282_v17 = vadd.f32 %v6281_v6, %v14770_v15  ;;  %v6283_v2 = vpop.f32.mrb[217].mxu1  ;;  %v6596_v32 = vpop.f32.mrb[101].mxu0  ;;  %v3074_v15 = vld [vmem:[%s11371_s4 + $0xb60] sm:$0xff] }
 0x4a6   : > { %v6284_v36 = vpop.f32.mrb[218].mxu1  ;;  %v13005_v13 = vpop.f32.mrb[102].mxu0 }
 0x4a7   : > { %v6285_v1 = vadd.f32 %v6284_v36, %v14771_v19  ;;  %v13009_v57 = vadd.f32 %v12954_v21, %v6282_v17  ;;  %v6286_v63 = vpop.f32.mrb[219].mxu1  ;;  %v6599_v6 = vpop.f32.mrb[103].mxu0  ;;  %v14774_v36 = vld [vmem:[#allocation107_spill] sm:$0xff]  ;;  %v9467_v17 = vcombine.low %v3001_v28, %v3009_v48  ;;  %v3033_v48 = vld [vmem:[%s11371_s4 + $0xa18] sm:$0xff] }
 0x4a8   : > { %v9517_v63 = vcombine.low %v3050_v44, %v3058_v18  ;;  %v3041_v44 = vld [vmem:[%s11371_s4 + $0xa58] sm:$0xff]  ;;  %v3082_v18 = vld [vmem:[%s11371_s4 + $0xba0] sm:$0xff] }
 0x4a9   : > { %14772 = vst [vmem:[#allocation49_spill] sm:$0xff] %v13009_v57  ;;  %v13012_v59 = vadd.f32 %v12957_v22, %v6285_v1  ;;  %6818 = vmatmul.mubr.bf16.gmra.mrb[68].mxu1 %v9451_v27  ;;  %7131 = vmatmul.mubr.bf16.gmra.mrb[208].mxu0 %v9501_v42  ;;  %v9484_v42 = vcombine.high %v3017_v14, %v3025_v0  ;;  %v14775_v1 = vld [vmem:[#allocation108_spill] sm:$0xff] }
 0x4aa   : > { %6825 = vmatprep.mubr.bf16.mxu1 %v9468_v33  ;;  %7138 = vmatprep.mubr.bf16.mxu0 %v9518_v56  ;;  %v9534_v33 = vcombine.high %v3066_v4, %v3074_v15 }
 0x4ab   : > { %14773 = vst [vmem:[#allocation86_spill] sm:$0xff] %v13012_v59 }
 0x4ac   : > { %v6289_v2 = vpop.f32.mrb[220].mxu1  ;;  %v13018_v32 = vpop.f32.mrb[104].mxu0 }
 0x4ad   : > { %v6290_v19 = vadd.f32 %v6289_v2, %v14774_v36  ;;  %v6291_v21 = vpop.f32.mrb[221].mxu1  ;;  %v6604_v22 = vpop.f32.mrb[105].mxu0  ;;  %v3090_v36 = vld [vmem:[%s11371_s4 + $0xbe0] sm:$0xff] }
 0x4ae   : > { %v6292_v27 = vpop.f32.mrb[222].mxu1  ;;  %v13021_v56 = vpop.f32.mrb[106].mxu0 }
 0x4af   : > { %v6293_v6 = vadd.f32 %v6292_v27, %v14775_v1  ;;  %v13025_v59 = vadd.f32 %v12970_v37, %v6290_v19  ;;  %v6294_v57 = vpop.f32.mrb[223].mxu1  ;;  %v6607_v2 = vpop.f32.mrb[107].mxu0  ;;  %v14778_v27 = vld [vmem:[#allocation111_spill] sm:$0xff]  ;;  %v9483_v19 = vcombine.low %v3017_v14, %v3025_v0  ;;  %v3049_v0 = vld [vmem:[%s11371_s4 + $0xa98] sm:$0xff] }
 0x4b0   : > { %v9533_v57 = vcombine.low %v3066_v4, %v3074_v15  ;;  %v3057_v4 = vld [vmem:[%s11371_s4 + $0xad8] sm:$0xff]  ;;  %v3098_v15 = vld [vmem:[%s11371_s4 + $0xc20] sm:$0xff] }
 0x4b1   : > { %14776 = vst [vmem:[#allocation83_spill] sm:$0xff] %v13025_v59  ;;  %v13028_v28 = vadd.f32 %v12973_v20, %v6293_v6  ;;  %6826 = vmatmul.mubr.bf16.gmra.mrb[72].mxu1 %v9467_v17  ;;  %7139 = vmatmul.mubr.bf16.gmra.mrb[212].mxu0 %v9517_v63  ;;  %v9500_v63 = vcombine.high %v3033_v48, %v3041_v44  ;;  %v14779_v6 = vld [vmem:[#allocation112_spill] sm:$0xff] }
 0x4b2   : > { %6833 = vmatprep.mubr.bf16.mxu1 %v9484_v42  ;;  %7146 = vmatprep.mubr.bf16.mxu0 %v9534_v33  ;;  %v9550_v42 = vcombine.high %v3082_v18, %v3090_v36 }
 0x4b3   : > { %14777 = vst [vmem:[#allocation52_spill] sm:$0xff] %v13028_v28 }
 0x4b4   : > { %v6297_v21 = vpop.f32.mrb[224].mxu1  ;;  %v13034_v22 = vpop.f32.mrb[108].mxu0 }
 0x4b5   : > { %v6298_v1 = vadd.f32 %v6297_v21, %v14778_v27  ;;  %v6299_v37 = vpop.f32.mrb[225].mxu1  ;;  %v6612_v20 = vpop.f32.mrb[109].mxu0  ;;  %v3106_v27 = vld [vmem:[%s11371_s4 + $0xc60] sm:$0xff] }
 0x4b6   : > { %v6300_v17 = vpop.f32.mrb[226].mxu1  ;;  %v13037_v33 = vpop.f32.mrb[110].mxu0 }
 0x4b7   : > { %v6301_v2 = vadd.f32 %v6300_v17, %v14779_v6  ;;  %v13041_v28 = vadd.f32 %v12986_v3, %v6298_v1  ;;  %v6302_v59 = vpop.f32.mrb[227].mxu1  ;;  %v6615_v21 = vpop.f32.mrb[111].mxu0  ;;  %v14782_v17 = vld [vmem:[#allocation115_spill] sm:$0xff]  ;;  %v9499_v1 = vcombine.low %v3033_v48, %v3041_v44  ;;  %v3065_v44 = vld [vmem:[%s11371_s4 + $0xb18] sm:$0xff] }
 0x4b8   : > { %v9549_v59 = vcombine.low %v3082_v18, %v3090_v36  ;;  %v3073_v18 = vld [vmem:[%s11371_s4 + $0xb58] sm:$0xff]  ;;  %v3114_v36 = vld [vmem:[%s11371_s4 + $0xca0] sm:$0xff] }
 0x4b9   : > { %14780 = vst [vmem:[#allocation55_spill] sm:$0xff] %v13041_v28  ;;  %v13044_v14 = vadd.f32 %v12989_v54, %v6301_v2  ;;  %6834 = vmatmul.mubr.bf16.gmra.mrb[76].mxu1 %v9483_v19  ;;  %7147 = vmatmul.mubr.bf16.gmra.mrb[216].mxu0 %v9533_v57  ;;  %v9516_v57 = vcombine.high %v3049_v0, %v3057_v4  ;;  %v14783_v2 = vld [vmem:[#allocation116_spill] sm:$0xff] }
 0x4ba   : > { %6841 = vmatprep.mubr.bf16.mxu1 %v9500_v63  ;;  %7154 = vmatprep.mubr.bf16.mxu0 %v9550_v42  ;;  %v9566_v63 = vcombine.high %v3098_v15, %v3106_v27 }
 0x4bb   : > { %14781 = vst [vmem:[#allocation50_spill] sm:$0xff] %v13044_v14 }
 0x4bc   : > { %v6305_v37 = vpop.f32.mrb[228].mxu1  ;;  %v13050_v20 = vpop.f32.mrb[112].mxu0 }
 0x4bd   : > { %v6306_v6 = vadd.f32 %v6305_v37, %v14782_v17  ;;  %v6307_v3 = vpop.f32.mrb[229].mxu1  ;;  %v6620_v54 = vpop.f32.mrb[113].mxu0  ;;  %v3122_v17 = vld [vmem:[%s11371_s4 + $0xce0] sm:$0xff] }
 0x4be   : > { %v6308_v19 = vpop.f32.mrb[230].mxu1  ;;  %v13053_v42 = vpop.f32.mrb[114].mxu0 }
 0x4bf   : > { %v6309_v21 = vadd.f32 %v6308_v19, %v14783_v2  ;;  %v13057_v14 = vadd.f32 %v13002_v40, %v6306_v6  ;;  %v6310_v28 = vpop.f32.mrb[231].mxu1  ;;  %v6623_v37 = vpop.f32.mrb[115].mxu0  ;;  %v14786_v19 = vld [vmem:[#allocation119_spill] sm:$0xff]  ;;  %v9515_v6 = vcombine.low %v3049_v0, %v3057_v4  ;;  %v3081_v4 = vld [vmem:[%s11371_s4 + $0xb98] sm:$0xff] }
 0x4c0   : > { %v9565_v28 = vcombine.low %v3098_v15, %v3106_v27  ;;  %v3089_v15 = vld [vmem:[%s11371_s4 + $0xbd8] sm:$0xff]  ;;  %v3130_v27 = vld [vmem:[%s11371_s4 + $0xd20] sm:$0xff] }
 0x4c1   : > { %14784 = vst [vmem:[#allocation48_spill] sm:$0xff] %v13057_v14  ;;  %v13060_v48 = vadd.f32 %v13005_v13, %v6309_v21  ;;  %6842 = vmatmul.mubr.bf16.gmra.mrb[80].mxu1 %v9499_v1  ;;  %7155 = vmatmul.mubr.bf16.gmra.mrb[220].mxu0 %v9549_v59  ;;  %v9532_v59 = vcombine.high %v3065_v44, %v3073_v18  ;;  %v14787_v21 = vld [vmem:[#allocation120_spill] sm:$0xff] }
 0x4c2   : > { %6849 = vmatprep.mubr.bf16.mxu1 %v9516_v57  ;;  %7162 = vmatprep.mubr.bf16.mxu0 %v9566_v63  ;;  %v9582_v57 = vcombine.high %v3114_v36, %v3122_v17 }
 0x4c3   : > { %14785 = vst [vmem:[#allocation85_spill] sm:$0xff] %v13060_v48 }
 0x4c4   : > { %v6313_v3 = vpop.f32.mrb[232].mxu1  ;;  %v13066_v54 = vpop.f32.mrb[116].mxu0 }
 0x4c5   : > { %v6314_v2 = vadd.f32 %v6313_v3, %v14786_v19  ;;  %v6315_v40 = vpop.f32.mrb[233].mxu1  ;;  %v6628_v13 = vpop.f32.mrb[117].mxu0  ;;  %v3138_v19 = vld [vmem:[%s11371_s4 + $0xd60] sm:$0xff] }
 0x4c6   : > { %v6316_v1 = vpop.f32.mrb[234].mxu1  ;;  %v13069_v63 = vpop.f32.mrb[118].mxu0 }
 0x4c7   : > { %v6317_v37 = vadd.f32 %v6316_v1, %v14787_v21  ;;  %v13073_v48 = vadd.f32 %v13018_v32, %v6314_v2  ;;  %v6318_v14 = vpop.f32.mrb[235].mxu1  ;;  %v6631_v3 = vpop.f32.mrb[119].mxu0  ;;  %v14790_v1 = vld [vmem:[#allocation123_spill] sm:$0xff]  ;;  %v9531_v2 = vcombine.low %v3065_v44, %v3073_v18  ;;  %v3097_v18 = vld [vmem:[%s11371_s4 + $0xc18] sm:$0xff] }
 0x4c8   : > { %v9581_v14 = vcombine.low %v3114_v36, %v3122_v17  ;;  %v3105_v36 = vld [vmem:[%s11371_s4 + $0xc58] sm:$0xff]  ;;  %v3146_v17 = vld [vmem:[%s11371_s4 + $0xda0] sm:$0xff] }
 0x4c9   : > { %14788 = vst [vmem:[#allocation82_spill] sm:$0xff] %v13073_v48  ;;  %v13076_v0 = vadd.f32 %v13021_v56, %v6317_v37  ;;  %6850 = vmatmul.mubr.bf16.gmra.mrb[84].mxu1 %v9515_v6  ;;  %7163 = vmatmul.mubr.bf16.gmra.mrb[224].mxu0 %v9565_v28  ;;  %v9548_v28 = vcombine.high %v3081_v4, %v3089_v15  ;;  %v14791_v37 = vld [vmem:[#allocation124_spill] sm:$0xff] }
 0x4ca   : > { %6857 = vmatprep.mubr.bf16.mxu1 %v9532_v59  ;;  %7170 = vmatprep.mubr.bf16.mxu0 %v9582_v57  ;;  %v9598_v59 = vcombine.high %v3130_v27, %v3138_v19 }
 0x4cb   : > { %14789 = vst [vmem:[#allocation57_spill] sm:$0xff] %v13076_v0 }
 0x4cc   : > { %v6321_v40 = vpop.f32.mrb[236].mxu1  ;;  %v13082_v13 = vpop.f32.mrb[120].mxu0 }
 0x4cd   : > { %v6322_v21 = vadd.f32 %v6321_v40, %v14790_v1  ;;  %v6323_v32 = vpop.f32.mrb[237].mxu1  ;;  %v6636_v56 = vpop.f32.mrb[121].mxu0  ;;  %v3154_v1 = vld [vmem:[%s11371_s4 + $0xde0] sm:$0xff] }
 0x4ce   : > { %v6324_v6 = vpop.f32.mrb[238].mxu1  ;;  %v13085_v57 = vpop.f32.mrb[122].mxu0 }
 0x4cf   : > { %v6325_v3 = vadd.f32 %v6324_v6, %v14791_v37  ;;  %v13089_v0 = vadd.f32 %v13034_v22, %v6322_v21  ;;  %v6326_v48 = vpop.f32.mrb[239].mxu1  ;;  %v6639_v40 = vpop.f32.mrb[123].mxu0  ;;  %v14794_v6 = vld [vmem:[#allocation127_spill] sm:$0xff]  ;;  %v9547_v21 = vcombine.low %v3081_v4, %v3089_v15  ;;  %v3113_v15 = vld [vmem:[%s11371_s4 + $0xc98] sm:$0xff] }
 0x4d0   : > { %v9597_v48 = vcombine.low %v3130_v27, %v3138_v19  ;;  %v3121_v27 = vld [vmem:[%s11371_s4 + $0xcd8] sm:$0xff]  ;;  %v3162_v19 = vld [vmem:[%s11371_s4 + $0xe20] sm:$0xff] }
 0x4d1   : > { %14792 = vst [vmem:[#allocation54_spill] sm:$0xff] %v13089_v0  ;;  %v13092_v44 = vadd.f32 %v13037_v33, %v6325_v3  ;;  %6858 = vmatmul.mubr.bf16.gmra.mrb[88].mxu1 %v9531_v2  ;;  %7171 = vmatmul.mubr.bf16.gmra.mrb[228].mxu0 %v9581_v14  ;;  %v9564_v14 = vcombine.high %v3097_v18, %v3105_v36  ;;  %v14795_v3 = vld [vmem:[#allocation128_spill] sm:$0xff] }
 0x4d2   : > { %6865 = vmatprep.mubr.bf16.mxu1 %v9548_v28  ;;  %7178 = vmatprep.mubr.bf16.mxu0 %v9598_v59  ;;  %v9614_v28 = vcombine.high %v3146_v17, %v3154_v1 }
 0x4d3   : > { %14793 = vst [vmem:[#allocation92_spill] sm:$0xff] %v13092_v44 }
 0x4d4   : > { %v6329_v32 = vpop.f32.mrb[240].mxu1  ;;  %v13098_v56 = vpop.f32.mrb[124].mxu0 }
 0x4d5   : > { %v6330_v37 = vadd.f32 %v6329_v32, %v14794_v6  ;;  %v6331_v22 = vpop.f32.mrb[241].mxu1  ;;  %v6644_v33 = vpop.f32.mrb[125].mxu0  ;;  %v3170_v6 = vld [vmem:[%s11371_s4 + $0xe60] sm:$0xff] }
 0x4d6   : > { %v6332_v2 = vpop.f32.mrb[242].mxu1  ;;  %v13101_v59 = vpop.f32.mrb[126].mxu0 }
 0x4d7   : > { %v6333_v40 = vadd.f32 %v6332_v2, %v14795_v3  ;;  %v13105_v44 = vadd.f32 %v13050_v20, %v6330_v37  ;;  %v6334_v0 = vpop.f32.mrb[243].mxu1  ;;  %v6647_v32 = vpop.f32.mrb[127].mxu0  ;;  %v14798_v2 = vld [vmem:[#allocation131_spill] sm:$0xff]  ;;  %v9563_v37 = vcombine.low %v3097_v18, %v3105_v36  ;;  %v3129_v36 = vld [vmem:[%s11371_s4 + $0xd18] sm:$0xff] }
 0x4d8   : > { %v9613_v0 = vcombine.low %v3146_v17, %v3154_v1  ;;  %v3137_v17 = vld [vmem:[%s11371_s4 + $0xd58] sm:$0xff]  ;;  %v3178_v1 = vld [vmem:[%s11371_s4 + $0xea0] sm:$0xff] }
 0x4d9   : > { %14796 = vst [vmem:[#allocation89_spill] sm:$0xff] %v13105_v44  ;;  %v13108_v4 = vadd.f32 %v13053_v42, %v6333_v40  ;;  %6866 = vmatmul.mubr.bf16.gmra.mrb[92].mxu1 %v9547_v21  ;;  %7179 = vmatmul.mubr.bf16.gmra.mrb[232].mxu0 %v9597_v48  ;;  %v9580_v48 = vcombine.high %v3113_v15, %v3121_v27  ;;  %v14799_v40 = vld [vmem:[#allocation132_spill] sm:$0xff] }
 0x4da   : > { %6873 = vmatprep.mubr.bf16.mxu1 %v9564_v14  ;;  %7186 = vmatprep.mubr.bf16.mxu0 %v9614_v28  ;;  %v9630_v14 = vcombine.high %v3162_v19, %v3170_v6 }
 0x4db   : > { %14797 = vst [vmem:[#allocation58_spill] sm:$0xff] %v13108_v4 }
 0x4dc   : > { %v6337_v22 = vpop.f32.mrb[244].mxu1  ;;  %v13114_v33 = vpop.f32.mrb[128].mxu0 }
 0x4dd   : > { %v6338_v3 = vadd.f32 %v6337_v22, %v14798_v2  ;;  %v6339_v20 = vpop.f32.mrb[245].mxu1  ;;  %v6974_v42 = vpop.f32.mrb[129].mxu0  ;;  %v3186_v2 = vld [vmem:[%s11371_s4 + $0xee0] sm:$0xff] }
 0x4de   : > { %v6340_v21 = vpop.f32.mrb[246].mxu1  ;;  %v13117_v28 = vpop.f32.mrb[130].mxu0 }
 0x4df   : > { %v6341_v32 = vadd.f32 %v6340_v21, %v14799_v40  ;;  %v13121_v4 = vadd.f32 %v13066_v54, %v6338_v3  ;;  %v6342_v44 = vpop.f32.mrb[247].mxu1  ;;  %v6977_v22 = vpop.f32.mrb[131].mxu0  ;;  %v14802_v21 = vld [vmem:[#allocation133_spill] sm:$0xff]  ;;  %v9629_v3 = vcombine.low %v3162_v19, %v3170_v6 }
 0x4e0   : > { %v9579_v44 = vcombine.low %v3113_v15, %v3121_v27  ;;  %v3145_v15 = vld [vmem:[%s11371_s4 + $0xd98] sm:$0xff]  ;;  %v3194_v6 = vld [vmem:[%s11371_s4 + $0xf20] sm:$0xff] }
 0x4e1   : > { %14800 = vst [vmem:[#allocation61_spill] sm:$0xff] %v13121_v4  ;;  %v13124_v18 = vadd.f32 %v13069_v63, %v6341_v32  ;;  %6874 = vmatmul.mubr.bf16.gmra.mrb[96].mxu1 %v9563_v37  ;;  %7187 = vmatmul.mubr.bf16.gmra.mrb[236].mxu0 %v9613_v0  ;;  %v9596_v0 = vcombine.high %v3129_v36, %v3137_v17  ;;  %v14803_v32 = vld [vmem:[#allocation134_spill] sm:$0xff]  ;;  %v3153_v19 = vld [vmem:[%s11371_s4 + $0xdd8] sm:$0xff] }
 0x4e2   : > { %6881 = vmatprep.mubr.bf16.mxu1 %v9580_v48  ;;  %7194 = vmatprep.mubr.bf16.mxu0 %v9630_v14  ;;  %v9646_v48 = vcombine.high %v3178_v1, %v3186_v2 }
 0x4e3   : > { %14801 = vst [vmem:[#allocation56_spill] sm:$0xff] %v13124_v18 }
 0x4e4   : > { %v6345_v20 = vpop.f32.mrb[248].mxu1  ;;  %v13130_v42 = vpop.f32.mrb[132].mxu0 }
 0x4e5   : > { %v6346_v40 = vadd.f32 %v6345_v20, %v14802_v21  ;;  %v6347_v54 = vpop.f32.mrb[249].mxu1  ;;  %v6982_v63 = vpop.f32.mrb[133].mxu0  ;;  %v3202_v20 = vld [vmem:[%s11371_s4 + $0xf60] sm:$0xff] }
 0x4e6   : > { %v6348_v37 = vpop.f32.mrb[250].mxu1  ;;  %v13133_v14 = vpop.f32.mrb[134].mxu0  ;;  %v14806_v63 = vld [vmem:[#allocation135_spill] sm:$0xff] }
 0x4e7   : > { %v6349_v22 = vadd.f32 %v6348_v37, %v14803_v32  ;;  %v6350_v18 = vpop.f32.mrb[251].mxu1  ;;  %v6985_v4 = vpop.f32.mrb[135].mxu0  ;;  %v13137_v24 = vadd.f32 %v13082_v13, %v6346_v40  ;;  %v9595_v13 = vcombine.low %v3129_v36, %v3137_v17  ;;  %v9645_v40 = vcombine.low %v3178_v1, %v3186_v2  ;;  %v3161_v36 = vld [vmem:[%s11371_s4 + $0xe18] sm:$0xff]  ;;  %v3210_v2 = vld [vmem:[%s11371_s4 + $0xfa0] sm:$0xff] }
 0x4e8   : > { %v9612_v37 = vcombine.high %v3145_v15, %v3153_v19  ;;  %v3169_v1 = vld [vmem:[%s11371_s4 + $0xe58] sm:$0xff] }
 0x4e9   : > { %14804 = vst [vmem:[#allocation53_spill] sm:$0xff] %v13137_v24  ;;  %6882 = vmatmul.mubr.bf16.gmra.mrb[100].mxu1 %v9579_v44  ;;  %7195 = vmatmul.mubr.bf16.gmra.mrb[240].mxu0 %v9629_v3  ;;  %v13141_v27 = vadd.f32 %v13085_v57, %v6349_v22  ;;  %v9662_v57 = vcombine.high %v3194_v6, %v3202_v20 }
 0x4ea   : > { %6889 = vmatprep.mubr.bf16.mxu1 %v9596_v0  ;;  %7202 = vmatprep.mubr.bf16.mxu0 %v9646_v48  ;;  %v14807_v48 = vld [vmem:[#allocation136_spill] sm:$0xff] }
 0x4eb   : > { %14805 = vst [vmem:[#allocation91_spill] sm:$0xff] %v13141_v27 }
 0x4ec   : > { %v6353_v21 = vpop.f32.mrb[252].mxu1  ;;  %v13146_v54 = vpop.f32.mrb[136].mxu0 }
 0x4ed   : > { %v6354_v18 = vadd.f32 %v6353_v21, %v14806_v63  ;;  %v6355_v4 = vpop.f32.mrb[253].mxu1  ;;  %v6990_v44 = vpop.f32.mrb[137].mxu0  ;;  %v3218_v21 = vld [vmem:[%s11371_s4 + $0xfe0] sm:$0xff] }
 0x4ee   : > { %v6356_v3 = vpop.f32.mrb[254].mxu1  ;;  %v13149_v0 = vpop.f32.mrb[138].mxu0  ;;  %v14810_v44 = vld [vmem:[#allocation36_spill] sm:$0xff] }
 0x4ef   : > { %v6357_v32 = vadd.f32 %v6356_v3, %v14807_v48  ;;  %v6358_v22 = vpop.f32.mrb[255].mxu1  ;;  %v6993_v27 = vpop.f32.mrb[139].mxu0  ;;  %v13153_v24 = vadd.f32 %v13098_v56, %v6354_v18  ;;  %v9611_v56 = vcombine.low %v3145_v15, %v3153_v19  ;;  %v9661_v18 = vcombine.low %v3194_v6, %v3202_v20  ;;  %v14811_v48 = vld [vmem:[#allocation38_spill] sm:$0xff]  ;;  %v3177_v15 = vld [vmem:[%s11371_s4 + $0xe98] sm:$0xff]  ;;  %v2716_v20 = vld [vmem:[%s11371_s4 + $0x30] sm:$0xff] }
 0x4f0   : > { %v3185_v6 = vld [vmem:[%s11371_s4 + $0xed8] sm:$0xff] }
 0x4f1   : > { %14808 = vst [vmem:[#allocation88_spill] sm:$0xff] %v13153_v24  ;;  %6890 = vmatmul.mubr.bf16.gmra.mrb[104].mxu1 %v9595_v13  ;;  %7203 = vmatmul.mubr.bf16.gmra.mrb[244].mxu0 %v9645_v40  ;;  %v13157_v17 = vadd.f32 %v13101_v59, %v6357_v32  ;;  %v9678_v59 = vcombine.high %v3210_v2, %v3218_v21 }
 0x4f2   : > { %6897 = vmatprep.mubr.bf16.mxu1 %v9612_v37  ;;  %7210 = vmatprep.mubr.bf16.mxu0 %v9662_v57  ;;  %v9628_v37 = vcombine.high %v3161_v36, %v3169_v1 }
 0x4f3   : > { %14809 = vst [vmem:[#allocation63_spill] sm:$0xff] %v13157_v17 }
 0x4f4   : > { %v6683_v63 = vpop.f32.mrb[0].mxu1  ;;  %v13162_v4 = vpop.f32.mrb[140].mxu0 }
 0x4f5   : > { %v6684_v3 = vadd.f32 %v6683_v63, %v14810_v44  ;;  %v6685_v27 = vpop.f32.mrb[1].mxu1  ;;  %v6998_v13 = vpop.f32.mrb[141].mxu0  ;;  %v2724_v63 = vld [vmem:[%s11371_s4 + $0x70] sm:$0xff] }
 0x4f6   : > { %v6686_v40 = vpop.f32.mrb[2].mxu1  ;;  %v13165_v57 = vpop.f32.mrb[142].mxu0  ;;  %v14814_v13 = vld [vmem:[#allocation39_spill] sm:$0xff] }
 0x4f7   : > { %v6687_v32 = vadd.f32 %v6686_v40, %v14811_v48  ;;  %v6688_v22 = vpop.f32.mrb[3].mxu1  ;;  %v7001_v17 = vpop.f32.mrb[143].mxu0  ;;  %v13169_v24 = vadd.f32 %v13114_v33, %v6684_v3  ;;  %v9627_v48 = vcombine.low %v3161_v36, %v3169_v1  ;;  %v9677_v33 = vcombine.low %v3210_v2, %v3218_v21  ;;  %v3193_v1 = vld [vmem:[%s11371_s4 + $0xf18] sm:$0xff] }
 0x4f8   : > { %v3201_v2 = vld [vmem:[%s11371_s4 + $0xf58] sm:$0xff] }
 0x4f9   : > { %14812 = vst [vmem:[#allocation60_spill] sm:$0xff] %v13169_v24  ;;  %6898 = vmatmul.mubr.bf16.gmra.mrb[108].mxu1 %v9611_v56  ;;  %7211 = vmatmul.mubr.bf16.gmra.mrb[248].mxu0 %v9661_v18  ;;  %v13173_v19 = vadd.f32 %v13117_v28, %v6687_v32  ;;  %v9644_v18 = vcombine.high %v3177_v15, %v3185_v6 }
 0x4fa   : > { %6905 = vmatprep.mubr.bf16.mxu1 %v9628_v37  ;;  %7218 = vmatprep.mubr.bf16.mxu0 %v9678_v59  ;;  %v9186_v28 = vcombine.high %v2716_v20, %v2724_v63  ;;  %v14815_v59 = vld [vmem:[#allocation40_spill] sm:$0xff] }
 0x4fb   : > { %14813 = vst [vmem:[#allocation98_spill] sm:$0xff] %v13173_v19 }
 0x4fc   : > { %v6691_v44 = vpop.f32.mrb[4].mxu1  ;;  %v13178_v27 = vpop.f32.mrb[144].mxu0 }
 0x4fd   : > { %v6692_v40 = vadd.f32 %v6691_v44, %v14814_v13  ;;  %v6693_v17 = vpop.f32.mrb[5].mxu1  ;;  %v7006_v3 = vpop.f32.mrb[145].mxu0  ;;  %v2732_v44 = vld [vmem:[%s11371_s4 + $0xb0] sm:$0xff] }
 0x4fe   : > { %v6694_v56 = vpop.f32.mrb[6].mxu1  ;;  %v13181_v37 = vpop.f32.mrb[146].mxu0  ;;  %v2740_v13 = vld [vmem:[%s11371_s4 + $0xf0] sm:$0xff] }
 0x4ff   : > { %v6695_v32 = vadd.f32 %v6694_v56, %v14815_v59  ;;  %v6696_v22 = vpop.f32.mrb[7].mxu1  ;;  %v7009_v19 = vpop.f32.mrb[147].mxu0  ;;  %v13185_v24 = vadd.f32 %v13130_v42, %v6692_v40  ;;  %v9643_v56 = vcombine.low %v3177_v15, %v3185_v6  ;;  %v9185_v42 = vcombine.low %v2716_v20, %v2724_v63  ;;  %v14816_v15 = vld [vmem:[#allocation102_spill] sm:$0xff]  ;;  %v3209_v6 = vld [vmem:[%s11371_s4 + $0xf98] sm:$0xff]  ;;  %v2748_v63 = vld [vmem:[%s11371_s4 + $0x130] sm:$0xff] }
 0x501   : > { %6906 = vmatmul.mubr.bf16.gmra.mrb[112].mxu1 %v9627_v48  ;;  %7219 = vmatmul.mubr.bf16.gmra.mrb[252].mxu0 %v9677_v33  ;;  %v13188_v36 = vadd.f32 %v13133_v14, %v6695_v32  ;;  %v9660_v33 = vcombine.high %v3193_v1, %v3201_v2  ;;  %v9202_v32 = vcombine.high %v2732_v44, %v2740_v13 }
 0x502   : > { %6913 = vmatprep.mubr.bf16.mxu1 %v9644_v18  ;;  %7548 = vmatprep.mubr.bf16.mxu0 %v9186_v28 }
 0x504   : > { %v6699_v21 = vpop.f32.mrb[8].mxu1  ;;  %v13194_v17 = vpop.f32.mrb[148].mxu0 }
 0x505   : > { %v6701_v3 = vpop.f32.mrb[9].mxu1  ;;  %v6700_v19 = vadd.f32 %v6699_v21, %v12561_v51  ;;  %v7014_v40 = vpop.f32.mrb[149].mxu0  ;;  %v2756_v21 = vld [vmem:[%s11371_s4 + $0x170] sm:$0xff] }
 0x506   : > { %v6702_v48 = vpop.f32.mrb[10].mxu1  ;;  %v13197_v18 = vpop.f32.mrb[150].mxu0  ;;  %v9201_v40 = vcombine.low %v2732_v44, %v2740_v13  ;;  %v14820_v13 = vld [vmem:[#allocation106_spill] sm:$0xff] }
 0x507   : > { %v13200_v14 = vadd.f32 %v13146_v54, %v6700_v19  ;;  %v6703_v28 = vadd.f32 %v6702_v48, %v12564_v7  ;;  %v6704_v59 = vpop.f32.mrb[11].mxu1  ;;  %v7017_v22 = vpop.f32.mrb[151].mxu0  ;;  %v3217_v54 = vld [vmem:[%s11371_s4 + $0xfd8] sm:$0xff] }
 0x508   : > { %v2723_v22 = vld [vmem:[%s11371_s4 + $0x68] sm:$0xff] }
 0x509   : > { %v13204_v51 = vadd.f32 %v13149_v0, %v6703_v28  ;;  %6914 = vmatmul.mubr.bf16.gmra.mrb[116].mxu1 %v9643_v56  ;;  %7549 = vmatmul.mubr.bf16.vlgmr.msra.gmra.mrb[0].mxu0 %v9185_v42  ;;  %v9659_v0 = vcombine.low %v3193_v1, %v3201_v2  ;;  %v14817_v42 = vld [vmem:[#allocation101_spill] sm:$0xff]  ;;  %v9218_v1 = vcombine.high %v2748_v63, %v2756_v21 }
 0x50a   : > { %7806 = vmatpush1.bf16.msra.mxu0 %v14816_v15  ;;  %6921 = vmatprep.mubr.bf16.mxu1 %v9660_v33  ;;  %v9676_v33 = vcombine.high %v3209_v6, %v3217_v54 }
 0x50b   : > { %7807 = vmatprep.subr.bf16.mxu0 %v14504_v62  ;;  %7556 = vmatprep.mubr.bf16.mxu0 %v9202_v32 }
 0x50c   : > { %v6707_v20 = vpop.f32.mrb[12].mxu1  ;;  %v13212_v7 = vpop.f32.mrb[152].mxu0 }
 0x50d   : > { %v6709_v3 = vpop.f32.mrb[13].mxu1  ;;  %v6708_v19 = vadd.f32 %v6707_v20, %v12581_v49  ;;  %v7022_v56 = vpop.f32.mrb[153].mxu0  ;;  %v2764_v20 = vld [vmem:[%s11371_s4 + $0x1b0] sm:$0xff] }
 0x50e   : > { %7808 = vmatpush1.bf16.msra.mxu0 %v14817_v42  ;;  %v6710_v48 = vpop.f32.mrb[14].mxu1  ;;  %v13216_v28 = vpop.f32.mrb[154].mxu0  ;;  %v2772_v3 = vld [vmem:[%s11371_s4 + $0x1f0] sm:$0xff] }
 0x50f   : > { %v13219_v59 = vadd.f32 %v13162_v4, %v6708_v19  ;;  %v6711_v32 = vadd.f32 %v6710_v48, %v12588_v26  ;;  %7809 = vmatprep.subr.bf16.mxu0 %v14504_v62  ;;  %v6712_v49 = vpop.f32.mrb[15].mxu1  ;;  %v7025_v2 = vpop.f32.mrb[155].mxu0  ;;  %v2715_v4 = vld [vmem:[%s11371_s4 + $0x28] sm:$0xff] }
 0x511   : > { %14818 = vst [vmem:[#allocation95_spill] sm:$0xff] %v13219_v59  ;;  %v13224_v44 = vadd.f32 %v13165_v57, %v6711_v32  ;;  %6922 = vmatmul.mubr.bf16.gmra.mrb[120].mxu1 %v9659_v0  ;;  %7557 = vmatmul.mubr.bf16.gmra.mrb[4].mxu0 %v9201_v40  ;;  %v9675_v57 = vcombine.low %v3209_v6, %v3217_v54  ;;  %v14821_v40 = vld [vmem:[#allocation105_spill] sm:$0xff]  ;;  %v14822_v54 = vld [vmem:[#allocation110_spill] sm:$0xff] }
 0x512   : > { %7810 = vmatpush1.bf16.msra.mxu0 %v14820_v13  ;;  %6929 = vmatprep.mubr.bf16.mxu1 %v9676_v33  ;;  %v9217_v32 = vcombine.low %v2748_v63, %v2756_v21  ;;  %v9184_v33 = vcombine.high %v2715_v4, %v2723_v22  ;;  %v9234_v59 = vcombine.high %v2764_v20, %v2772_v3 }
 0x513   : > { %14819 = vst [vmem:[#allocation64_spill] sm:$0xff] %v13224_v44  ;;  %7811 = vmatprep.subr.bf16.mxu0 %v14504_v62  ;;  %7564 = vmatprep.mubr.bf16.mxu0 %v9218_v1 }
 0x514   : > { %v6715_v26 = vpop.f32.mrb[16].mxu1  ;;  %v13232_v19 = vpop.f32.mrb[156].mxu0 }
 0x515   : > { %v6717_v56 = vpop.f32.mrb[17].mxu1  ;;  %v6716_v48 = vadd.f32 %v6715_v26, %v12605_v58  ;;  %v7030_v0 = vpop.f32.mrb[157].mxu0 }
 0x516   : > { %7812 = vmatpush1.bf16.msra.mxu0 %v14821_v40  ;;  %v6718_v49 = vpop.f32.mrb[18].mxu1  ;;  %v13236_v2 = vpop.f32.mrb[158].mxu0  ;;  %v9233_v0 = vcombine.low %v2764_v20, %v2772_v3 }
 0x517   : > { %v13239_v1 = vadd.f32 %v13178_v27, %v6716_v48  ;;  %v6719_v44 = vadd.f32 %v6718_v49, %v12612_v43  ;;  %7813 = vmatprep.subr.bf16.mxu0 %v14504_v62  ;;  %v6720_v56 = vpop.f32.mrb[19].mxu1  ;;  %v7033_v58 = vpop.f32.mrb[159].mxu0  ;;  %v2731_v27 = vld [vmem:[%s11371_s4 + $0xa8] sm:$0xff]  ;;  %v9183_v48 = vcombine.low %v2715_v4, %v2723_v22  ;;  %v2788_v49 = vld [vmem:[%s11371_s4 + $0x270] sm:$0xff] }
 0x519   : > { %v13244_v6 = vadd.f32 %v13181_v37, %v6719_v44  ;;  %6930 = vmatmul.mubr.bf16.gmra.mrb[124].mxu1 %v9675_v57  ;;  %7565 = vmatmul.mubr.bf16.gmra.mrb[8].mxu0 %v9217_v32  ;;  %v2739_v37 = vld [vmem:[%s11371_s4 + $0xe8] sm:$0xff]  ;;  %v2780_v44 = vld [vmem:[%s11371_s4 + $0x230] sm:$0xff]  ;;  %v14823_v32 = vld [vmem:[#allocation109_spill] sm:$0xff] }
 0x51a   : > { %7814 = vmatpush1.bf16.msra.mxu0 %v14822_v54  ;;  %7259 = vmatprep.mubr.bf16.mxu1 %v9184_v33  ;;  %v9200_v22 = vcombine.high %v2731_v27, %v2739_v37  ;;  %v9250_v20 = vcombine.high %v2780_v44, %v2788_v49 }
 0x51b   : > { %7815 = vmatprep.subr.bf16.mxu0 %v14504_v62  ;;  %7572 = vmatprep.mubr.bf16.mxu0 %v9234_v59 }
 0x51c   : > { %v6723_v43 = vpop.f32.mrb[20].mxu1  ;;  %v13249_v63 = vpop.f32.mrb[160].mxu0 }
 0x51d   : > { %v6725_v21 = vpop.f32.mrb[21].mxu1  ;;  %v6724_v26 = vadd.f32 %v6723_v43, %v12629_v9  ;;  %v7038_v57 = vpop.f32.mrb[161].mxu0  ;;  %v2747_v43 = vld [vmem:[%s11371_s4 + $0x128] sm:$0xff] }
 0x51e   : > { %7816 = vmatpush1.bf16.msra.mxu0 %v14823_v32  ;;  %v6726_v56 = vpop.f32.mrb[22].mxu1  ;;  %v13256_v33 = vpop.f32.mrb[162].mxu0  ;;  %v2755_v57 = vld [vmem:[%s11371_s4 + $0x168] sm:$0xff] }
 0x51f   : > { %v13259_v59 = vadd.f32 %v13194_v17, %v6724_v26  ;;  %v6727_v58 = vadd.f32 %v6726_v56, %v12636_v50  ;;  %7817 = vmatprep.subr.bf16.mxu0 %v14504_v62  ;;  %v6728_v9 = vpop.f32.mrb[23].mxu1  ;;  %v7041_v4 = vpop.f32.mrb[163].mxu0  ;;  %v14825_v17 = vld [vmem:[#allocation114_spill] sm:$0xff]  ;;  %v2796_v56 = vld [vmem:[%s11371_s4 + $0x2b0] sm:$0xff] }
 0x520   : > { %v14826_v9 = vld [vmem:[#allocation113_spill] sm:$0xff] }
 0x521   : > { %v13264_v3 = vadd.f32 %v13197_v18, %v6727_v58  ;;  %7260 = vmatmul.mubr.bf16.vlgmr.msra.gmra.mrb[128].mxu1 %v9183_v48  ;;  %7573 = vmatmul.mubr.bf16.gmra.mrb[12].mxu0 %v9233_v0  ;;  %v9199_v48 = vcombine.low %v2731_v27, %v2739_v37  ;;  %v9249_v0 = vcombine.low %v2780_v44, %v2788_v49  ;;  %v2763_v49 = vld [vmem:[%s11371_s4 + $0x1a8] sm:$0xff] }
 0x522   : > { %10438 = vmatpush1.bf16.msra.mxu1 %v14816_v15  ;;  %7818 = vmatpush1.bf16.msra.mxu0 %v14825_v17  ;;  %v2804_v15 = vld [vmem:[%s11371_s4 + $0x2f0] sm:$0xff]  ;;  %v9216_v37 = vcombine.high %v2747_v43, %v2755_v57 }
 0x523   : > { %14824 = vst [vmem:[#allocation67_spill] sm:$0xff] %v13264_v3  ;;  %10423 = vmatprep.subr.bf16.mxu1 %v14504_v62  ;;  %7819 = vmatprep.subr.bf16.mxu0 %v14504_v62  ;;  %v9266_v44 = vcombine.high %v2796_v56, %v2804_v15 }
 0x524   : > { %v6731_v50 = vpop.f32.mrb[24].mxu1  ;;  %7267 = vmatprep.mubr.bf16.mxu1 %v9200_v22  ;;  %7580 = vmatprep.mubr.bf16.mxu0 %v9250_v20  ;;  %v13271_v21 = vpop.f32.mrb[164].mxu0 }
 0x525   : > { %v6733_v18 = vpop.f32.mrb[25].mxu1  ;;  %v6732_v26 = vadd.f32 %v6731_v50, %v12657_v39  ;;  %v7046_v58 = vpop.f32.mrb[165].mxu0 }
 0x526   : > { %10439 = vmatpush1.bf16.msra.mxu1 %v14817_v42  ;;  %7820 = vmatpush1.bf16.msra.mxu0 %v14826_v9  ;;  %v6734_v4 = vpop.f32.mrb[26].mxu1  ;;  %v13279_v3 = vpop.f32.mrb[166].mxu0  ;;  %v2812_v58 = vld [vmem:[%s11371_s4 + $0x330] sm:$0xff] }
 0x527   : > { %v13282_v22 = vadd.f32 %v13212_v7, %v6732_v26  ;;  %v6735_v20 = vadd.f32 %v6734_v4, %v12668_v60  ;;  %10424 = vmatprep.subr.bf16.mxu1 %v14504_v62  ;;  %7821 = vmatprep.subr.bf16.mxu0 %v14504_v62  ;;  %v6736_v39 = vpop.f32.mrb[27].mxu1  ;;  %v7049_v27 = vpop.f32.mrb[167].mxu0  ;;  %v14827_v60 = vld [vmem:[#allocation118_spill] sm:$0xff]  ;;  %v9215_v26 = vcombine.low %v2747_v43, %v2755_v57 }
 0x529   : > { %v13288_v42 = vadd.f32 %v13216_v28, %v6735_v20  ;;  %7268 = vmatmul.mubr.bf16.gmra.mrb[132].mxu1 %v9199_v48  ;;  %7581 = vmatmul.mubr.bf16.gmra.mrb[16].mxu0 %v9249_v0  ;;  %v9265_v48 = vcombine.low %v2796_v56, %v2804_v15  ;;  %v2771_v0 = vld [vmem:[%s11371_s4 + $0x1e8] sm:$0xff]  ;;  %v14828_v20 = vld [vmem:[#allocation117_spill] sm:$0xff] }
 0x52a   : > { %10440 = vmatpush1.bf16.msra.mxu1 %v14820_v13  ;;  %7822 = vmatpush1.bf16.msra.mxu0 %v14827_v60  ;;  %v2820_v13 = vld [vmem:[%s11371_s4 + $0x370] sm:$0xff]  ;;  %v9232_v57 = vcombine.high %v2763_v49, %v2771_v0  ;;  %v2779_v15 = vld [vmem:[%s11371_s4 + $0x228] sm:$0xff] }
 0x52b   : > { %10425 = vmatprep.subr.bf16.mxu1 %v14504_v62  ;;  %7823 = vmatprep.subr.bf16.mxu0 %v14504_v62  ;;  %v9282_v56 = vcombine.high %v2812_v58, %v2820_v13 }
 0x52c   : > { %v6739_v7 = vpop.f32.mrb[28].mxu1  ;;  %7275 = vmatprep.mubr.bf16.mxu1 %v9216_v37  ;;  %7588 = vmatprep.mubr.bf16.mxu0 %v9266_v44  ;;  %v13295_v50 = vpop.f32.mrb[168].mxu0 }
 0x52d   : > { %v6741_v28 = vpop.f32.mrb[29].mxu1  ;;  %v6740_v18 = vadd.f32 %v6739_v7, %v12689_v5  ;;  %v7054_v4 = vpop.f32.mrb[169].mxu0 }
 0x52e   : > { %10441 = vmatpush1.bf16.msra.mxu1 %v14821_v40  ;;  %7824 = vmatpush1.bf16.msra.mxu0 %v14828_v20  ;;  %v6742_v39 = vpop.f32.mrb[30].mxu1  ;;  %v13303_v27 = vpop.f32.mrb[170].mxu0  ;;  %v2828_v4 = vld [vmem:[%s11371_s4 + $0x3b0] sm:$0xff] }
 0x52f   : > { %v13306_v37 = vadd.f32 %v13232_v19, %v6740_v18  ;;  %v6743_v44 = vadd.f32 %v6742_v39, %v12700_v8  ;;  %10426 = vmatprep.subr.bf16.mxu1 %v14504_v62  ;;  %7825 = vmatprep.subr.bf16.mxu0 %v14504_v62  ;;  %v6744_v5 = vpop.f32.mrb[31].mxu1  ;;  %v7057_v43 = vpop.f32.mrb[171].mxu0  ;;  %v14829_v8 = vld [vmem:[#allocation122_spill] sm:$0xff]  ;;  %v9231_v18 = vcombine.low %v2763_v49, %v2771_v0 }
 0x531   : > { %v13312_v40 = vadd.f32 %v13236_v2, %v6743_v44  ;;  %7276 = vmatmul.mubr.bf16.gmra.mrb[136].mxu1 %v9215_v26  ;;  %7589 = vmatmul.mubr.bf16.gmra.mrb[20].mxu0 %v9265_v48  ;;  %v9281_v26 = vcombine.low %v2812_v58, %v2820_v13  ;;  %v2787_v48 = vld [vmem:[%s11371_s4 + $0x268] sm:$0xff]  ;;  %v14830_v44 = vld [vmem:[#allocation121_spill] sm:$0xff] }
 0x532   : > { %10442 = vmatpush1.bf16.msra.mxu1 %v14822_v54  ;;  %7826 = vmatpush1.bf16.msra.mxu0 %v14829_v8  ;;  %v2836_v54 = vld [vmem:[%s11371_s4 + $0x3f0] sm:$0xff]  ;;  %v9248_v0 = vcombine.high %v2779_v15, %v2787_v48  ;;  %v2795_v13 = vld [vmem:[%s11371_s4 + $0x2a8] sm:$0xff] }
 0x533   : > { %10427 = vmatprep.subr.bf16.mxu1 %v14504_v62  ;;  %7827 = vmatprep.subr.bf16.mxu0 %v14504_v62  ;;  %v9298_v58 = vcombine.high %v2828_v4, %v2836_v54 }
 0x534   : > { %v6747_v19 = vpop.f32.mrb[32].mxu1  ;;  %7283 = vmatprep.mubr.bf16.mxu1 %v9232_v57  ;;  %7596 = vmatprep.mubr.bf16.mxu0 %v9282_v56  ;;  %v13319_v7 = vpop.f32.mrb[172].mxu0 }
 0x535   : > { %v6749_v2 = vpop.f32.mrb[33].mxu1  ;;  %v6748_v28 = vadd.f32 %v6747_v19, %v12721_v35  ;;  %v7062_v39 = vpop.f32.mrb[173].mxu0 }
 0x536   : > { %10443 = vmatpush1.bf16.msra.mxu1 %v14823_v32  ;;  %7828 = vmatpush1.bf16.msra.mxu0 %v14830_v44  ;;  %v6750_v5 = vpop.f32.mrb[34].mxu1  ;;  %v13327_v43 = vpop.f32.mrb[174].mxu0  ;;  %v2844_v39 = vld [vmem:[%s11371_s4 + $0x430] sm:$0xff] }
 0x537   : > { %v13330_v57 = vadd.f32 %v13249_v63, %v6748_v28  ;;  %v6751_v56 = vadd.f32 %v6750_v5, %v12732_v55  ;;  %10428 = vmatprep.subr.bf16.mxu1 %v14504_v62  ;;  %7829 = vmatprep.subr.bf16.mxu0 %v14504_v62  ;;  %v6752_v35 = vpop.f32.mrb[35].mxu1  ;;  %v7065_v49 = vpop.f32.mrb[175].mxu0  ;;  %v14831_v55 = vld [vmem:[#allocation126_spill] sm:$0xff]  ;;  %v9247_v28 = vcombine.low %v2779_v15, %v2787_v48 }
 0x539   : > { %v13336_v32 = vadd.f32 %v13256_v33, %v6751_v56  ;;  %7284 = vmatmul.mubr.bf16.gmra.mrb[140].mxu1 %v9231_v18  ;;  %7597 = vmatmul.mubr.bf16.gmra.mrb[24].mxu0 %v9281_v26  ;;  %v9297_v18 = vcombine.low %v2828_v4, %v2836_v54  ;;  %v2803_v26 = vld [vmem:[%s11371_s4 + $0x2e8] sm:$0xff]  ;;  %v14832_v56 = vld [vmem:[#allocation125_spill] sm:$0xff] }
 0x53a   : > { %10444 = vmatpush1.bf16.msra.mxu1 %v14825_v17  ;;  %7830 = vmatpush1.bf16.msra.mxu0 %v14831_v55  ;;  %v2852_v17 = vld [vmem:[%s11371_s4 + $0x470] sm:$0xff] }
 0x53b   : > { %10429 = vmatprep.subr.bf16.mxu1 %v14504_v62  ;;  %7831 = vmatprep.subr.bf16.mxu0 %v14504_v62  ;;  %v9314_v4 = vcombine.high %v2844_v39, %v2852_v17 }
 0x53c   : > { %v6755_v63 = vpop.f32.mrb[36].mxu1  ;;  %7291 = vmatprep.mubr.bf16.mxu1 %v9248_v0  ;;  %7604 = vmatprep.mubr.bf16.mxu0 %v9298_v58  ;;  %v13343_v19 = vpop.f32.mrb[176].mxu0  ;;  %v2819_v58 = vld [vmem:[%s11371_s4 + $0x368] sm:$0xff] }
 0x53d   : > { %v6757_v33 = vpop.f32.mrb[37].mxu1  ;;  %v6756_v2 = vadd.f32 %v6755_v63, %v12753_v30  ;;  %v7070_v5 = vpop.f32.mrb[177].mxu0 }
 0x53e   : > { %10445 = vmatpush1.bf16.msra.mxu1 %v14826_v9  ;;  %7832 = vmatpush1.bf16.msra.mxu0 %v14832_v56  ;;  %v6758_v35 = vpop.f32.mrb[38].mxu1  ;;  %v13351_v49 = vpop.f32.mrb[178].mxu0  ;;  %v9264_v9 = vcombine.high %v2795_v13, %v2803_v26  ;;  %v2860_v33 = vld [vmem:[%s11371_s4 + $0x4b0] sm:$0xff] }
 0x53f   : > { %v13354_v0 = vadd.f32 %v13271_v21, %v6756_v2  ;;  %v6759_v30 = vadd.f32 %v6758_v35, %v12764_v29  ;;  %10430 = vmatprep.subr.bf16.mxu1 %v14504_v62  ;;  %7833 = vmatprep.subr.bf16.mxu0 %v14504_v62  ;;  %v6760_v15 = vpop.f32.mrb[39].mxu1  ;;  %v7073_v48 = vpop.f32.mrb[179].mxu0  ;;  %v14833_v21 = vld [vmem:[#allocation130_spill] sm:$0xff]  ;;  %v2868_v2 = vld [vmem:[%s11371_s4 + $0x4f0] sm:$0xff] }
 0x540   : > { %v2811_v29 = vld [vmem:[%s11371_s4 + $0x328] sm:$0xff] }
 0x541   : > { %v13360_v54 = vadd.f32 %v13279_v3, %v6759_v30  ;;  %7292 = vmatmul.mubr.bf16.gmra.mrb[144].mxu1 %v9247_v28  ;;  %7605 = vmatmul.mubr.bf16.gmra.mrb[28].mxu0 %v9297_v18  ;;  %v9263_v18 = vcombine.low %v2795_v13, %v2803_v26  ;;  %v14834_v30 = vld [vmem:[#allocation129_spill] sm:$0xff]  ;;  %v9280_v48 = vcombine.high %v2811_v29, %v2819_v58 }
 0x542   : > { %10446 = vmatpush1.bf16.msra.mxu1 %v14827_v60  ;;  %7834 = vmatpush1.bf16.msra.mxu0 %v14833_v21  ;;  %v9313_v60 = vcombine.low %v2844_v39, %v2852_v17  ;;  %v9330_v13 = vcombine.high %v2860_v33, %v2868_v2  ;;  %v2835_v39 = vld [vmem:[%s11371_s4 + $0x3e8] sm:$0xff]  ;;  %v2876_v17 = vld [vmem:[%s11371_s4 + $0x530] sm:$0xff] }
 0x543   : > { %10431 = vmatprep.subr.bf16.mxu1 %v14504_v62  ;;  %7835 = vmatprep.subr.bf16.mxu0 %v14504_v62 }
 0x544   : > { %v6763_v63 = vpop.f32.mrb[40].mxu1  ;;  %7299 = vmatprep.mubr.bf16.mxu1 %v9264_v9  ;;  %7612 = vmatprep.mubr.bf16.mxu0 %v9314_v4  ;;  %v13370_v5 = vpop.f32.mrb[180].mxu0 }
 0x545   : > { %v6765_v3 = vpop.f32.mrb[41].mxu1  ;;  %v6764_v28 = vadd.f32 %v6763_v63, %v12785_v41  ;;  %v7078_v35 = vpop.f32.mrb[181].mxu0  ;;  %v2884_v63 = vld [vmem:[%s11371_s4 + $0x570] sm:$0xff] }
 0x546   : > { %10447 = vmatpush1.bf16.msra.mxu1 %v14828_v20  ;;  %7836 = vmatpush1.bf16.msra.mxu0 %v14834_v30  ;;  %v6766_v15 = vpop.f32.mrb[42].mxu1  ;;  %v13375_v9 = vpop.f32.mrb[182].mxu0 }
 0x547   : > { %v13378_v4 = vadd.f32 %v13295_v50, %v6764_v28  ;;  %v6767_v3 = vadd.f32 %v6766_v15, %v12796_v16  ;;  %10432 = vmatprep.subr.bf16.mxu1 %v14504_v62  ;;  %v6768_v41 = vpop.f32.mrb[43].mxu1  ;;  %v7081_v20 = vpop.f32.mrb[183].mxu0  ;;  %v2827_v50 = vld [vmem:[%s11371_s4 + $0x3a8] sm:$0xff] }
 0x548   : > { %v2900_v20 = vld [vmem:[%s11371_s4 + $0x5f0] sm:$0xff] }
 0x549   : > { %v13383_v26 = vadd.f32 %v13303_v27, %v6767_v3  ;;  %7300 = vmatmul.mubr.bf16.gmra.mrb[148].mxu1 %v9263_v18  ;;  %7613 = vmatmul.mubr.bf16.gmra.mrb[32].mxu0 %v9313_v60  ;;  %v9279_v27 = vcombine.low %v2811_v29, %v2819_v58  ;;  %v9329_v3 = vcombine.low %v2860_v33, %v2868_v2  ;;  %v2851_v33 = vld [vmem:[%s11371_s4 + $0x468] sm:$0xff]  ;;  %v2892_v2 = vld [vmem:[%s11371_s4 + $0x5b0] sm:$0xff] }
 0x54a   : > { %10448 = vmatpush1.bf16.msra.mxu1 %v14829_v8  ;;  %7307 = vmatprep.mubr.bf16.mxu1 %v9280_v48  ;;  %v9296_v60 = vcombine.high %v2827_v50, %v2835_v39  ;;  %v9346_v29 = vcombine.high %v2876_v17, %v2884_v63 }
 0x54b   : > { %10433 = vmatprep.subr.bf16.mxu1 %v14504_v62  ;;  %7620 = vmatprep.mubr.bf16.mxu0 %v9330_v13 }
 0x54c   : > { %v6771_v16 = vpop.f32.mrb[44].mxu1  ;;  %v13391_v28 = vpop.f32.mrb[184].mxu0 }
 0x54d   : > { %v6773_v35 = vpop.f32.mrb[45].mxu1  ;;  %v6772_v15 = vadd.f32 %v6771_v16, %v12813_v23  ;;  %v7086_v18 = vpop.f32.mrb[185].mxu0 }
 0x54e   : > { %10449 = vmatpush1.bf16.msra.mxu1 %v14830_v44  ;;  %v6774_v8 = vpop.f32.mrb[46].mxu1  ;;  %v13395_v48 = vpop.f32.mrb[186].mxu0  ;;  %v9345_v18 = vcombine.low %v2876_v17, %v2884_v63  ;;  %v2908_v63 = vld [vmem:[%s11371_s4 + $0x630] sm:$0xff] }
 0x54f   : > { %v13398_v41 = vadd.f32 %v13319_v7, %v6772_v15  ;;  %v6775_v13 = vadd.f32 %v6774_v8, %v12820_v11  ;;  %10434 = vmatprep.subr.bf16.mxu1 %v14504_v62  ;;  %v6776_v23 = vpop.f32.mrb[47].mxu1  ;;  %v7089_v58 = vpop.f32.mrb[187].mxu0  ;;  %v2843_v7 = vld [vmem:[%s11371_s4 + $0x428] sm:$0xff] }
 0x551   : > { %v13403_v44 = vadd.f32 %v13327_v43, %v6775_v13  ;;  %7308 = vmatmul.mubr.bf16.gmra.mrb[152].mxu1 %v9279_v27  ;;  %7621 = vmatmul.mubr.bf16.gmra.mrb[36].mxu0 %v9329_v3  ;;  %v9295_v43 = vcombine.low %v2827_v50, %v2835_v39  ;;  %v9312_v3 = vcombine.high %v2843_v7, %v2851_v33 }
 0x552   : > { %10450 = vmatpush1.bf16.msra.mxu1 %v14831_v55  ;;  %7315 = vmatprep.mubr.bf16.mxu1 %v9296_v60  ;;  %v9362_v50 = vcombine.high %v2892_v2, %v2900_v20 }
 0x553   : > { %10435 = vmatprep.subr.bf16.mxu1 %v14504_v62  ;;  %7628 = vmatprep.mubr.bf16.mxu0 %v9346_v29 }
 0x554   : > { %v6779_v11 = vpop.f32.mrb[48].mxu1  ;;  %v13411_v16 = vpop.f32.mrb[188].mxu0 }
 0x555   : > { %v6781_v35 = vpop.f32.mrb[49].mxu1  ;;  %v6780_v15 = vadd.f32 %v6779_v11, %v12837_v45  ;;  %v7094_v27 = vpop.f32.mrb[189].mxu0 }
 0x556   : > { %10451 = vmatpush1.bf16.msra.mxu1 %v14832_v56  ;;  %v6782_v55 = vpop.f32.mrb[50].mxu1  ;;  %v13415_v8 = vpop.f32.mrb[190].mxu0  ;;  %v2859_v56 = vld [vmem:[%s11371_s4 + $0x4a8] sm:$0xff]  ;;  %v9361_v35 = vcombine.low %v2892_v2, %v2900_v20  ;;  %v2924_v20 = vld [vmem:[%s11371_s4 + $0x6b0] sm:$0xff] }
 0x557   : > { %v13418_v60 = vadd.f32 %v13343_v19, %v6780_v15  ;;  %v6783_v13 = vadd.f32 %v6782_v55, %v12844_v52  ;;  %10436 = vmatprep.subr.bf16.mxu1 %v14504_v62  ;;  %v6784_v45 = vpop.f32.mrb[51].mxu1  ;;  %v7097_v39 = vpop.f32.mrb[191].mxu0  ;;  %v2867_v19 = vld [vmem:[%s11371_s4 + $0x4e8] sm:$0xff]  ;;  %v2916_v52 = vld [vmem:[%s11371_s4 + $0x670] sm:$0xff] }
 0x558   : > { %v2883_v2 = vld [vmem:[%s11371_s4 + $0x568] sm:$0xff]  ;;  %v9377_v39 = vcombine.low %v2908_v63, %v2916_v52 }
 0x559   : > { %v13423_v17 = vadd.f32 %v13351_v49, %v6783_v13  ;;  %7316 = vmatmul.mubr.bf16.gmra.mrb[156].mxu1 %v9295_v43  ;;  %7629 = vmatmul.mubr.bf16.gmra.mrb[40].mxu0 %v9345_v18  ;;  %v9311_v49 = vcombine.low %v2843_v7, %v2851_v33  ;;  %v9378_v43 = vcombine.high %v2908_v63, %v2916_v52  ;;  %v2940_v63 = vld [vmem:[%s11371_s4 + $0x730] sm:$0xff] }
 0x55a   : > { %10452 = vmatpush1.bf16.msra.mxu1 %v14833_v21  ;;  %7323 = vmatprep.mubr.bf16.mxu1 %v9312_v3  ;;  %v2932_v3 = vld [vmem:[%s11371_s4 + $0x6f0] sm:$0xff] }
 0x55b   : > { %10437 = vmatprep.subr.bf16.mxu1 %v14504_v62  ;;  %7636 = vmatprep.mubr.bf16.mxu0 %v9362_v50  ;;  %v9328_v62 = vcombine.high %v2859_v56, %v2867_v19  ;;  %v2948_v52 = vld [vmem:[%s11371_s4 + $0x770] sm:$0xff] }
 0x55c   : > { %v6787_v23 = vpop.f32.mrb[52].mxu1  ;;  %v13431_v29 = vpop.f32.mrb[192].mxu0 }
 0x55d   : > { %v6789_v58 = vpop.f32.mrb[53].mxu1  ;;  %v6788_v11 = vadd.f32 %v6787_v23, %v12861_v10  ;;  %v7102_v15 = vpop.f32.mrb[193].mxu0 }
 0x55e   : > { %10453 = vmatpush1.bf16.msra.mxu1 %v14834_v30  ;;  %v6790_v21 = vpop.f32.mrb[54].mxu1  ;;  %v13435_v18 = vpop.f32.mrb[194].mxu0  ;;  %v2875_v30 = vld [vmem:[%s11371_s4 + $0x528] sm:$0xff] }
 0x55f   : > { %v13438_v27 = vadd.f32 %v13370_v5, %v6788_v11  ;;  %v6791_v55 = vadd.f32 %v6790_v21, %v12868_v31  ;;  %v6792_v10 = vpop.f32.mrb[55].mxu1  ;;  %v7105_v7 = vpop.f32.mrb[195].mxu0  ;;  %v9327_v31 = vcombine.low %v2859_v56, %v2867_v19  ;;  %v9344_v58 = vcombine.high %v2875_v30, %v2883_v2  ;;  %v2891_v56 = vld [vmem:[%s11371_s4 + $0x5a8] sm:$0xff] }
 0x560   : > { %v9394_v11 = vcombine.high %v2924_v20, %v2932_v3  ;;  %v2899_v19 = vld [vmem:[%s11371_s4 + $0x5e8] sm:$0xff]  ;;  %v9393_v7 = vcombine.low %v2924_v20, %v2932_v3  ;;  %v2956_v20 = vld [vmem:[%s11371_s4 + $0x7b0] sm:$0xff] }
 0x561   : > { %v13442_v33 = vadd.f32 %v13375_v9, %v6791_v55  ;;  %7324 = vmatmul.mubr.bf16.gmra.mrb[160].mxu1 %v9311_v49  ;;  %7637 = vmatmul.mubr.bf16.gmra.mrb[44].mxu0 %v9361_v35  ;;  %v2964_v3 = vld [vmem:[%s11371_s4 + $0x7f0] sm:$0xff] }
 0x562   : > { %7331 = vmatprep.mubr.bf16.mxu1 %v9328_v62  ;;  %7644 = vmatprep.mubr.bf16.mxu0 %v9378_v43 }
 0x564   : > { %v6795_v13 = vpop.f32.mrb[56].mxu1  ;;  %v13448_v45 = vpop.f32.mrb[196].mxu0 }
 0x565   : > { %v6797_v5 = vpop.f32.mrb[57].mxu1  ;;  %v6796_v50 = vadd.f32 %v6795_v13, %v12881_v47  ;;  %v7110_v9 = vpop.f32.mrb[197].mxu0 }
 0x566   : > { %v6798_v23 = vpop.f32.mrb[58].mxu1  ;;  %v13451_v49 = vpop.f32.mrb[198].mxu0  ;;  %v9360_v5 = vcombine.high %v2891_v56, %v2899_v19 }
 0x567   : > { %v13454_v35 = vadd.f32 %v13391_v28, %v6796_v50  ;;  %v6799_v15 = vadd.f32 %v6798_v23, %v12884_v12  ;;  %v6800_v21 = vpop.f32.mrb[59].mxu1  ;;  %v7113_v62 = vpop.f32.mrb[199].mxu0  ;;  %v9343_v12 = vcombine.low %v2875_v30, %v2883_v2  ;;  %v9410_v50 = vcombine.high %v2940_v63, %v2948_v52  ;;  %v2907_v30 = vld [vmem:[%s11371_s4 + $0x628] sm:$0xff] }
 0x568   : > { %v2915_v2 = vld [vmem:[%s11371_s4 + $0x668] sm:$0xff]  ;;  %v9409_v62 = vcombine.low %v2940_v63, %v2948_v52  ;;  %v2972_v63 = vld [vmem:[%s11371_s4 + $0x830] sm:$0xff] }
 0x569   : > { %v13458_v47 = vadd.f32 %v13395_v48, %v6799_v15  ;;  %7332 = vmatmul.mubr.bf16.gmra.mrb[164].mxu1 %v9327_v31  ;;  %7645 = vmatmul.mubr.bf16.gmra.mrb[48].mxu0 %v9377_v39  ;;  %v2980_v52 = vld [vmem:[%s11371_s4 + $0x870] sm:$0xff] }
 0x56a   : > { %7339 = vmatprep.mubr.bf16.mxu1 %v9344_v58  ;;  %7652 = vmatprep.mubr.bf16.mxu0 %v9394_v11 }
 0x56c   : > { %v6803_v43 = vpop.f32.mrb[60].mxu1  ;;  %v13464_v55 = vpop.f32.mrb[200].mxu0 }
 0x56d   : > { %v6805_v28 = vpop.f32.mrb[61].mxu1  ;;  %v6804_v10 = vadd.f32 %v6803_v43, %v12897_v38  ;;  %v7118_v48 = vpop.f32.mrb[201].mxu0 }
 0x56e   : > { %v6806_v13 = vpop.f32.mrb[62].mxu1  ;;  %v13467_v31 = vpop.f32.mrb[202].mxu0  ;;  %v9376_v28 = vcombine.high %v2907_v30, %v2915_v2 }
 0x56f   : > { %v13470_v39 = vadd.f32 %v13411_v16, %v6804_v10  ;;  %v6807_v9 = vadd.f32 %v6806_v13, %v12900_v46  ;;  %v6808_v23 = vpop.f32.mrb[63].mxu1  ;;  %v7121_v58 = vpop.f32.mrb[203].mxu0  ;;  %v9359_v46 = vcombine.low %v2891_v56, %v2899_v19  ;;  %v9426_v10 = vcombine.high %v2956_v20, %v2964_v3  ;;  %v2923_v56 = vld [vmem:[%s11371_s4 + $0x6a8] sm:$0xff] }
 0x570   : > { %v2931_v19 = vld [vmem:[%s11371_s4 + $0x6e8] sm:$0xff]  ;;  %v9425_v58 = vcombine.low %v2956_v20, %v2964_v3  ;;  %v2988_v20 = vld [vmem:[%s11371_s4 + $0x8b0] sm:$0xff] }
 0x571   : > { %v13474_v38 = vadd.f32 %v13415_v8, %v6807_v9  ;;  %7340 = vmatmul.mubr.bf16.gmra.mrb[168].mxu1 %v9343_v12  ;;  %7653 = vmatmul.mubr.bf16.gmra.mrb[52].mxu0 %v9393_v7  ;;  %v2996_v3 = vld [vmem:[%s11371_s4 + $0x8f0] sm:$0xff] }
 0x572   : > { %7347 = vmatprep.mubr.bf16.mxu1 %v9360_v5  ;;  %7660 = vmatprep.mubr.bf16.mxu0 %v9410_v50 }
 0x574   : > { %v6811_v11 = vpop.f32.mrb[64].mxu1  ;;  %v13480_v15 = vpop.f32.mrb[204].mxu0 }
 0x575   : > { %v6813_v16 = vpop.f32.mrb[65].mxu1  ;;  %v6812_v21 = vadd.f32 %v6811_v11, %v12913_v53  ;;  %v7126_v8 = vpop.f32.mrb[205].mxu0 }
 0x576   : > { %v6814_v43 = vpop.f32.mrb[66].mxu1  ;;  %v13483_v12 = vpop.f32.mrb[206].mxu0  ;;  %v9392_v16 = vcombine.high %v2923_v56, %v2931_v19 }
 0x577   : > { %v13486_v7 = vadd.f32 %v13431_v29, %v6812_v21  ;;  %v6815_v48 = vadd.f32 %v6814_v43, %v12916_v25  ;;  %v6816_v13 = vpop.f32.mrb[67].mxu1  ;;  %v7129_v5 = vpop.f32.mrb[207].mxu0  ;;  %v9375_v25 = vcombine.low %v2907_v30, %v2915_v2  ;;  %v9442_v21 = vcombine.high %v2972_v63, %v2980_v52  ;;  %v2939_v30 = vld [vmem:[%s11371_s4 + $0x728] sm:$0xff] }
 0x578   : > { %v2947_v2 = vld [vmem:[%s11371_s4 + $0x768] sm:$0xff]  ;;  %v14835_v13 = vld [vmem:[#allocation41_spill] sm:$0xff] }
 0x579   : > { %v13490_v53 = vadd.f32 %v13435_v18, %v6815_v48  ;;  %7348 = vmatmul.mubr.bf16.gmra.mrb[172].mxu1 %v9359_v46  ;;  %7661 = vmatmul.mubr.bf16.gmra.mrb[56].mxu0 %v9409_v62 }
 0x57a   : > { %7355 = vmatprep.mubr.bf16.mxu1 %v9376_v28  ;;  %7668 = vmatprep.mubr.bf16.mxu0 %v9426_v10 }
 0x57c   : > { %v6819_v50 = vpop.f32.mrb[68].mxu1  ;;  %v13496_v9 = vpop.f32.mrb[208].mxu0 }
 0x57d   : > { %v6821_v29 = vpop.f32.mrb[69].mxu1  ;;  %v6820_v23 = vadd.f32 %v6819_v50, %v12929_v61  ;;  %v7134_v18 = vpop.f32.mrb[209].mxu0  ;;  %v9441_v50 = vcombine.low %v2972_v63, %v2980_v52  ;;  %v2963_v63 = vld [vmem:[%s11371_s4 + $0x7e8] sm:$0xff]  ;;  %v3004_v52 = vld [vmem:[%s11371_s4 + $0x930] sm:$0xff] }
 0x57e   : > { %v6822_v11 = vpop.f32.mrb[70].mxu1  ;;  %v13499_v46 = vpop.f32.mrb[210].mxu0 }
 0x57f   : > { %v13502_v62 = vadd.f32 %v13448_v45, %v6820_v23  ;;  %v6823_v8 = vadd.f32 %v6822_v11, %v12932_v34  ;;  %v6824_v43 = vpop.f32.mrb[71].mxu1  ;;  %v7137_v28 = vpop.f32.mrb[211].mxu0  ;;  %v9391_v34 = vcombine.low %v2923_v56, %v2931_v19  ;;  %v9408_v23 = vcombine.high %v2939_v30, %v2947_v2  ;;  %v14836_v11 = vld [vmem:[#allocation42_spill] sm:$0xff] }
 0x580   : > { %v2955_v19 = vld [vmem:[%s11371_s4 + $0x7a8] sm:$0xff]  ;;  %v3012_v43 = vld [vmem:[%s11371_s4 + $0x970] sm:$0xff] }
 0x581   : > { %v13506_v61 = vadd.f32 %v13451_v49, %v6823_v8  ;;  %7356 = vmatmul.mubr.bf16.gmra.mrb[176].mxu1 %v9375_v25  ;;  %7669 = vmatmul.mubr.bf16.gmra.mrb[60].mxu0 %v9425_v58  ;;  %v9458_v25 = vcombine.high %v2988_v20, %v2996_v3 }
 0x582   : > { %7363 = vmatprep.mubr.bf16.mxu1 %v9392_v16  ;;  %7676 = vmatprep.mubr.bf16.mxu0 %v9442_v21 }
 0x584   : > { %v6827_v10 = vpop.f32.mrb[72].mxu1  ;;  %v13512_v48 = vpop.f32.mrb[212].mxu0 }
 0x585   : > { %v6829_v45 = vpop.f32.mrb[73].mxu1  ;;  %v6828_v5 = vadd.f32 %v6827_v10, %v14835_v13  ;;  %v7142_v49 = vpop.f32.mrb[213].mxu0 }
 0x586   : > { %v6830_v29 = vpop.f32.mrb[74].mxu1  ;;  %v13515_v58 = vpop.f32.mrb[214].mxu0  ;;  %v14837_v45 = vld [vmem:[#allocation43_spill] sm:$0xff]  ;;  %v9457_v49 = vcombine.low %v2988_v20, %v2996_v3 }
 0x587   : > { %v13518_v18 = vadd.f32 %v13464_v55, %v6828_v5  ;;  %v6831_v16 = vadd.f32 %v6830_v29, %v14836_v11  ;;  %v6832_v21 = vpop.f32.mrb[75].mxu1  ;;  %v7145_v8 = vpop.f32.mrb[215].mxu0  ;;  %v9407_v5 = vcombine.low %v2939_v30, %v2947_v2  ;;  %v9474_v29 = vcombine.high %v3004_v52, %v3012_v43  ;;  %v14838_v11 = vld [vmem:[#allocation44_spill] sm:$0xff]  ;;  %v2971_v2 = vld [vmem:[%s11371_s4 + $0x828] sm:$0xff] }
 0x588   : > { %v2979_v20 = vld [vmem:[%s11371_s4 + $0x868] sm:$0xff]  ;;  %v3020_v3 = vld [vmem:[%s11371_s4 + $0x9b0] sm:$0xff] }
 0x589   : > { %v13522_v56 = vadd.f32 %v13467_v31, %v6831_v16  ;;  %7364 = vmatmul.mubr.bf16.gmra.mrb[180].mxu1 %v9391_v34  ;;  %7677 = vmatmul.mubr.bf16.gmra.mrb[64].mxu0 %v9441_v50  ;;  %v9424_v50 = vcombine.high %v2955_v19, %v2963_v63 }
 0x58a   : > { %7371 = vmatprep.mubr.bf16.mxu1 %v9408_v23  ;;  %7684 = vmatprep.mubr.bf16.mxu0 %v9458_v25 }
 0x58c   : > { %v6835_v28 = vpop.f32.mrb[76].mxu1  ;;  %v13528_v10 = vpop.f32.mrb[216].mxu0 }
 0x58d   : > { %v6837_v55 = vpop.f32.mrb[77].mxu1  ;;  %v6836_v13 = vadd.f32 %v6835_v28, %v14837_v45  ;;  %v7150_v31 = vpop.f32.mrb[217].mxu0  ;;  %v3028_v28 = vld [vmem:[%s11371_s4 + $0x9f0] sm:$0xff] }
 0x58e   : > { %v6838_v34 = vpop.f32.mrb[78].mxu1  ;;  %v13531_v23 = vpop.f32.mrb[218].mxu0 }
 0x58f   : > { %v13534_v25 = vadd.f32 %v13480_v15, %v6836_v13  ;;  %v6839_v16 = vadd.f32 %v6838_v34, %v14838_v11  ;;  %v6840_v21 = vpop.f32.mrb[79].mxu1  ;;  %v7153_v8 = vpop.f32.mrb[219].mxu0  ;;  %v14840_v13 = vld [vmem:[#allocation45_spill] sm:$0xff]  ;;  %v9423_v34 = vcombine.low %v2955_v19, %v2963_v63  ;;  %v9473_v11 = vcombine.low %v3004_v52, %v3012_v43  ;;  %v2987_v63 = vld [vmem:[%s11371_s4 + $0x8a8] sm:$0xff]  ;;  %v3036_v43 = vld [vmem:[%s11371_s4 + $0xa30] sm:$0xff] }
 0x590   : > { %v14842_v21 = vld [vmem:[#allocation46_spill] sm:$0xff] }
 0x591   : > { %v13538_v30 = vadd.f32 %v13483_v12, %v6839_v16  ;;  %7372 = vmatmul.mubr.bf16.gmra.mrb[184].mxu1 %v9407_v5  ;;  %7685 = vmatmul.mubr.bf16.gmra.mrb[68].mxu0 %v9457_v49  ;;  %v9440_v49 = vcombine.high %v2971_v2, %v2979_v20  ;;  %v2995_v52 = vld [vmem:[%s11371_s4 + $0x8e8] sm:$0xff] }
 0x592   : > { %7379 = vmatprep.mubr.bf16.mxu1 %v9424_v50  ;;  %7692 = vmatprep.mubr.bf16.mxu0 %v9474_v29  ;;  %v9490_v50 = vcombine.high %v3020_v3, %v3028_v28 }
 0x593   : > { %14839 = vst [vmem:[#allocation62_spill] sm:$0xff] %v13538_v30 }
 0x594   : > { %v6843_v55 = vpop.f32.mrb[80].mxu1  ;;  %v13544_v45 = vpop.f32.mrb[220].mxu0 }
 0x595   : > { %v6845_v15 = vpop.f32.mrb[81].mxu1  ;;  %v6844_v31 = vadd.f32 %v6843_v55, %v14840_v13  ;;  %v7158_v12 = vpop.f32.mrb[221].mxu0  ;;  %v3044_v55 = vld [vmem:[%s11371_s4 + $0xa70] sm:$0xff] }
 0x596   : > { %v6846_v5 = vpop.f32.mrb[82].mxu1  ;;  %v13547_v29 = vpop.f32.mrb[222].mxu0 }
 0x597   : > { %v13550_v16 = vadd.f32 %v13496_v9, %v6844_v31  ;;  %v6847_v8 = vadd.f32 %v6846_v5, %v14842_v21  ;;  %v6848_v15 = vpop.f32.mrb[83].mxu1  ;;  %v7161_v30 = vpop.f32.mrb[223].mxu0  ;;  %v14844_v31 = vld [vmem:[#allocation47_spill] sm:$0xff]  ;;  %v9439_v5 = vcombine.low %v2971_v2, %v2979_v20 }
 0x598   : > { %v9489_v30 = vcombine.low %v3020_v3, %v3028_v28  ;;  %v3003_v20 = vld [vmem:[%s11371_s4 + $0x928] sm:$0xff]  ;;  %v3052_v28 = vld [vmem:[%s11371_s4 + $0xab0] sm:$0xff] }
 0x599   : > { %14841 = vst [vmem:[#allocation59_spill] sm:$0xff] %v13550_v16  ;;  %v13554_v19 = vadd.f32 %v13499_v46, %v6847_v8  ;;  %7380 = vmatmul.mubr.bf16.gmra.mrb[188].mxu1 %v9423_v34  ;;  %7693 = vmatmul.mubr.bf16.gmra.mrb[72].mxu0 %v9473_v11  ;;  %v9456_v11 = vcombine.high %v2987_v63, %v2995_v52  ;;  %v14846_v8 = vld [vmem:[#allocation51_spill] sm:$0xff] }
 0x59a   : > { %7387 = vmatprep.mubr.bf16.mxu1 %v9440_v49  ;;  %7700 = vmatprep.mubr.bf16.mxu0 %v9490_v50  ;;  %v9506_v49 = vcombine.high %v3036_v43, %v3044_v55  ;;  %v3011_v3 = vld [vmem:[%s11371_s4 + $0x968] sm:$0xff] }
 0x59b   : > { %14843 = vst [vmem:[#allocation97_spill] sm:$0xff] %v13554_v19 }
 0x59c   : > { %v6851_v13 = vpop.f32.mrb[84].mxu1  ;;  %v13560_v12 = vpop.f32.mrb[224].mxu0 }
 0x59d   : > { %v6853_v9 = vpop.f32.mrb[85].mxu1  ;;  %v6852_v16 = vadd.f32 %v6851_v13, %v14844_v31  ;;  %v7166_v46 = vpop.f32.mrb[225].mxu0  ;;  %v3060_v13 = vld [vmem:[%s11371_s4 + $0xaf0] sm:$0xff] }
 0x59e   : > { %v6854_v34 = vpop.f32.mrb[86].mxu1  ;;  %v13563_v50 = vpop.f32.mrb[226].mxu0 }
 0x59f   : > { %v13566_v21 = vadd.f32 %v13512_v48, %v6852_v16  ;;  %v6855_v15 = vadd.f32 %v6854_v34, %v14846_v8  ;;  %v6856_v9 = vpop.f32.mrb[87].mxu1  ;;  %v7169_v19 = vpop.f32.mrb[227].mxu0  ;;  %v14848_v16 = vld [vmem:[#allocation49_spill] sm:$0xff]  ;;  %v9455_v34 = vcombine.low %v2987_v63, %v2995_v52  ;;  %v3019_v52 = vld [vmem:[%s11371_s4 + $0x9a8] sm:$0xff] }
 0x5a0   : > { %v9505_v19 = vcombine.low %v3036_v43, %v3044_v55  ;;  %v3027_v43 = vld [vmem:[%s11371_s4 + $0x9e8] sm:$0xff]  ;;  %v3068_v55 = vld [vmem:[%s11371_s4 + $0xb30] sm:$0xff] }
 0x5a1   : > { %14845 = vst [vmem:[#allocation94_spill] sm:$0xff] %v13566_v21  ;;  %v13570_v2 = vadd.f32 %v13515_v58, %v6855_v15  ;;  %7388 = vmatmul.mubr.bf16.gmra.mrb[192].mxu1 %v9439_v5  ;;  %7701 = vmatmul.mubr.bf16.gmra.mrb[76].mxu0 %v9489_v30  ;;  %v9472_v30 = vcombine.high %v3003_v20, %v3011_v3  ;;  %v14850_v15 = vld [vmem:[#allocation86_spill] sm:$0xff] }
 0x5a2   : > { %7395 = vmatprep.mubr.bf16.mxu1 %v9456_v11  ;;  %7708 = vmatprep.mubr.bf16.mxu0 %v9506_v49  ;;  %v9522_v11 = vcombine.high %v3052_v28, %v3060_v13 }
 0x5a3   : > { %14847 = vst [vmem:[#allocation69_spill] sm:$0xff] %v13570_v2 }
 0x5a4   : > { %v6859_v31 = vpop.f32.mrb[88].mxu1  ;;  %v13576_v46 = vpop.f32.mrb[228].mxu0 }
 0x5a5   : > { %v6861_v48 = vpop.f32.mrb[89].mxu1  ;;  %v6860_v21 = vadd.f32 %v6859_v31, %v14848_v16  ;;  %v7174_v58 = vpop.f32.mrb[229].mxu0  ;;  %v3076_v31 = vld [vmem:[%s11371_s4 + $0xb70] sm:$0xff] }
 0x5a6   : > { %v6862_v5 = vpop.f32.mrb[90].mxu1  ;;  %v13579_v49 = vpop.f32.mrb[230].mxu0 }
 0x5a7   : > { %v13582_v8 = vadd.f32 %v13528_v10, %v6860_v21  ;;  %v6863_v9 = vadd.f32 %v6862_v5, %v14850_v15  ;;  %v6864_v48 = vpop.f32.mrb[91].mxu1  ;;  %v7177_v2 = vpop.f32.mrb[231].mxu0  ;;  %v14852_v21 = vld [vmem:[#allocation83_spill] sm:$0xff]  ;;  %v9471_v5 = vcombine.low %v3003_v20, %v3011_v3 }
 0x5a8   : > { %v9521_v2 = vcombine.low %v3052_v28, %v3060_v13  ;;  %v3035_v3 = vld [vmem:[%s11371_s4 + $0xa28] sm:$0xff]  ;;  %v3084_v13 = vld [vmem:[%s11371_s4 + $0xbb0] sm:$0xff] }
 0x5a9   : > { %14849 = vst [vmem:[#allocation66_spill] sm:$0xff] %v13582_v8  ;;  %v13586_v63 = vadd.f32 %v13531_v23, %v6863_v9  ;;  %7396 = vmatmul.mubr.bf16.gmra.mrb[196].mxu1 %v9455_v34  ;;  %7709 = vmatmul.mubr.bf16.gmra.mrb[80].mxu0 %v9505_v19  ;;  %v9488_v19 = vcombine.high %v3019_v52, %v3027_v43  ;;  %v14854_v9 = vld [vmem:[#allocation52_spill] sm:$0xff]  ;;  %v3043_v28 = vld [vmem:[%s11371_s4 + $0xa68] sm:$0xff] }
 0x5aa   : > { %7403 = vmatprep.mubr.bf16.mxu1 %v9472_v30  ;;  %7716 = vmatprep.mubr.bf16.mxu0 %v9522_v11  ;;  %v9538_v30 = vcombine.high %v3068_v55, %v3076_v31 }
 0x5ab   : > { %14851 = vst [vmem:[#allocation27_spill] sm:$0xff] %v13586_v63 }
 0x5ac   : > { %v6867_v16 = vpop.f32.mrb[92].mxu1  ;;  %v13592_v58 = vpop.f32.mrb[232].mxu0 }
 0x5ad   : > { %v6869_v10 = vpop.f32.mrb[93].mxu1  ;;  %v6868_v8 = vadd.f32 %v6867_v16, %v14852_v21  ;;  %v7182_v23 = vpop.f32.mrb[233].mxu0  ;;  %v3092_v16 = vld [vmem:[%s11371_s4 + $0xbf0] sm:$0xff] }
 0x5ae   : > { %v6870_v34 = vpop.f32.mrb[94].mxu1  ;;  %v13595_v11 = vpop.f32.mrb[234].mxu0 }
 0x5af   : > { %v13598_v15 = vadd.f32 %v13544_v45, %v6868_v8  ;;  %v6871_v48 = vadd.f32 %v6870_v34, %v14854_v9  ;;  %v6872_v10 = vpop.f32.mrb[95].mxu1  ;;  %v7185_v63 = vpop.f32.mrb[235].mxu0  ;;  %v14856_v8 = vld [vmem:[#allocation55_spill] sm:$0xff]  ;;  %v9487_v34 = vcombine.low %v3019_v52, %v3027_v43 }
 0x5b0   : > { %v9537_v63 = vcombine.low %v3068_v55, %v3076_v31  ;;  %v3051_v43 = vld [vmem:[%s11371_s4 + $0xaa8] sm:$0xff]  ;;  %v3100_v31 = vld [vmem:[%s11371_s4 + $0xc30] sm:$0xff] }
 0x5b1   : > { %14853 = vst [vmem:[#allocation72_spill] sm:$0xff] %v13598_v15  ;;  %v13602_v20 = vadd.f32 %v13547_v29, %v6871_v48  ;;  %7404 = vmatmul.mubr.bf16.gmra.mrb[200].mxu1 %v9471_v5  ;;  %7717 = vmatmul.mubr.bf16.gmra.mrb[84].mxu0 %v9521_v2  ;;  %v9504_v2 = vcombine.high %v3035_v3, %v3043_v28  ;;  %v14858_v48 = vld [vmem:[#allocation50_spill] sm:$0xff] }
 0x5b2   : > { %7411 = vmatprep.mubr.bf16.mxu1 %v9488_v19  ;;  %7724 = vmatprep.mubr.bf16.mxu0 %v9538_v30  ;;  %v9554_v19 = vcombine.high %v3084_v13, %v3092_v16  ;;  %v3059_v55 = vld [vmem:[%s11371_s4 + $0xae8] sm:$0xff] }
 0x5b3   : > { %14855 = vst [vmem:[#allocation68_spill] sm:$0xff] %v13602_v20 }
 0x5b4   : > { %v6875_v21 = vpop.f32.mrb[96].mxu1  ;;  %v13608_v23 = vpop.f32.mrb[236].mxu0 }
 0x5b5   : > { %v6877_v45 = vpop.f32.mrb[97].mxu1  ;;  %v6876_v15 = vadd.f32 %v6875_v21, %v14856_v8  ;;  %v7190_v29 = vpop.f32.mrb[237].mxu0  ;;  %v3108_v21 = vld [vmem:[%s11371_s4 + $0xc70] sm:$0xff] }
 0x5b6   : > { %v6878_v5 = vpop.f32.mrb[98].mxu1  ;;  %v13611_v30 = vpop.f32.mrb[238].mxu0 }
 0x5b7   : > { %v13614_v9 = vadd.f32 %v13560_v12, %v6876_v15  ;;  %v6879_v10 = vadd.f32 %v6878_v5, %v14858_v48  ;;  %v6880_v45 = vpop.f32.mrb[99].mxu1  ;;  %v7193_v20 = vpop.f32.mrb[239].mxu0  ;;  %v14860_v15 = vld [vmem:[#allocation48_spill] sm:$0xff]  ;;  %v9503_v5 = vcombine.low %v3035_v3, %v3043_v28  ;;  %v3067_v28 = vld [vmem:[%s11371_s4 + $0xb28] sm:$0xff] }
 0x5b8   : > { %v9553_v20 = vcombine.low %v3084_v13, %v3092_v16  ;;  %v3075_v13 = vld [vmem:[%s11371_s4 + $0xb68] sm:$0xff]  ;;  %v3116_v16 = vld [vmem:[%s11371_s4 + $0xcb0] sm:$0xff] }
 0x5b9   : > { %14857 = vst [vmem:[#allocation65_spill] sm:$0xff] %v13614_v9  ;;  %v13618_v52 = vadd.f32 %v13563_v50, %v6879_v10  ;;  %7412 = vmatmul.mubr.bf16.gmra.mrb[204].mxu1 %v9487_v34  ;;  %7725 = vmatmul.mubr.bf16.gmra.mrb[88].mxu0 %v9537_v63  ;;  %v9520_v63 = vcombine.high %v3051_v43, %v3059_v55  ;;  %v14862_v10 = vld [vmem:[#allocation85_spill] sm:$0xff] }
 0x5ba   : > { %7419 = vmatprep.mubr.bf16.mxu1 %v9504_v2  ;;  %7732 = vmatprep.mubr.bf16.mxu0 %v9554_v19  ;;  %v9570_v2 = vcombine.high %v3100_v31, %v3108_v21 }
 0x5bb   : > { %14859 = vst [vmem:[#allocation74_spill] sm:$0xff] %v13618_v52 }
 0x5bc   : > { %v6883_v8 = vpop.f32.mrb[100].mxu1  ;;  %v13624_v29 = vpop.f32.mrb[240].mxu0 }
 0x5bd   : > { %v6885_v12 = vpop.f32.mrb[101].mxu1  ;;  %v6884_v9 = vadd.f32 %v6883_v8, %v14860_v15  ;;  %v7198_v50 = vpop.f32.mrb[241].mxu0  ;;  %v3124_v8 = vld [vmem:[%s11371_s4 + $0xcf0] sm:$0xff] }
 0x5be   : > { %v6886_v34 = vpop.f32.mrb[102].mxu1  ;;  %v13627_v19 = vpop.f32.mrb[242].mxu0 }
 0x5bf   : > { %v13630_v48 = vadd.f32 %v13576_v46, %v6884_v9  ;;  %v6887_v45 = vadd.f32 %v6886_v34, %v14862_v10  ;;  %v6888_v12 = vpop.f32.mrb[103].mxu1  ;;  %v7201_v52 = vpop.f32.mrb[243].mxu0  ;;  %v14864_v9 = vld [vmem:[#allocation82_spill] sm:$0xff]  ;;  %v9519_v34 = vcombine.low %v3051_v43, %v3059_v55 }
 0x5c0   : > { %v9569_v52 = vcombine.low %v3100_v31, %v3108_v21  ;;  %v3083_v55 = vld [vmem:[%s11371_s4 + $0xba8] sm:$0xff]  ;;  %v3132_v21 = vld [vmem:[%s11371_s4 + $0xd30] sm:$0xff] }
 0x5c1   : > { %14861 = vst [vmem:[#allocation71_spill] sm:$0xff] %v13630_v48  ;;  %v13634_v3 = vadd.f32 %v13579_v49, %v6887_v45  ;;  %7420 = vmatmul.mubr.bf16.gmra.mrb[208].mxu1 %v9503_v5  ;;  %7733 = vmatmul.mubr.bf16.gmra.mrb[92].mxu0 %v9553_v20  ;;  %v9536_v20 = vcombine.high %v3067_v28, %v3075_v13  ;;  %v14866_v45 = vld [vmem:[#allocation57_spill] sm:$0xff]  ;;  %v3091_v31 = vld [vmem:[%s11371_s4 + $0xbe8] sm:$0xff] }
 0x5c2   : > { %7427 = vmatprep.mubr.bf16.mxu1 %v9520_v63  ;;  %7740 = vmatprep.mubr.bf16.mxu0 %v9570_v2  ;;  %v9586_v63 = vcombine.high %v3116_v16, %v3124_v8 }
 0x5c3   : > { %14863 = vst [vmem:[#allocation28_spill] sm:$0xff] %v13634_v3 }
 0x5c4   : > { %v6891_v15 = vpop.f32.mrb[104].mxu1  ;;  %v13640_v50 = vpop.f32.mrb[244].mxu0 }
 0x5c5   : > { %v6893_v46 = vpop.f32.mrb[105].mxu1  ;;  %v6892_v48 = vadd.f32 %v6891_v15, %v14864_v9  ;;  %v7206_v49 = vpop.f32.mrb[245].mxu0  ;;  %v3140_v15 = vld [vmem:[%s11371_s4 + $0xd70] sm:$0xff] }
 0x5c6   : > { %v6894_v5 = vpop.f32.mrb[106].mxu1  ;;  %v13643_v2 = vpop.f32.mrb[246].mxu0 }
 0x5c7   : > { %v13646_v10 = vadd.f32 %v13592_v58, %v6892_v48  ;;  %v6895_v12 = vadd.f32 %v6894_v5, %v14866_v45  ;;  %v6896_v46 = vpop.f32.mrb[107].mxu1  ;;  %v7209_v3 = vpop.f32.mrb[247].mxu0  ;;  %v14868_v48 = vld [vmem:[#allocation54_spill] sm:$0xff]  ;;  %v9535_v5 = vcombine.low %v3067_v28, %v3075_v13 }
 0x5c8   : > { %v9585_v3 = vcombine.low %v3116_v16, %v3124_v8  ;;  %v3099_v13 = vld [vmem:[%s11371_s4 + $0xc28] sm:$0xff]  ;;  %v3148_v8 = vld [vmem:[%s11371_s4 + $0xdb0] sm:$0xff] }
 0x5c9   : > { %14865 = vst [vmem:[#allocation30_spill] sm:$0xff] %v13646_v10  ;;  %v13650_v43 = vadd.f32 %v13595_v11, %v6895_v12  ;;  %7428 = vmatmul.mubr.bf16.gmra.mrb[212].mxu1 %v9519_v34  ;;  %7741 = vmatmul.mubr.bf16.gmra.mrb[96].mxu0 %v9569_v52  ;;  %v9552_v52 = vcombine.high %v3083_v55, %v3091_v31  ;;  %v14870_v12 = vld [vmem:[#allocation92_spill] sm:$0xff]  ;;  %v3107_v16 = vld [vmem:[%s11371_s4 + $0xc68] sm:$0xff] }
 0x5ca   : > { %7435 = vmatprep.mubr.bf16.mxu1 %v9536_v20  ;;  %7748 = vmatprep.mubr.bf16.mxu0 %v9586_v63  ;;  %v9602_v20 = vcombine.high %v3132_v21, %v3140_v15 }
 0x5cb   : > { %14867 = vst [vmem:[#allocation73_spill] sm:$0xff] %v13650_v43 }
 0x5cc   : > { %v6899_v9 = vpop.f32.mrb[108].mxu1  ;;  %v13656_v49 = vpop.f32.mrb[248].mxu0 }
 0x5cd   : > { %v6901_v58 = vpop.f32.mrb[109].mxu1  ;;  %v6900_v10 = vadd.f32 %v6899_v9, %v14868_v48  ;;  %v7214_v11 = vpop.f32.mrb[249].mxu0  ;;  %v3156_v9 = vld [vmem:[%s11371_s4 + $0xdf0] sm:$0xff] }
 0x5ce   : > { %v6902_v34 = vpop.f32.mrb[110].mxu1  ;;  %v13659_v63 = vpop.f32.mrb[250].mxu0 }
 0x5cf   : > { %v13662_v45 = vadd.f32 %v13608_v23, %v6900_v10  ;;  %v6903_v46 = vadd.f32 %v6902_v34, %v14870_v12  ;;  %v6904_v58 = vpop.f32.mrb[111].mxu1  ;;  %v7217_v43 = vpop.f32.mrb[251].mxu0  ;;  %v14872_v10 = vld [vmem:[#allocation89_spill] sm:$0xff]  ;;  %v9551_v34 = vcombine.low %v3083_v55, %v3091_v31  ;;  %v3115_v31 = vld [vmem:[%s11371_s4 + $0xca8] sm:$0xff] }
 0x5d0   : > { %v9601_v43 = vcombine.low %v3132_v21, %v3140_v15  ;;  %v3123_v21 = vld [vmem:[%s11371_s4 + $0xce8] sm:$0xff]  ;;  %v3164_v15 = vld [vmem:[%s11371_s4 + $0xe30] sm:$0xff] }
 0x5d1   : > { %14869 = vst [vmem:[#allocation70_spill] sm:$0xff] %v13662_v45  ;;  %v13666_v28 = vadd.f32 %v13611_v30, %v6903_v46  ;;  %7436 = vmatmul.mubr.bf16.gmra.mrb[216].mxu1 %v9535_v5  ;;  %7749 = vmatmul.mubr.bf16.gmra.mrb[100].mxu0 %v9585_v3  ;;  %v9568_v3 = vcombine.high %v3099_v13, %v3107_v16  ;;  %v14874_v46 = vld [vmem:[#allocation58_spill] sm:$0xff] }
 0x5d2   : > { %7443 = vmatprep.mubr.bf16.mxu1 %v9552_v52  ;;  %7756 = vmatprep.mubr.bf16.mxu0 %v9602_v20  ;;  %v9618_v52 = vcombine.high %v3148_v8, %v3156_v9 }
 0x5d3   : > { %14871 = vst [vmem:[#allocation76_spill] sm:$0xff] %v13666_v28 }
 0x5d4   : > { %v6907_v48 = vpop.f32.mrb[112].mxu1  ;;  %v13672_v11 = vpop.f32.mrb[252].mxu0 }
 0x5d5   : > { %v6909_v23 = vpop.f32.mrb[113].mxu1  ;;  %v6908_v45 = vadd.f32 %v6907_v48, %v14872_v10  ;;  %v7222_v30 = vpop.f32.mrb[253].mxu0  ;;  %v3172_v48 = vld [vmem:[%s11371_s4 + $0xe70] sm:$0xff] }
 0x5d6   : > { %v6910_v5 = vpop.f32.mrb[114].mxu1  ;;  %v13675_v20 = vpop.f32.mrb[254].mxu0 }
 0x5d7   : > { %v13678_v12 = vadd.f32 %v13624_v29, %v6908_v45  ;;  %v6911_v58 = vadd.f32 %v6910_v5, %v14874_v46  ;;  %v6912_v23 = vpop.f32.mrb[115].mxu1  ;;  %v7225_v28 = vpop.f32.mrb[255].mxu0  ;;  %v14876_v45 = vld [vmem:[#allocation61_spill] sm:$0xff]  ;;  %v9567_v5 = vcombine.low %v3099_v13, %v3107_v16  ;;  %v3131_v16 = vld [vmem:[%s11371_s4 + $0xd28] sm:$0xff] }
 0x5d8   : > { %v9617_v28 = vcombine.low %v3148_v8, %v3156_v9  ;;  %v3139_v8 = vld [vmem:[%s11371_s4 + $0xd68] sm:$0xff]  ;;  %v3180_v9 = vld [vmem:[%s11371_s4 + $0xeb0] sm:$0xff] }
 0x5d9   : > { %14873 = vst [vmem:[#allocation32_spill] sm:$0xff] %v13678_v12  ;;  %v13682_v55 = vadd.f32 %v13627_v19, %v6911_v58  ;;  %7444 = vmatmul.mubr.bf16.gmra.mrb[220].mxu1 %v9551_v34  ;;  %7757 = vmatmul.mubr.bf16.gmra.mrb[104].mxu0 %v9601_v43  ;;  %v9584_v43 = vcombine.high %v3115_v31, %v3123_v21  ;;  %v14878_v58 = vld [vmem:[#allocation56_spill] sm:$0xff] }
 0x5da   : > { %7451 = vmatprep.mubr.bf16.mxu1 %v9568_v3  ;;  %7764 = vmatprep.mubr.bf16.mxu0 %v9618_v52  ;;  %v9634_v3 = vcombine.high %v3164_v15, %v3172_v48 }
 0x5db   : > { %14875 = vst [vmem:[#allocation31_spill] sm:$0xff] %v13682_v55 }
 0x5dc   : > { %v6915_v10 = vpop.f32.mrb[116].mxu1  ;;  %v13688_v30 = vpop.f32.mrb[0].mxu0 }
 0x5dd   : > { %v6917_v29 = vpop.f32.mrb[117].mxu1  ;;  %v6916_v12 = vadd.f32 %v6915_v10, %v14876_v45  ;;  %v7552_v19 = vpop.f32.mrb[1].mxu0  ;;  %v3188_v10 = vld [vmem:[%s11371_s4 + $0xef0] sm:$0xff] }
 0x5de   : > { %v6918_v34 = vpop.f32.mrb[118].mxu1  ;;  %v13691_v52 = vpop.f32.mrb[2].mxu0 }
 0x5df   : > { %v13694_v46 = vadd.f32 %v13640_v50, %v6916_v12  ;;  %v6919_v23 = vadd.f32 %v6918_v34, %v14878_v58  ;;  %v6920_v29 = vpop.f32.mrb[119].mxu1  ;;  %v7555_v55 = vpop.f32.mrb[3].mxu0  ;;  %v14880_v50 = vld [vmem:[#allocation53_spill] sm:$0xff]  ;;  %v9583_v34 = vcombine.low %v3115_v31, %v3123_v21  ;;  %v14881_v58 = vld [vmem:[#allocation91_spill] sm:$0xff] }
 0x5e0   : > { %v9633_v55 = vcombine.low %v3164_v15, %v3172_v48  ;;  %v3147_v21 = vld [vmem:[%s11371_s4 + $0xda8] sm:$0xff]  ;;  %v3196_v48 = vld [vmem:[%s11371_s4 + $0xf30] sm:$0xff] }
 0x5e1   : > { %14877 = vst [vmem:[#allocation29_spill] sm:$0xff] %v13694_v46  ;;  %v13698_v13 = vadd.f32 %v13643_v2, %v6919_v23  ;;  %7452 = vmatmul.mubr.bf16.gmra.mrb[224].mxu1 %v9567_v5  ;;  %7765 = vmatmul.mubr.bf16.gmra.mrb[108].mxu0 %v9617_v28  ;;  %v9600_v28 = vcombine.high %v3131_v16, %v3139_v8  ;;  %v3155_v15 = vld [vmem:[%s11371_s4 + $0xde8] sm:$0xff] }
 0x5e2   : > { %7459 = vmatprep.mubr.bf16.mxu1 %v9584_v43  ;;  %7772 = vmatprep.mubr.bf16.mxu0 %v9634_v3  ;;  %v9650_v43 = vcombine.high %v3180_v9, %v3188_v10 }
 0x5e3   : > { %14879 = vst [vmem:[#allocation75_spill] sm:$0xff] %v13698_v13 }
 0x5e4   : > { %v6923_v45 = vpop.f32.mrb[120].mxu1  ;;  %v13704_v19 = vpop.f32.mrb[4].mxu0 }
 0x5e5   : > { %v6924_v12 = vadd.f32 %v6923_v45, %v14880_v50  ;;  %v6925_v46 = vpop.f32.mrb[121].mxu1  ;;  %v7560_v2 = vpop.f32.mrb[5].mxu0 }
 0x5e6   : > { %v6926_v5 = vpop.f32.mrb[122].mxu1  ;;  %v13707_v3 = vpop.f32.mrb[6].mxu0  ;;  %v3204_v46 = vld [vmem:[%s11371_s4 + $0xf70] sm:$0xff] }
 0x5e7   : > { %v6927_v23 = vadd.f32 %v6926_v5, %v14881_v58  ;;  %v13711_v29 = vadd.f32 %v13656_v49, %v6924_v12  ;;  %v6928_v13 = vpop.f32.mrb[123].mxu1  ;;  %v7563_v45 = vpop.f32.mrb[7].mxu0  ;;  %v14884_v5 = vld [vmem:[#allocation88_spill] sm:$0xff]  ;;  %v9599_v12 = vcombine.low %v3131_v16, %v3139_v8  ;;  %v3163_v8 = vld [vmem:[%s11371_s4 + $0xe28] sm:$0xff] }
 0x5e8   : > { %v9649_v13 = vcombine.low %v3180_v9, %v3188_v10  ;;  %v3171_v9 = vld [vmem:[%s11371_s4 + $0xe68] sm:$0xff]  ;;  %v3212_v10 = vld [vmem:[%s11371_s4 + $0xfb0] sm:$0xff] }
 0x5e9   : > { %14882 = vst [vmem:[#allocation26_spill] sm:$0xff] %v13711_v29  ;;  %v13714_v31 = vadd.f32 %v13659_v63, %v6927_v23  ;;  %7460 = vmatmul.mubr.bf16.gmra.mrb[228].mxu1 %v9583_v34  ;;  %7773 = vmatmul.mubr.bf16.gmra.mrb[112].mxu0 %v9633_v55  ;;  %v9616_v55 = vcombine.high %v3147_v21, %v3155_v15  ;;  %v14885_v23 = vld [vmem:[#allocation63_spill] sm:$0xff] }
 0x5ea   : > { %7467 = vmatprep.mubr.bf16.mxu1 %v9600_v28  ;;  %7780 = vmatprep.mubr.bf16.mxu0 %v9650_v43  ;;  %v9666_v28 = vcombine.high %v3196_v48, %v3204_v46 }
 0x5eb   : > { %14883 = vst [vmem:[#allocation37_spill] sm:$0xff] %v13714_v31 }
 0x5ec   : > { %v6931_v50 = vpop.f32.mrb[124].mxu1  ;;  %v13720_v2 = vpop.f32.mrb[8].mxu0 }
 0x5ed   : > { %v6932_v58 = vadd.f32 %v6931_v50, %v14884_v5  ;;  %v6933_v49 = vpop.f32.mrb[125].mxu1  ;;  %v7568_v63 = vpop.f32.mrb[9].mxu0  ;;  %v3220_v5 = vld [vmem:[%s11371_s4 + $0xff0] sm:$0xff] }
 0x5ee   : > { %v6934_v34 = vpop.f32.mrb[126].mxu1  ;;  %v13723_v43 = vpop.f32.mrb[10].mxu0 }
 0x5ef   : > { %v6935_v45 = vadd.f32 %v6934_v34, %v14885_v23  ;;  %v13727_v31 = vadd.f32 %v13672_v11, %v6932_v58  ;;  %v6936_v29 = vpop.f32.mrb[127].mxu1  ;;  %v7571_v50 = vpop.f32.mrb[11].mxu0  ;;  %v14888_v34 = vld [vmem:[#allocation60_spill] sm:$0xff]  ;;  %v9615_v58 = vcombine.low %v3147_v21, %v3155_v15  ;;  %v3179_v15 = vld [vmem:[%s11371_s4 + $0xea8] sm:$0xff] }
 0x5f0   : > { %v9665_v29 = vcombine.low %v3196_v48, %v3204_v46  ;;  %v3187_v48 = vld [vmem:[%s11371_s4 + $0xee8] sm:$0xff]  ;;  %v2717_v46 = vld [vmem:[%s11371_s4 + $0x38] sm:$0xff] }
 0x5f1   : > { %14886 = vst [vmem:[#allocation34_spill] sm:$0xff] %v13727_v31  ;;  %v13730_v16 = vadd.f32 %v13675_v20, %v6935_v45  ;;  %7468 = vmatmul.mubr.bf16.gmra.mrb[232].mxu1 %v9599_v12  ;;  %7781 = vmatmul.mubr.bf16.gmra.mrb[116].mxu0 %v9649_v13  ;;  %v9632_v13 = vcombine.high %v3163_v8, %v3171_v9  ;;  %v14889_v45 = vld [vmem:[#allocation98_spill] sm:$0xff] }
 0x5f2   : > { %7475 = vmatprep.mubr.bf16.mxu1 %v9616_v55  ;;  %7788 = vmatprep.mubr.bf16.mxu0 %v9666_v28  ;;  %v9682_v55 = vcombine.high %v3212_v10, %v3220_v5 }
 0x5f3   : > { %14887 = vst [vmem:[#allocation35_spill] sm:$0xff] %v13730_v16 }
 0x5f4   : > { %v7261_v49 = vpop.f32.mrb[128].mxu1  ;;  %v13736_v63 = vpop.f32.mrb[12].mxu0 }
 0x5f5   : > { %v7262_v23 = vadd.f32 %v7261_v49, %v14888_v34  ;;  %v7263_v11 = vpop.f32.mrb[129].mxu1  ;;  %v7576_v20 = vpop.f32.mrb[13].mxu0  ;;  %v2725_v34 = vld [vmem:[%s11371_s4 + $0x78] sm:$0xff] }
 0x5f6   : > { %v7264_v12 = vpop.f32.mrb[130].mxu1  ;;  %v13739_v28 = vpop.f32.mrb[14].mxu0 }
 0x5f7   : > { %v7265_v50 = vadd.f32 %v7264_v12, %v14889_v45  ;;  %v13743_v16 = vadd.f32 %v13688_v30, %v7262_v23  ;;  %v7266_v31 = vpop.f32.mrb[131].mxu1  ;;  %v7579_v49 = vpop.f32.mrb[15].mxu0  ;;  %v9631_v23 = vcombine.low %v3163_v8, %v3171_v9  ;;  %v3195_v9 = vld [vmem:[%s11371_s4 + $0xf28] sm:$0xff] }
 0x5f8   : > { %v9681_v31 = vcombine.low %v3212_v10, %v3220_v5  ;;  %v3203_v10 = vld [vmem:[%s11371_s4 + $0xf68] sm:$0xff]  ;;  %v2733_v5 = vld [vmem:[%s11371_s4 + $0xb8] sm:$0xff] }
 0x5f9   : > { %v13746_v21 = vadd.f32 %v13691_v52, %v7265_v50  ;;  %7476 = vmatmul.mubr.bf16.gmra.mrb[236].mxu1 %v9615_v58  ;;  %7789 = vmatmul.mubr.bf16.gmra.mrb[120].mxu0 %v9665_v29  ;;  %v9648_v29 = vcombine.high %v3179_v15, %v3187_v48 }
 0x5fa   : > { %7483 = vmatprep.mubr.bf16.mxu1 %v9632_v13  ;;  %7796 = vmatprep.mubr.bf16.mxu0 %v9682_v55  ;;  %v9188_v13 = vcombine.high %v2717_v46, %v2725_v34 }
 0x5fc   : > { %v7269_v11 = vpop.f32.mrb[132].mxu1  ;;  %v13752_v20 = vpop.f32.mrb[16].mxu0 }
 0x5fd   : > { %v7270_v12 = vadd.f32 %v7269_v11, %v13185_v24  ;;  %v7271_v30 = vpop.f32.mrb[133].mxu1  ;;  %v7584_v52 = vpop.f32.mrb[17].mxu0  ;;  %v2741_v11 = vld [vmem:[%s11371_s4 + $0xf8] sm:$0xff] }
 0x5fe   : > { %v7272_v58 = vpop.f32.mrb[134].mxu1  ;;  %v13755_v55 = vpop.f32.mrb[18].mxu0 }
 0x5ff   : > { %v7273_v45 = vadd.f32 %v7272_v58, %v13188_v36  ;;  %v13759_v50 = vadd.f32 %v13704_v19, %v7270_v12  ;;  %v7274_v49 = vpop.f32.mrb[135].mxu1  ;;  %v7587_v24 = vpop.f32.mrb[19].mxu0  ;;  %v9647_v12 = vcombine.low %v3179_v15, %v3187_v48  ;;  %v9187_v58 = vcombine.low %v2717_v46, %v2725_v34  ;;  %v3211_v15 = vld [vmem:[%s11371_s4 + $0xfa8] sm:$0xff] }
 0x600   : > { %v3219_v48 = vld [vmem:[%s11371_s4 + $0xfe8] sm:$0xff] }
 0x601   : > { %v13762_v8 = vadd.f32 %v13707_v3, %v7273_v45  ;;  %7484 = vmatmul.mubr.bf16.gmra.mrb[240].mxu1 %v9631_v23  ;;  %7797 = vmatmul.mubr.bf16.gmra.mrb[124].mxu0 %v9681_v31  ;;  %v9664_v23 = vcombine.high %v3195_v9, %v3203_v10  ;;  %v9204_v31 = vcombine.high %v2733_v5, %v2741_v11 }
 0x602   : > { %7491 = vmatprep.mubr.bf16.mxu1 %v9648_v29  ;;  %7837 = vmatprep.mubr.bf16.mxu0 %v9188_v13 }
 0x603   : > { %14890 = vst [vmem:[#allocation33_spill] sm:$0xff] %v13762_v8 }
 0x604   : > { %v7277_v30 = vpop.f32.mrb[136].mxu1  ;;  %v13768_v52 = vpop.f32.mrb[20].mxu0 }
 0x605   : > { %v7278_v36 = vadd.f32 %v7277_v30, %v13200_v14  ;;  %v7279_v19 = vpop.f32.mrb[137].mxu1  ;;  %v7592_v3 = vpop.f32.mrb[21].mxu0  ;;  %v14891_v30 = vld [vmem:[#allocation95_spill] sm:$0xff] }
 0x606   : > { %v7280_v45 = vpop.f32.mrb[138].mxu1  ;;  %v13771_v29 = vpop.f32.mrb[22].mxu0 }
 0x607   : > { %v7281_v13 = vadd.f32 %v7280_v45, %v13204_v51  ;;  %v13775_v49 = vadd.f32 %v13720_v2, %v7278_v36  ;;  %v7282_v24 = vpop.f32.mrb[139].mxu1  ;;  %v7595_v8 = vpop.f32.mrb[23].mxu0  ;;  %v9663_v2 = vcombine.low %v3195_v9, %v3203_v10  ;;  %v9203_v36 = vcombine.low %v2733_v5, %v2741_v11  ;;  %v2757_v9 = vld [vmem:[%s11371_s4 + $0x178] sm:$0xff] }
 0x609   : > { %v13778_v14 = vadd.f32 %v13723_v43, %v7281_v13  ;;  %7492 = vmatmul.mubr.bf16.gmra.mrb[244].mxu1 %v9647_v12  ;;  %7838 = vmatmul.mubr.bf16.vlgmr.msra.gmra.mrb[128].mxu0 %v9187_v58  ;;  %v9680_v43 = vcombine.high %v3211_v15, %v3219_v48  ;;  %v14892_v12 = vld [vmem:[#allocation64_spill] sm:$0xff] }
 0x60a   : > { %7499 = vmatprep.mubr.bf16.mxu1 %v9664_v23  ;;  %7845 = vmatprep.mubr.bf16.mxu0 %v9204_v31 }
 0x60c   : > { %v7285_v46 = vpop.f32.mrb[140].mxu1  ;;  %v13782_v34 = vpop.f32.mrb[24].mxu0 }
 0x60d   : > { %v7286_v19 = vadd.f32 %v7285_v46, %v14891_v30  ;;  %v7287_v51 = vpop.f32.mrb[141].mxu1  ;;  %v7600_v8 = vpop.f32.mrb[25].mxu0  ;;  %v2749_v46 = vld [vmem:[%s11371_s4 + $0x138] sm:$0xff] }
 0x60e   : > { %v7288_v3 = vpop.f32.mrb[142].mxu1  ;;  %v7601_v45 = vpop.f32.mrb[26].mxu0  ;;  %v9220_v8 = vcombine.high %v2749_v46, %v2757_v9 }
 0x60f   : > { %v7289_v58 = vadd.f32 %v7288_v3, %v14892_v12  ;;  %v13787_v23 = vadd.f32 %v13736_v63, %v7286_v19  ;;  %v7290_v31 = vpop.f32.mrb[143].mxu1  ;;  %v7603_v13 = vpop.f32.mrb[27].mxu0  ;;  %v9679_v63 = vcombine.low %v3211_v15, %v3219_v48 }
 0x610   : > { %v9219_v13 = vcombine.low %v2749_v46, %v2757_v9 }
 0x611   : > { %v13790_v24 = vadd.f32 %v13739_v28, %v7289_v58  ;;  %7500 = vmatmul.mubr.bf16.gmra.mrb[248].mxu1 %v9663_v2  ;;  %7846 = vmatmul.mubr.bf16.gmra.mrb[132].mxu0 %v9203_v36  ;;  %v2765_v58 = vld [vmem:[%s11371_s4 + $0x1b8] sm:$0xff] }
 0x612   : > { %7507 = vmatprep.mubr.bf16.mxu1 %v9680_v43 }
 0x614   : > { %v7293_v10 = vpop.f32.mrb[144].mxu1  ;;  %v13794_v5 = vpop.f32.mrb[28].mxu0 }
 0x615   : > { %v7294_v11 = vadd.f32 %v7293_v10, %v13239_v1  ;;  %v7295_v30 = vpop.f32.mrb[145].mxu1  ;;  %v7608_v19 = vpop.f32.mrb[29].mxu0  ;;  %v2773_v1 = vld [vmem:[%s11371_s4 + $0x1f8] sm:$0xff] }
 0x616   : > { %v7296_v51 = vpop.f32.mrb[146].mxu1  ;;  %v7609_v3 = vpop.f32.mrb[30].mxu0  ;;  %v14893_v19 = vld [vmem:[#allocation67_spill] sm:$0xff] }
 0x617   : > { %v7297_v28 = vadd.f32 %v7296_v51, %v13244_v6  ;;  %v13799_v2 = vadd.f32 %v13752_v20, %v7294_v11  ;;  %v7298_v36 = vpop.f32.mrb[147].mxu1  ;;  %v7611_v43 = vpop.f32.mrb[31].mxu0  ;;  %v9236_v11 = vcombine.high %v2765_v58, %v2773_v1 }
 0x618   : > { %v2781_v36 = vld [vmem:[%s11371_s4 + $0x238] sm:$0xff] }
 0x619   : > { %v13802_v12 = vadd.f32 %v13755_v55, %v7297_v28  ;;  %7508 = vmatmul.mubr.bf16.gmra.mrb[252].mxu1 %v9679_v63 }
 0x61a   : > { %7853 = vmatprep.mubr.bf16.mxu1 %v9220_v8 }
 0x61c   : > { %v7301_v31 = vpop.f32.mrb[148].mxu1  ;;  %v13806_v15 = vpop.f32.mrb[32].mxu0 }
 0x61d   : > { %v7302_v48 = vadd.f32 %v7301_v31, %v13259_v59  ;;  %v7303_v6 = vpop.f32.mrb[149].mxu1  ;;  %v7616_v20 = vpop.f32.mrb[33].mxu0  ;;  %v2789_v59 = vld [vmem:[%s11371_s4 + $0x278] sm:$0xff] }
 0x61e   : > { %v7304_v10 = vpop.f32.mrb[150].mxu1  ;;  %v7617_v30 = vpop.f32.mrb[34].mxu0  ;;  %v9235_v6 = vcombine.low %v2765_v58, %v2773_v1  ;;  %v9252_v20 = vcombine.high %v2781_v36, %v2789_v59 }
 0x61f   : > { %v7305_v55 = vadd.f32 %v7304_v10, %v14893_v19  ;;  %v13811_v63 = vadd.f32 %v13768_v52, %v7302_v48  ;;  %v7306_v51 = vpop.f32.mrb[151].mxu1  ;;  %v7619_v8 = vpop.f32.mrb[35].mxu0 }
 0x620   : > { %v2797_v51 = vld [vmem:[%s11371_s4 + $0x2b8] sm:$0xff] }
 0x621   : > { %v13814_v28 = vadd.f32 %v13771_v29, %v7305_v55  ;;  %7854 = vmatmul.mubr.bf16.vlgmr.msra.gmra.mrb[0].mxu1 %v9219_v13  ;;  %v2805_v8 = vld [vmem:[%s11371_s4 + $0x2f8] sm:$0xff] }
 0x622   : > { %7861 = vmatprep.mubr.bf16.mxu1 %v9236_v11 }
 0x624   : > { %v7309_v43 = vpop.f32.mrb[152].mxu1  ;;  %v13818_v46 = vpop.f32.mrb[36].mxu0 }
 0x625   : > { %v7310_v9 = vadd.f32 %v7309_v43, %v13282_v22  ;;  %v7311_v31 = vpop.f32.mrb[153].mxu1  ;;  %v7624_v52 = vpop.f32.mrb[37].mxu0 }
 0x626   : > { %v7312_v48 = vpop.f32.mrb[154].mxu1  ;;  %v7625_v10 = vpop.f32.mrb[38].mxu0 }
 0x627   : > { %v7313_v29 = vadd.f32 %v7312_v48, %v13288_v42  ;;  %v13823_v13 = vadd.f32 %v13782_v34, %v7310_v9  ;;  %v7314_v11 = vpop.f32.mrb[155].mxu1  ;;  %v7627_v19 = vpop.f32.mrb[39].mxu0  ;;  %v9251_v42 = vcombine.low %v2781_v36, %v2789_v59  ;;  %v9268_v9 = vcombine.high %v2797_v51, %v2805_v8 }
 0x628   : > { %v2813_v11 = vld [vmem:[%s11371_s4 + $0x338] sm:$0xff] }
 0x629   : > { %v13825_v55 = vadd.f32 %v7601_v45, %v7313_v29  ;;  %7862 = vmatmul.mubr.bf16.gmra.mrb[4].mxu1 %v9235_v6  ;;  %v2821_v19 = vld [vmem:[%s11371_s4 + $0x378] sm:$0xff] }
 0x62a   : > { %7869 = vmatprep.mubr.bf16.mxu1 %v9252_v20 }
 0x62c   : > { %v7317_v22 = vpop.f32.mrb[156].mxu1  ;;  %v13829_v58 = vpop.f32.mrb[40].mxu0 }
 0x62d   : > { %v7318_v1 = vadd.f32 %v7317_v22, %v13306_v37  ;;  %v7319_v43 = vpop.f32.mrb[157].mxu1  ;;  %v7632_v31 = vpop.f32.mrb[41].mxu0 }
 0x62e   : > { %v7320_v34 = vpop.f32.mrb[158].mxu1  ;;  %v7633_v52 = vpop.f32.mrb[42].mxu0 }
 0x62f   : > { %v7321_v45 = vadd.f32 %v7320_v34, %v13312_v40  ;;  %v13834_v6 = vadd.f32 %v13794_v5, %v7318_v1  ;;  %v7322_v48 = vpop.f32.mrb[159].mxu1  ;;  %v7635_v20 = vpop.f32.mrb[43].mxu0  ;;  %v9267_v40 = vcombine.low %v2797_v51, %v2805_v8  ;;  %v9284_v1 = vcombine.high %v2813_v11, %v2821_v19 }
 0x630   : > { %v2829_v48 = vld [vmem:[%s11371_s4 + $0x3b8] sm:$0xff] }
 0x631   : > { %v13836_v29 = vadd.f32 %v7609_v3, %v7321_v45  ;;  %7870 = vmatmul.mubr.bf16.gmra.mrb[8].mxu1 %v9251_v42  ;;  %v2837_v20 = vld [vmem:[%s11371_s4 + $0x3f8] sm:$0xff] }
 0x632   : > { %7877 = vmatprep.mubr.bf16.mxu1 %v9268_v9 }
 0x634   : > { %v7325_v37 = vpop.f32.mrb[160].mxu1  ;;  %v13840_v36 = vpop.f32.mrb[44].mxu0 }
 0x635   : > { %v7326_v59 = vadd.f32 %v7325_v37, %v13330_v57  ;;  %v7327_v22 = vpop.f32.mrb[161].mxu1  ;;  %v7640_v43 = vpop.f32.mrb[45].mxu0 }
 0x636   : > { %v7328_v5 = vpop.f32.mrb[162].mxu1  ;;  %v7641_v31 = vpop.f32.mrb[46].mxu0 }
 0x637   : > { %v7329_v3 = vadd.f32 %v7328_v5, %v13336_v32  ;;  %v13845_v42 = vadd.f32 %v13806_v15, %v7326_v59  ;;  %v7330_v34 = vpop.f32.mrb[163].mxu1  ;;  %v7643_v9 = vpop.f32.mrb[47].mxu0  ;;  %v9283_v32 = vcombine.low %v2813_v11, %v2821_v19  ;;  %v9300_v59 = vcombine.high %v2829_v48, %v2837_v20 }
 0x638   : > { %v2845_v34 = vld [vmem:[%s11371_s4 + $0x438] sm:$0xff] }
 0x639   : > { %v13847_v45 = vadd.f32 %v7617_v30, %v7329_v3  ;;  %7878 = vmatmul.mubr.bf16.gmra.mrb[12].mxu1 %v9267_v40  ;;  %v2853_v9 = vld [vmem:[%s11371_s4 + $0x478] sm:$0xff] }
 0x63a   : > { %7885 = vmatprep.mubr.bf16.mxu1 %v9284_v1 }
 0x63c   : > { %v7333_v57 = vpop.f32.mrb[164].mxu1  ;;  %v13851_v51 = vpop.f32.mrb[48].mxu0 }
 0x63d   : > { %v7334_v8 = vadd.f32 %v7333_v57, %v13354_v0  ;;  %v7335_v37 = vpop.f32.mrb[165].mxu1  ;;  %v7648_v22 = vpop.f32.mrb[49].mxu0 }
 0x63e   : > { %v7336_v15 = vpop.f32.mrb[166].mxu1  ;;  %v7649_v43 = vpop.f32.mrb[50].mxu0 }
 0x63f   : > { %v7337_v30 = vadd.f32 %v7336_v15, %v13360_v54  ;;  %v13856_v40 = vadd.f32 %v13818_v46, %v7334_v8  ;;  %v7338_v5 = vpop.f32.mrb[167].mxu1  ;;  %v7651_v1 = vpop.f32.mrb[51].mxu0  ;;  %v9299_v54 = vcombine.low %v2829_v48, %v2837_v20  ;;  %v9316_v8 = vcombine.high %v2845_v34, %v2853_v9 }
 0x640   : > { %v2861_v5 = vld [vmem:[%s11371_s4 + $0x4b8] sm:$0xff] }
 0x641   : > { %v13858_v3 = vadd.f32 %v7625_v10, %v7337_v30  ;;  %7886 = vmatmul.mubr.bf16.gmra.mrb[16].mxu1 %v9283_v32  ;;  %v2869_v1 = vld [vmem:[%s11371_s4 + $0x4f8] sm:$0xff] }
 0x642   : > { %7893 = vmatprep.mubr.bf16.mxu1 %v9300_v59 }
 0x644   : > { %v7341_v0 = vpop.f32.mrb[168].mxu1  ;;  %v13862_v11 = vpop.f32.mrb[52].mxu0 }
 0x645   : > { %v7342_v19 = vadd.f32 %v7341_v0, %v13378_v4  ;;  %v7343_v57 = vpop.f32.mrb[169].mxu1  ;;  %v7656_v37 = vpop.f32.mrb[53].mxu0 }
 0x646   : > { %v7344_v46 = vpop.f32.mrb[170].mxu1  ;;  %v7657_v22 = vpop.f32.mrb[54].mxu0 }
 0x647   : > { %v7345_v10 = vadd.f32 %v7344_v46, %v13383_v26  ;;  %v13867_v32 = vadd.f32 %v13829_v58, %v7342_v19  ;;  %v7346_v15 = vpop.f32.mrb[171].mxu1  ;;  %v7659_v59 = vpop.f32.mrb[55].mxu0  ;;  %v9315_v26 = vcombine.low %v2845_v34, %v2853_v9  ;;  %v9332_v19 = vcombine.high %v2861_v5, %v2869_v1 }
 0x648   : > { %v2877_v15 = vld [vmem:[%s11371_s4 + $0x538] sm:$0xff] }
 0x649   : > { %v13869_v30 = vadd.f32 %v7633_v52, %v7345_v10  ;;  %7894 = vmatmul.mubr.bf16.gmra.mrb[20].mxu1 %v9299_v54  ;;  %v2885_v59 = vld [vmem:[%s11371_s4 + $0x578] sm:$0xff] }
 0x64a   : > { %7901 = vmatprep.mubr.bf16.mxu1 %v9316_v8 }
 0x64c   : > { %v7349_v4 = vpop.f32.mrb[172].mxu1  ;;  %v13873_v48 = vpop.f32.mrb[56].mxu0 }
 0x64d   : > { %v7350_v20 = vadd.f32 %v7349_v4, %v13398_v41  ;;  %v7351_v0 = vpop.f32.mrb[173].mxu1  ;;  %v7664_v57 = vpop.f32.mrb[57].mxu0 }
 0x64e   : > { %v7352_v58 = vpop.f32.mrb[174].mxu1  ;;  %v7665_v37 = vpop.f32.mrb[58].mxu0 }
 0x64f   : > { %v7353_v52 = vadd.f32 %v7352_v58, %v13403_v44  ;;  %v13878_v54 = vadd.f32 %v13840_v36, %v7350_v20  ;;  %v7354_v46 = vpop.f32.mrb[175].mxu1  ;;  %v7667_v8 = vpop.f32.mrb[59].mxu0  ;;  %v9331_v44 = vcombine.low %v2861_v5, %v2869_v1  ;;  %v9348_v20 = vcombine.high %v2877_v15, %v2885_v59 }
 0x650   : > { %v2893_v46 = vld [vmem:[%s11371_s4 + $0x5b8] sm:$0xff] }
 0x651   : > { %v13880_v10 = vadd.f32 %v7641_v31, %v7353_v52  ;;  %7902 = vmatmul.mubr.bf16.gmra.mrb[24].mxu1 %v9315_v26  ;;  %v2901_v8 = vld [vmem:[%s11371_s4 + $0x5f8] sm:$0xff] }
 0x652   : > { %7909 = vmatprep.mubr.bf16.mxu1 %v9332_v19 }
 0x654   : > { %v7357_v41 = vpop.f32.mrb[176].mxu1  ;;  %v13884_v34 = vpop.f32.mrb[60].mxu0 }
 0x655   : > { %v7358_v9 = vadd.f32 %v7357_v41, %v13418_v60  ;;  %v7359_v4 = vpop.f32.mrb[177].mxu1  ;;  %v7672_v0 = vpop.f32.mrb[61].mxu0 }
 0x656   : > { %v7360_v36 = vpop.f32.mrb[178].mxu1  ;;  %v7673_v57 = vpop.f32.mrb[62].mxu0 }
 0x657   : > { %v7361_v31 = vadd.f32 %v7360_v36, %v13423_v17  ;;  %v13889_v26 = vadd.f32 %v13851_v51, %v7358_v9  ;;  %v7362_v58 = vpop.f32.mrb[179].mxu1  ;;  %v7675_v19 = vpop.f32.mrb[63].mxu0  ;;  %v9347_v17 = vcombine.low %v2877_v15, %v2885_v59  ;;  %v9364_v9 = vcombine.high %v2893_v46, %v2901_v8 }
 0x658   : > { %v2909_v58 = vld [vmem:[%s11371_s4 + $0x638] sm:$0xff] }
 0x659   : > { %v13891_v52 = vadd.f32 %v7649_v43, %v7361_v31  ;;  %7910 = vmatmul.mubr.bf16.gmra.mrb[28].mxu1 %v9331_v44  ;;  %v2917_v19 = vld [vmem:[%s11371_s4 + $0x678] sm:$0xff] }
 0x65a   : > { %7917 = vmatprep.mubr.bf16.mxu1 %v9348_v20 }
 0x65c   : > { %v7365_v60 = vpop.f32.mrb[180].mxu1  ;;  %v13895_v5 = vpop.f32.mrb[64].mxu0 }
 0x65d   : > { %v7366_v1 = vadd.f32 %v7365_v60, %v13438_v27  ;;  %v7367_v41 = vpop.f32.mrb[181].mxu1  ;;  %v7680_v4 = vpop.f32.mrb[65].mxu0 }
 0x65e   : > { %v7368_v51 = vpop.f32.mrb[182].mxu1  ;;  %v7681_v0 = vpop.f32.mrb[66].mxu0 }
 0x65f   : > { %v7369_v43 = vadd.f32 %v7368_v51, %v13442_v33  ;;  %v13900_v44 = vadd.f32 %v13862_v11, %v7366_v1  ;;  %v7370_v36 = vpop.f32.mrb[183].mxu1  ;;  %v7683_v20 = vpop.f32.mrb[67].mxu0  ;;  %v9363_v33 = vcombine.low %v2893_v46, %v2901_v8  ;;  %v9380_v1 = vcombine.high %v2909_v58, %v2917_v19 }
 0x660   : > { %v2925_v36 = vld [vmem:[%s11371_s4 + $0x6b8] sm:$0xff] }
 0x661   : > { %v13902_v31 = vadd.f32 %v7657_v22, %v7369_v43  ;;  %7918 = vmatmul.mubr.bf16.gmra.mrb[32].mxu1 %v9347_v17  ;;  %v2933_v20 = vld [vmem:[%s11371_s4 + $0x6f8] sm:$0xff] }
 0x662   : > { %7925 = vmatprep.mubr.bf16.mxu1 %v9364_v9 }
 0x664   : > { %v7373_v27 = vpop.f32.mrb[184].mxu1  ;;  %v13906_v15 = vpop.f32.mrb[68].mxu0 }
 0x665   : > { %v7374_v59 = vadd.f32 %v7373_v27, %v13454_v35  ;;  %v7375_v60 = vpop.f32.mrb[185].mxu1  ;;  %v7688_v41 = vpop.f32.mrb[69].mxu0 }
 0x666   : > { %v7376_v11 = vpop.f32.mrb[186].mxu1  ;;  %v7689_v4 = vpop.f32.mrb[70].mxu0 }
 0x667   : > { %v7377_v22 = vadd.f32 %v7376_v11, %v13458_v47  ;;  %v13911_v17 = vadd.f32 %v13873_v48, %v7374_v59  ;;  %v7378_v51 = vpop.f32.mrb[187].mxu1  ;;  %v7691_v9 = vpop.f32.mrb[71].mxu0  ;;  %v9379_v47 = vcombine.low %v2909_v58, %v2917_v19  ;;  %v9396_v59 = vcombine.high %v2925_v36, %v2933_v20 }
 0x668   : > { %v2941_v51 = vld [vmem:[%s11371_s4 + $0x738] sm:$0xff] }
 0x669   : > { %v13913_v43 = vadd.f32 %v7665_v37, %v7377_v22  ;;  %7926 = vmatmul.mubr.bf16.gmra.mrb[36].mxu1 %v9363_v33  ;;  %v2949_v9 = vld [vmem:[%s11371_s4 + $0x778] sm:$0xff] }
 0x66a   : > { %7933 = vmatprep.mubr.bf16.mxu1 %v9380_v1 }
 0x66c   : > { %v7381_v35 = vpop.f32.mrb[188].mxu1  ;;  %v13917_v46 = vpop.f32.mrb[72].mxu0 }
 0x66d   : > { %v7382_v8 = vadd.f32 %v7381_v35, %v13470_v39  ;;  %v7383_v27 = vpop.f32.mrb[189].mxu1  ;;  %v7696_v60 = vpop.f32.mrb[73].mxu0 }
 0x66e   : > { %v7384_v48 = vpop.f32.mrb[190].mxu1  ;;  %v7697_v41 = vpop.f32.mrb[74].mxu0 }
 0x66f   : > { %v7385_v37 = vadd.f32 %v7384_v48, %v13474_v38  ;;  %v13922_v33 = vadd.f32 %v13884_v34, %v7382_v8  ;;  %v7386_v11 = vpop.f32.mrb[191].mxu1  ;;  %v7699_v1 = vpop.f32.mrb[75].mxu0  ;;  %v9395_v38 = vcombine.low %v2925_v36, %v2933_v20  ;;  %v9412_v8 = vcombine.high %v2941_v51, %v2949_v9 }
 0x670   : > { %v2957_v11 = vld [vmem:[%s11371_s4 + $0x7b8] sm:$0xff] }
 0x671   : > { %v13924_v22 = vadd.f32 %v7673_v57, %v7385_v37  ;;  %7934 = vmatmul.mubr.bf16.gmra.mrb[40].mxu1 %v9379_v47  ;;  %v2965_v1 = vld [vmem:[%s11371_s4 + $0x7f8] sm:$0xff] }
 0x672   : > { %7941 = vmatprep.mubr.bf16.mxu1 %v9396_v59 }
 0x674   : > { %v7389_v39 = vpop.f32.mrb[192].mxu1  ;;  %v13928_v58 = vpop.f32.mrb[76].mxu0 }
 0x675   : > { %v7390_v19 = vadd.f32 %v7389_v39, %v13486_v7  ;;  %v7391_v35 = vpop.f32.mrb[193].mxu1  ;;  %v7704_v27 = vpop.f32.mrb[77].mxu0 }
 0x676   : > { %v7392_v34 = vpop.f32.mrb[194].mxu1  ;;  %v7705_v60 = vpop.f32.mrb[78].mxu0 }
 0x677   : > { %v7393_v57 = vadd.f32 %v7392_v34, %v13490_v53  ;;  %v13933_v47 = vadd.f32 %v13895_v5, %v7390_v19  ;;  %v7394_v48 = vpop.f32.mrb[195].mxu1  ;;  %v7707_v59 = vpop.f32.mrb[79].mxu0  ;;  %v9411_v53 = vcombine.low %v2941_v51, %v2949_v9  ;;  %v9428_v19 = vcombine.high %v2957_v11, %v2965_v1 }
 0x678   : > { %v2973_v48 = vld [vmem:[%s11371_s4 + $0x838] sm:$0xff] }
 0x679   : > { %v13935_v37 = vadd.f32 %v7681_v0, %v7393_v57  ;;  %7942 = vmatmul.mubr.bf16.gmra.mrb[44].mxu1 %v9395_v38  ;;  %v2981_v59 = vld [vmem:[%s11371_s4 + $0x878] sm:$0xff] }
 0x67a   : > { %7949 = vmatprep.mubr.bf16.mxu1 %v9412_v8 }
 0x67c   : > { %v7397_v7 = vpop.f32.mrb[196].mxu1  ;;  %v13939_v36 = vpop.f32.mrb[80].mxu0 }
 0x67d   : > { %v7398_v20 = vadd.f32 %v7397_v7, %v13502_v62  ;;  %v7399_v39 = vpop.f32.mrb[197].mxu1  ;;  %v7712_v35 = vpop.f32.mrb[81].mxu0 }
 0x67e   : > { %v7400_v5 = vpop.f32.mrb[198].mxu1  ;;  %v7713_v27 = vpop.f32.mrb[82].mxu0 }
 0x67f   : > { %v7401_v0 = vadd.f32 %v7400_v5, %v13506_v61  ;;  %v13944_v38 = vadd.f32 %v13906_v15, %v7398_v20  ;;  %v7402_v34 = vpop.f32.mrb[199].mxu1  ;;  %v7715_v8 = vpop.f32.mrb[83].mxu0  ;;  %v9427_v61 = vcombine.low %v2957_v11, %v2965_v1  ;;  %v9444_v20 = vcombine.high %v2973_v48, %v2981_v59 }
 0x680   : > { %v2989_v34 = vld [vmem:[%s11371_s4 + $0x8b8] sm:$0xff] }
 0x681   : > { %v13946_v57 = vadd.f32 %v7689_v4, %v7401_v0  ;;  %7950 = vmatmul.mubr.bf16.gmra.mrb[48].mxu1 %v9411_v53  ;;  %v2997_v8 = vld [vmem:[%s11371_s4 + $0x8f8] sm:$0xff] }
 0x682   : > { %7957 = vmatprep.mubr.bf16.mxu1 %v9428_v19 }
 0x684   : > { %v7405_v62 = vpop.f32.mrb[200].mxu1  ;;  %v13950_v51 = vpop.f32.mrb[84].mxu0 }
 0x685   : > { %v7406_v9 = vadd.f32 %v7405_v62, %v13518_v18  ;;  %v7407_v7 = vpop.f32.mrb[201].mxu1  ;;  %v7720_v39 = vpop.f32.mrb[85].mxu0 }
 0x686   : > { %v7408_v15 = vpop.f32.mrb[202].mxu1  ;;  %v7721_v35 = vpop.f32.mrb[86].mxu0 }
 0x687   : > { %v7409_v4 = vadd.f32 %v7408_v15, %v13522_v56  ;;  %v13955_v53 = vadd.f32 %v13917_v46, %v7406_v9  ;;  %v7410_v5 = vpop.f32.mrb[203].mxu1  ;;  %v7723_v19 = vpop.f32.mrb[87].mxu0  ;;  %v9443_v56 = vcombine.low %v2973_v48, %v2981_v59  ;;  %v9460_v9 = vcombine.high %v2989_v34, %v2997_v8  ;;  %v14896_v15 = vld [vmem:[#allocation62_spill] sm:$0xff]  ;;  %v14899_v59 = vld [vmem:[#allocation59_spill] sm:$0xff] }
 0x688   : > { %v3005_v19 = vld [vmem:[%s11371_s4 + $0x938] sm:$0xff] }
 0x689   : > { %14894 = vst [vmem:[#allocation77_spill] sm:$0xff] %v13955_v53  ;;  %v13957_v0 = vadd.f32 %v7697_v41, %v7409_v4  ;;  %7958 = vmatmul.mubr.bf16.gmra.mrb[52].mxu1 %v9427_v61 }
 0x68a   : > { %7965 = vmatprep.mubr.bf16.mxu1 %v9444_v20 }
 0x68b   : > { %14895 = vst [vmem:[#allocation78_spill] sm:$0xff] %v13957_v0  ;;  %v3013_v0 = vld [vmem:[%s11371_s4 + $0x978] sm:$0xff] }
 0x68c   : > { %v7413_v18 = vpop.f32.mrb[204].mxu1  ;;  %v13961_v11 = vpop.f32.mrb[88].mxu0 }
 0x68d   : > { %v7414_v1 = vadd.f32 %v7413_v18, %v13534_v25  ;;  %v7415_v62 = vpop.f32.mrb[205].mxu1  ;;  %v7728_v7 = vpop.f32.mrb[89].mxu0 }
 0x68e   : > { %v7416_v46 = vpop.f32.mrb[206].mxu1  ;;  %v7729_v39 = vpop.f32.mrb[90].mxu0  ;;  %v9459_v7 = vcombine.low %v2989_v34, %v2997_v8  ;;  %v14903_v8 = vld [vmem:[#allocation94_spill] sm:$0xff] }
 0x68f   : > { %v7417_v41 = vadd.f32 %v7416_v46, %v14896_v15  ;;  %v13966_v61 = vadd.f32 %v13928_v58, %v7414_v1  ;;  %v7418_v20 = vpop.f32.mrb[207].mxu1  ;;  %v7731_v4 = vpop.f32.mrb[91].mxu0  ;;  %v9476_v1 = vcombine.high %v3005_v19, %v3013_v0 }
 0x690   : > { %v14900_v20 = vld [vmem:[#allocation97_spill] sm:$0xff] }
 0x691   : > { %14897 = vst [vmem:[#allocation79_spill] sm:$0xff] %v13966_v61  ;;  %v13968_v5 = vadd.f32 %v7705_v60, %v7417_v41  ;;  %7966 = vmatmul.mubr.bf16.gmra.mrb[56].mxu1 %v9443_v56  ;;  %v3029_v61 = vld [vmem:[%s11371_s4 + $0x9f8] sm:$0xff] }
 0x692   : > { %7973 = vmatprep.mubr.bf16.mxu1 %v9460_v9 }
 0x693   : > { %14898 = vst [vmem:[#allocation80_spill] sm:$0xff] %v13968_v5  ;;  %v3021_v5 = vld [vmem:[%s11371_s4 + $0x9b8] sm:$0xff] }
 0x694   : > { %v7421_v25 = vpop.f32.mrb[208].mxu1  ;;  %v13972_v48 = vpop.f32.mrb[92].mxu0 }
 0x695   : > { %v7422_v18 = vadd.f32 %v7421_v25, %v14899_v59  ;;  %v7423_v62 = vpop.f32.mrb[209].mxu1  ;;  %v7736_v46 = vpop.f32.mrb[93].mxu0 }
 0x696   : > { %v7424_v58 = vpop.f32.mrb[210].mxu1  ;;  %v7737_v15 = vpop.f32.mrb[94].mxu0  ;;  %v9475_v46 = vcombine.low %v3005_v19, %v3013_v0  ;;  %v14907_v19 = vld [vmem:[#allocation66_spill] sm:$0xff] }
 0x697   : > { %v7425_v60 = vadd.f32 %v7424_v58, %v14900_v20  ;;  %v13977_v56 = vadd.f32 %v13939_v36, %v7422_v18  ;;  %v7426_v9 = vpop.f32.mrb[211].mxu1  ;;  %v7739_v41 = vpop.f32.mrb[95].mxu0  ;;  %v9492_v18 = vcombine.high %v3021_v5, %v3029_v61 }
 0x698   : > { %v14904_v9 = vld [vmem:[#allocation69_spill] sm:$0xff] }
 0x699   : > { %14901 = vst [vmem:[#allocation81_spill] sm:$0xff] %v13977_v56  ;;  %v13979_v4 = vadd.f32 %v7713_v27, %v7425_v60  ;;  %7974 = vmatmul.mubr.bf16.gmra.mrb[60].mxu1 %v9459_v7  ;;  %v3045_v56 = vld [vmem:[%s11371_s4 + $0xa78] sm:$0xff] }
 0x69a   : > { %7981 = vmatprep.mubr.bf16.mxu1 %v9476_v1 }
 0x69b   : > { %14902 = vst [vmem:[#allocation84_spill] sm:$0xff] %v13979_v4  ;;  %v3037_v4 = vld [vmem:[%s11371_s4 + $0xa38] sm:$0xff] }
 0x69c   : > { %v7429_v25 = vpop.f32.mrb[212].mxu1  ;;  %v13983_v34 = vpop.f32.mrb[96].mxu0 }
 0x69d   : > { %v7430_v59 = vadd.f32 %v7429_v25, %v14903_v8  ;;  %v7431_v62 = vpop.f32.mrb[213].mxu1  ;;  %v7744_v58 = vpop.f32.mrb[97].mxu0 }
 0x69e   : > { %v7432_v36 = vpop.f32.mrb[214].mxu1  ;;  %v7745_v20 = vpop.f32.mrb[98].mxu0  ;;  %v9491_v58 = vcombine.low %v3021_v5, %v3029_v61  ;;  %v14911_v5 = vld [vmem:[#allocation72_spill] sm:$0xff] }
 0x69f   : > { %v7433_v27 = vadd.f32 %v7432_v36, %v14904_v9  ;;  %v13988_v7 = vadd.f32 %v13950_v51, %v7430_v59  ;;  %v7434_v1 = vpop.f32.mrb[215].mxu1  ;;  %v7747_v60 = vpop.f32.mrb[99].mxu0  ;;  %v9508_v59 = vcombine.high %v3037_v4, %v3045_v56 }
 0x6a0   : > { %v14908_v1 = vld [vmem:[#allocation27_spill] sm:$0xff] }
 0x6a1   : > { %14905 = vst [vmem:[#allocation87_spill] sm:$0xff] %v13988_v7  ;;  %v13990_v41 = vadd.f32 %v7721_v35, %v7433_v27  ;;  %7982 = vmatmul.mubr.bf16.gmra.mrb[64].mxu1 %v9475_v46  ;;  %v3061_v7 = vld [vmem:[%s11371_s4 + $0xaf8] sm:$0xff] }
 0x6a2   : > { %7989 = vmatprep.mubr.bf16.mxu1 %v9492_v18 }
 0x6a3   : > { %14906 = vst [vmem:[#allocation90_spill] sm:$0xff] %v13990_v41  ;;  %v3053_v41 = vld [vmem:[%s11371_s4 + $0xab8] sm:$0xff] }
 0x6a4   : > { %v7437_v25 = vpop.f32.mrb[216].mxu1  ;;  %v13994_v0 = vpop.f32.mrb[100].mxu0 }
 0x6a5   : > { %v7438_v8 = vadd.f32 %v7437_v25, %v14907_v19  ;;  %v7439_v62 = vpop.f32.mrb[217].mxu1  ;;  %v7752_v36 = vpop.f32.mrb[101].mxu0 }
 0x6a6   : > { %v7440_v51 = vpop.f32.mrb[218].mxu1  ;;  %v7753_v9 = vpop.f32.mrb[102].mxu0  ;;  %v9507_v36 = vcombine.low %v3037_v4, %v3045_v56  ;;  %v14915_v4 = vld [vmem:[#allocation65_spill] sm:$0xff] }
 0x6a7   : > { %v7441_v35 = vadd.f32 %v7440_v51, %v14908_v1  ;;  %v13999_v46 = vadd.f32 %v13961_v11, %v7438_v8  ;;  %v7442_v18 = vpop.f32.mrb[219].mxu1  ;;  %v7755_v27 = vpop.f32.mrb[103].mxu0  ;;  %v9524_v11 = vcombine.high %v3053_v41, %v3061_v7 }
 0x6a8   : > { %v14912_v18 = vld [vmem:[#allocation68_spill] sm:$0xff] }
 0x6a9   : > { %14909 = vst [vmem:[#allocation93_spill] sm:$0xff] %v13999_v46  ;;  %v14001_v60 = vadd.f32 %v7729_v39, %v7441_v35  ;;  %7990 = vmatmul.mubr.bf16.gmra.mrb[68].mxu1 %v9491_v58  ;;  %v3077_v46 = vld [vmem:[%s11371_s4 + $0xb78] sm:$0xff] }
 0x6aa   : > { %7997 = vmatprep.mubr.bf16.mxu1 %v9508_v59 }
 0x6ab   : > { %14910 = vst [vmem:[#allocation96_spill] sm:$0xff] %v14001_v60  ;;  %v3069_v60 = vld [vmem:[%s11371_s4 + $0xb38] sm:$0xff] }
 0x6ac   : > { %v7445_v25 = vpop.f32.mrb[220].mxu1  ;;  %v7758_v61 = vpop.f32.mrb[104].mxu0 }
 0x6ad   : > { %v7446_v19 = vadd.f32 %v7445_v25, %v14911_v5  ;;  %v7447_v62 = vpop.f32.mrb[221].mxu1  ;;  %v7760_v51 = vpop.f32.mrb[105].mxu0 }
 0x6ae   : > { %v7448_v1 = vpop.f32.mrb[222].mxu1  ;;  %v7761_v8 = vpop.f32.mrb[106].mxu0  ;;  %v9523_v51 = vcombine.low %v3053_v41, %v3061_v7  ;;  %v14919_v41 = vld [vmem:[#allocation71_spill] sm:$0xff] }
 0x6af   : > { %v7449_v27 = vadd.f32 %v7448_v1, %v14912_v18  ;;  %v14008_v39 = vadd.f32 %v13972_v48, %v7446_v19  ;;  %v7450_v58 = vpop.f32.mrb[223].mxu1  ;;  %v7763_v59 = vpop.f32.mrb[107].mxu0  ;;  %v9540_v19 = vcombine.high %v3069_v60, %v3077_v46 }
 0x6b0   : > { %v14916_v58 = vld [vmem:[#allocation74_spill] sm:$0xff] }
 0x6b1   : > { %14913 = vst [vmem:[#allocation99_spill] sm:$0xff] %v14008_v39  ;;  %v14010_v35 = vadd.f32 %v7737_v15, %v7449_v27  ;;  %7998 = vmatmul.mubr.bf16.gmra.mrb[72].mxu1 %v9507_v36  ;;  %v3093_v39 = vld [vmem:[%s11371_s4 + $0xbf8] sm:$0xff] }
 0x6b2   : > { %8005 = vmatprep.mubr.bf16.mxu1 %v9524_v11 }
 0x6b3   : > { %14914 = vst [vmem:[#allocation100_spill] sm:$0xff] %v14010_v35  ;;  %v3085_v35 = vld [vmem:[%s11371_s4 + $0xbb8] sm:$0xff] }
 0x6b4   : > { %v7453_v25 = vpop.f32.mrb[224].mxu1  ;;  %v14014_v56 = vpop.f32.mrb[108].mxu0 }
 0x6b5   : > { %v7454_v5 = vadd.f32 %v7453_v25, %v14915_v4  ;;  %v7455_v62 = vpop.f32.mrb[225].mxu1  ;;  %v7768_v1 = vpop.f32.mrb[109].mxu0 }
 0x6b6   : > { %v7456_v48 = vpop.f32.mrb[226].mxu1  ;;  %v7769_v18 = vpop.f32.mrb[110].mxu0  ;;  %v9539_v1 = vcombine.low %v3069_v60, %v3077_v46  ;;  %v14923_v60 = vld [vmem:[#allocation30_spill] sm:$0xff] }
 0x6b7   : > { %v7457_v15 = vadd.f32 %v7456_v48, %v14916_v58  ;;  %v14019_v36 = vadd.f32 %v13983_v34, %v7454_v5  ;;  %v7458_v11 = vpop.f32.mrb[227].mxu1  ;;  %v7771_v27 = vpop.f32.mrb[111].mxu0  ;;  %v9556_v5 = vcombine.high %v3085_v35, %v3093_v39 }
 0x6b8   : > { %v14920_v11 = vld [vmem:[#allocation28_spill] sm:$0xff] }
 0x6b9   : > { %14917 = vst [vmem:[#allocation103_spill] sm:$0xff] %v14019_v36  ;;  %v14021_v59 = vadd.f32 %v7745_v20, %v7457_v15  ;;  %8006 = vmatmul.mubr.bf16.gmra.mrb[76].mxu1 %v9523_v51  ;;  %v3109_v36 = vld [vmem:[%s11371_s4 + $0xc78] sm:$0xff] }
 0x6ba   : > { %8013 = vmatprep.mubr.bf16.mxu1 %v9540_v19 }
 0x6bb   : > { %14918 = vst [vmem:[#allocation104_spill] sm:$0xff] %v14021_v59  ;;  %v3101_v59 = vld [vmem:[%s11371_s4 + $0xc38] sm:$0xff] }
 0x6bc   : > { %v7461_v25 = vpop.f32.mrb[228].mxu1  ;;  %v14025_v7 = vpop.f32.mrb[112].mxu0 }
 0x6bd   : > { %v7462_v4 = vadd.f32 %v7461_v25, %v14919_v41  ;;  %v7463_v62 = vpop.f32.mrb[229].mxu1  ;;  %v7776_v48 = vpop.f32.mrb[113].mxu0 }
 0x6be   : > { %v7464_v34 = vpop.f32.mrb[230].mxu1  ;;  %v7777_v58 = vpop.f32.mrb[114].mxu0  ;;  %v9555_v48 = vcombine.low %v3085_v35, %v3093_v39  ;;  %v14927_v35 = vld [vmem:[#allocation70_spill] sm:$0xff] }
 0x6bf   : > { %v7465_v20 = vadd.f32 %v7464_v34, %v14920_v11  ;;  %v14030_v51 = vadd.f32 %v13994_v0, %v7462_v4  ;;  %v7466_v19 = vpop.f32.mrb[231].mxu1  ;;  %v7779_v15 = vpop.f32.mrb[115].mxu0  ;;  %v9572_v4 = vcombine.high %v3101_v59, %v3109_v36 }
 0x6c1   : > { %14921 = vst [vmem:[#allocation107_spill] sm:$0xff] %v14030_v51  ;;  %v14032_v27 = vadd.f32 %v7753_v9, %v7465_v20  ;;  %8014 = vmatmul.mubr.bf16.gmra.mrb[80].mxu1 %v9539_v1  ;;  %v14925_v1 = vld [vmem:[#allocation73_spill] sm:$0xff] }
 0x6c2   : > { %8021 = vmatprep.mubr.bf16.mxu1 %v9556_v5  ;;  %v3125_v51 = vld [vmem:[%s11371_s4 + $0xcf8] sm:$0xff] }
 0x6c3   : > { %14922 = vst [vmem:[#allocation108_spill] sm:$0xff] %v14032_v27  ;;  %v3117_v27 = vld [vmem:[%s11371_s4 + $0xcb8] sm:$0xff] }
 0x6c4   : > { %v7469_v25 = vpop.f32.mrb[232].mxu1  ;;  %v14036_v46 = vpop.f32.mrb[116].mxu0 }
 0x6c5   : > { %v7470_v41 = vadd.f32 %v7469_v25, %v14923_v60  ;;  %v7471_v62 = vpop.f32.mrb[233].mxu1  ;;  %v7784_v34 = vpop.f32.mrb[117].mxu0 }
 0x6c6   : > { %v7472_v0 = vpop.f32.mrb[234].mxu1  ;;  %v14039_v11 = vpop.f32.mrb[118].mxu0 }
 0x6c7   : > { %v14041_v9 = vadd.f32 %v7758_v61, %v7470_v41  ;;  %v7473_v5 = vadd.f32 %v7472_v0, %v14925_v1  ;;  %v7474_v20 = vpop.f32.mrb[235].mxu1  ;;  %v7787_v19 = vpop.f32.mrb[119].mxu0  ;;  %v9571_v61 = vcombine.low %v3101_v59, %v3109_v36  ;;  %v9588_v1 = vcombine.high %v3117_v27, %v3125_v51  ;;  %v14931_v59 = vld [vmem:[#allocation32_spill] sm:$0xff] }
 0x6c9   : > { %14924 = vst [vmem:[#allocation111_spill] sm:$0xff] %v14041_v9  ;;  %v14044_v15 = vadd.f32 %v7761_v8, %v7473_v5  ;;  %8022 = vmatmul.mubr.bf16.gmra.mrb[84].mxu1 %v9555_v48  ;;  %v14928_v8 = vld [vmem:[#allocation76_spill] sm:$0xff] }
 0x6ca   : > { %8029 = vmatprep.mubr.bf16.mxu1 %v9572_v4 }
 0x6cb   : > { %14926 = vst [vmem:[#allocation112_spill] sm:$0xff] %v14044_v15  ;;  %v3133_v15 = vld [vmem:[%s11371_s4 + $0xd38] sm:$0xff] }
 0x6cc   : > { %v7477_v25 = vpop.f32.mrb[236].mxu1  ;;  %v14048_v39 = vpop.f32.mrb[120].mxu0 }
 0x6cd   : > { %v7478_v60 = vadd.f32 %v7477_v25, %v14927_v35  ;;  %v7479_v62 = vpop.f32.mrb[237].mxu1  ;;  %v7792_v41 = vpop.f32.mrb[121].mxu0  ;;  %v3141_v25 = vld [vmem:[%s11371_s4 + $0xd78] sm:$0xff] }
 0x6ce   : > { %v7480_v34 = vpop.f32.mrb[238].mxu1  ;;  %v14051_v0 = vpop.f32.mrb[122].mxu0 }
 0x6cf   : > { %v7481_v5 = vadd.f32 %v7480_v34, %v14928_v8  ;;  %v7482_v48 = vpop.f32.mrb[239].mxu1  ;;  %v7795_v4 = vpop.f32.mrb[123].mxu0  ;;  %v14055_v20 = vadd.f32 %v14014_v56, %v7478_v60  ;;  %v9587_v34 = vcombine.low %v3117_v27, %v3125_v51  ;;  %v9604_v56 = vcombine.high %v3133_v15, %v3141_v25  ;;  %v14932_v60 = vld [vmem:[#allocation31_spill] sm:$0xff]  ;;  %v2646_v51 = vld [vmem:[#allocation2] sm:$0xff] }
 0x6d1   : > { %14929 = vst [vmem:[#allocation115_spill] sm:$0xff] %v14055_v20  ;;  %8030 = vmatmul.mubr.bf16.gmra.mrb[88].mxu1 %v9571_v61  ;;  %v14057_v19 = vadd.f32 %v7769_v18, %v7481_v5  ;;  %v3149_v20 = vld [vmem:[%s11371_s4 + $0xdb8] sm:$0xff] }
 0x6d2   : > { %8037 = vmatprep.mubr.bf16.mxu1 %v9588_v1 }
 0x6d3   : > { %14930 = vst [vmem:[#allocation116_spill] sm:$0xff] %v14057_v19 }
 0x6d4   : > { %v7485_v35 = vpop.f32.mrb[240].mxu1  ;;  %v14061_v36 = vpop.f32.mrb[124].mxu0 }
 0x6d5   : > { %v7486_v62 = vadd.f32 %v7485_v35, %v14931_v59  ;;  %v7487_v41 = vpop.f32.mrb[241].mxu1  ;;  %v7800_v8 = vpop.f32.mrb[125].mxu0  ;;  %v3157_v35 = vld [vmem:[%s11371_s4 + $0xdf8] sm:$0xff] }
 0x6d6   : > { %v7488_v48 = vpop.f32.mrb[242].mxu1  ;;  %v14064_v4 = vpop.f32.mrb[126].mxu0  ;;  %v14935_v41 = vld [vmem:[#allocation29_spill] sm:$0xff] }
 0x6d7   : > { %v7489_v18 = vadd.f32 %v7488_v48, %v14932_v60  ;;  %v7490_v61 = vpop.f32.mrb[243].mxu1  ;;  %v7803_v1 = vpop.f32.mrb[127].mxu0  ;;  %v14068_v5 = vadd.f32 %v14025_v7, %v7486_v62  ;;  %v9603_v60 = vcombine.low %v3133_v15, %v3141_v25  ;;  %v2647_v7 = vld [vmem:[#allocation2 + $0x8] sm:$0xff]  ;;  %v3165_v15 = vld [vmem:[%s11371_s4 + $0xe38] sm:$0xff] }
 0x6d8   : > { %v3173_v25 = vld [vmem:[%s11371_s4 + $0xe78] sm:$0xff] }
 0x6d9   : > { %14933 = vst [vmem:[#allocation119_spill] sm:$0xff] %v14068_v5  ;;  %8038 = vmatmul.mubr.bf16.gmra.mrb[92].mxu1 %v9587_v34  ;;  %v14070_v19 = vadd.f32 %v7777_v58, %v7489_v18  ;;  %v9620_v58 = vcombine.high %v3149_v20, %v3157_v35 }
 0x6da   : > { %8045 = vmatprep.mubr.bf16.mxu1 %v9604_v56  ;;  %v14936_v56 = vld [vmem:[#allocation75_spill] sm:$0xff] }
 0x6db   : > { %14934 = vst [vmem:[#allocation120_spill] sm:$0xff] %v14070_v19 }
 0x6dc   : > { %v7493_v59 = vpop.f32.mrb[244].mxu1  ;;  %v7839_v27 = vpop.f32.mrb[128].mxu0 }
 0x6dd   : > { %v7494_v8 = vadd.f32 %v7493_v59, %v14935_v41  ;;  %v7840_v9 = vadd.f32 %v7839_v27, %v13743_v16  ;;  %v7495_v53 = vpop.f32.mrb[245].mxu1  ;;  %v7841_v48 = vpop.f32.mrb[129].mxu0  ;;  %v14937_v41 = vld [vmem:[#allocation26_spill] sm:$0xff] }
 0x6de   : > { %v7496_v61 = vpop.f32.mrb[246].mxu1  ;;  %v7842_v62 = vpop.f32.mrb[130].mxu0 }
 0x6df   : > { %v8094_v34 = vadd.f32 %v7840_v9, %v2646_v51  ;;  %v7497_v18 = vadd.f32 %v7496_v61, %v14936_v56  ;;  %v7843_v1 = vadd.f32 %v7842_v62, %v13746_v21  ;;  %v7498_v19 = vpop.f32.mrb[247].mxu1  ;;  %v7844_v5 = vpop.f32.mrb[131].mxu0  ;;  %v14079_v59 = vadd.f32 %v14036_v46, %v7494_v8  ;;  %v2648_v51 = vld [vmem:[#allocation2 + $0x10] sm:$0xff]  ;;  %v14938_v62 = vld [vmem:[#allocation37_spill] sm:$0xff] }
 0x6e0   : > { %v9619_v8 = vcombine.low %v3149_v20, %v3157_v35  ;;  %v9636_v61 = vcombine.high %v3165_v15, %v3173_v25  ;;  %v3181_v35 = vld [vmem:[%s11371_s4 + $0xeb8] sm:$0xff] }
 0x6e1   : > { %8158 = vst [vmem:[#allocation2] sm:$0xff] %v8094_v34  ;;  %v8095_v16 = vadd.f32 %v7843_v1, %v2647_v7  ;;  %8046 = vmatmul.mubr.bf16.gmra.mrb[96].mxu1 %v9603_v60  ;;  %v14082_v53 = vadd.f32 %v14039_v11, %v7497_v18  ;;  %v2649_v60 = vld [vmem:[#allocation2 + $0x18] sm:$0xff] }
 0x6e2   : > { %8053 = vmatprep.mubr.bf16.mxu1 %v9620_v58  ;;  %v14939_v34 = vld [vmem:[#allocation33_spill] sm:$0xff] }
 0x6e3   : > { %8159 = vst [vmem:[#allocation2 + $0x8] sm:$0xff] %v8095_v16 }
 0x6e4   : > { %v7501_v9 = vpop.f32.mrb[248].mxu1  ;;  %v7847_v27 = vpop.f32.mrb[132].mxu0 }
 0x6e5   : > { %v7502_v21 = vadd.f32 %v7501_v9, %v14937_v41  ;;  %v7848_v19 = vadd.f32 %v7847_v27, %v13759_v50  ;;  %v7503_v5 = vpop.f32.mrb[249].mxu1  ;;  %v7849_v46 = vpop.f32.mrb[133].mxu0  ;;  %v3189_v9 = vld [vmem:[%s11371_s4 + $0xef8] sm:$0xff]  ;;  %v14940_v27 = vld [vmem:[#allocation34_spill] sm:$0xff] }
 0x6e6   : > { %v7504_v48 = vpop.f32.mrb[250].mxu1  ;;  %v7850_v11 = vpop.f32.mrb[134].mxu0  ;;  %v9635_v5 = vcombine.low %v3165_v15, %v3173_v25  ;;  %v14941_v46 = vld [vmem:[#allocation35_spill] sm:$0xff] }
 0x6e7   : > { %v8096_v7 = vadd.f32 %v7848_v19, %v2648_v51  ;;  %v7505_v58 = vadd.f32 %v7504_v48, %v14938_v62  ;;  %v7851_v56 = vadd.f32 %v7850_v11, %v14939_v34  ;;  %v7506_v18 = vpop.f32.mrb[251].mxu1  ;;  %v14091_v1 = vadd.f32 %v14048_v39, %v7502_v21  ;;  %v7852_v16 = vpop.f32.mrb[135].mxu0  ;;  %v3197_v11 = vld [vmem:[%s11371_s4 + $0xf38] sm:$0xff]  ;;  %v2651_v34 = vld [vmem:[#allocation2 + $0x28] sm:$0xff] }
 0x6e8   : > { %v9652_v21 = vcombine.high %v3181_v35, %v3189_v9 }
 0x6e9   : > { %8160 = vst [vmem:[#allocation2 + $0x10] sm:$0xff] %v8096_v7  ;;  %v8097_v50 = vadd.f32 %v7851_v56, %v2649_v60  ;;  %8054 = vmatmul.mubr.bf16.gmra.mrb[100].mxu1 %v9619_v8  ;;  %v14094_v20 = vadd.f32 %v14051_v0, %v7505_v58  ;;  %v2650_v7 = vld [vmem:[#allocation2 + $0x20] sm:$0xff]  ;;  %v9651_v58 = vcombine.low %v3181_v35, %v3189_v9  ;;  %v2653_v9 = vld [vmem:[#allocation2 + $0x38] sm:$0xff] }
 0x6ea   : > { %8061 = vmatprep.mubr.bf16.mxu1 %v9636_v61  ;;  %v3205_v61 = vld [vmem:[%s11371_s4 + $0xf78] sm:$0xff] }
 0x6eb   : > { %8161 = vst [vmem:[#allocation2 + $0x18] sm:$0xff] %v8097_v50  ;;  %v9668_v18 = vcombine.high %v3197_v11, %v3205_v61  ;;  %v9667_v35 = vcombine.low %v3197_v11, %v3205_v61 }
 0x6ec   : > { %v7509_v51 = vpop.f32.mrb[252].mxu1 }
 0x6ed   : > { %v7510_v41 = vadd.f32 %v7509_v51, %v14940_v27  ;;  %v7511_v19 = vpop.f32.mrb[253].mxu1  ;;  %v3213_v51 = vld [vmem:[%s11371_s4 + $0xfb8] sm:$0xff] }
 0x6ee   : > { %v7512_v39 = vpop.f32.mrb[254].mxu1  ;;  %v3221_v27 = vld [vmem:[%s11371_s4 + $0xff8] sm:$0xff] }
 0x6ef   : > { %v7513_v48 = vadd.f32 %v7512_v39, %v14941_v46  ;;  %v7514_v60 = vpop.f32.mrb[255].mxu1  ;;  %v14101_v8 = vadd.f32 %v14061_v36, %v7510_v41  ;;  %v2652_v41 = vld [vmem:[#allocation2 + $0x30] sm:$0xff] }
 0x6f1   : > { %8062 = vmatmul.mubr.bf16.gmra.mrb[104].mxu1 %v9635_v5  ;;  %v14104_v0 = vadd.f32 %v14064_v4, %v7513_v48 }
 0x6f2   : > { %8069 = vmatprep.mubr.bf16.mxu1 %v9652_v21  ;;  %v9684_v21 = vcombine.high %v3213_v51, %v3221_v27 }
 0x6f4   : > { %v7855_v62 = vpop.f32.mrb[0].mxu1 }
 0x6f5   : > { %v7856_v15 = vadd.f32 %v7855_v62, %v13775_v49  ;;  %v7857_v25 = vpop.f32.mrb[1].mxu1 }
 0x6f6   : > { %v7858_v56 = vpop.f32.mrb[2].mxu1 }
 0x6f7   : > { %v8098_v36 = vadd.f32 %v7856_v15, %v2650_v7  ;;  %v7859_v16 = vadd.f32 %v7858_v56, %v13778_v14  ;;  %v7860_v50 = vpop.f32.mrb[3].mxu1  ;;  %v2654_v7 = vld [vmem:[#allocation2 + $0x40] sm:$0xff] }
 0x6f9   : > { %8162 = vst [vmem:[#allocation2 + $0x20] sm:$0xff] %v8098_v36  ;;  %v8099_v4 = vadd.f32 %v7859_v16, %v2651_v34  ;;  %8070 = vmatmul.mubr.bf16.gmra.mrb[108].mxu1 %v9651_v58  ;;  %v2655_v58 = vld [vmem:[#allocation2 + $0x48] sm:$0xff] }
 0x6fa   : > { %8077 = vmatprep.mubr.bf16.mxu1 %v9668_v18  ;;  %v2656_v18 = vld [vmem:[#allocation2 + $0x50] sm:$0xff] }
 0x6fb   : > { %8163 = vst [vmem:[#allocation2 + $0x28] sm:$0xff] %v8099_v4  ;;  %v2657_v4 = vld [vmem:[#allocation2 + $0x58] sm:$0xff] }
 0x6fc   : > { %v7863_v19 = vpop.f32.mrb[4].mxu1 }
 0x6fd   : > { %v7864_v49 = vadd.f32 %v7863_v19, %v13787_v23  ;;  %v7865_v5 = vpop.f32.mrb[5].mxu1  ;;  %v9683_v23 = vcombine.low %v3213_v51, %v3221_v27 }
 0x6fe   : > { %v7866_v39 = vpop.f32.mrb[6].mxu1 }
 0x6ff   : > { %v8100_v46 = vadd.f32 %v7864_v49, %v2652_v41  ;;  %v7867_v14 = vadd.f32 %v7866_v39, %v13790_v24  ;;  %v7868_v48 = vpop.f32.mrb[7].mxu1 }
 0x700   : > { %v2660_v48 = vld [vmem:[#allocation2 + $0x70] sm:$0xff] }
 0x701   : > { %8164 = vst [vmem:[#allocation2 + $0x30] sm:$0xff] %v8100_v46  ;;  %v8101_v60 = vadd.f32 %v7867_v14, %v2653_v9  ;;  %8078 = vmatmul.mubr.bf16.gmra.mrb[112].mxu1 %v9667_v35  ;;  %v2659_v9 = vld [vmem:[#allocation2 + $0x68] sm:$0xff] }
 0x702   : > { %8085 = vmatprep.mubr.bf16.mxu1 %v9684_v21 }
 0x703   : > { %8165 = vst [vmem:[#allocation2 + $0x38] sm:$0xff] %v8101_v60 }
 0x704   : > { %v7871_v62 = vpop.f32.mrb[8].mxu1 }
 0x705   : > { %v7872_v15 = vadd.f32 %v7871_v62, %v13799_v2  ;;  %v7873_v25 = vpop.f32.mrb[9].mxu1  ;;  %v2661_v62 = vld [vmem:[#allocation2 + $0x78] sm:$0xff] }
 0x706   : > { %v7874_v11 = vpop.f32.mrb[10].mxu1 }
 0x707   : > { %v8102_v61 = vadd.f32 %v7872_v15, %v2654_v7  ;;  %v7875_v34 = vadd.f32 %v7874_v11, %v13802_v12  ;;  %v7876_v56 = vpop.f32.mrb[11].mxu1  ;;  %v2658_v12 = vld [vmem:[#allocation2 + $0x60] sm:$0xff] }
 0x708   : > { %v2662_v11 = vld [vmem:[#allocation2 + $0x80] sm:$0xff]  ;;  %v2663_v56 = vld [vmem:[#allocation2 + $0x88] sm:$0xff] }
 0x709   : > { %8166 = vst [vmem:[#allocation2 + $0x40] sm:$0xff] %v8102_v61  ;;  %v8103_v24 = vadd.f32 %v7875_v34, %v2655_v58  ;;  %8086 = vmatmul.mubr.bf16.gmra.mrb[116].mxu1 %v9683_v23 }
 0x70b   : > { %8167 = vst [vmem:[#allocation2 + $0x48] sm:$0xff] %v8103_v24 }
 0x70c   : > { %v7879_v36 = vpop.f32.mrb[12].mxu1 }
 0x70d   : > { %v7880_v16 = vadd.f32 %v7879_v36, %v13811_v63  ;;  %v7881_v50 = vpop.f32.mrb[13].mxu1 }
 0x70e   : > { %v7882_v41 = vpop.f32.mrb[14].mxu1  ;;  %v2664_v50 = vld [vmem:[#allocation2 + $0x90] sm:$0xff] }
 0x70f   : > { %v8104_v2 = vadd.f32 %v7880_v16, %v2656_v18  ;;  %v7883_v51 = vadd.f32 %v7882_v41, %v13814_v28  ;;  %v7884_v27 = vpop.f32.mrb[15].mxu1 }
 0x711   : > { %8168 = vst [vmem:[#allocation2 + $0x50] sm:$0xff] %v8104_v2  ;;  %v8105_v19 = vadd.f32 %v7883_v51, %v2657_v4  ;;  %v2665_v2 = vld [vmem:[#allocation2 + $0x98] sm:$0xff] }
 0x713   : > { %8169 = vst [vmem:[#allocation2 + $0x58] sm:$0xff] %v8105_v19 }
 0x714   : > { %v7887_v49 = vpop.f32.mrb[16].mxu1 }
 0x715   : > { %v7888_v5 = vadd.f32 %v7887_v49, %v13823_v13  ;;  %v7889_v35 = vpop.f32.mrb[17].mxu1  ;;  %v2666_v49 = vld [vmem:[#allocation2 + $0xa0] sm:$0xff] }
 0x716   : > { %v7890_v39 = vpop.f32.mrb[18].mxu1 }
 0x717   : > { %v8106_v21 = vadd.f32 %v7888_v5, %v2658_v12  ;;  %v7891_v63 = vadd.f32 %v7890_v39, %v13825_v55  ;;  %v7892_v46 = vpop.f32.mrb[19].mxu1 }
 0x719   : > { %8170 = vst [vmem:[#allocation2 + $0x60] sm:$0xff] %v8106_v21  ;;  %v8107_v14 = vadd.f32 %v7891_v63, %v2659_v9  ;;  %v2667_v9 = vld [vmem:[#allocation2 + $0xa8] sm:$0xff] }
 0x71b   : > { %8171 = vst [vmem:[#allocation2 + $0x68] sm:$0xff] %v8107_v14  ;;  %v2668_v14 = vld [vmem:[#allocation2 + $0xb0] sm:$0xff] }
 0x71c   : > { %v7895_v28 = vpop.f32.mrb[20].mxu1 }
 0x71d   : > { %v7896_v60 = vadd.f32 %v7895_v28, %v13834_v6  ;;  %v7897_v7 = vpop.f32.mrb[21].mxu1 }
 0x71e   : > { %v7898_v15 = vpop.f32.mrb[22].mxu1 }
 0x71f   : > { %v8108_v25 = vadd.f32 %v7896_v60, %v2660_v48  ;;  %v7899_v13 = vadd.f32 %v7898_v15, %v13836_v29  ;;  %v7900_v23 = vpop.f32.mrb[23].mxu1  ;;  %v2669_v60 = vld [vmem:[#allocation2 + $0xb8] sm:$0xff] }
 0x721   : > { %8172 = vst [vmem:[#allocation2 + $0x70] sm:$0xff] %v8108_v25  ;;  %v8109_v58 = vadd.f32 %v7899_v13, %v2661_v62  ;;  %v2670_v13 = vld [vmem:[#allocation2 + $0xc0] sm:$0xff] }
 0x723   : > { %8173 = vst [vmem:[#allocation2 + $0x78] sm:$0xff] %v8109_v58 }
 0x724   : > { %v7903_v55 = vpop.f32.mrb[24].mxu1 }
 0x725   : > { %v7904_v61 = vadd.f32 %v7903_v55, %v13845_v42  ;;  %v7905_v34 = vpop.f32.mrb[25].mxu1 }
 0x726   : > { %v7906_v24 = vpop.f32.mrb[26].mxu1 }
 0x727   : > { %v8110_v18 = vadd.f32 %v7904_v61, %v2662_v11  ;;  %v7907_v6 = vadd.f32 %v7906_v24, %v13847_v45  ;;  %v7908_v36 = vpop.f32.mrb[27].mxu1  ;;  %v2671_v11 = vld [vmem:[#allocation2 + $0xc8] sm:$0xff]  ;;  %v2672_v24 = vld [vmem:[#allocation2 + $0xd0] sm:$0xff] }
 0x728   : > { %v2673_v36 = vld [vmem:[#allocation2 + $0xd8] sm:$0xff] }
 0x729   : > { %8174 = vst [vmem:[#allocation2 + $0x80] sm:$0xff] %v8110_v18  ;;  %v8111_v16 = vadd.f32 %v7907_v6, %v2663_v56 }
 0x72b   : > { %8175 = vst [vmem:[#allocation2 + $0x88] sm:$0xff] %v8111_v16 }
 0x72c   : > { %v7911_v29 = vpop.f32.mrb[28].mxu1 }
 0x72d   : > { %v7912_v4 = vadd.f32 %v7911_v29, %v13856_v40  ;;  %v7913_v41 = vpop.f32.mrb[29].mxu1 }
 0x72e   : > { %v7914_v51 = vpop.f32.mrb[30].mxu1  ;;  %v2674_v41 = vld [vmem:[#allocation2 + $0xe0] sm:$0xff] }
 0x72f   : > { %v8112_v27 = vadd.f32 %v7912_v4, %v2664_v50  ;;  %v7915_v42 = vadd.f32 %v7914_v51, %v13858_v3  ;;  %v7916_v19 = vpop.f32.mrb[31].mxu1 }
 0x731   : > { %8176 = vst [vmem:[#allocation2 + $0x90] sm:$0xff] %v8112_v27  ;;  %v8113_v12 = vadd.f32 %v7915_v42, %v2665_v2  ;;  %v2675_v27 = vld [vmem:[#allocation2 + $0xe8] sm:$0xff] }
 0x733   : > { %8177 = vst [vmem:[#allocation2 + $0x98] sm:$0xff] %v8113_v12 }
 0x734   : > { %v7919_v45 = vpop.f32.mrb[32].mxu1 }
 0x735   : > { %v7920_v5 = vadd.f32 %v7919_v45, %v13867_v32  ;;  %v7921_v35 = vpop.f32.mrb[33].mxu1  ;;  %v2676_v45 = vld [vmem:[#allocation2 + $0xf0] sm:$0xff] }
 0x736   : > { %v7922_v39 = vpop.f32.mrb[34].mxu1 }
 0x737   : > { %v8114_v21 = vadd.f32 %v7920_v5, %v2666_v49  ;;  %v7923_v40 = vadd.f32 %v7922_v39, %v13869_v30  ;;  %v7924_v63 = vpop.f32.mrb[35].mxu1 }
 0x739   : > { %8178 = vst [vmem:[#allocation2 + $0xa0] sm:$0xff] %v8114_v21  ;;  %v8115_v46 = vadd.f32 %v7923_v40, %v2667_v9  ;;  %v2677_v9 = vld [vmem:[#allocation2 + $0xf8] sm:$0xff] }
 0x73b   : > { %8179 = vst [vmem:[#allocation2 + $0xa8] sm:$0xff] %v8115_v46  ;;  %v2678_v46 = vld [vmem:[#allocation2 + $0x100] sm:$0xff] }
 0x73c   : > { %v7927_v3 = vpop.f32.mrb[36].mxu1 }
 0x73d   : > { %v7928_v48 = vadd.f32 %v7927_v3, %v13878_v54  ;;  %v7929_v28 = vpop.f32.mrb[37].mxu1 }
 0x73e   : > { %v7930_v7 = vpop.f32.mrb[38].mxu1 }
 0x73f   : > { %v8116_v62 = vadd.f32 %v7928_v48, %v2668_v14  ;;  %v7931_v32 = vadd.f32 %v7930_v7, %v13880_v10  ;;  %v7932_v15 = vpop.f32.mrb[39].mxu1  ;;  %v2679_v48 = vld [vmem:[#allocation2 + $0x108] sm:$0xff] }
 0x741   : > { %8180 = vst [vmem:[#allocation2 + $0xb0] sm:$0xff] %v8116_v62  ;;  %v8117_v25 = vadd.f32 %v7931_v32, %v2669_v60  ;;  %v2680_v32 = vld [vmem:[#allocation2 + $0x110] sm:$0xff] }
 0x743   : > { %8181 = vst [vmem:[#allocation2 + $0xb8] sm:$0xff] %v8117_v25 }
 0x744   : > { %v7935_v30 = vpop.f32.mrb[40].mxu1 }
 0x745   : > { %v7936_v23 = vadd.f32 %v7935_v30, %v13889_v26  ;;  %v7937_v58 = vpop.f32.mrb[41].mxu1 }
 0x746   : > { %v7938_v55 = vpop.f32.mrb[42].mxu1 }
 0x747   : > { %v8118_v61 = vadd.f32 %v7936_v23, %v2670_v13  ;;  %v7939_v54 = vadd.f32 %v7938_v55, %v13891_v52  ;;  %v7940_v34 = vpop.f32.mrb[43].mxu1  ;;  %v2681_v13 = vld [vmem:[#allocation2 + $0x118] sm:$0xff]  ;;  %v2682_v55 = vld [vmem:[#allocation2 + $0x120] sm:$0xff] }
 0x749   : > { %8182 = vst [vmem:[#allocation2 + $0xc0] sm:$0xff] %v8118_v61  ;;  %v8119_v56 = vadd.f32 %v7939_v54, %v2671_v11  ;;  %v14942_v61 = vld [vmem:[#allocation77_spill] sm:$0xff] }
 0x74b   : > { %8183 = vst [vmem:[#allocation2 + $0xc8] sm:$0xff] %v8119_v56  ;;  %v2683_v56 = vld [vmem:[#allocation2 + $0x128] sm:$0xff] }
 0x74c   : > { %v7943_v10 = vpop.f32.mrb[44].mxu1 }
 0x74d   : > { %v7944_v18 = vadd.f32 %v7943_v10, %v13900_v44  ;;  %v7945_v6 = vpop.f32.mrb[45].mxu1 }
 0x74e   : > { %v7946_v16 = vpop.f32.mrb[46].mxu1 }
 0x74f   : > { %v8120_v50 = vadd.f32 %v7944_v18, %v2672_v24  ;;  %v7947_v26 = vadd.f32 %v7946_v16, %v13902_v31  ;;  %v7948_v29 = vpop.f32.mrb[47].mxu1  ;;  %v14943_v18 = vld [vmem:[#allocation78_spill] sm:$0xff]  ;;  %v2684_v16 = vld [vmem:[#allocation2 + $0x130] sm:$0xff] }
 0x751   : > { %8184 = vst [vmem:[#allocation2 + $0xd0] sm:$0xff] %v8120_v50  ;;  %v8121_v4 = vadd.f32 %v7947_v26, %v2673_v36  ;;  %v14944_v50 = vld [vmem:[#allocation79_spill] sm:$0xff] }
 0x753   : > { %8185 = vst [vmem:[#allocation2 + $0xd8] sm:$0xff] %v8121_v4  ;;  %v2685_v4 = vld [vmem:[#allocation2 + $0x138] sm:$0xff] }
 0x754   : > { %v7951_v52 = vpop.f32.mrb[48].mxu1 }
 0x755   : > { %v7952_v2 = vadd.f32 %v7951_v52, %v13911_v17  ;;  %v7953_v51 = vpop.f32.mrb[49].mxu1 }
 0x756   : > { %v7954_v42 = vpop.f32.mrb[50].mxu1 }
 0x757   : > { %v8122_v19 = vadd.f32 %v7952_v2, %v2674_v41  ;;  %v7955_v44 = vadd.f32 %v7954_v42, %v13913_v43  ;;  %v7956_v12 = vpop.f32.mrb[51].mxu1  ;;  %v14945_v2 = vld [vmem:[#allocation80_spill] sm:$0xff] }
 0x758   : > { %v14946_v12 = vld [vmem:[#allocation81_spill] sm:$0xff] }
 0x759   : > { %8186 = vst [vmem:[#allocation2 + $0xe0] sm:$0xff] %v8122_v19  ;;  %v8123_v49 = vadd.f32 %v7955_v44, %v2675_v27  ;;  %v2686_v19 = vld [vmem:[#allocation2 + $0x140] sm:$0xff] }
 0x75b   : > { %8187 = vst [vmem:[#allocation2 + $0xe8] sm:$0xff] %v8123_v49 }
 0x75c   : > { %v7959_v31 = vpop.f32.mrb[52].mxu1 }
 0x75d   : > { %v7960_v5 = vadd.f32 %v7959_v31, %v13922_v33  ;;  %v7961_v35 = vpop.f32.mrb[53].mxu1  ;;  %v2687_v31 = vld [vmem:[#allocation2 + $0x148] sm:$0xff] }
 0x75e   : > { %v7962_v39 = vpop.f32.mrb[54].mxu1 }
 0x75f   : > { %v8124_v21 = vadd.f32 %v7960_v5, %v2676_v45  ;;  %v7963_v17 = vadd.f32 %v7962_v39, %v13924_v22  ;;  %v7964_v40 = vpop.f32.mrb[55].mxu1 }
 0x760   : > { %v2688_v40 = vld [vmem:[#allocation2 + $0x150] sm:$0xff] }
 0x761   : > { %8188 = vst [vmem:[#allocation2 + $0xf0] sm:$0xff] %v8124_v21  ;;  %v8125_v63 = vadd.f32 %v7963_v17, %v2677_v9  ;;  %v14947_v9 = vld [vmem:[#allocation84_spill] sm:$0xff] }
 0x763   : > { %8189 = vst [vmem:[#allocation2 + $0xf8] sm:$0xff] %v8125_v63 }
 0x764   : > { %v7967_v43 = vpop.f32.mrb[56].mxu1 }
 0x765   : > { %v7968_v14 = vadd.f32 %v7967_v43, %v13933_v47  ;;  %v7969_v3 = vpop.f32.mrb[57].mxu1 }
 0x766   : > { %v7970_v28 = vpop.f32.mrb[58].mxu1  ;;  %v2689_v3 = vld [vmem:[#allocation2 + $0x158] sm:$0xff] }
 0x767   : > { %v8126_v60 = vadd.f32 %v7968_v14, %v2678_v46  ;;  %v7971_v33 = vadd.f32 %v7970_v28, %v13935_v37  ;;  %v7972_v7 = vpop.f32.mrb[59].mxu1  ;;  %v14948_v46 = vld [vmem:[#allocation87_spill] sm:$0xff] }
 0x769   : > { %8190 = vst [vmem:[#allocation2 + $0x100] sm:$0xff] %v8126_v60  ;;  %v8127_v62 = vadd.f32 %v7971_v33, %v2679_v48  ;;  %v14949_v60 = vld [vmem:[#allocation90_spill] sm:$0xff] }
 0x76b   : > { %8191 = vst [vmem:[#allocation2 + $0x108] sm:$0xff] %v8127_v62 }
 0x76c   : > { %v7975_v22 = vpop.f32.mrb[60].mxu1 }
 0x76d   : > { %v7976_v15 = vadd.f32 %v7975_v22, %v13944_v38  ;;  %v7977_v25 = vpop.f32.mrb[61].mxu1 }
 0x76e   : > { %v7978_v30 = vpop.f32.mrb[62].mxu1 }
 0x76f   : > { %v8128_v23 = vadd.f32 %v7976_v15, %v2680_v32  ;;  %v7979_v47 = vadd.f32 %v7978_v30, %v13946_v57  ;;  %v7980_v58 = vpop.f32.mrb[63].mxu1  ;;  %v2690_v32 = vld [vmem:[#allocation2 + $0x160] sm:$0xff]  ;;  %v2691_v30 = vld [vmem:[#allocation2 + $0x168] sm:$0xff] }
 0x770   : > { %v14950_v15 = vld [vmem:[#allocation93_spill] sm:$0xff]  ;;  %v14951_v58 = vld [vmem:[#allocation96_spill] sm:$0xff] }
 0x771   : > { %8192 = vst [vmem:[#allocation2 + $0x110] sm:$0xff] %v8128_v23  ;;  %v8129_v11 = vadd.f32 %v7979_v47, %v2681_v13 }
 0x773   : > { %8193 = vst [vmem:[#allocation2 + $0x118] sm:$0xff] %v8129_v11 }
 0x774   : > { %v7983_v37 = vpop.f32.mrb[64].mxu1 }
 0x775   : > { %v7984_v54 = vadd.f32 %v7983_v37, %v14942_v61  ;;  %v7985_v34 = vpop.f32.mrb[65].mxu1  ;;  %v2692_v61 = vld [vmem:[#allocation2 + $0x170] sm:$0xff] }
 0x776   : > { %v7986_v24 = vpop.f32.mrb[66].mxu1  ;;  %v14952_v34 = vld [vmem:[#allocation99_spill] sm:$0xff] }
 0x777   : > { %v8130_v10 = vadd.f32 %v7984_v54, %v2682_v55  ;;  %v7987_v38 = vadd.f32 %v7986_v24, %v14943_v18  ;;  %v7988_v6 = vpop.f32.mrb[67].mxu1 }
 0x778   : > { %v14953_v6 = vld [vmem:[#allocation100_spill] sm:$0xff] }
 0x779   : > { %8194 = vst [vmem:[#allocation2 + $0x120] sm:$0xff] %v8130_v10  ;;  %v8131_v36 = vadd.f32 %v7987_v38, %v2683_v56  ;;  %v2693_v10 = vld [vmem:[#allocation2 + $0x178] sm:$0xff] }
 0x77b   : > { %8195 = vst [vmem:[#allocation2 + $0x128] sm:$0xff] %v8131_v36 }
 0x77c   : > { %v7991_v57 = vpop.f32.mrb[68].mxu1 }
 0x77d   : > { %v7992_v26 = vadd.f32 %v7991_v57, %v14944_v50  ;;  %v7993_v29 = vpop.f32.mrb[69].mxu1  ;;  %v2694_v50 = vld [vmem:[#allocation2 + $0x180] sm:$0xff] }
 0x77e   : > { %v7994_v41 = vpop.f32.mrb[70].mxu1  ;;  %v14954_v29 = vld [vmem:[#allocation103_spill] sm:$0xff] }
 0x77f   : > { %v8132_v52 = vadd.f32 %v7992_v26, %v2684_v16  ;;  %v7995_v51 = vadd.f32 %v7994_v41, %v14945_v2  ;;  %v7996_v27 = vpop.f32.mrb[71].mxu1 }
 0x780   : > { %v14955_v27 = vld [vmem:[#allocation104_spill] sm:$0xff] }
 0x781   : > { %8196 = vst [vmem:[#allocation2 + $0x130] sm:$0xff] %v8132_v52  ;;  %v8133_v42 = vadd.f32 %v7995_v51, %v2685_v4  ;;  %v2695_v52 = vld [vmem:[#allocation2 + $0x188] sm:$0xff] }
 0x783   : > { %8197 = vst [vmem:[#allocation2 + $0x138] sm:$0xff] %v8133_v42 }
 0x784   : > { %v7999_v44 = vpop.f32.mrb[72].mxu1 }
 0x785   : > { %v8000_v49 = vadd.f32 %v7999_v44, %v14946_v12  ;;  %v8001_v45 = vpop.f32.mrb[73].mxu1  ;;  %v2696_v12 = vld [vmem:[#allocation2 + $0x190] sm:$0xff] }
 0x786   : > { %v8002_v5 = vpop.f32.mrb[74].mxu1  ;;  %v14956_v45 = vld [vmem:[#allocation107_spill] sm:$0xff] }
 0x787   : > { %v8134_v35 = vadd.f32 %v8000_v49, %v2686_v19  ;;  %v8003_v39 = vadd.f32 %v8002_v5, %v14947_v9  ;;  %v8004_v21 = vpop.f32.mrb[75].mxu1 }
 0x788   : > { %v14957_v21 = vld [vmem:[#allocation108_spill] sm:$0xff] }
 0x789   : > { %8198 = vst [vmem:[#allocation2 + $0x140] sm:$0xff] %v8134_v35  ;;  %v8135_v17 = vadd.f32 %v8003_v39, %v2687_v31  ;;  %v2697_v35 = vld [vmem:[#allocation2 + $0x198] sm:$0xff] }
 0x78b   : > { %8199 = vst [vmem:[#allocation2 + $0x148] sm:$0xff] %v8135_v17 }
 0x78c   : > { %v8007_v63 = vpop.f32.mrb[76].mxu1 }
 0x78d   : > { %v8008_v43 = vadd.f32 %v8007_v63, %v14948_v46  ;;  %v8009_v14 = vpop.f32.mrb[77].mxu1  ;;  %v2698_v46 = vld [vmem:[#allocation2 + $0x1a0] sm:$0xff] }
 0x78e   : > { %v8010_v48 = vpop.f32.mrb[78].mxu1  ;;  %v14958_v14 = vld [vmem:[#allocation111_spill] sm:$0xff] }
 0x78f   : > { %v8136_v28 = vadd.f32 %v8008_v43, %v2688_v40  ;;  %v8011_v33 = vadd.f32 %v8010_v48, %v14949_v60  ;;  %v8012_v7 = vpop.f32.mrb[79].mxu1 }
 0x790   : > { %v14959_v7 = vld [vmem:[#allocation112_spill] sm:$0xff] }
 0x791   : > { %8200 = vst [vmem:[#allocation2 + $0x150] sm:$0xff] %v8136_v28  ;;  %v8137_v62 = vadd.f32 %v8011_v33, %v2689_v3  ;;  %v2699_v28 = vld [vmem:[#allocation2 + $0x1a8] sm:$0xff] }
 0x793   : > { %8201 = vst [vmem:[#allocation2 + $0x158] sm:$0xff] %v8137_v62 }
 0x794   : > { %v8015_v22 = vpop.f32.mrb[80].mxu1 }
 0x795   : > { %v8016_v25 = vadd.f32 %v8015_v22, %v14950_v15  ;;  %v8017_v13 = vpop.f32.mrb[81].mxu1  ;;  %v2700_v15 = vld [vmem:[#allocation2 + $0x1b0] sm:$0xff] }
 0x796   : > { %v8018_v23 = vpop.f32.mrb[82].mxu1  ;;  %v14960_v13 = vld [vmem:[#allocation115_spill] sm:$0xff] }
 0x797   : > { %v8138_v47 = vadd.f32 %v8016_v25, %v2690_v32  ;;  %v8019_v11 = vadd.f32 %v8018_v23, %v14951_v58  ;;  %v8020_v55 = vpop.f32.mrb[83].mxu1 }
 0x798   : > { %v14961_v55 = vld [vmem:[#allocation116_spill] sm:$0xff] }
 0x799   : > { %8202 = vst [vmem:[#allocation2 + $0x160] sm:$0xff] %v8138_v47  ;;  %v8139_v37 = vadd.f32 %v8019_v11, %v2691_v30  ;;  %v2701_v47 = vld [vmem:[#allocation2 + $0x1b8] sm:$0xff] }
 0x79b   : > { %8203 = vst [vmem:[#allocation2 + $0x168] sm:$0xff] %v8139_v37 }
 0x79c   : > { %v8023_v54 = vpop.f32.mrb[84].mxu1 }
 0x79d   : > { %v8024_v56 = vadd.f32 %v8023_v54, %v14952_v34  ;;  %v8025_v24 = vpop.f32.mrb[85].mxu1  ;;  %v2702_v34 = vld [vmem:[#allocation2 + $0x1c0] sm:$0xff] }
 0x79e   : > { %v8026_v18 = vpop.f32.mrb[86].mxu1  ;;  %v14962_v24 = vld [vmem:[#allocation119_spill] sm:$0xff] }
 0x79f   : > { %v8140_v38 = vadd.f32 %v8024_v56, %v2692_v61  ;;  %v8027_v36 = vadd.f32 %v8026_v18, %v14953_v6  ;;  %v8028_v16 = vpop.f32.mrb[87].mxu1 }
 0x7a0   : > { %v14963_v16 = vld [vmem:[#allocation120_spill] sm:$0xff] }
 0x7a1   : > { %8204 = vst [vmem:[#allocation2 + $0x170] sm:$0xff] %v8140_v38  ;;  %v8141_v57 = vadd.f32 %v8027_v36, %v2693_v10  ;;  %v2703_v38 = vld [vmem:[#allocation2 + $0x1c8] sm:$0xff] }
 0x7a3   : > { %8205 = vst [vmem:[#allocation2 + $0x178] sm:$0xff] %v8141_v57 }
 0x7a4   : > { %v8031_v26 = vpop.f32.mrb[88].mxu1 }
 0x7a5   : > { %v8032_v4 = vadd.f32 %v8031_v26, %v14954_v29  ;;  %v8033_v41 = vpop.f32.mrb[89].mxu1  ;;  %v2704_v29 = vld [vmem:[#allocation2 + $0x1d0] sm:$0xff] }
 0x7a6   : > { %v8034_v2 = vpop.f32.mrb[90].mxu1 }
 0x7a7   : > { %v8142_v51 = vadd.f32 %v8032_v4, %v2694_v50  ;;  %v8035_v42 = vadd.f32 %v8034_v2, %v14955_v27  ;;  %v8036_v19 = vpop.f32.mrb[91].mxu1  ;;  %v2705_v2 = vld [vmem:[#allocation2 + $0x1d8] sm:$0xff] }
 0x7a9   : > { %8206 = vst [vmem:[#allocation2 + $0x180] sm:$0xff] %v8142_v51  ;;  %v8143_v44 = vadd.f32 %v8035_v42, %v2695_v52 }
 0x7ab   : > { %8207 = vst [vmem:[#allocation2 + $0x188] sm:$0xff] %v8143_v44 }
 0x7ac   : > { %v8039_v49 = vpop.f32.mrb[92].mxu1 }
 0x7ad   : > { %v8040_v31 = vadd.f32 %v8039_v49, %v14956_v45  ;;  %v8041_v5 = vpop.f32.mrb[93].mxu1 }
 0x7ae   : > { %v8042_v9 = vpop.f32.mrb[94].mxu1  ;;  %v2707_v5 = vld [vmem:[#allocation2 + $0x1e8] sm:$0xff] }
 0x7af   : > { %v8144_v39 = vadd.f32 %v8040_v31, %v2696_v12  ;;  %v8043_v17 = vadd.f32 %v8042_v9, %v14957_v21  ;;  %v8044_v40 = vpop.f32.mrb[95].mxu1  ;;  %v2706_v12 = vld [vmem:[#allocation2 + $0x1e0] sm:$0xff] }
 0x7b1   : > { %8208 = vst [vmem:[#allocation2 + $0x190] sm:$0xff] %v8144_v39  ;;  %v8145_v63 = vadd.f32 %v8043_v17, %v2697_v35  ;;  %v2708_v17 = vld [vmem:[#allocation2 + $0x1f0] sm:$0xff] }
 0x7b3   : > { %8209 = vst [vmem:[#allocation2 + $0x198] sm:$0xff] %v8145_v63 }
 0x7b4   : > { %v8047_v43 = vpop.f32.mrb[96].mxu1 }
 0x7b5   : > { %v8048_v3 = vadd.f32 %v8047_v43, %v14958_v14  ;;  %v8049_v48 = vpop.f32.mrb[97].mxu1 }
 0x7b6   : > { %v8050_v60 = vpop.f32.mrb[98].mxu1 }
 0x7b7   : > { %v8146_v33 = vadd.f32 %v8048_v3, %v2698_v46  ;;  %v8051_v62 = vadd.f32 %v8050_v60, %v14959_v7  ;;  %v8052_v32 = vpop.f32.mrb[99].mxu1  ;;  %v2709_v46 = vld [vmem:[#allocation2 + $0x1f8] sm:$0xff]  ;;  %v14171_v60 = vld [vmem:[#allocation9] ss:$0 sm:$0xff] (!%p9685_p10)  ;;  %v8228_v7 = vld [vmem:[#allocation2 + $0x10] sm:$0xff] (!%p9685_p10) }
 0x7b8   : > { %v8230_v32 = vld [vmem:[#allocation2 + $0x20] sm:$0xff] (!%p9685_p10) }
 0x7b9   : > { %8210 = vst [vmem:[#allocation2 + $0x1a0] sm:$0xff] %v8146_v33  ;;  %v8147_v22 = vadd.f32 %v8051_v62, %v2699_v28  ;;  %v8227_v28 = vld [vmem:[#allocation2 + $0x8] sm:$0xff] (!%p9685_p10)  ;;  %v8229_v62 = vld [vmem:[#allocation2 + $0x18] sm:$0xff] (!%p9685_p10) }
 0x7bb   : > { %8211 = vst [vmem:[#allocation2 + $0x1a8] sm:$0xff] %v8147_v22  ;;  %v8300_v22 = vadd.f32 (!%p9685_p10), %v14171_v60, %v8229_v62 }
 0x7bc   : > { %v8055_v25 = vpop.f32.mrb[100].mxu1 }
 0x7bd   : > { %v8056_v30 = vadd.f32 %v8055_v25, %v14960_v13  ;;  %v8057_v23 = vpop.f32.mrb[101].mxu1  ;;  %v8301_v25 = vadd.f32 (!%p9685_p10), %v14171_v60, %v8230_v32  ;;  %vm8364_vm3 = vcmp.ge.f32.partialorder (!%p9685_p10), %v8300_v22, 0.0 }
 0x7be   : > { %v8058_v58 = vpop.f32.mrb[102].mxu1 }
 0x7bf   : > { %v8148_v11 = vadd.f32 %v8056_v30, %v2700_v15  ;;  %v8059_v37 = vadd.f32 %v8058_v58, %v14961_v55  ;;  %v8060_v61 = vpop.f32.mrb[103].mxu1  ;;  %v8231_v15 = vld [vmem:[#allocation2 + $0x28] sm:$0xff] (!%p9685_p10)  ;;  %v8232_v58 = vld [vmem:[#allocation2 + $0x30] sm:$0xff] (!%p9685_p10)  ;;  %vm8365_vm4 = vcmp.ge.f32.partialorder (!%p9685_p10), %v8301_v25, 0.0 }
 0x7c0   : > { %v8233_v61 = vld [vmem:[#allocation2 + $0x38] sm:$0xff] (!%p9685_p10) }
 0x7c1   : > { %8212 = vst [vmem:[#allocation2 + $0x1b0] sm:$0xff] %v8148_v11  ;;  %v8149_v54 = vadd.f32 %v8059_v37, %v2701_v47  ;;  %v8428_v47 = vmul.f32 (!%p9685_p10), 0.25, %v8300_v22  ;;  %v8302_v37 = vadd.f32 (!%p9685_p10), %v14171_v60, %v8231_v15  ;;  %v8245_v15 = vld [vmem:[#allocation2 + $0x98] sm:$0xff] (!%p9685_p10) }
 0x7c3   : > { %8213 = vst [vmem:[#allocation2 + $0x1b8] sm:$0xff] %v8149_v54  ;;  %v8234_v54 = vld [vmem:[#allocation2 + $0x40] sm:$0xff] (!%p9685_p10)  ;;  %vm8366_vm5 = vcmp.ge.f32.partialorder (!%p9685_p10), %v8302_v37, 0.0 }
 0x7c4   : > { %v8063_v56 = vpop.f32.mrb[104].mxu1 }
 0x7c5   : > { %v8064_v10 = vadd.f32 %v8063_v56, %v14962_v24  ;;  %v8065_v18 = vpop.f32.mrb[105].mxu1 }
 0x7c6   : > { %v8066_v6 = vpop.f32.mrb[106].mxu1  ;;  %v8429_v18 = vmul.f32 (!%p9685_p10), 0.25, %v8301_v25 }
 0x7c7   : > { %v8150_v36 = vadd.f32 %v8064_v10, %v2702_v34  ;;  %v8067_v57 = vadd.f32 %v8066_v6, %v14963_v16  ;;  %v8068_v50 = vpop.f32.mrb[107].mxu1  ;;  %v8235_v34 = vld [vmem:[#allocation2 + $0x48] sm:$0xff] (!%p9685_p10)  ;;  %v8492_v10 = vsel (!%p9685_p10), %vm8364_vm3, %v8300_v22, %v8428_v47  ;;  %v8303_v16 = vadd.f32 (!%p9685_p10), %v14171_v60, %v8232_v58  ;;  %v8244_v22 = vld [vmem:[#allocation2 + $0x90] sm:$0xff] (!%p9685_p10) }
 0x7c8   : > { %v8304_v50 = vadd.f32 (!%p9685_p10), %v14171_v60, %v8233_v61  ;;  %v8248_v47 = vld [vmem:[#allocation2 + $0xb0] sm:$0xff] (!%p9685_p10) }
 0x7c9   : > { %8214 = vst [vmem:[#allocation2 + $0x1c0] sm:$0xff] %v8150_v36  ;;  %v8151_v26 = vadd.f32 %v8067_v57, %v2703_v38  ;;  %v8236_v38 = vld [vmem:[#allocation2 + $0x50] sm:$0xff] (!%p9685_p10)  ;;  %v8430_v36 = vmul.f32 (!%p9685_p10), 0.25, %v8302_v37  ;;  %v8493_v57 = vsel (!%p9685_p10), %vm8365_vm4, %v8301_v25, %v8429_v18  ;;  %vm8367_vm6 = vcmp.ge.f32.partialorder (!%p9685_p10), %v8303_v16, 0.0 }
 0x7ca   : > { %vm8368_vm7 = vcmp.ge.f32.partialorder (!%p9685_p10), %v8304_v50, 0.0 }
 0x7cb   : > { %8215 = vst [vmem:[#allocation2 + $0x1c8] sm:$0xff] %v8151_v26  ;;  %v8305_v26 = vadd.f32 (!%p9685_p10), %v14171_v60, %v8234_v54 }
 0x7cc   : > { %v8071_v4 = vpop.f32.mrb[108].mxu1 }
 0x7cd   : > { %v8072_v41 = vadd.f32 %v8071_v4, %v14079_v59  ;;  %v8073_v52 = vpop.f32.mrb[109].mxu1  ;;  %v8494_v4 = vsel (!%p9685_p10), %vm8366_vm5, %v8302_v37, %v8430_v36  ;;  %vm8369_vm8 = vcmp.ge.f32.partialorder (!%p9685_p10), %v8305_v26, 0.0 }
 0x7ce   : > { %v8074_v51 = vpop.f32.mrb[110].mxu1  ;;  %v8237_v52 = vld [vmem:[#allocation2 + $0x58] sm:$0xff] (!%p9685_p10) }
 0x7cf   : > { %v8152_v27 = vadd.f32 %v8072_v41, %v2704_v29  ;;  %v8075_v42 = vadd.f32 %v8074_v51, %v14082_v53  ;;  %v8076_v19 = vpop.f32.mrb[111].mxu1  ;;  %v8306_v29 = vadd.f32 (!%p9685_p10), %v14171_v60, %v8235_v34  ;;  %v8431_v41 = vmul.f32 (!%p9685_p10), 0.25, %v8303_v16 }
 0x7d0   : > { %v9836_v51 = vpack.c.bf16 (!%p9685_p10), %v8494_v4, %v8493_v57  ;;  %v8315_v34 = vadd.f32 (!%p9685_p10), %v14171_v60, %v8244_v22  ;;  %v8250_v57 = vld [vmem:[#allocation2 + $0xc0] sm:$0xff] (!%p9685_p10) }
 0x7d1   : > { %8216 = vst [vmem:[#allocation2 + $0x1d0] sm:$0xff] %v8152_v27  ;;  %v8153_v44 = vadd.f32 %v8075_v42, %v2705_v2  ;;  %v8307_v2 = vadd.f32 (!%p9685_p10), %v14171_v60, %v8236_v38  ;;  %v8432_v27 = vmul.f32 (!%p9685_p10), 0.25, %v8304_v50  ;;  %v8238_v42 = vld [vmem:[#allocation2 + $0x60] sm:$0xff] (!%p9685_p10)  ;;  %v8495_v19 = vsel (!%p9685_p10), %vm8367_vm6, %v8303_v16, %v8431_v41  ;;  %v8249_v38 = vld [vmem:[#allocation2 + $0xb8] sm:$0xff] (!%p9685_p10) }
 0x7d2   : > { %vm8370_vm9 = vcmp.ge.f32.partialorder (!%p9685_p10), %v8306_v29, 0.0  ;;  %9984 = vst [vmem:[%s11396_s30 + $0x10] sm:$0xff] (!%p9685_p10), %v9836_v51   ;;  %v8443_v16 = vmul.f32 (!%p9685_p10), 0.25, %v8315_v34  ;;  %v8320_v41 = vadd.f32 (!%p9685_p10), %v14171_v60, %v8249_v38  ;;  %v8262_v38 = vld [vmem:[#allocation2 + $0x120] sm:$0xff] (!%p9685_p10) }
 0x7d3   : > { %8217 = vst [vmem:[#allocation2 + $0x1d8] sm:$0xff] %v8153_v44  ;;  %v8433_v44 = vmul.f32 (!%p9685_p10), 0.25, %v8305_v26  ;;  %vm8371_vm10 = vcmp.ge.f32.partialorder (!%p9685_p10), %v8307_v2, 0.0 }
 0x7d4   : > { %v8079_v49 = vpop.f32.mrb[112].mxu1 }
 0x7d5   : > { %v8080_v45 = vadd.f32 %v8079_v49, %v14091_v1  ;;  %v8081_v31 = vpop.f32.mrb[113].mxu1  ;;  %v8496_v49 = vsel (!%p9685_p10), %vm8368_vm7, %v8304_v50, %v8432_v27  ;;  %vm8384_vm7 = vcmp.ge.f32.partialorder (!%p9685_p10), %v8320_v41, 0.0 }
 0x7d6   : > { %v8082_v35 = vpop.f32.mrb[114].mxu1  ;;  %v8435_v31 = vmul.f32 (!%p9685_p10), 0.25, %v8307_v2 }
 0x7d7   : > { %v8154_v9 = vadd.f32 %v8080_v45, %v2706_v12  ;;  %v8083_v59 = vadd.f32 %v8082_v35, %v14094_v20  ;;  %v8084_v39 = vpop.f32.mrb[115].mxu1  ;;  %v8226_v20 = vld [vmem:[#allocation2] sm:$0xff] (!%p9685_p10)  ;;  %v8434_v12 = vmul.f32 (!%p9685_p10), 0.25, %v8306_v29  ;;  %v8308_v45 = vadd.f32 (!%p9685_p10), %v14171_v60, %v8237_v52  ;;  %v8240_v35 = vld [vmem:[#allocation2 + $0x70] sm:$0xff] (!%p9685_p10)  ;;  %v8251_v52 = vld [vmem:[#allocation2 + $0xc8] sm:$0xff] (!%p9685_p10) }
 0x7d8   : > { %v8297_v33 = vadd.f32 (!%p9685_p10), %v14171_v60, %v8226_v20 }
 0x7d9   : > { %8218 = vst [vmem:[#allocation2 + $0x1e0] sm:$0xff] %v8154_v9  ;;  %v8155_v21 = vadd.f32 %v8083_v59, %v2707_v5  ;;  %v8239_v5 = vld [vmem:[#allocation2 + $0x68] sm:$0xff] (!%p9685_p10)  ;;  %v9841_v9 = vpack.c.bf16 (!%p9685_p10), %v8496_v49, %v8495_v19  ;;  %v8497_v59 = vsel (!%p9685_p10), %vm8369_vm8, %v8305_v26, %v8433_v44  ;;  %v8498_v39 = vsel (!%p9685_p10), %vm8370_vm9, %v8306_v29, %v8434_v12  ;;  %v8252_v19 = vld [vmem:[#allocation2 + $0xd0] sm:$0xff] (!%p9685_p10)  ;;  %v8253_v44 = vld [vmem:[#allocation2 + $0xd8] sm:$0xff] (!%p9685_p10) }
 0x7da   : > { %vm8361_vm0 = vcmp.ge.f32.partialorder (!%p9685_p10), %v8297_v33, 0.0  ;;  %v8425_v13 = vmul.f32 (!%p9685_p10), 0.25, %v8297_v33  ;;  %vm8372_vm11 = vcmp.ge.f32.partialorder (!%p9685_p10), %v8308_v45, 0.0 }
 0x7db   : > { %8219 = vst [vmem:[#allocation2 + $0x1e8] sm:$0xff] %v8155_v21  ;;  %v8309_v21 = vadd.f32 (!%p9685_p10), %v14171_v60, %v8238_v42  ;;  %9985 = vst [vmem:[%s11396_s30 + $0x18] sm:$0xff] (!%p9685_p10), %v9841_v9   ;;  %v8321_v42 = vadd.f32 (!%p9685_p10), %v14171_v60, %v8250_v57  ;;  %v8322_v9 = vadd.f32 (!%p9685_p10), %v14171_v60, %v8251_v52 }
 0x7dc   : > { %v8087_v53 = vpop.f32.mrb[116].mxu1  ;;  %v8489_v11 = vsel (!%p9685_p10), %vm8361_vm0, %v8297_v33, %v8425_v13  ;;  %v8333_v52 = vadd.f32 (!%p9685_p10), %v14171_v60, %v8262_v38 }
 0x7dd   : > { %v8088_v40 = vadd.f32 %v8087_v53, %v14101_v8  ;;  %v8089_v63 = vpop.f32.mrb[117].mxu1  ;;  %8225 = sbr.rel (%p9685_p10) target bundleno = 2079 (0x81f), region = 60  ;;  %v8298_v8 = vadd.f32 (!%p9685_p10), %v14171_v60, %v8227_v28  ;;  %v8242_v53 = vld [vmem:[#allocation2 + $0x80] sm:$0xff] (!%p9685_p10)  ;;  %vm8373_vm12 = vcmp.ge.f32.partialorder (!%p9685_p10), %v8309_v21, 0.0  ;;  %vm8385_vm8 = vcmp.ge.f32.partialorder (!%p9685_p10), %v8321_v42, 0.0 }
 0x7de   : > { %v8090_v43 = vpop.f32.mrb[118].mxu1  ;;  %v9846_v63 = vpack.c.bf16 (!%p9685_p10), %v8498_v39, %v8497_v59  ;;  %v8313_v28 = vadd.f32 (!%p9685_p10), %v14171_v60, %v8242_v53  ;;  %v8449_v39 = vmul.f32 (!%p9685_p10), 0.25, %v8321_v42  ;;  %v8255_v53 = vld [vmem:[#allocation2 + $0xe8] sm:$0xff] (!%p9685_p10)  ;;  %vm8386_vm9 = vcmp.ge.f32.partialorder (!%p9685_p10), %v8322_v9, 0.0 }
 0x7df   : > { %v8156_v14 = vadd.f32 %v8088_v40, %v2708_v17  ;;  %v8091_v1 = vadd.f32 %v8090_v43, %v14104_v0  ;;  %v8092_v3 = vpop.f32.mrb[119].mxu1  ;;  %v8299_v0 = vadd.f32 (!%p9685_p10), %v14171_v60, %v8228_v7  ;;  %vm8362_vm1 = vcmp.ge.f32.partialorder (!%p9685_p10), %v8298_v8, 0.0  ;;  %v8241_v17 = vld [vmem:[#allocation2 + $0x78] sm:$0xff] (!%p9685_p10)  ;;  %v8243_v40 = vld [vmem:[#allocation2 + $0x88] sm:$0xff] (!%p9685_p10) }
 0x7e0   : > { %v8426_v30 = vmul.f32 (!%p9685_p10), 0.25, %v8298_v8  ;;  %v8499_v43 = vsel (!%p9685_p10), %vm8371_vm10, %v8307_v2, %v8435_v31  ;;  %v8311_v3 = vadd.f32 (!%p9685_p10), %v14171_v60, %v8240_v35  ;;  %9986 = vst [vmem:[%s11396_s30 + $0x20] sm:$0xff] (!%p9685_p10), %v9846_v63   ;;  %v8312_v20 = vadd.f32 (!%p9685_p10), %v14171_v60, %v8241_v17  ;;  %v8254_v31 = vld [vmem:[#allocation2 + $0xe0] sm:$0xff] (!%p9685_p10) }
 0x7e1   : > { %8220 = vst [vmem:[#allocation2 + $0x1f0] sm:$0xff] %v8156_v14  ;;  %v8157_v48 = vadd.f32 %v8091_v1, %v2709_v46  ;;  %vm8363_vm2 = vcmp.ge.f32.partialorder (!%p9685_p10), %v8299_v0, 0.0  ;;  %v8427_v23 = vmul.f32 (!%p9685_p10), 0.25, %v8299_v0  ;;  %v8436_v46 = vmul.f32 (!%p9685_p10), 0.25, %v8308_v45 }
 0x7e2   : > { %v8490_v55 = vsel (!%p9685_p10), %vm8362_vm1, %v8298_v8, %v8426_v30  ;;  %v8310_v14 = vadd.f32 (!%p9685_p10), %v14171_v60, %v8239_v5  ;;  %v8437_v1 = vmul.f32 (!%p9685_p10), 0.25, %v8309_v21  ;;  %v8314_v33 = vadd.f32 (!%p9685_p10), %v14171_v60, %v8243_v40  ;;  %v8246_v30 = vld [vmem:[#allocation2 + $0xa0] sm:$0xff] (!%p9685_p10) }
 0x7e3   : > { %8221 = vst [vmem:[#allocation2 + $0x1f8] sm:$0xff] %v8157_v48  ;;  %v9826_v56 = vpack.c.bf16 (!%p9685_p10), %v8490_v55, %v8489_v11  ;;  %v8491_v24 = vsel (!%p9685_p10), %vm8363_vm2, %v8299_v0, %v8427_v23  ;;  %v8500_v48 = vsel (!%p9685_p10), %vm8372_vm11, %v8308_v45, %v8436_v46  ;;  %vm8375_vm14 = vcmp.ge.f32.partialorder (!%p9685_p10), %v8311_v3, 0.0  ;;  %v8247_v23 = vld [vmem:[#allocation2 + $0xa8] sm:$0xff] (!%p9685_p10) }
 0x7e4   : > { %v9831_v6 = vpack.c.bf16 %v8492_v10, %v8491_v24  ;;  %v9851_v8 = vpack.c.bf16 %v8500_v48, %v8499_v43  ;;  %vm8374_vm13 = vcmp.ge.f32.partialorder %v8310_v14, 0.0  ;;  %v8438_v7 = vmul.f32 0.25, %v8310_v14  ;;  %v8256_v43 = vld [vmem:[#allocation2 + $0xf0] sm:$0xff] }
 0x7e5   : > { %9827 = vst [vmem:[%s11396_s30] sm:$0xff] %v9826_v56   ;;  %v8501_v62 = vsel %vm8373_vm12, %v8309_v21, %v8437_v1  ;;  %vm8376_vm15 = vcmp.ge.f32.partialorder %v8312_v20, 0.0  ;;  %v8439_v32 = vmul.f32 0.25, %v8311_v3  ;;  %v8440_v0 = vmul.f32 0.25, %v8312_v20 }
 0x7e6   : > { %9983 = vst [vmem:[%s11396_s30 + $0x8] sm:$0xff] %v9831_v6   ;;  %9987 = vst [vmem:[%s11396_s30 + $0x28] sm:$0xff] %v9851_v8   ;;  %v8502_v25 = vsel %vm8374_vm13, %v8310_v14, %v8438_v7  ;;  %vm8377_vm0 = vcmp.ge.f32.partialorder %v8313_v28, 0.0  ;;  %vm8378_vm1 = vcmp.ge.f32.partialorder %v8314_v33, 0.0  ;;  %v8441_v13 = vmul.f32 0.25, %v8313_v28 }
 0x7e7   : > { %v9856_v58 = vpack.c.bf16 %v8502_v25, %v8501_v62  ;;  %v8503_v11 = vsel %vm8375_vm14, %v8311_v3, %v8439_v32  ;;  %v8504_v55 = vsel %vm8376_vm15, %v8312_v20, %v8440_v0  ;;  %v8442_v37 = vmul.f32 0.25, %v8314_v33  ;;  %v8257_v3 = vld [vmem:[#allocation2 + $0xf8] sm:$0xff]  ;;  %v8258_v32 = vld [vmem:[#allocation2 + $0x100] sm:$0xff]  ;;  %v8259_v25 = vld [vmem:[#allocation2 + $0x108] sm:$0xff] }
 0x7e8   : > { %v9861_v61 = vpack.c.bf16 %v8504_v55, %v8503_v11  ;;  %v8505_v54 = vsel %vm8377_vm0, %v8313_v28, %v8441_v13  ;;  %v8316_v56 = vadd.f32 %v14171_v60, %v8245_v15  ;;  %v8317_v10 = vadd.f32 %v14171_v60, %v8246_v30  ;;  %v8260_v13 = vld [vmem:[#allocation2 + $0x110] sm:$0xff] }
 0x7e9   : > { %9988 = vst [vmem:[%s11396_s30 + $0x30] sm:$0xff] %v9856_v58   ;;  %v8506_v24 = vsel %vm8378_vm1, %v8314_v33, %v8442_v37  ;;  %v8318_v18 = vadd.f32 %v14171_v60, %v8247_v23  ;;  %v8319_v6 = vadd.f32 %v14171_v60, %v8248_v47  ;;  %vm8379_vm2 = vcmp.ge.f32.partialorder %v8315_v34, 0.0  ;;  %v8261_v58 = vld [vmem:[#allocation2 + $0x118] sm:$0xff] }
 0x7ea   : > { %9989 = vst [vmem:[%s11396_s30 + $0x38] sm:$0xff] %v9861_v61   ;;  %v9866_v36 = vpack.c.bf16 %v8506_v24, %v8505_v54  ;;  %vm8380_vm3 = vcmp.ge.f32.partialorder %v8316_v56, 0.0  ;;  %v8444_v50 = vmul.f32 0.25, %v8316_v56  ;;  %vm8381_vm4 = vcmp.ge.f32.partialorder %v8317_v10, 0.0 }
 0x7eb   : > { %vm8382_vm5 = vcmp.ge.f32.partialorder %v8318_v18, 0.0  ;;  %v8445_v26 = vmul.f32 0.25, %v8317_v10  ;;  %v8507_v29 = vsel %vm8379_vm2, %v8315_v34, %v8443_v16  ;;  %v8446_v4 = vmul.f32 0.25, %v8318_v18 }
 0x7ec   : > { %9990 = vst [vmem:[%s11396_s30 + $0x40] sm:$0xff] %v9866_v36   ;;  %vm8383_vm6 = vcmp.ge.f32.partialorder %v8319_v6, 0.0  ;;  %v8508_v2 = vsel %vm8380_vm3, %v8316_v56, %v8444_v50  ;;  %v8447_v27 = vmul.f32 0.25, %v8319_v6  ;;  %v8448_v45 = vmul.f32 0.25, %v8320_v41  ;;  %v8264_v36 = vld [vmem:[#allocation2 + $0x130] sm:$0xff]  ;;  %v8265_v50 = vld [vmem:[#allocation2 + $0x138] sm:$0xff] }
 0x7ed   : > { %v8509_v51 = vsel %vm8381_vm4, %v8317_v10, %v8445_v26  ;;  %v9871_v12 = vpack.c.bf16 %v8508_v2, %v8507_v29  ;;  %v8510_v49 = vsel %vm8382_vm5, %v8318_v18, %v8446_v4  ;;  %v8323_v21 = vadd.f32 %v14171_v60, %v8252_v19 }
 0x7ee   : > { %v9876_v5 = vpack.c.bf16 %v8510_v49, %v8509_v51  ;;  %v8511_v35 = vsel %vm8383_vm6, %v8319_v6, %v8447_v27  ;;  %v8512_v59 = vsel %vm8384_vm7, %v8320_v41, %v8448_v45  ;;  %v8324_v17 = vadd.f32 %v14171_v60, %v8253_v44  ;;  %v8263_v6 = vld [vmem:[#allocation2 + $0x128] sm:$0xff] }
 0x7ef   : > { %9991 = vst [vmem:[%s11396_s30 + $0x48] sm:$0xff] %v9871_v12   ;;  %v9881_v40 = vpack.c.bf16 %v8512_v59, %v8511_v35  ;;  %v8450_v63 = vmul.f32 0.25, %v8322_v9  ;;  %v8325_v46 = vadd.f32 %v14171_v60, %v8254_v31  ;;  %v8513_v14 = vsel %vm8385_vm8, %v8321_v42, %v8449_v39  ;;  %v8266_v12 = vld [vmem:[#allocation2 + $0x140] sm:$0xff]  ;;  %v8267_v49 = vld [vmem:[#allocation2 + $0x148] sm:$0xff]  ;;  %v8269_v35 = vld [vmem:[#allocation2 + $0x158] sm:$0xff] }
 0x7f0   : > { %9992 = vst [vmem:[%s11396_s30 + $0x50] sm:$0xff] %v9876_v5   ;;  %vm8387_vm10 = vcmp.ge.f32.partialorder %v8323_v21, 0.0  ;;  %vm8388_vm11 = vcmp.ge.f32.partialorder %v8324_v17, 0.0  ;;  %v8451_v1 = vmul.f32 0.25, %v8323_v21  ;;  %v8452_v20 = vmul.f32 0.25, %v8324_v17  ;;  %v8268_v5 = vld [vmem:[#allocation2 + $0x150] sm:$0xff] }
 0x7f1   : > { %9993 = vst [vmem:[%s11396_s30 + $0x58] sm:$0xff] %v9881_v40   ;;  %v8514_v48 = vsel %vm8386_vm9, %v8322_v9, %v8450_v63  ;;  %v8326_v28 = vadd.f32 %v14171_v60, %v8255_v53  ;;  %vm8389_vm12 = vcmp.ge.f32.partialorder %v8325_v46, 0.0  ;;  %v8453_v7 = vmul.f32 0.25, %v8325_v46 }
 0x7f2   : > { %v9886_v33 = vpack.c.bf16 %v8514_v48, %v8513_v14  ;;  %v8515_v8 = vsel %vm8387_vm10, %v8323_v21, %v8451_v1  ;;  %v8327_v62 = vadd.f32 %v14171_v60, %v8256_v43  ;;  %v8516_v0 = vsel %vm8388_vm11, %v8324_v17, %v8452_v20  ;;  %v8270_v14 = vld [vmem:[#allocation2 + $0x160] sm:$0xff]  ;;  %v8271_v48 = vld [vmem:[#allocation2 + $0x168] sm:$0xff]  ;;  %v8272_v20 = vld [vmem:[#allocation2 + $0x170] sm:$0xff] }
 0x7f3   : > { %vm8390_vm13 = vcmp.ge.f32.partialorder %v8326_v28, 0.0  ;;  %v8454_v22 = vmul.f32 0.25, %v8326_v28  ;;  %v8328_v15 = vadd.f32 %v14171_v60, %v8257_v3  ;;  %v9891_v30 = vpack.c.bf16 %v8516_v0, %v8515_v8 }
 0x7f4   : > { %9994 = vst [vmem:[%s11396_s30 + $0x60] sm:$0xff] %v9886_v33   ;;  %v8517_v23 = vsel %vm8389_vm12, %v8325_v46, %v8453_v7  ;;  %vm8391_vm14 = vcmp.ge.f32.partialorder %v8327_v62, 0.0  ;;  %v8455_v47 = vmul.f32 0.25, %v8327_v62  ;;  %v8329_v37 = vadd.f32 %v14171_v60, %v8258_v32 }
 0x7f5   : > { %v8518_v11 = vsel %vm8390_vm13, %v8326_v28, %v8454_v22  ;;  %vm8392_vm15 = vcmp.ge.f32.partialorder %v8328_v15, 0.0  ;;  %v8456_v55 = vmul.f32 0.25, %v8328_v15  ;;  %9995 = vst [vmem:[%s11396_s30 + $0x68] sm:$0xff] %v9891_v30   ;;  %v8330_v34 = vadd.f32 %v14171_v60, %v8259_v25  ;;  %v8273_v25 = vld [vmem:[#allocation2 + $0x178] sm:$0xff]  ;;  %v8274_v30 = vld [vmem:[#allocation2 + $0x180] sm:$0xff] }
 0x7f6   : > { %v9896_v61 = vpack.c.bf16 %v8518_v11, %v8517_v23  ;;  %v8519_v54 = vsel %vm8391_vm14, %v8327_v62, %v8455_v47  ;;  %v8331_v56 = vadd.f32 %v14171_v60, %v8260_v13  ;;  %vm8393_vm0 = vcmp.ge.f32.partialorder %v8329_v37, 0.0  ;;  %v8275_v11 = vld [vmem:[#allocation2 + $0x188] sm:$0xff] }
 0x7f7   : > { %v8520_v24 = vsel %vm8392_vm15, %v8328_v15, %v8456_v55  ;;  %v8457_v10 = vmul.f32 0.25, %v8329_v37  ;;  %v8332_v18 = vadd.f32 %v14171_v60, %v8261_v58  ;;  %vm8394_vm1 = vcmp.ge.f32.partialorder %v8330_v34, 0.0  ;;  %v8276_v55 = vld [vmem:[#allocation2 + $0x190] sm:$0xff] }
 0x7f8   : > { %9996 = vst [vmem:[%s11396_s30 + $0x70] sm:$0xff] %v9896_v61   ;;  %v9901_v16 = vpack.c.bf16 %v8520_v24, %v8519_v54  ;;  %v8458_v57 = vmul.f32 0.25, %v8330_v34  ;;  %vm8395_vm2 = vcmp.ge.f32.partialorder %v8331_v56, 0.0  ;;  %v8459_v29 = vmul.f32 0.25, %v8331_v56 }
 0x7f9   : > { %v8521_v26 = vsel %vm8393_vm0, %v8329_v37, %v8457_v10  ;;  %vm8396_vm3 = vcmp.ge.f32.partialorder %v8332_v18, 0.0  ;;  %v8460_v4 = vmul.f32 0.25, %v8332_v18  ;;  %v8334_v2 = vadd.f32 %v14171_v60, %v8263_v6  ;;  %v8277_v6 = vld [vmem:[#allocation2 + $0x198] sm:$0xff] }
 0x7fa   : > { %9997 = vst [vmem:[%s11396_s30 + $0x78] sm:$0xff] %v9901_v16   ;;  %v8522_v41 = vsel %vm8394_vm1, %v8330_v34, %v8458_v57  ;;  %v8335_v51 = vadd.f32 %v14171_v60, %v8264_v36  ;;  %v8523_v42 = vsel %vm8395_vm2, %v8331_v56, %v8459_v29  ;;  %v8336_v44 = vadd.f32 %v14171_v60, %v8265_v50 }
 0x7fb   : > { %v9906_v27 = vpack.c.bf16 %v8522_v41, %v8521_v26  ;;  %v8524_v19 = vsel %vm8396_vm3, %v8332_v18, %v8460_v4  ;;  %vm8397_vm4 = vcmp.ge.f32.partialorder %v8333_v52, 0.0  ;;  %vm8398_vm5 = vcmp.ge.f32.partialorder %v8334_v2, 0.0  ;;  %v8278_v26 = vld [vmem:[#allocation2 + $0x1a0] sm:$0xff] }
 0x7fc   : > { %v9911_v45 = vpack.c.bf16 %v8524_v19, %v8523_v42  ;;  %v8461_v31 = vmul.f32 0.25, %v8333_v52  ;;  %v8462_v9 = vmul.f32 0.25, %v8334_v2  ;;  %vm8399_vm6 = vcmp.ge.f32.partialorder %v8335_v51, 0.0 }
 0x7fd   : > { %9998 = vst [vmem:[%s11396_s30 + $0x80] sm:$0xff] %v9906_v27   ;;  %vm8400_vm7 = vcmp.ge.f32.partialorder %v8336_v44, 0.0  ;;  %v8463_v59 = vmul.f32 0.25, %v8335_v51  ;;  %v8464_v21 = vmul.f32 0.25, %v8336_v44  ;;  %v8337_v17 = vadd.f32 %v14171_v60, %v8266_v12  ;;  %v8280_v27 = vld [vmem:[#allocation2 + $0x1b0] sm:$0xff] }
 0x7fe   : > { %9999 = vst [vmem:[%s11396_s30 + $0x88] sm:$0xff] %v9911_v45   ;;  %v8525_v39 = vsel %vm8397_vm4, %v8333_v52, %v8461_v31  ;;  %v8338_v53 = vadd.f32 %v14171_v60, %v8267_v49  ;;  %v8526_v40 = vsel %vm8398_vm5, %v8334_v2, %v8462_v9  ;;  %v8339_v46 = vadd.f32 %v14171_v60, %v8268_v5  ;;  %v8281_v49 = vld [vmem:[#allocation2 + $0x1b8] sm:$0xff]  ;;  %v8282_v45 = vld [vmem:[#allocation2 + $0x1c0] sm:$0xff]  ;;  %v8283_v31 = vld [vmem:[#allocation2 + $0x1c8] sm:$0xff] }
 0x7ff   : > { %v8527_v63 = vsel %vm8399_vm6, %v8335_v51, %v8463_v59  ;;  %v8340_v43 = vadd.f32 %v14171_v60, %v8269_v35  ;;  %v9916_v1 = vpack.c.bf16 %v8526_v40, %v8525_v39  ;;  %v8528_v3 = vsel %vm8400_vm7, %v8336_v44, %v8464_v21  ;;  %v8279_v51 = vld [vmem:[#allocation2 + $0x1a8] sm:$0xff] }
 0x800   : > { %vm8401_vm8 = vcmp.ge.f32.partialorder %v8337_v17, 0.0  ;;  %vm8402_vm9 = vcmp.ge.f32.partialorder %v8338_v53, 0.0  ;;  %v9921_v28 = vpack.c.bf16 %v8528_v3, %v8527_v63  ;;  %v8465_v33 = vmul.f32 0.25, %v8337_v17 }
 0x801   : > { %v8466_v8 = vmul.f32 0.25, %v8338_v53  ;;  %vm8403_vm10 = vcmp.ge.f32.partialorder %v8339_v46, 0.0  ;;  %10000 = vst [vmem:[%s11396_s30 + $0x90] sm:$0xff] %v9916_v1   ;;  %vm8404_vm11 = vcmp.ge.f32.partialorder %v8340_v43, 0.0  ;;  %v8467_v7 = vmul.f32 0.25, %v8339_v46 }
 0x802   : > { %v8468_v62 = vmul.f32 0.25, %v8340_v43  ;;  %v8341_v32 = vadd.f32 %v14171_v60, %v8270_v14  ;;  %10001 = vst [vmem:[%s11396_s30 + $0x98] sm:$0xff] %v9921_v28   ;;  %v8529_v0 = vsel %vm8401_vm8, %v8337_v17, %v8465_v33  ;;  %v8342_v15 = vadd.f32 %v14171_v60, %v8271_v48  ;;  %v8284_v48 = vld [vmem:[#allocation2 + $0x1d0] sm:$0xff] }
 0x803   : > { %v8530_v22 = vsel %vm8402_vm9, %v8338_v53, %v8466_v8  ;;  %v8343_v13 = vadd.f32 %v14171_v60, %v8272_v20  ;;  %v8531_v47 = vsel %vm8403_vm10, %v8339_v46, %v8467_v7  ;;  %v8344_v34 = vadd.f32 %v14171_v60, %v8273_v25  ;;  %v8285_v20 = vld [vmem:[#allocation2 + $0x1d8] sm:$0xff]  ;;  %v8286_v8 = vld [vmem:[#allocation2 + $0x1e0] sm:$0xff]  ;;  %v8287_v7 = vld [vmem:[#allocation2 + $0x1e8] sm:$0xff] }
 0x804   : > { %v9926_v23 = vpack.c.bf16 %v8530_v22, %v8529_v0  ;;  %v8532_v58 = vsel %vm8404_vm11, %v8340_v43, %v8468_v62  ;;  %vm8405_vm12 = vcmp.ge.f32.partialorder %v8341_v32, 0.0  ;;  %vm8406_vm13 = vcmp.ge.f32.partialorder %v8342_v15, 0.0  ;;  %v8288_v62 = vld [vmem:[#allocation2 + $0x1f0] sm:$0xff] }
 0x805   : > { %v9931_v37 = vpack.c.bf16 %v8532_v58, %v8531_v47  ;;  %v8469_v61 = vmul.f32 0.25, %v8341_v32  ;;  %v8470_v54 = vmul.f32 0.25, %v8342_v15  ;;  %vm8407_vm14 = vcmp.ge.f32.partialorder %v8343_v13, 0.0 }
 0x806   : > { %10002 = vst [vmem:[%s11396_s30 + $0xa0] sm:$0xff] %v9926_v23   ;;  %v8471_v56 = vmul.f32 0.25, %v8343_v13  ;;  %v8345_v24 = vadd.f32 %v14171_v60, %v8274_v30  ;;  %v8346_v38 = vadd.f32 %v14171_v60, %v8275_v11  ;;  %v8347_v36 = vadd.f32 %v14171_v60, %v8276_v55  ;;  %v8289_v55 = vld [vmem:[#allocation2 + $0x1f8] sm:$0xff] }
 0x807   : > { %10003 = vst [vmem:[%s11396_s30 + $0xa8] sm:$0xff] %v9931_v37   ;;  %v8533_v10 = vsel %vm8405_vm12, %v8341_v32, %v8469_v61  ;;  %v8534_v18 = vsel %vm8406_vm13, %v8342_v15, %v8470_v54  ;;  %vm8408_vm15 = vcmp.ge.f32.partialorder %v8344_v34, 0.0  ;;  %v8472_v57 = vmul.f32 0.25, %v8344_v34 }
 0x808   : > { %v9936_v16 = vpack.c.bf16 %v8534_v18, %v8533_v10  ;;  %v8535_v50 = vsel %vm8407_vm14, %v8343_v13, %v8471_v56  ;;  %vm8409_vm0 = vcmp.ge.f32.partialorder %v8345_v24, 0.0  ;;  %vm8410_vm1 = vcmp.ge.f32.partialorder %v8346_v38, 0.0 }
 0x809   : > { %v8473_v29 = vmul.f32 0.25, %v8345_v24  ;;  %v8474_v4 = vmul.f32 0.25, %v8346_v38  ;;  %v8536_v41 = vsel %vm8408_vm15, %v8344_v34, %v8472_v57  ;;  %v8348_v52 = vadd.f32 %v14171_v60, %v8277_v6 }
 0x80a   : > { %10004 = vst [vmem:[%s11396_s30 + $0xb0] sm:$0xff] %v9936_v16   ;;  %vm8411_vm2 = vcmp.ge.f32.partialorder %v8347_v36, 0.0  ;;  %v8475_v2 = vmul.f32 0.25, %v8347_v36  ;;  %v9941_v42 = vpack.c.bf16 %v8536_v41, %v8535_v50  ;;  %v8349_v12 = vadd.f32 %v14171_v60, %v8278_v26 }
 0x80b   : > { %v8537_v19 = vsel %vm8409_vm0, %v8345_v24, %v8473_v29  ;;  %v8538_v44 = vsel %vm8410_vm1, %v8346_v38, %v8474_v4  ;;  %vm8412_vm3 = vcmp.ge.f32.partialorder %v8348_v52, 0.0  ;;  %v8476_v35 = vmul.f32 0.25, %v8348_v52 }
 0x80c   : > { %v9946_v5 = vpack.c.bf16 %v8538_v44, %v8537_v19  ;;  %v8539_v9 = vsel %vm8411_vm2, %v8347_v36, %v8475_v2  ;;  %10005 = vst [vmem:[%s11396_s30 + $0xb8] sm:$0xff] %v9941_v42   ;;  %v8350_v59 = vadd.f32 %v14171_v60, %v8279_v51  ;;  %vm8413_vm4 = vcmp.ge.f32.partialorder %v8349_v12, 0.0 }
 0x80d   : > { %v8477_v39 = vmul.f32 0.25, %v8349_v12  ;;  %v8351_v21 = vadd.f32 %v14171_v60, %v8280_v27  ;;  %v8540_v17 = vsel %vm8412_vm3, %v8348_v52, %v8476_v35  ;;  %v8352_v53 = vadd.f32 %v14171_v60, %v8281_v49 }
 0x80e   : > { %10006 = vst [vmem:[%s11396_s30 + $0xc0] sm:$0xff] %v9946_v5   ;;  %v8353_v40 = vadd.f32 %v14171_v60, %v8282_v45  ;;  %v8354_v63 = vadd.f32 %v14171_v60, %v8283_v31  ;;  %v9951_v46 = vpack.c.bf16 %v8540_v17, %v8539_v9  ;;  %vm8414_vm5 = vcmp.ge.f32.partialorder %v8350_v59, 0.0 }
 0x80f   : > { %v8478_v43 = vmul.f32 0.25, %v8350_v59  ;;  %v8541_v14 = vsel %vm8413_vm4, %v8349_v12, %v8477_v39  ;;  %vm8415_vm6 = vcmp.ge.f32.partialorder %v8351_v21, 0.0  ;;  %vm8416_vm7 = vcmp.ge.f32.partialorder %v8352_v53, 0.0 }
 0x810   : > { %v8479_v1 = vmul.f32 0.25, %v8351_v21  ;;  %v8480_v3 = vmul.f32 0.25, %v8352_v53  ;;  %10007 = vst [vmem:[%s11396_s30 + $0xc8] sm:$0xff] %v9951_v46   ;;  %vm8417_vm8 = vcmp.ge.f32.partialorder %v8353_v40, 0.0  ;;  %vm8418_vm9 = vcmp.ge.f32.partialorder %v8354_v63, 0.0 }
 0x811   : > { %v8542_v28 = vsel %vm8414_vm5, %v8350_v59, %v8478_v43  ;;  %v8481_v33 = vmul.f32 0.25, %v8353_v40  ;;  %v8482_v15 = vmul.f32 0.25, %v8354_v63  ;;  %v8355_v30 = vadd.f32 %v14171_v60, %v8284_v48 }
 0x812   : > { %v9956_v32 = vpack.c.bf16 %v8542_v28, %v8541_v14  ;;  %v8543_v0 = vsel %vm8415_vm6, %v8351_v21, %v8479_v1  ;;  %v8544_v22 = vsel %vm8416_vm7, %v8352_v53, %v8480_v3  ;;  %v8356_v23 = vadd.f32 %v14171_v60, %v8285_v20 }
 0x813   : > { %v9961_v25 = vpack.c.bf16 %v8544_v22, %v8543_v0  ;;  %v8545_v13 = vsel %vm8417_vm8, %v8353_v40, %v8481_v33  ;;  %v8546_v47 = vsel %vm8418_vm9, %v8354_v63, %v8482_v15  ;;  %v8357_v58 = vadd.f32 %v14171_v60, %v8286_v8 }
 0x814   : > { %10008 = vst [vmem:[%s11396_s30 + $0xd0] sm:$0xff] %v9956_v32   ;;  %v8358_v11 = vadd.f32 %v14171_v60, %v8287_v7  ;;  %v8359_v37 = vadd.f32 %v14171_v60, %v8288_v62  ;;  %v9966_v61 = vpack.c.bf16 %v8546_v47, %v8545_v13  ;;  %vm8419_vm10 = vcmp.ge.f32.partialorder %v8355_v30, 0.0 }
 0x815   : > { %10009 = vst [vmem:[%s11396_s30 + $0xd8] sm:$0xff] %v9961_v25   ;;  %vm8420_vm11 = vcmp.ge.f32.partialorder %v8356_v23, 0.0  ;;  %v8483_v54 = vmul.f32 0.25, %v8355_v30  ;;  %v8484_v34 = vmul.f32 0.25, %v8356_v23  ;;  %vm8421_vm12 = vcmp.ge.f32.partialorder %v8357_v58, 0.0 }
 0x816   : > { %vm8422_vm13 = vcmp.ge.f32.partialorder %v8358_v11, 0.0  ;;  %v8485_v56 = vmul.f32 0.25, %v8357_v58  ;;  %10010 = vst [vmem:[%s11396_s30 + $0xe0] sm:$0xff] %v9966_v61   ;;  %v8486_v10 = vmul.f32 0.25, %v8358_v11  ;;  %v8360_v18 = vadd.f32 %v14171_v60, %v8289_v55 }
 0x817   : > { %v8547_v24 = vsel %vm8419_vm10, %v8355_v30, %v8483_v54  ;;  %vm8423_vm14 = vcmp.ge.f32.partialorder %v8359_v37, 0.0  ;;  %v8548_v38 = vsel %vm8420_vm11, %v8356_v23, %v8484_v34  ;;  %v8487_v36 = vmul.f32 0.25, %v8359_v37 }
 0x818   : > { %v8549_v6 = vsel %vm8421_vm12, %v8357_v58, %v8485_v56  ;;  %v9971_v16 = vpack.c.bf16 %v8548_v38, %v8547_v24  ;;  %v8550_v57 = vsel %vm8422_vm13, %v8358_v11, %v8486_v10  ;;  %vm8424_vm15 = vcmp.ge.f32.partialorder %v8360_v18, 0.0 }
 0x819   : > { %v8488_v50 = vmul.f32 0.25, %v8360_v18  ;;  %v9976_v26 = vpack.c.bf16 %v8550_v57, %v8549_v6  ;;  %v8551_v29 = vsel %vm8423_vm14, %v8359_v37, %v8487_v36 }
 0x81a   : > { %10011 = vst [vmem:[%s11396_s30 + $0xe8] sm:$0xff] %v9971_v16  }
 0x81b   : > { %v8552_v4 = vsel %vm8424_vm15, %v8360_v18, %v8488_v50  ;;  %10012 = vst [vmem:[%s11396_s30 + $0xf0] sm:$0xff] %v9976_v26  }
 0x81c   : > { %v9981_v41 = vpack.c.bf16 %v8552_v4, %v8551_v29 }
 0x81e   : > { %10013 = vst [vmem:[%s11396_s30 + $0xf8] sm:$0xff] %v9981_v41  }
 0x81f PF: > { %s14965_s11 = sld [smem:[#allocation20_spill]]  ;;  %s14967_s14 = sld [smem:[#allocation22_spill]] }
 0x820   : > { %s14968_s2 = sld [smem:[#allocation140_spill]]  ;;  %s8887_s4 = sshll.u32 %s11396_s30, 4  ;;  %s14276_s4 = int_to_ptr.vmem [resolvable:$true] %s8887_s4 }
 0x821   : > { %s14280_s5 = scalar_lea.sflag [#allocation5], %s297_s13  ;;  %s10866_s27 = scalar_lea.vmem %s14276_s4, 4096 }
 0x822   : > { %p10867_p7 = scmp.ne.s32.totalorder %s14276_s4, %s10866_s27  ;;  %s11036_s18 = smov [#allocation11]  }
 0x823   : > { %s10870_s10 = sshll.u32 %s11036_s18, 4  ;;  %s10871_s10 = int_to_ptr.vmem [resolvable:$false] %s10870_s10 }
 0x824   : > { %s10872_s15 = scalar_lea.vmem %s10871_s10, 8192  ;;  %p10873_p12 = scmp.lt.s32.totalorder %s14276_s4, %s10871_s10 }
 0x825   : > { %s9822_s12 = sshll.u32 %s14965_s11, 12  ;;  %p14969_p9 = scmp.ne.s32.totalorder %s14967_s14, 0 }
 0x826   : > { %s14273_s9 = scalar_lea.hbm %s14968_s2, %s9822_s12  ;;  %p10874_p5 = scmp.lt.s32.totalorder %s10872_s15, %s10866_s27 }
 0x827   : > { %p10868_p13 = pnand %p10867_p7, %p14969_p9 }
 0x828   : > { %p10875_p4 = por %p10874_p5, %p10873_p12 }
 0x829   : > { %p10869_p8 = pneg %p10868_p13 }
 0x82b   : > { %p10876_p0 = pnand %p10875_p4, %p10869_p8 }
 0x82d   : > { %10879 = shalt.err (!%p10876_p0)
}
 0x82e   : > { %s10880_s6 = scalar_lea.hbm %s14273_s9, 4096  ;;  %s10884_s30 = scalar_lea.hbm %s14968_s2, 32768 }
 0x82f   : > { %p10881_p6 = scmp.ne.s32.totalorder %s14273_s9, %s10880_s6  ;;  %p10885_p3 = scmp.lt.u32.totalorder %s14273_s9, %s14968_s2 }
 0x830   : > { %p10886_p11 = scmp.lt.u32.totalorder %s10884_s30, %s10880_s6  ;;  %p10888_p7 = scmp.lt.u32.totalorder %s10880_s6, %s14273_s9 }
 0x831   : > { %p10882_p1 = pnand %p10881_p6, %p14969_p9 }
 0x832   : > { %p10887_p10 = por %p10886_p11, %p10885_p3 }
 0x833   : > { %p10883_p2 = pneg %p10882_p1 }
 0x834   : > { %p10889_p13 = por %p10888_p7, %p10887_p10 }
 0x836   : > { %p10890_p8 = pnand %p10889_p13, %p10883_p2 }
 0x838   : > { %10893 = shalt.err (!%p10890_p8)
}
 0x839   : > { %s11037_s11 = smov 64   ;;  %s11038_s24 = smov 4  }
 0x83a   : > { %10466 = dma.vmem_to_hbm [thread:$0]  (%p14969_p9), %s14276_s4, 4096, %s14273_s9, %s14280_s5, %s11037_s11, %s11037_s11, %s11038_s24  }
 0x83b PF: > { %s14970_s12 = sld [smem:[#allocation17_spill]]  ;;  %s14971_s3 = sld [smem:[#allocation23_spill]] }
 0x83c   : > { %p10491_p12 = scmp.ge.s32.totalorder %s11024_s28, 2 }
 0x841   : > { %s8902_s0 = sand.u32 1, %s14970_s12   ;;  %p14972_p5 = scmp.ne.s32.totalorder %s14971_s3, 0 }
 0x842   : > { %s8903_s27 = scalar_lea.sflag [#allocation5], %s8902_s0 }
 0x843   : > { %p10483_p4 = pnand %p10491_p12, %p14972_p5 }
 0x845   : > { %10967 = dma.done.wait (!%p10483_p4), %s8903_s27, 4096  }
 0x846   : > { %10969 = vsyncadd (!%p10483_p4), %s8903_s27, 4294963200  ;;  %s24_s28 = sadd.s32 1, %s11024_s28   ;;  %s14974_s15 = sld [smem:[#allocation18_spill]] }
 0x847   : > { %p14309_p0 = scmp.ge.s32.totalorder %s24_s28, 18   ;;  %s14975_s14 = smov %s11264_s21 }
 0x848   : > { %s14976_s9 = sld [smem:[#allocation21_spill]]  ;;  %s14977_s4 = sld [smem:[#allocation24_spill]] }
 0x849   : > { %s14978_s27 = sld [smem:[#allocation25_spill]]  ;;  %s14980_s16 = smov %s10980_s17 }
 0x84a   : > { %s14981_s17 = smov %s11261_s25  ;;  %s14982_s18 = smov %s10988_s19 }
 0x84b   : > { %s14983_s19 = smov %s10992_s20  ;;  %s14984_s20 = smov %s11318_s8 }
 0x84c   : > { %s14985_s21 = smov %s11000_s22  ;;  %s14986_s22 = smov %s11004_s23 }
 0x84d   : > { %s14987_s23 = smov %s14975_s14  ;;  %s14988_s24 = smov %s11016_s26 }
 0x84e   : > { %s14989_s25 = smov %s14976_s9  ;;  %s14990_s26 = smov %s14977_s4 }
 0x84f   :  { %23 = sbr.rel (!%p14309_p0) target bundleno = 18 (0x12), region = 110 }
 0x856   :  { %8908 = vsyncpa [#allocation4], 1 }
 0x857   :  { %8910 = vsyncpa [#allocation4 + $0x1], 1 }
 0x858   :  { %8911 = vsyncpa [#allocation7], 1 }
 0x859   :  { %8913 = vsyncpa [#allocation7 + $0x1], 1 }
 0x85a   :  { %8914 = vsyncpa [#allocation10], 1 }
 0x85b   :  { %8915 = vsyncpa [#allocation5], 1 }
 0x85c   :  { %8917 = vsyncpa [#allocation5 + $0x1], 1 }

</bundles_post_ra>
